<compile_context>
chip_gen: v6e
topology: v6e:2x2x1
jax: 0.10.0
libtpu: 0.0.40
codegen_flags: <defaults>
</compile_context>

<pallas_src>
import functools
import math

import jax
import jax.numpy as jnp
from jax.experimental import pallas as pl
from jax.experimental.pallas import tpu as pltpu

# ---------------- small synthetic wav2vec2 config ----------------
B = 2                                   # batch
L = 400                                 # raw waveform length
CONV_CFG = [(24, 10, 5), (24, 3, 2)]    # feature extractor: (dim, kernel, stride)
C0, K0, S0 = CONV_CFG[0]
C1, K1, S1 = CONV_CFG[1]
C_FEAT = C1                             # conv feature dim
T0 = (L - K0) // S0 + 1                 # frames after conv0 (= 79)
T_FEAT = (T0 - K1) // S1 + 1            # frames after conv1 (= 39)
D = 32                                  # encoder embed dim
H = 4                                   # attention heads
HD = D // H                             # head dim
FFN = 64                                # encoder FFN dim
NLAYERS = 2                             # transformer layers
POS_K = 4                               # conv positional embedding kernel (even -> SamePad drops last)
POS_GROUPS = 4
POS_PAD = POS_K // 2
EPS = 1e-5
NEG_BIG = -1e30                         # finite "-inf" for key-padding bias (NaN-safe)
INPUT_NORM = True                       # cfg['task'].normalize
OUTPUT_NORM = True                      # output_norm=True

assert L % S0 == 0 and K0 == 2 * S0, "in-kernel im2col for conv0 assumes K0 == 2*S0 and L % S0 == 0"


def _gelu(x):
    # TODO(synk): PyTorch nn.GELU / F.gelu use the exact erf form; tanh
    # approximation is used because lax.erf lowering is not guaranteed in Mosaic.
    c = math.sqrt(2.0 / math.pi)
    return 0.5 * x * (1.0 + jnp.tanh(c * (x + 0.044715 * x * x * x)))


def _mean2d(u):
    # full mean of a 2-D value via two single-axis reductions (rows all equal length)
    return jnp.mean(jnp.mean(u, axis=1, keepdims=True), axis=0, keepdims=True)


# ----------------------------- Pallas kernels -----------------------------
def _feature_extractor_kernel(wav_ref, c0w_ref, gng_ref, gnb_ref, c1w_ref,
                              flng_ref, flnb_ref, pw_ref, pb_ref, o_ref,
                              *, input_norm, eps):
    """One batch element per grid step; everything stays 2-D and VMEM-resident."""
    x = wav_ref[0].astype(jnp.float32)                          # (L//S0, S0) view of the waveform

    # optional F.layer_norm over the raw waveform (no affine).
    # NOTE: matches the reference, which normalizes the padded batch tensor as-is.
    if input_norm:
        m = _mean2d(x)
        v = _mean2d((x - m) ** 2)
        x = (x - m) * jax.lax.rsqrt(v + eps)

    # conv0 (kernel K0 = 2*S0, stride S0): rows t and t+1 of the (T0+1, S0) view form the patch
    patches0 = jnp.concatenate([x[:T0, :], x[1:T0 + 1, :]], axis=-1)            # (T0, K0)
    h = jnp.dot(patches0, c0w_ref[...], preferred_element_type=jnp.float32)     # (T0, C0)

    # GroupNorm(num_groups == channels): per-channel stats over time, affine, then GELU
    m = jnp.mean(h, axis=0, keepdims=True)
    v = jnp.mean((h - m) ** 2, axis=0, keepdims=True)
    h = (h - m) * jax.lax.rsqrt(v + eps) * gng_ref[...] + gnb_ref[...]
    h = _gelu(h)

    # conv1 (kernel K1, stride S1): strided row selection via tiny selection matmuls (no gather)
    ii = jax.lax.broadcasted_iota(jnp.int32, (T_FEAT, T0), 0)
    jj = jax.lax.broadcasted_iota(jnp.int32, (T_FEAT, T0), 1)
    cols = [jnp.dot((jj == S1 * ii + k).astype(jnp.float32), h,
                    preferred_element_type=jnp.float32) for k in range(K1)]
    patches1 = jnp.concatenate(cols, axis=-1)                                   # (T_FEAT, K1*C0)
    z = _gelu(jnp.dot(patches1, c1w_ref[...], preferred_element_type=jnp.float32))   # (T_FEAT, C1)

    # feature LayerNorm (affine, per frame over channels)
    m = jnp.mean(z, axis=-1, keepdims=True)
    v = jnp.mean((z - m) ** 2, axis=-1, keepdims=True)
    z = (z - m) * jax.lax.rsqrt(v + eps) * flng_ref[...] + flnb_ref[...]

    # post_extract_proj (dropout_input is identity in eval / freeze mode)
    o_ref[0] = jnp.dot(z, pw_ref[...], preferred_element_type=jnp.float32) + pb_ref[...]


def _encoder_kernel(xpad_ref, bias_ref, posw_ref, posb_ref, encg_ref, encb_ref,
                    wqkv_ref, bqkv_ref, wo_ref, bo_ref, ln1g_ref, ln1b_ref,
                    w1_ref, b1_ref, w2_ref, b2_ref, ln2g_ref, ln2b_ref,
                    o_ref, *, output_norm, eps):
    """Whole transformer encoder for one batch element: pos-conv + NLAYERS post-LN layers."""

    def ln(u, g, b_):
        m = jnp.mean(u, axis=-1, keepdims=True)
        v = jnp.mean((u - m) ** 2, axis=-1, keepdims=True)
        return (u - m) * jax.lax.rsqrt(v + eps) * g + b_

    xp = xpad_ref[0]                                    # (T + 2*POS_PAD, D), padded frames already zeroed
    x = xp[POS_PAD:POS_PAD + T_FEAT, :]                 # (T, D)
    bias = bias_ref[0]                                  # (1, T) additive key-padding bias

    # conv positional embedding: grouped conv as a block-diagonal matmul on in-kernel
    # shifted patches, SamePad drops the trailing output, GELU, residual add, post-LN.
    patches = jnp.concatenate([xp[k:k + T_FEAT, :] for k in range(POS_K)], axis=-1)   # (T, POS_K*D)
    pos = _gelu(jnp.dot(patches, posw_ref[...], preferred_element_type=jnp.float32)
                + posb_ref[...])
    x = ln(x + pos, encg_ref[...], encb_ref[...])

    scale = 1.0 / math.sqrt(HD)
    for l in range(NLAYERS):                            # layers unrolled, weights stay in VMEM
        # fused QKV projection: (T, D) @ (D, 3D)
        qkv = jnp.dot(x, wqkv_ref[l], preferred_element_type=jnp.float32) + bqkv_ref[l]
        heads = []
        for hh in range(H):                             # all heads handled inside one kernel
            q = qkv[:, hh * HD:(hh + 1) * HD]
            k = qkv[:, D + hh * HD:D + (hh + 1) * HD]
            v = qkv[:, 2 * D + hh * HD:2 * D + (hh + 1) * HD]
            s = jax.lax.dot_general(q, k, (((1,), (1,)), ((), ())),
                                    preferred_element_type=jnp.float32) * scale        # (T, T)
            s = s + bias
            p = jnp.exp(s - jnp.max(s, axis=-1, keepdims=True))
            p = p * pl.reciprocal(jnp.sum(p, axis=-1, keepdims=True), approx=True)
            heads.append(jnp.dot(p, v, preferred_element_type=jnp.float32))             # (T, HD)
        attn = jnp.concatenate(heads, axis=-1)                                           # (T, D)
        attn = jnp.dot(attn, wo_ref[l], preferred_element_type=jnp.float32) + bo_ref[l]
        x = ln(x + attn, ln1g_ref[l], ln1b_ref[l])
        y = _gelu(jnp.dot(x, w1_ref[l], preferred_element_type=jnp.float32) + b1_ref[l])
        y = jnp.dot(y, w2_ref[l], preferred_element_type=jnp.float32) + b2_ref[l]
        x = ln(x + y, ln2g_ref[l], ln2b_ref[l])

    if output_norm:
        # F.layer_norm(out, out.shape[1:]) -> joint normalization over (T, D), no affine
        m = _mean2d(x)
        v = _mean2d((x - m) ** 2)
        x = (x - m) * jax.lax.rsqrt(v + eps)
    o_ref[0] = x


# ----------------------------- spec / packing helpers -----------------------------
def _shared_spec(shape):
    """Whole-array VMEM block that is identical for every grid step (DMA'd once)."""
    zeros = (0,) * len(shape)
    return pl.BlockSpec(shape, lambda i: zeros)


def _conv_w_to_mat(w):
    # PyTorch Conv1d weight (C_out, C_in, K) -> matmul matrix (K*C_in, C_out)
    c_out, c_in, k = w.shape
    return jnp.transpose(w, (2, 1, 0)).reshape(k * c_in, c_out)


def _pos_conv_w_to_mat(w, groups):
    # grouped Conv1d weight (D, D//groups, K) -> block-diagonal (K*D, D) matrix
    d, cg, k = w.shape
    mat = jnp.zeros((k * d, d), jnp.float32)
    for kk in range(k):
        for g in range(groups):
            rows = slice(kk * d + g * cg, kk * d + (g + 1) * cg)
            cols = slice(g * cg, (g + 1) * cg)
            mat = mat.at[rows, cols].set(w[cols, :, kk].T)
    return mat


def _pack_encoder_params(layers):
    # stack per-layer weights along a leading layer axis and fuse Q/K/V into one matrix
    def stack(name, as_row=False):
        if as_row:
            return jnp.stack([lyr[name][None, :] for lyr in layers])
        return jnp.stack([lyr[name] for lyr in layers])

    return dict(
        wqkv=jnp.stack([jnp.concatenate([lyr["wq"], lyr["wk"], lyr["wv"]], axis=1)
                        for lyr in layers]),
        bqkv=jnp.stack([jnp.concatenate([lyr["bq"], lyr["bk"], lyr["bv"]])[None, :]
                        for lyr in layers]),
        wo=stack("wo"), bo=stack("bo", True),
        ln1_g=stack("ln1_g", True), ln1_b=stack("ln1_b", True),
        w1=stack("w1"), b1=stack("b1", True),
        w2=stack("w2"), b2=stack("b2", True),
        ln2_g=stack("ln2_g", True), ln2_b=stack("ln2_b", True),
    )


# ----------------------------- parameters -----------------------------
def init_params(key):
    keys = iter(jax.random.split(key, 32))

    def nrm(shape, scale=0.02):
        return scale * jax.random.normal(next(keys), shape, dtype=jnp.float32)

    p = {}
    # feature extractor (conv_bias=False; first block has GroupNorm)
    p["conv0_w_mat"] = _conv_w_to_mat(nrm((C0, 1, K0)))
    p["conv1_w_mat"] = _conv_w_to_mat(nrm((C1, C0, K1)))
    p["gn_g"] = jnp.ones((C0,), jnp.float32)
    p["gn_b"] = jnp.zeros((C0,), jnp.float32)
    p["feat_ln_g"] = jnp.ones((C_FEAT,), jnp.float32)
    p["feat_ln_b"] = jnp.zeros((C_FEAT,), jnp.float32)
    p["proj_w"] = nrm((C_FEAT, D))
    p["proj_b"] = jnp.zeros((D,), jnp.float32)
    # TODO(synk): weight_norm parametrization of pos_conv omitted; raw weights used directly.
    p["pos_w_mat"] = _pos_conv_w_to_mat(nrm((D, D // POS_GROUPS, POS_K)), POS_GROUPS)
    p["pos_b"] = jnp.zeros((D,), jnp.float32)
    p["enc_ln_g"] = jnp.ones((D,), jnp.float32)
    p["enc_ln_b"] = jnp.zeros((D,), jnp.float32)
    layers = []
    for _ in range(NLAYERS):
        layers.append(dict(
            wq=nrm((D, D)), bq=jnp.zeros((D,), jnp.float32),
            wk=nrm((D, D)), bk=jnp.zeros((D,), jnp.float32),
            wv=nrm((D, D)), bv=jnp.zeros((D,), jnp.float32),
            wo=nrm((D, D)), bo=jnp.zeros((D,), jnp.float32),
            ln1_g=jnp.ones((D,), jnp.float32), ln1_b=jnp.zeros((D,), jnp.float32),
            w1=nrm((D, FFN)), b1=jnp.zeros((FFN,), jnp.float32),
            w2=nrm((FFN, D)), b2=jnp.zeros((D,), jnp.float32),
            ln2_g=jnp.ones((D,), jnp.float32), ln2_b=jnp.zeros((D,), jnp.float32),
        ))
    p["layers"] = layers
    return p


# ----------------------------- forward pass -----------------------------
def wav2vec2_forward(params, wav, wav_lens):
    b, length = wav.shape

    # ---- make_masks: SpeechBrain relative lengths -> frame-level padding mask ----
    abs_len = jnp.round(wav_lens * length).astype(jnp.int32)
    lens = jnp.clip(abs_len, 0, length)
    for (_, kk, ss) in CONV_CFG:                        # downsample lengths through the conv stack
        lens = (lens - kk) // ss + 1
    feat_pad = jnp.arange(T_FEAT)[None, :] >= lens[:, None]                         # (B, T) True = pad
    valid = (~feat_pad).astype(jnp.float32)[:, :, None]                             # (B, T, 1)
    key_bias = jnp.where(feat_pad, NEG_BIG, 0.0).astype(jnp.float32)[:, None, :]    # (B, 1, T)

    # ---- fused feature extractor: ONE pallas_call, batch on a "parallel" grid ----
    wav3 = wav.astype(jnp.float32).reshape(b, length // S0, S0)
    feats = pl.pallas_call(
        functools.partial(_feature_extractor_kernel, input_norm=INPUT_NORM, eps=EPS),
        out_shape=jax.ShapeDtypeStruct((b, T_FEAT, D), jnp.float32),
        grid=(b,),
        in_specs=[
            pl.BlockSpec((1, length // S0, S0), lambda i: (i, 0, 0)),
            _shared_spec((K0, C0)),
            _shared_spec((1, C0)), _shared_spec((1, C0)),
            _shared_spec((K1 * C0, C1)),
            _shared_spec((1, C_FEAT)), _shared_spec((1, C_FEAT)),
            _shared_spec((C_FEAT, D)), _shared_spec((1, D)),
        ],
        out_specs=pl.BlockSpec((1, T_FEAT, D), lambda i: (i, 0, 0)),
        compiler_params=pltpu.CompilerParams(dimension_semantics=("parallel",)),
    )(wav3, params["conv0_w_mat"],
      params["gn_g"].reshape(1, C0), params["gn_b"].reshape(1, C0),
      params["conv1_w_mat"],
      params["feat_ln_g"].reshape(1, C_FEAT), params["feat_ln_b"].reshape(1, C_FEAT),
      params["proj_w"], params["proj_b"].reshape(1, D))

    # x[padding_mask] = 0 and zero-pad the time axis for the positional conv
    # (two tiny XLA elementwise ops; all heavy work stays inside the two kernels)
    xpad = jnp.pad(feats * valid, ((0, 0), (POS_PAD, POS_PAD), (0, 0)))

    # ---- fused transformer encoder: ONE pallas_call, batch on a "parallel" grid ----
    enc = _pack_encoder_params(params["layers"])
    out = pl.pallas_call(
        functools.partial(_encoder_kernel, output_norm=OUTPUT_NORM, eps=EPS),
        out_shape=jax.ShapeDtypeStruct((b, T_FEAT, D), jnp.float32),
        grid=(b,),
        in_specs=[
            pl.BlockSpec((1, T_FEAT + 2 * POS_PAD, D), lambda i: (i, 0, 0)),
            pl.BlockSpec((1, 1, T_FEAT), lambda i: (i, 0, 0)),
            _shared_spec((POS_K * D, D)), _shared_spec((1, D)),
            _shared_spec((1, D)), _shared_spec((1, D)),
            _shared_spec((NLAYERS, D, 3 * D)), _shared_spec((NLAYERS, 1, 3 * D)),
            _shared_spec((NLAYERS, D, D)), _shared_spec((NLAYERS, 1, D)),
            _shared_spec((NLAYERS, 1, D)), _shared_spec((NLAYERS, 1, D)),
            _shared_spec((NLAYERS, D, FFN)), _shared_spec((NLAYERS, 1, FFN)),
            _shared_spec((NLAYERS, FFN, D)), _shared_spec((NLAYERS, 1, D)),
            _shared_spec((NLAYERS, 1, D)), _shared_spec((NLAYERS, 1, D)),
        ],
        out_specs=pl.BlockSpec((1, T_FEAT, D), lambda i: (i, 0, 0)),
        compiler_params=pltpu.CompilerParams(dimension_semantics=("parallel",)),
    )(xpad, key_bias,
      params["pos_w_mat"], params["pos_b"].reshape(1, D),
      params["enc_ln_g"].reshape(1, D), params["enc_ln_b"].reshape(1, D),
      enc["wqkv"], enc["bqkv"], enc["wo"], enc["bo"],
      enc["ln1_g"], enc["ln1_b"], enc["w1"], enc["b1"],
      enc["w2"], enc["b2"], enc["ln2_g"], enc["ln2_b"])
    return out


if __name__ == "__main__":
    key = jax.random.PRNGKey(0)
    pkey, wkey = jax.random.split(key)
    params = init_params(pkey)
    wav = jax.random.normal(wkey, (B, L), dtype=jnp.float32)
    wav_lens = jnp.array([1.0, 0.7], dtype=jnp.float32)   # SpeechBrain relative lengths

    out = jax.jit(wav2vec2_forward)(params, wav, wav_lens)
    out = jax.block_until_ready(out)

    assert out.shape == (B, T_FEAT, D), out.shape
    assert bool(jnp.all(jnp.isfinite(out)))
    print("KERNEL_OK")
</pallas_src>

<mosaic_0001>
module attributes {stable_mosaic.version = 11 : i64} {
  func.func @_feature_extractor_kernel(%arg0: i32, %arg1: memref<1x80x5xf32, #tpu.memory_space<vmem>>, %arg2: memref<10x24xf32, #tpu.memory_space<vmem>>, %arg3: memref<1x24xf32, #tpu.memory_space<vmem>>, %arg4: memref<1x24xf32, #tpu.memory_space<vmem>>, %arg5: memref<72x24xf32, #tpu.memory_space<vmem>>, %arg6: memref<1x24xf32, #tpu.memory_space<vmem>>, %arg7: memref<1x24xf32, #tpu.memory_space<vmem>>, %arg8: memref<24x32xf32, #tpu.memory_space<vmem>>, %arg9: memref<1x32xf32, #tpu.memory_space<vmem>>, %arg10: memref<1x39x32xf32, #tpu.memory_space<vmem>>) attributes {dimension_semantics = [#tpu.dimension_semantics<parallel>], iteration_bounds = array<i64: 2>, scalar_prefetch = 0 : i64, scratch_operands = 0 : i64, tpu.core_type = #tpu.core_type<tc>, window_params = [{transform_indices = @transform_0, window_bounds = array<i64: 1, 80, 5>}, {pipeline_mode = #tpu.pipeline_mode<synchronous>, transform_indices = @transform_1, window_bounds = array<i64: 10, 24>}, {pipeline_mode = #tpu.pipeline_mode<synchronous>, transform_indices = @transform_2, window_bounds = array<i64: 1, 24>}, {pipeline_mode = #tpu.pipeline_mode<synchronous>, transform_indices = @transform_3, window_bounds = array<i64: 1, 24>}, {pipeline_mode = #tpu.pipeline_mode<synchronous>, transform_indices = @transform_4, window_bounds = array<i64: 72, 24>}, {pipeline_mode = #tpu.pipeline_mode<synchronous>, transform_indices = @transform_5, window_bounds = array<i64: 1, 24>}, {pipeline_mode = #tpu.pipeline_mode<synchronous>, transform_indices = @transform_6, window_bounds = array<i64: 1, 24>}, {pipeline_mode = #tpu.pipeline_mode<synchronous>, transform_indices = @transform_7, window_bounds = array<i64: 24, 32>}, {pipeline_mode = #tpu.pipeline_mode<synchronous>, transform_indices = @transform_8, window_bounds = array<i64: 1, 32>}, {transform_indices = @transform_9, window_bounds = array<i64: 1, 39, 32>}]} {
    %c0 = arith.constant 0 : index
    %c0_0 = arith.constant 0 : index
    %c0_1 = arith.constant 0 : index
    %0 = vector.load %arg1[%c0, %c0_0, %c0_1] : memref<1x80x5xf32, #tpu.memory_space<vmem>>, vector<1x80x5xf32>
    %1 = vector.shape_cast %0 : vector<1x80x5xf32> to vector<80x5xf32>
    %cst = arith.constant dense<0.000000e+00> : vector<80xf32>
    %2 = vector.multi_reduction <add>, %1, %cst [1] : vector<80x5xf32> to vector<80xf32>
    %3 = vector.shape_cast %2 : vector<80xf32> to vector<80x1xf32>
    %cst_2 = arith.constant 5.000000e+00 : f32
    %4 = vector.broadcast %cst_2 : f32 to vector<80x1xf32>
    %5 = arith.divf %3, %4 : vector<80x1xf32>
    %cst_3 = arith.constant dense<0.000000e+00> : vector<1xf32>
    %6 = vector.multi_reduction <add>, %5, %cst_3 [0] : vector<80x1xf32> to vector<1xf32>
    %7 = vector.shape_cast %6 : vector<1xf32> to vector<1x1xf32>
    %cst_4 = arith.constant 8.000000e+01 : f32
    %8 = vector.broadcast %cst_4 : f32 to vector<1x1xf32>
    %9 = arith.divf %7, %8 : vector<1x1xf32>
    %10 = vector.broadcast %9 : vector<1x1xf32> to vector<80x5xf32>
    %11 = arith.subf %1, %10 : vector<80x5xf32>
    %12 = arith.mulf %11, %11 : vector<80x5xf32>
    %cst_5 = arith.constant dense<0.000000e+00> : vector<80xf32>
    %13 = vector.multi_reduction <add>, %12, %cst_5 [1] : vector<80x5xf32> to vector<80xf32>
    %14 = vector.shape_cast %13 : vector<80xf32> to vector<80x1xf32>
    %cst_6 = arith.constant 5.000000e+00 : f32
    %15 = vector.broadcast %cst_6 : f32 to vector<80x1xf32>
    %16 = arith.divf %14, %15 : vector<80x1xf32>
    %cst_7 = arith.constant dense<0.000000e+00> : vector<1xf32>
    %17 = vector.multi_reduction <add>, %16, %cst_7 [0] : vector<80x1xf32> to vector<1xf32>
    %18 = vector.shape_cast %17 : vector<1xf32> to vector<1x1xf32>
    %cst_8 = arith.constant 8.000000e+01 : f32
    %19 = vector.broadcast %cst_8 : f32 to vector<1x1xf32>
    %20 = arith.divf %18, %19 : vector<1x1xf32>
    %21 = vector.broadcast %9 : vector<1x1xf32> to vector<80x5xf32>
    %22 = arith.subf %1, %21 : vector<80x5xf32>
    %cst_9 = arith.constant 9.99999974E-6 : f32
    %23 = vector.broadcast %cst_9 : f32 to vector<1x1xf32>
    %24 = arith.addf %20, %23 : vector<1x1xf32>
    %25 = math.rsqrt %24 : vector<1x1xf32>
    %26 = vector.broadcast %25 : vector<1x1xf32> to vector<80x5xf32>
    %27 = arith.mulf %22, %26 : vector<80x5xf32>
    %28 = vector.extract_strided_slice %27 {offsets = [0, 0], sizes = [79, 5], strides = [1, 1]} : vector<80x5xf32> to vector<79x5xf32>
    %29 = vector.extract_strided_slice %27 {offsets = [1, 0], sizes = [79, 5], strides = [1, 1]} : vector<80x5xf32> to vector<79x5xf32>
    %30 = tpu.concatenate %28, %29 in 1 : vector<79x5xf32>, vector<79x5xf32> -> vector<79x10xf32>
    %c0_10 = arith.constant 0 : index
    %c0_11 = arith.constant 0 : index
    %31 = vector.load %arg2[%c0_10, %c0_11] : memref<10x24xf32, #tpu.memory_space<vmem>>, vector<10x24xf32>
    %cst_12 = arith.constant dense<0.000000e+00> : vector<79x24xf32>
    %32 = tpu.matmul %30, %31, %cst_12 {dimension_numbers = #tpu.dot_dimension_numbers<[1], [0], [0], [1], [0, 0, 1, 1], [], []>} : vector<79x10xf32>, vector<10x24xf32>, vector<79x24xf32> -> vector<79x24xf32>
    %cst_13 = arith.constant dense<0.000000e+00> : vector<24xf32>
    %33 = vector.multi_reduction <add>, %32, %cst_13 [0] : vector<79x24xf32> to vector<24xf32>
    %34 = vector.shape_cast %33 : vector<24xf32> to vector<1x24xf32>
    %cst_14 = arith.constant 7.900000e+01 : f32
    %35 = vector.broadcast %cst_14 : f32 to vector<1x24xf32>
    %36 = arith.divf %34, %35 : vector<1x24xf32>
    %37 = vector.broadcast %36 : vector<1x24xf32> to vector<79x24xf32>
    %38 = arith.subf %32, %37 : vector<79x24xf32>
    %39 = arith.mulf %38, %38 : vector<79x24xf32>
    %cst_15 = arith.constant dense<0.000000e+00> : vector<24xf32>
    %40 = vector.multi_reduction <add>, %39, %cst_15 [0] : vector<79x24xf32> to vector<24xf32>
    %41 = vector.shape_cast %40 : vector<24xf32> to vector<1x24xf32>
    %cst_16 = arith.constant 7.900000e+01 : f32
    %42 = vector.broadcast %cst_16 : f32 to vector<1x24xf32>
    %43 = arith.divf %41, %42 : vector<1x24xf32>
    %44 = vector.broadcast %36 : vector<1x24xf32> to vector<79x24xf32>
    %45 = arith.subf %32, %44 : vector<79x24xf32>
    %cst_17 = arith.constant 9.99999974E-6 : f32
    %46 = vector.broadcast %cst_17 : f32 to vector<1x24xf32>
    %47 = arith.addf %43, %46 : vector<1x24xf32>
    %48 = math.rsqrt %47 : vector<1x24xf32>
    %49 = vector.broadcast %48 : vector<1x24xf32> to vector<79x24xf32>
    %50 = arith.mulf %45, %49 : vector<79x24xf32>
    %c0_18 = arith.constant 0 : index
    %c0_19 = arith.constant 0 : index
    %51 = vector.load %arg3[%c0_18, %c0_19] : memref<1x24xf32, #tpu.memory_space<vmem>>, vector<1x24xf32>
    %52 = vector.broadcast %51 : vector<1x24xf32> to vector<79x24xf32>
    %53 = arith.mulf %50, %52 : vector<79x24xf32>
    %c0_20 = arith.constant 0 : index
    %c0_21 = arith.constant 0 : index
    %54 = vector.load %arg4[%c0_20, %c0_21] : memref<1x24xf32, #tpu.memory_space<vmem>>, vector<1x24xf32>
    %55 = vector.broadcast %54 : vector<1x24xf32> to vector<79x24xf32>
    %56 = arith.addf %53, %55 : vector<79x24xf32>
    %cst_22 = arith.constant 5.000000e-01 : f32
    %57 = vector.broadcast %cst_22 : f32 to vector<79x24xf32>
    %58 = arith.mulf %57, %56 : vector<79x24xf32>
    %cst_23 = arith.constant 4.471500e-02 : f32
    %59 = vector.broadcast %cst_23 : f32 to vector<79x24xf32>
    %60 = arith.mulf %59, %56 : vector<79x24xf32>
    %61 = arith.mulf %60, %56 : vector<79x24xf32>
    %62 = arith.mulf %61, %56 : vector<79x24xf32>
    %63 = arith.addf %56, %62 : vector<79x24xf32>
    %cst_24 = arith.constant 0.797884583 : f32
    %64 = vector.broadcast %cst_24 : f32 to vector<79x24xf32>
    %65 = arith.mulf %64, %63 : vector<79x24xf32>
    %66 = math.tanh %65 : vector<79x24xf32>
    %cst_25 = arith.constant 1.000000e+00 : f32
    %67 = vector.broadcast %cst_25 : f32 to vector<79x24xf32>
    %68 = arith.addf %67, %66 : vector<79x24xf32>
    %69 = arith.mulf %58, %68 : vector<79x24xf32>
    %70 = tpu.iota {dimensions = array<i32: 0>} : vector<39x79xi32>
    %71 = tpu.iota {dimensions = array<i32: 1>} : vector<39x79xi32>
    %c2_i32 = arith.constant 2 : i32
    %72 = vector.broadcast %c2_i32 : i32 to vector<39x79xi32>
    %73 = arith.muli %72, %70 : vector<39x79xi32>
    %c0_i32 = arith.constant 0 : i32
    %74 = vector.broadcast %c0_i32 : i32 to vector<39x79xi32>
    %75 = arith.addi %73, %74 : vector<39x79xi32>
    %76 = arith.cmpi eq, %71, %75 : vector<39x79xi32>
    %77 = arith.extui %76 : vector<39x79xi1> to vector<39x79xi32>
    %78 = arith.sitofp %77 : vector<39x79xi32> to vector<39x79xf32>
    %cst_26 = arith.constant dense<0.000000e+00> : vector<39x24xf32>
    %79 = tpu.matmul %78, %69, %cst_26 {dimension_numbers = #tpu.dot_dimension_numbers<[1], [0], [0], [1], [0, 0, 1, 1], [], []>} : vector<39x79xf32>, vector<79x24xf32>, vector<39x24xf32> -> vector<39x24xf32>
    %c2_i32_27 = arith.constant 2 : i32
    %80 = vector.broadcast %c2_i32_27 : i32 to vector<39x79xi32>
    %81 = arith.muli %80, %70 : vector<39x79xi32>
    %c1_i32 = arith.constant 1 : i32
    %82 = vector.broadcast %c1_i32 : i32 to vector<39x79xi32>
    %83 = arith.addi %81, %82 : vector<39x79xi32>
    %84 = arith.cmpi eq, %71, %83 : vector<39x79xi32>
    %85 = arith.extui %84 : vector<39x79xi1> to vector<39x79xi32>
    %86 = arith.sitofp %85 : vector<39x79xi32> to vector<39x79xf32>
    %cst_28 = arith.constant dense<0.000000e+00> : vector<39x24xf32>
    %87 = tpu.matmul %86, %69, %cst_28 {dimension_numbers = #tpu.dot_dimension_numbers<[1], [0], [0], [1], [0, 0, 1, 1], [], []>} : vector<39x79xf32>, vector<79x24xf32>, vector<39x24xf32> -> vector<39x24xf32>
    %c2_i32_29 = arith.constant 2 : i32
    %88 = vector.broadcast %c2_i32_29 : i32 to vector<39x79xi32>
    %89 = arith.muli %88, %70 : vector<39x79xi32>
    %c2_i32_30 = arith.constant 2 : i32
    %90 = vector.broadcast %c2_i32_30 : i32 to vector<39x79xi32>
    %91 = arith.addi %89, %90 : vector<39x79xi32>
    %92 = arith.cmpi eq, %71, %91 : vector<39x79xi32>
    %93 = arith.extui %92 : vector<39x79xi1> to vector<39x79xi32>
    %94 = arith.sitofp %93 : vector<39x79xi32> to vector<39x79xf32>
    %cst_31 = arith.constant dense<0.000000e+00> : vector<39x24xf32>
    %95 = tpu.matmul %94, %69, %cst_31 {dimension_numbers = #tpu.dot_dimension_numbers<[1], [0], [0], [1], [0, 0, 1, 1], [], []>} : vector<39x79xf32>, vector<79x24xf32>, vector<39x24xf32> -> vector<39x24xf32>
    %96 = tpu.concatenate %79, %87, %95 in 1 : vector<39x24xf32>, vector<39x24xf32>, vector<39x24xf32> -> vector<39x72xf32>
    %c0_32 = arith.constant 0 : index
    %c0_33 = arith.constant 0 : index
    %97 = vector.load %arg5[%c0_32, %c0_33] : memref<72x24xf32, #tpu.memory_space<vmem>>, vector<72x24xf32>
    %cst_34 = arith.constant dense<0.000000e+00> : vector<39x24xf32>
    %98 = tpu.matmul %96, %97, %cst_34 {dimension_numbers = #tpu.dot_dimension_numbers<[1], [0], [0], [1], [0, 0, 1, 1], [], []>} : vector<39x72xf32>, vector<72x24xf32>, vector<39x24xf32> -> vector<39x24xf32>
    %cst_35 = arith.constant 5.000000e-01 : f32
    %99 = vector.broadcast %cst_35 : f32 to vector<39x24xf32>
    %100 = arith.mulf %99, %98 : vector<39x24xf32>
    %cst_36 = arith.constant 4.471500e-02 : f32
    %101 = vector.broadcast %cst_36 : f32 to vector<39x24xf32>
    %102 = arith.mulf %101, %98 : vector<39x24xf32>
    %103 = arith.mulf %102, %98 : vector<39x24xf32>
    %104 = arith.mulf %103, %98 : vector<39x24xf32>
    %105 = arith.addf %98, %104 : vector<39x24xf32>
    %cst_37 = arith.constant 0.797884583 : f32
    %106 = vector.broadcast %cst_37 : f32 to vector<39x24xf32>
    %107 = arith.mulf %106, %105 : vector<39x24xf32>
    %108 = math.tanh %107 : vector<39x24xf32>
    %cst_38 = arith.constant 1.000000e+00 : f32
    %109 = vector.broadcast %cst_38 : f32 to vector<39x24xf32>
    %110 = arith.addf %109, %108 : vector<39x24xf32>
    %111 = arith.mulf %100, %110 : vector<39x24xf32>
    %cst_39 = arith.constant dense<0.000000e+00> : vector<39xf32>
    %112 = vector.multi_reduction <add>, %111, %cst_39 [1] : vector<39x24xf32> to vector<39xf32>
    %113 = vector.shape_cast %112 : vector<39xf32> to vector<39x1xf32>
    %cst_40 = arith.constant 2.400000e+01 : f32
    %114 = vector.broadcast %cst_40 : f32 to vector<39x1xf32>
    %115 = arith.divf %113, %114 : vector<39x1xf32>
    %116 = vector.broadcast %115 : vector<39x1xf32> to vector<39x24xf32>
    %117 = arith.subf %111, %116 : vector<39x24xf32>
    %118 = arith.mulf %117, %117 : vector<39x24xf32>
    %cst_41 = arith.constant dense<0.000000e+00> : vector<39xf32>
    %119 = vector.multi_reduction <add>, %118, %cst_41 [1] : vector<39x24xf32> to vector<39xf32>
    %120 = vector.shape_cast %119 : vector<39xf32> to vector<39x1xf32>
    %cst_42 = arith.constant 2.400000e+01 : f32
    %121 = vector.broadcast %cst_42 : f32 to vector<39x1xf32>
    %122 = arith.divf %120, %121 : vector<39x1xf32>
    %123 = vector.broadcast %115 : vector<39x1xf32> to vector<39x24xf32>
    %124 = arith.subf %111, %123 : vector<39x24xf32>
    %cst_43 = arith.constant 9.99999974E-6 : f32
    %125 = vector.broadcast %cst_43 : f32 to vector<39x1xf32>
    %126 = arith.addf %122, %125 : vector<39x1xf32>
    %127 = math.rsqrt %126 : vector<39x1xf32>
    %128 = vector.broadcast %127 : vector<39x1xf32> to vector<39x24xf32>
    %129 = arith.mulf %124, %128 : vector<39x24xf32>
    %c0_44 = arith.constant 0 : index
    %c0_45 = arith.constant 0 : index
    %130 = vector.load %arg6[%c0_44, %c0_45] : memref<1x24xf32, #tpu.memory_space<vmem>>, vector<1x24xf32>
    %131 = vector.broadcast %130 : vector<1x24xf32> to vector<39x24xf32>
    %132 = arith.mulf %129, %131 : vector<39x24xf32>
    %c0_46 = arith.constant 0 : index
    %c0_47 = arith.constant 0 : index
    %133 = vector.load %arg7[%c0_46, %c0_47] : memref<1x24xf32, #tpu.memory_space<vmem>>, vector<1x24xf32>
    %134 = vector.broadcast %133 : vector<1x24xf32> to vector<39x24xf32>
    %135 = arith.addf %132, %134 : vector<39x24xf32>
    %c0_48 = arith.constant 0 : index
    %c0_49 = arith.constant 0 : index
    %136 = vector.load %arg8[%c0_48, %c0_49] : memref<24x32xf32, #tpu.memory_space<vmem>>, vector<24x32xf32>
    %cst_50 = arith.constant dense<0.000000e+00> : vector<39x32xf32>
    %137 = tpu.matmul %135, %136, %cst_50 {dimension_numbers = #tpu.dot_dimension_numbers<[1], [0], [0], [1], [0, 0, 1, 1], [], []>} : vector<39x24xf32>, vector<24x32xf32>, vector<39x32xf32> -> vector<39x32xf32>
    %c0_51 = arith.constant 0 : index
    %c0_52 = arith.constant 0 : index
    %138 = vector.load %arg9[%c0_51, %c0_52] : memref<1x32xf32, #tpu.memory_space<vmem>>, vector<1x32xf32>
    %139 = vector.broadcast %138 : vector<1x32xf32> to vector<39x32xf32>
    %140 = arith.addf %137, %139 : vector<39x32xf32>
    %c0_53 = arith.constant 0 : index
    %c0_54 = arith.constant 0 : index
    %c0_55 = arith.constant 0 : index
    %141 = vector.load %arg10[%c0_53, %c0_54, %c0_55] : memref<1x39x32xf32, #tpu.memory_space<vmem>>, vector<1x39x32xf32>
    %142 = vector.shape_cast %141 : vector<1x39x32xf32> to vector<39x32xf32>
    %143 = vector.shape_cast %140 : vector<39x32xf32> to vector<1x39x32xf32>
    tpu.vector_store %arg10[%c0_53, %c0_54, %c0_55], %143 {strides = array<i32>} : memref<1x39x32xf32, #tpu.memory_space<vmem>>, vector<1x39x32xf32>,
    return
  }
  func.func @transform_0(%arg0: i32) -> (i32, i32, i32) {
    %c0_i32 = arith.constant 0 : i32
    %c0_i32_0 = arith.constant 0 : i32
    %c0_i32_1 = arith.constant 0 : i32
    return %arg0, %c0_i32, %c0_i32_0 : i32, i32, i32
  }
  func.func @transform_1(%arg0: i32) -> (i32, i32) {
    %c0_i32 = arith.constant 0 : i32
    %c0_i32_0 = arith.constant 0 : i32
    %c0_i32_1 = arith.constant 0 : i32
    return %c0_i32, %c0_i32_0 : i32, i32
  }
  func.func @transform_2(%arg0: i32) -> (i32, i32) {
    %c0_i32 = arith.constant 0 : i32
    %c0_i32_0 = arith.constant 0 : i32
    %c0_i32_1 = arith.constant 0 : i32
    return %c0_i32, %c0_i32_0 : i32, i32
  }
  func.func @transform_3(%arg0: i32) -> (i32, i32) {
    %c0_i32 = arith.constant 0 : i32
    %c0_i32_0 = arith.constant 0 : i32
    %c0_i32_1 = arith.constant 0 : i32
    return %c0_i32, %c0_i32_0 : i32, i32
  }
  func.func @transform_4(%arg0: i32) -> (i32, i32) {
    %c0_i32 = arith.constant 0 : i32
    %c0_i32_0 = arith.constant 0 : i32
    %c0_i32_1 = arith.constant 0 : i32
    return %c0_i32, %c0_i32_0 : i32, i32
  }
  func.func @transform_5(%arg0: i32) -> (i32, i32) {
    %c0_i32 = arith.constant 0 : i32
    %c0_i32_0 = arith.constant 0 : i32
    %c0_i32_1 = arith.constant 0 : i32
    return %c0_i32, %c0_i32_0 : i32, i32
  }
  func.func @transform_6(%arg0: i32) -> (i32, i32) {
    %c0_i32 = arith.constant 0 : i32
    %c0_i32_0 = arith.constant 0 : i32
    %c0_i32_1 = arith.constant 0 : i32
    return %c0_i32, %c0_i32_0 : i32, i32
  }
  func.func @transform_7(%arg0: i32) -> (i32, i32) {
    %c0_i32 = arith.constant 0 : i32
    %c0_i32_0 = arith.constant 0 : i32
    %c0_i32_1 = arith.constant 0 : i32
    return %c0_i32, %c0_i32_0 : i32, i32
  }
  func.func @transform_8(%arg0: i32) -> (i32, i32) {
    %c0_i32 = arith.constant 0 : i32
    %c0_i32_0 = arith.constant 0 : i32
    %c0_i32_1 = arith.constant 0 : i32
    return %c0_i32, %c0_i32_0 : i32, i32
  }
  func.func @transform_9(%arg0: i32) -> (i32, i32, i32) {
    %c0_i32 = arith.constant 0 : i32
    %c0_i32_0 = arith.constant 0 : i32
    %c0_i32_1 = arith.constant 0 : i32
    return %arg0, %c0_i32, %c0_i32_0 : i32, i32, i32
  }
}

module attributes {stable_mosaic.version = 11 : i64} {
  func.func @_encoder_kernel(%arg0: i32, %arg1: memref<1x43x32xf32, #tpu.memory_space<vmem>>, %arg2: memref<1x1x39xf32, #tpu.memory_space<vmem>>, %arg3: memref<128x32xf32, #tpu.memory_space<vmem>>, %arg4: memref<1x32xf32, #tpu.memory_space<vmem>>, %arg5: memref<1x32xf32, #tpu.memory_space<vmem>>, %arg6: memref<1x32xf32, #tpu.memory_space<vmem>>, %arg7: memref<2x32x96xf32, #tpu.memory_space<vmem>>, %arg8: memref<2x1x96xf32, #tpu.memory_space<vmem>>, %arg9: memref<2x32x32xf32, #tpu.memory_space<vmem>>, %arg10: memref<2x1x32xf32, #tpu.memory_space<vmem>>, %arg11: memref<2x1x32xf32, #tpu.memory_space<vmem>>, %arg12: memref<2x1x32xf32, #tpu.memory_space<vmem>>, %arg13: memref<2x32x64xf32, #tpu.memory_space<vmem>>, %arg14: memref<2x1x64xf32, #tpu.memory_space<vmem>>, %arg15: memref<2x64x32xf32, #tpu.memory_space<vmem>>, %arg16: memref<2x1x32xf32, #tpu.memory_space<vmem>>, %arg17: memref<2x1x32xf32, #tpu.memory_space<vmem>>, %arg18: memref<2x1x32xf32, #tpu.memory_space<vmem>>, %arg19: memref<1x39x32xf32, #tpu.memory_space<vmem>>) attributes {dimension_semantics = [#tpu.dimension_semantics<parallel>], iteration_bounds = array<i64: 2>, scalar_prefetch = 0 : i64, scratch_operands = 0 : i64, tpu.core_type = #tpu.core_type<tc>, window_params = [{transform_indices = @transform_0, window_bounds = array<i64: 1, 43, 32>}, {transform_indices = @transform_1, window_bounds = array<i64: 1, 1, 39>}, {pipeline_mode = #tpu.pipeline_mode<synchronous>, transform_indices = @transform_2, window_bounds = array<i64: 128, 32>}, {pipeline_mode = #tpu.pipeline_mode<synchronous>, transform_indices = @transform_3, window_bounds = array<i64: 1, 32>}, {pipeline_mode = #tpu.pipeline_mode<synchronous>, transform_indices = @transform_4, window_bounds = array<i64: 1, 32>}, {pipeline_mode = #tpu.pipeline_mode<synchronous>, transform_indices = @transform_5, window_bounds = array<i64: 1, 32>}, {pipeline_mode = #tpu.pipeline_mode<synchronous>, transform_indices = @transform_6, window_bounds = array<i64: 2, 32, 96>}, {pipeline_mode = #tpu.pipeline_mode<synchronous>, transform_indices = @transform_7, window_bounds = array<i64: 2, 1, 96>}, {pipeline_mode = #tpu.pipeline_mode<synchronous>, transform_indices = @transform_8, window_bounds = array<i64: 2, 32, 32>}, {pipeline_mode = #tpu.pipeline_mode<synchronous>, transform_indices = @transform_9, window_bounds = array<i64: 2, 1, 32>}, {pipeline_mode = #tpu.pipeline_mode<synchronous>, transform_indices = @transform_10, window_bounds = array<i64: 2, 1, 32>}, {pipeline_mode = #tpu.pipeline_mode<synchronous>, transform_indices = @transform_11, window_bounds = array<i64: 2, 1, 32>}, {pipeline_mode = #tpu.pipeline_mode<synchronous>, transform_indices = @transform_12, window_bounds = array<i64: 2, 32, 64>}, {pipeline_mode = #tpu.pipeline_mode<synchronous>, transform_indices = @transform_13, window_bounds = array<i64: 2, 1, 64>}, {pipeline_mode = #tpu.pipeline_mode<synchronous>, transform_indices = @transform_14, window_bounds = array<i64: 2, 64, 32>}, {pipeline_mode = #tpu.pipeline_mode<synchronous>, transform_indices = @transform_15, window_bounds = array<i64: 2, 1, 32>}, {pipeline_mode = #tpu.pipeline_mode<synchronous>, transform_indices = @transform_16, window_bounds = array<i64: 2, 1, 32>}, {pipeline_mode = #tpu.pipeline_mode<synchronous>, transform_indices = @transform_17, window_bounds = array<i64: 2, 1, 32>}, {transform_indices = @transform_18, window_bounds = array<i64: 1, 39, 32>}]} {
    %c0 = arith.constant 0 : index
    %c0_0 = arith.constant 0 : index
    %c0_1 = arith.constant 0 : index
    %0 = vector.load %arg1[%c0, %c0_0, %c0_1] : memref<1x43x32xf32, #tpu.memory_space<vmem>>, vector<1x43x32xf32>
    %1 = vector.shape_cast %0 : vector<1x43x32xf32> to vector<43x32xf32>
    %2 = vector.extract_strided_slice %1 {offsets = [2, 0], sizes = [39, 32], strides = [1, 1]} : vector<43x32xf32> to vector<39x32xf32>
    %c0_2 = arith.constant 0 : index
    %c0_3 = arith.constant 0 : index
    %c0_4 = arith.constant 0 : index
    %3 = vector.load %arg2[%c0_2, %c0_3, %c0_4] : memref<1x1x39xf32, #tpu.memory_space<vmem>>, vector<1x1x39xf32>
    %4 = vector.shape_cast %3 : vector<1x1x39xf32> to vector<1x39xf32>
    %5 = vector.extract_strided_slice %1 {offsets = [0, 0], sizes = [39, 32], strides = [1, 1]} : vector<43x32xf32> to vector<39x32xf32>
    %6 = vector.extract_strided_slice %1 {offsets = [1, 0], sizes = [39, 32], strides = [1, 1]} : vector<43x32xf32> to vector<39x32xf32>
    %7 = vector.extract_strided_slice %1 {offsets = [2, 0], sizes = [39, 32], strides = [1, 1]} : vector<43x32xf32> to vector<39x32xf32>
    %8 = vector.extract_strided_slice %1 {offsets = [3, 0], sizes = [39, 32], strides = [1, 1]} : vector<43x32xf32> to vector<39x32xf32>
    %9 = tpu.concatenate %5, %6, %7, %8 in 1 : vector<39x32xf32>, vector<39x32xf32>, vector<39x32xf32>, vector<39x32xf32> -> vector<39x128xf32>
    %c0_5 = arith.constant 0 : index
    %c0_6 = arith.constant 0 : index
    %10 = vector.load %arg3[%c0_5, %c0_6] : memref<128x32xf32, #tpu.memory_space<vmem>>, vector<128x32xf32>
    %cst = arith.constant dense<0.000000e+00> : vector<39x32xf32>
    %11 = tpu.matmul %9, %10, %cst {dimension_numbers = #tpu.dot_dimension_numbers<[1], [0], [0], [1], [0, 0, 1, 1], [], []>} : vector<39x128xf32>, vector<128x32xf32>, vector<39x32xf32> -> vector<39x32xf32>
    %c0_7 = arith.constant 0 : index
    %c0_8 = arith.constant 0 : index
    %12 = vector.load %arg4[%c0_7, %c0_8] : memref<1x32xf32, #tpu.memory_space<vmem>>, vector<1x32xf32>
    %13 = vector.broadcast %12 : vector<1x32xf32> to vector<39x32xf32>
    %14 = arith.addf %11, %13 : vector<39x32xf32>
    %cst_9 = arith.constant 5.000000e-01 : f32
    %15 = vector.broadcast %cst_9 : f32 to vector<39x32xf32>
    %16 = arith.mulf %15, %14 : vector<39x32xf32>
    %cst_10 = arith.constant 4.471500e-02 : f32
    %17 = vector.broadcast %cst_10 : f32 to vector<39x32xf32>
    %18 = arith.mulf %17, %14 : vector<39x32xf32>
    %19 = arith.mulf %18, %14 : vector<39x32xf32>
    %20 = arith.mulf %19, %14 : vector<39x32xf32>
    %21 = arith.addf %14, %20 : vector<39x32xf32>
    %cst_11 = arith.constant 0.797884583 : f32
    %22 = vector.broadcast %cst_11 : f32 to vector<39x32xf32>
    %23 = arith.mulf %22, %21 : vector<39x32xf32>
    %24 = math.tanh %23 : vector<39x32xf32>
    %cst_12 = arith.constant 1.000000e+00 : f32
    %25 = vector.broadcast %cst_12 : f32 to vector<39x32xf32>
    %26 = arith.addf %25, %24 : vector<39x32xf32>
    %27 = arith.mulf %16, %26 : vector<39x32xf32>
    %28 = arith.addf %2, %27 : vector<39x32xf32>
    %c0_13 = arith.constant 0 : index
    %c0_14 = arith.constant 0 : index
    %29 = vector.load %arg5[%c0_13, %c0_14] : memref<1x32xf32, #tpu.memory_space<vmem>>, vector<1x32xf32>
    %c0_15 = arith.constant 0 : index
    %c0_16 = arith.constant 0 : index
    %30 = vector.load %arg6[%c0_15, %c0_16] : memref<1x32xf32, #tpu.memory_space<vmem>>, vector<1x32xf32>
    %cst_17 = arith.constant dense<0.000000e+00> : vector<39xf32>
    %31 = vector.multi_reduction <add>, %28, %cst_17 [1] : vector<39x32xf32> to vector<39xf32>
    %32 = vector.shape_cast %31 : vector<39xf32> to vector<39x1xf32>
    %cst_18 = arith.constant 3.200000e+01 : f32
    %33 = vector.broadcast %cst_18 : f32 to vector<39x1xf32>
    %34 = arith.divf %32, %33 : vector<39x1xf32>
    %35 = vector.broadcast %34 : vector<39x1xf32> to vector<39x32xf32>
    %36 = arith.subf %28, %35 : vector<39x32xf32>
    %37 = arith.mulf %36, %36 : vector<39x32xf32>
    %cst_19 = arith.constant dense<0.000000e+00> : vector<39xf32>
    %38 = vector.multi_reduction <add>, %37, %cst_19 [1] : vector<39x32xf32> to vector<39xf32>
    %39 = vector.shape_cast %38 : vector<39xf32> to vector<39x1xf32>
    %cst_20 = arith.constant 3.200000e+01 : f32
    %40 = vector.broadcast %cst_20 : f32 to vector<39x1xf32>
    %41 = arith.divf %39, %40 : vector<39x1xf32>
    %42 = vector.broadcast %34 : vector<39x1xf32> to vector<39x32xf32>
    %43 = arith.subf %28, %42 : vector<39x32xf32>
    %cst_21 = arith.constant 9.99999974E-6 : f32
    %44 = vector.broadcast %cst_21 : f32 to vector<39x1xf32>
    %45 = arith.addf %41, %44 : vector<39x1xf32>
    %46 = math.rsqrt %45 : vector<39x1xf32>
    %47 = vector.broadcast %46 : vector<39x1xf32> to vector<39x32xf32>
    %48 = arith.mulf %43, %47 : vector<39x32xf32>
    %49 = vector.broadcast %29 : vector<1x32xf32> to vector<39x32xf32>
    %50 = arith.mulf %48, %49 : vector<39x32xf32>
    %51 = vector.broadcast %30 : vector<1x32xf32> to vector<39x32xf32>
    %52 = arith.addf %50, %51 : vector<39x32xf32>
    %c0_22 = arith.constant 0 : index
    %c0_23 = arith.constant 0 : index
    %c0_24 = arith.constant 0 : index
    %53 = vector.load %arg7[%c0_22, %c0_23, %c0_24] : memref<2x32x96xf32, #tpu.memory_space<vmem>>, vector<1x32x96xf32>
    %54 = vector.shape_cast %53 : vector<1x32x96xf32> to vector<32x96xf32>
    %cst_25 = arith.constant dense<0.000000e+00> : vector<39x96xf32>
    %55 = tpu.matmul %52, %54, %cst_25 {dimension_numbers = #tpu.dot_dimension_numbers<[1], [0], [0], [1], [0, 0, 1, 1], [], []>} : vector<39x32xf32>, vector<32x96xf32>, vector<39x96xf32> -> vector<39x96xf32>
    %c0_26 = arith.constant 0 : index
    %c0_27 = arith.constant 0 : index
    %c0_28 = arith.constant 0 : index
    %56 = vector.load %arg8[%c0_26, %c0_27, %c0_28] : memref<2x1x96xf32, #tpu.memory_space<vmem>>, vector<1x1x96xf32>
    %57 = vector.shape_cast %56 : vector<1x1x96xf32> to vector<1x96xf32>
    %58 = vector.broadcast %57 : vector<1x96xf32> to vector<39x96xf32>
    %59 = arith.addf %55, %58 : vector<39x96xf32>
    %60 = vector.extract_strided_slice %59 {offsets = [0, 0], sizes = [39, 8], strides = [1, 1]} : vector<39x96xf32> to vector<39x8xf32>
    %61 = vector.extract_strided_slice %59 {offsets = [0, 32], sizes = [39, 8], strides = [1, 1]} : vector<39x96xf32> to vector<39x8xf32>
    %62 = vector.extract_strided_slice %59 {offsets = [0, 64], sizes = [39, 8], strides = [1, 1]} : vector<39x96xf32> to vector<39x8xf32>
    %cst_29 = arith.constant dense<0.000000e+00> : vector<39x39xf32>
    %63 = tpu.matmul %60, %61, %cst_29 {dimension_numbers = #tpu.dot_dimension_numbers<[1], [1], [0], [0], [0, 0, 1, 0], [], []>} : vector<39x8xf32>, vector<39x8xf32>, vector<39x39xf32> -> vector<39x39xf32>
    %cst_30 = arith.constant 0.353553385 : f32
    %64 = vector.broadcast %cst_30 : f32 to vector<39x39xf32>
    %65 = arith.mulf %63, %64 : vector<39x39xf32>
    %66 = vector.broadcast %4 : vector<1x39xf32> to vector<39x39xf32>
    %67 = arith.addf %65, %66 : vector<39x39xf32>
    %cst_31 = arith.constant dense<0xFF800000> : vector<39xf32>
    %68 = vector.multi_reduction <maximumf>, %67, %cst_31 [1] : vector<39x39xf32> to vector<39xf32>
    %69 = vector.shape_cast %68 : vector<39xf32> to vector<39x1xf32>
    %70 = vector.broadcast %69 : vector<39x1xf32> to vector<39x39xf32>
    %71 = arith.subf %67, %70 : vector<39x39xf32>
    %72 = math.exp %71 : vector<39x39xf32>
    %cst_32 = arith.constant dense<0.000000e+00> : vector<39xf32>
    %73 = vector.multi_reduction <add>, %72, %cst_32 [1] : vector<39x39xf32> to vector<39xf32>
    %74 = vector.shape_cast %73 : vector<39xf32> to vector<39x1xf32>
    %75 = tpu.reciprocal %74 {approx = true} : vector<39x1xf32> -> vector<39x1xf32>
    %76 = vector.broadcast %75 : vector<39x1xf32> to vector<39x39xf32>
    %77 = arith.mulf %72, %76 : vector<39x39xf32>
    %cst_33 = arith.constant dense<0.000000e+00> : vector<39x8xf32>
    %78 = tpu.matmul %77, %62, %cst_33 {dimension_numbers = #tpu.dot_dimension_numbers<[1], [0], [0], [1], [0, 0, 1, 1], [], []>} : vector<39x39xf32>, vector<39x8xf32>, vector<39x8xf32> -> vector<39x8xf32>
    %79 = vector.extract_strided_slice %59 {offsets = [0, 8], sizes = [39, 8], strides = [1, 1]} : vector<39x96xf32> to vector<39x8xf32>
    %80 = vector.extract_strided_slice %59 {offsets = [0, 40], sizes = [39, 8], strides = [1, 1]} : vector<39x96xf32> to vector<39x8xf32>
    %81 = vector.extract_strided_slice %59 {offsets = [0, 72], sizes = [39, 8], strides = [1, 1]} : vector<39x96xf32> to vector<39x8xf32>
    %cst_34 = arith.constant dense<0.000000e+00> : vector<39x39xf32>
    %82 = tpu.matmul %79, %80, %cst_34 {dimension_numbers = #tpu.dot_dimension_numbers<[1], [1], [0], [0], [0, 0, 1, 0], [], []>} : vector<39x8xf32>, vector<39x8xf32>, vector<39x39xf32> -> vector<39x39xf32>
    %cst_35 = arith.constant 0.353553385 : f32
    %83 = vector.broadcast %cst_35 : f32 to vector<39x39xf32>
    %84 = arith.mulf %82, %83 : vector<39x39xf32>
    %85 = vector.broadcast %4 : vector<1x39xf32> to vector<39x39xf32>
    %86 = arith.addf %84, %85 : vector<39x39xf32>
    %cst_36 = arith.constant dense<0xFF800000> : vector<39xf32>
    %87 = vector.multi_reduction <maximumf>, %86, %cst_36 [1] : vector<39x39xf32> to vector<39xf32>
    %88 = vector.shape_cast %87 : vector<39xf32> to vector<39x1xf32>
    %89 = vector.broadcast %88 : vector<39x1xf32> to vector<39x39xf32>
    %90 = arith.subf %86, %89 : vector<39x39xf32>
    %91 = math.exp %90 : vector<39x39xf32>
    %cst_37 = arith.constant dense<0.000000e+00> : vector<39xf32>
    %92 = vector.multi_reduction <add>, %91, %cst_37 [1] : vector<39x39xf32> to vector<39xf32>
    %93 = vector.shape_cast %92 : vector<39xf32> to vector<39x1xf32>
    %94 = tpu.reciprocal %93 {approx = true} : vector<39x1xf32> -> vector<39x1xf32>
    %95 = vector.broadcast %94 : vector<39x1xf32> to vector<39x39xf32>
    %96 = arith.mulf %91, %95 : vector<39x39xf32>
    %cst_38 = arith.constant dense<0.000000e+00> : vector<39x8xf32>
    %97 = tpu.matmul %96, %81, %cst_38 {dimension_numbers = #tpu.dot_dimension_numbers<[1], [0], [0], [1], [0, 0, 1, 1], [], []>} : vector<39x39xf32>, vector<39x8xf32>, vector<39x8xf32> -> vector<39x8xf32>
    %98 = vector.extract_strided_slice %59 {offsets = [0, 16], sizes = [39, 8], strides = [1, 1]} : vector<39x96xf32> to vector<39x8xf32>
    %99 = vector.extract_strided_slice %59 {offsets = [0, 48], sizes = [39, 8], strides = [1, 1]} : vector<39x96xf32> to vector<39x8xf32>
    %100 = vector.extract_strided_slice %59 {offsets = [0, 80], sizes = [39, 8], strides = [1, 1]} : vector<39x96xf32> to vector<39x8xf32>
    %cst_39 = arith.constant dense<0.000000e+00> : vector<39x39xf32>
    %101 = tpu.matmul %98, %99, %cst_39 {dimension_numbers = #tpu.dot_dimension_numbers<[1], [1], [0], [0], [0, 0, 1, 0], [], []>} : vector<39x8xf32>, vector<39x8xf32>, vector<39x39xf32> -> vector<39x39xf32>
    %cst_40 = arith.constant 0.353553385 : f32
    %102 = vector.broadcast %cst_40 : f32 to vector<39x39xf32>
    %103 = arith.mulf %101, %102 : vector<39x39xf32>
    %104 = vector.broadcast %4 : vector<1x39xf32> to vector<39x39xf32>
    %105 = arith.addf %103, %104 : vector<39x39xf32>
    %cst_41 = arith.constant dense<0xFF800000> : vector<39xf32>
    %106 = vector.multi_reduction <maximumf>, %105, %cst_41 [1] : vector<39x39xf32> to vector<39xf32>
    %107 = vector.shape_cast %106 : vector<39xf32> to vector<39x1xf32>
    %108 = vector.broadcast %107 : vector<39x1xf32> to vector<39x39xf32>
    %109 = arith.subf %105, %108 : vector<39x39xf32>
    %110 = math.exp %109 : vector<39x39xf32>
    %cst_42 = arith.constant dense<0.000000e+00> : vector<39xf32>
    %111 = vector.multi_reduction <add>, %110, %cst_42 [1] : vector<39x39xf32> to vector<39xf32>
    %112 = vector.shape_cast %111 : vector<39xf32> to vector<39x1xf32>
    %113 = tpu.reciprocal %112 {approx = true} : vector<39x1xf32> -> vector<39x1xf32>
    %114 = vector.broadcast %113 : vector<39x1xf32> to vector<39x39xf32>
    %115 = arith.mulf %110, %114 : vector<39x39xf32>
    %cst_43 = arith.constant dense<0.000000e+00> : vector<39x8xf32>
    %116 = tpu.matmul %115, %100, %cst_43 {dimension_numbers = #tpu.dot_dimension_numbers<[1], [0], [0], [1], [0, 0, 1, 1], [], []>} : vector<39x39xf32>, vector<39x8xf32>, vector<39x8xf32> -> vector<39x8xf32>
    %117 = vector.extract_strided_slice %59 {offsets = [0, 24], sizes = [39, 8], strides = [1, 1]} : vector<39x96xf32> to vector<39x8xf32>
    %118 = vector.extract_strided_slice %59 {offsets = [0, 56], sizes = [39, 8], strides = [1, 1]} : vector<39x96xf32> to vector<39x8xf32>
    %119 = vector.extract_strided_slice %59 {offsets = [0, 88], sizes = [39, 8], strides = [1, 1]} : vector<39x96xf32> to vector<39x8xf32>
    %cst_44 = arith.constant dense<0.000000e+00> : vector<39x39xf32>
    %120 = tpu.matmul %117, %118, %cst_44 {dimension_numbers = #tpu.dot_dimension_numbers<[1], [1], [0], [0], [0, 0, 1, 0], [], []>} : vector<39x8xf32>, vector<39x8xf32>, vector<39x39xf32> -> vector<39x39xf32>
    %cst_45 = arith.constant 0.353553385 : f32
    %121 = vector.broadcast %cst_45 : f32 to vector<39x39xf32>
    %122 = arith.mulf %120, %121 : vector<39x39xf32>
    %123 = vector.broadcast %4 : vector<1x39xf32> to vector<39x39xf32>
    %124 = arith.addf %122, %123 : vector<39x39xf32>
    %cst_46 = arith.constant dense<0xFF800000> : vector<39xf32>
    %125 = vector.multi_reduction <maximumf>, %124, %cst_46 [1] : vector<39x39xf32> to vector<39xf32>
    %126 = vector.shape_cast %125 : vector<39xf32> to vector<39x1xf32>
    %127 = vector.broadcast %126 : vector<39x1xf32> to vector<39x39xf32>
    %128 = arith.subf %124, %127 : vector<39x39xf32>
    %129 = math.exp %128 : vector<39x39xf32>
    %cst_47 = arith.constant dense<0.000000e+00> : vector<39xf32>
    %130 = vector.multi_reduction <add>, %129, %cst_47 [1] : vector<39x39xf32> to vector<39xf32>
    %131 = vector.shape_cast %130 : vector<39xf32> to vector<39x1xf32>
    %132 = tpu.reciprocal %131 {approx = true} : vector<39x1xf32> -> vector<39x1xf32>
    %133 = vector.broadcast %132 : vector<39x1xf32> to vector<39x39xf32>
    %134 = arith.mulf %129, %133 : vector<39x39xf32>
    %cst_48 = arith.constant dense<0.000000e+00> : vector<39x8xf32>
    %135 = tpu.matmul %134, %119, %cst_48 {dimension_numbers = #tpu.dot_dimension_numbers<[1], [0], [0], [1], [0, 0, 1, 1], [], []>} : vector<39x39xf32>, vector<39x8xf32>, vector<39x8xf32> -> vector<39x8xf32>
    %136 = tpu.concatenate %78, %97, %116, %135 in 1 : vector<39x8xf32>, vector<39x8xf32>, vector<39x8xf32>, vector<39x8xf32> -> vector<39x32xf32>
    %c0_49 = arith.constant 0 : index
    %c0_50 = arith.constant 0 : index
    %c0_51 = arith.constant 0 : index
    %137 = vector.load %arg9[%c0_49, %c0_50, %c0_51] : memref<2x32x32xf32, #tpu.memory_space<vmem>>, vector<1x32x32xf32>
    %138 = vector.shape_cast %137 : vector<1x32x32xf32> to vector<32x32xf32>
    %cst_52 = arith.constant dense<0.000000e+00> : vector<39x32xf32>
    %139 = tpu.matmul %136, %138, %cst_52 {dimension_numbers = #tpu.dot_dimension_numbers<[1], [0], [0], [1], [0, 0, 1, 1], [], []>} : vector<39x32xf32>, vector<32x32xf32>, vector<39x32xf32> -> vector<39x32xf32>
    %c0_53 = arith.constant 0 : index
    %c0_54 = arith.constant 0 : index
    %c0_55 = arith.constant 0 : index
    %140 = vector.load %arg10[%c0_53, %c0_54, %c0_55] : memref<2x1x32xf32, #tpu.memory_space<vmem>>, vector<1x1x32xf32>
    %141 = vector.shape_cast %140 : vector<1x1x32xf32> to vector<1x32xf32>
    %142 = vector.broadcast %141 : vector<1x32xf32> to vector<39x32xf32>
    %143 = arith.addf %139, %142 : vector<39x32xf32>
    %144 = arith.addf %52, %143 : vector<39x32xf32>
    %c0_56 = arith.constant 0 : index
    %c0_57 = arith.constant 0 : index
    %c0_58 = arith.constant 0 : index
    %145 = vector.load %arg11[%c0_56, %c0_57, %c0_58] : memref<2x1x32xf32, #tpu.memory_space<vmem>>, vector<1x1x32xf32>
    %146 = vector.shape_cast %145 : vector<1x1x32xf32> to vector<1x32xf32>
    %c0_59 = arith.constant 0 : index
    %c0_60 = arith.constant 0 : index
    %c0_61 = arith.constant 0 : index
    %147 = vector.load %arg12[%c0_59, %c0_60, %c0_61] : memref<2x1x32xf32, #tpu.memory_space<vmem>>, vector<1x1x32xf32>
    %148 = vector.shape_cast %147 : vector<1x1x32xf32> to vector<1x32xf32>
    %cst_62 = arith.constant dense<0.000000e+00> : vector<39xf32>
    %149 = vector.multi_reduction <add>, %144, %cst_62 [1] : vector<39x32xf32> to vector<39xf32>
    %150 = vector.shape_cast %149 : vector<39xf32> to vector<39x1xf32>
    %cst_63 = arith.constant 3.200000e+01 : f32
    %151 = vector.broadcast %cst_63 : f32 to vector<39x1xf32>
    %152 = arith.divf %150, %151 : vector<39x1xf32>
    %153 = vector.broadcast %152 : vector<39x1xf32> to vector<39x32xf32>
    %154 = arith.subf %144, %153 : vector<39x32xf32>
    %155 = arith.mulf %154, %154 : vector<39x32xf32>
    %cst_64 = arith.constant dense<0.000000e+00> : vector<39xf32>
    %156 = vector.multi_reduction <add>, %155, %cst_64 [1] : vector<39x32xf32> to vector<39xf32>
    %157 = vector.shape_cast %156 : vector<39xf32> to vector<39x1xf32>
    %cst_65 = arith.constant 3.200000e+01 : f32
    %158 = vector.broadcast %cst_65 : f32 to vector<39x1xf32>
    %159 = arith.divf %157, %158 : vector<39x1xf32>
    %160 = vector.broadcast %152 : vector<39x1xf32> to vector<39x32xf32>
    %161 = arith.subf %144, %160 : vector<39x32xf32>
    %cst_66 = arith.constant 9.99999974E-6 : f32
    %162 = vector.broadcast %cst_66 : f32 to vector<39x1xf32>
    %163 = arith.addf %159, %162 : vector<39x1xf32>
    %164 = math.rsqrt %163 : vector<39x1xf32>
    %165 = vector.broadcast %164 : vector<39x1xf32> to vector<39x32xf32>
    %166 = arith.mulf %161, %165 : vector<39x32xf32>
    %167 = vector.broadcast %146 : vector<1x32xf32> to vector<39x32xf32>
    %168 = arith.mulf %166, %167 : vector<39x32xf32>
    %169 = vector.broadcast %148 : vector<1x32xf32> to vector<39x32xf32>
    %170 = arith.addf %168, %169 : vector<39x32xf32>
    %c0_67 = arith.constant 0 : index
    %c0_68 = arith.constant 0 : index
    %c0_69 = arith.constant 0 : index
    %171 = vector.load %arg13[%c0_67, %c0_68, %c0_69] : memref<2x32x64xf32, #tpu.memory_space<vmem>>, vector<1x32x64xf32>
    %172 = vector.shape_cast %171 : vector<1x32x64xf32> to vector<32x64xf32>
    %cst_70 = arith.constant dense<0.000000e+00> : vector<39x64xf32>
    %173 = tpu.matmul %170, %172, %cst_70 {dimension_numbers = #tpu.dot_dimension_numbers<[1], [0], [0], [1], [0, 0, 1, 1], [], []>} : vector<39x32xf32>, vector<32x64xf32>, vector<39x64xf32> -> vector<39x64xf32>
    %c0_71 = arith.constant 0 : index
    %c0_72 = arith.constant 0 : index
    %c0_73 = arith.constant 0 : index
    %174 = vector.load %arg14[%c0_71, %c0_72, %c0_73] : memref<2x1x64xf32, #tpu.memory_space<vmem>>, vector<1x1x64xf32>
    %175 = vector.shape_cast %174 : vector<1x1x64xf32> to vector<1x64xf32>
    %176 = vector.broadcast %175 : vector<1x64xf32> to vector<39x64xf32>
    %177 = arith.addf %173, %176 : vector<39x64xf32>
    %cst_74 = arith.constant 5.000000e-01 : f32
    %178 = vector.broadcast %cst_74 : f32 to vector<39x64xf32>
    %179 = arith.mulf %178, %177 : vector<39x64xf32>
    %cst_75 = arith.constant 4.471500e-02 : f32
    %180 = vector.broadcast %cst_75 : f32 to vector<39x64xf32>
    %181 = arith.mulf %180, %177 : vector<39x64xf32>
    %182 = arith.mulf %181, %177 : vector<39x64xf32>
    %183 = arith.mulf %182, %177 : vector<39x64xf32>
    %184 = arith.addf %177, %183 : vector<39x64xf32>
    %cst_76 = arith.constant 0.797884583 : f32
    %185 = vector.broadcast %cst_76 : f32 to vector<39x64xf32>
    %186 = arith.mulf %185, %184 : vector<39x64xf32>
    %187 = math.tanh %186 : vector<39x64xf32>
    %cst_77 = arith.constant 1.000000e+00 : f32
    %188 = vector.broadcast %cst_77 : f32 to vector<39x64xf32>
    %189 = arith.addf %188, %187 : vector<39x64xf32>
    %190 = arith.mulf %179, %189 : vector<39x64xf32>
    %c0_78 = arith.constant 0 : index
    %c0_79 = arith.constant 0 : index
    %c0_80 = arith.constant 0 : index
    %191 = vector.load %arg15[%c0_78, %c0_79, %c0_80] : memref<2x64x32xf32, #tpu.memory_space<vmem>>, vector<1x64x32xf32>
    %192 = vector.shape_cast %191 : vector<1x64x32xf32> to vector<64x32xf32>
    %cst_81 = arith.constant dense<0.000000e+00> : vector<39x32xf32>
    %193 = tpu.matmul %190, %192, %cst_81 {dimension_numbers = #tpu.dot_dimension_numbers<[1], [0], [0], [1], [0, 0, 1, 1], [], []>} : vector<39x64xf32>, vector<64x32xf32>, vector<39x32xf32> -> vector<39x32xf32>
    %c0_82 = arith.constant 0 : index
    %c0_83 = arith.constant 0 : index
    %c0_84 = arith.constant 0 : index
    %194 = vector.load %arg16[%c0_82, %c0_83, %c0_84] : memref<2x1x32xf32, #tpu.memory_space<vmem>>, vector<1x1x32xf32>
    %195 = vector.shape_cast %194 : vector<1x1x32xf32> to vector<1x32xf32>
    %196 = vector.broadcast %195 : vector<1x32xf32> to vector<39x32xf32>
    %197 = arith.addf %193, %196 : vector<39x32xf32>
    %198 = arith.addf %170, %197 : vector<39x32xf32>
    %c0_85 = arith.constant 0 : index
    %c0_86 = arith.constant 0 : index
    %c0_87 = arith.constant 0 : index
    %199 = vector.load %arg17[%c0_85, %c0_86, %c0_87] : memref<2x1x32xf32, #tpu.memory_space<vmem>>, vector<1x1x32xf32>
    %200 = vector.shape_cast %199 : vector<1x1x32xf32> to vector<1x32xf32>
    %c0_88 = arith.constant 0 : index
    %c0_89 = arith.constant 0 : index
    %c0_90 = arith.constant 0 : index
    %201 = vector.load %arg18[%c0_88, %c0_89, %c0_90] : memref<2x1x32xf32, #tpu.memory_space<vmem>>, vector<1x1x32xf32>
    %202 = vector.shape_cast %201 : vector<1x1x32xf32> to vector<1x32xf32>
    %cst_91 = arith.constant dense<0.000000e+00> : vector<39xf32>
    %203 = vector.multi_reduction <add>, %198, %cst_91 [1] : vector<39x32xf32> to vector<39xf32>
    %204 = vector.shape_cast %203 : vector<39xf32> to vector<39x1xf32>
    %cst_92 = arith.constant 3.200000e+01 : f32
    %205 = vector.broadcast %cst_92 : f32 to vector<39x1xf32>
    %206 = arith.divf %204, %205 : vector<39x1xf32>
    %207 = vector.broadcast %206 : vector<39x1xf32> to vector<39x32xf32>
    %208 = arith.subf %198, %207 : vector<39x32xf32>
    %209 = arith.mulf %208, %208 : vector<39x32xf32>
    %cst_93 = arith.constant dense<0.000000e+00> : vector<39xf32>
    %210 = vector.multi_reduction <add>, %209, %cst_93 [1] : vector<39x32xf32> to vector<39xf32>
    %211 = vector.shape_cast %210 : vector<39xf32> to vector<39x1xf32>
    %cst_94 = arith.constant 3.200000e+01 : f32
    %212 = vector.broadcast %cst_94 : f32 to vector<39x1xf32>
    %213 = arith.divf %211, %212 : vector<39x1xf32>
    %214 = vector.broadcast %206 : vector<39x1xf32> to vector<39x32xf32>
    %215 = arith.subf %198, %214 : vector<39x32xf32>
    %cst_95 = arith.constant 9.99999974E-6 : f32
    %216 = vector.broadcast %cst_95 : f32 to vector<39x1xf32>
    %217 = arith.addf %213, %216 : vector<39x1xf32>
    %218 = math.rsqrt %217 : vector<39x1xf32>
    %219 = vector.broadcast %218 : vector<39x1xf32> to vector<39x32xf32>
    %220 = arith.mulf %215, %219 : vector<39x32xf32>
    %221 = vector.broadcast %200 : vector<1x32xf32> to vector<39x32xf32>
    %222 = arith.mulf %220, %221 : vector<39x32xf32>
    %223 = vector.broadcast %202 : vector<1x32xf32> to vector<39x32xf32>
    %224 = arith.addf %222, %223 : vector<39x32xf32>
    %c1 = arith.constant 1 : index
    %c0_96 = arith.constant 0 : index
    %c0_97 = arith.constant 0 : index
    %225 = vector.load %arg7[%c1, %c0_96, %c0_97] : memref<2x32x96xf32, #tpu.memory_space<vmem>>, vector<1x32x96xf32>
    %226 = vector.shape_cast %225 : vector<1x32x96xf32> to vector<32x96xf32>
    %cst_98 = arith.constant dense<0.000000e+00> : vector<39x96xf32>
    %227 = tpu.matmul %224, %226, %cst_98 {dimension_numbers = #tpu.dot_dimension_numbers<[1], [0], [0], [1], [0, 0, 1, 1], [], []>} : vector<39x32xf32>, vector<32x96xf32>, vector<39x96xf32> -> vector<39x96xf32>
    %c1_99 = arith.constant 1 : index
    %c0_100 = arith.constant 0 : index
    %c0_101 = arith.constant 0 : index
    %228 = vector.load %arg8[%c1_99, %c0_100, %c0_101] : memref<2x1x96xf32, #tpu.memory_space<vmem>>, vector<1x1x96xf32>
    %229 = vector.shape_cast %228 : vector<1x1x96xf32> to vector<1x96xf32>
    %230 = vector.broadcast %229 : vector<1x96xf32> to vector<39x96xf32>
    %231 = arith.addf %227, %230 : vector<39x96xf32>
    %232 = vector.extract_strided_slice %231 {offsets = [0, 0], sizes = [39, 8], strides = [1, 1]} : vector<39x96xf32> to vector<39x8xf32>
    %233 = vector.extract_strided_slice %231 {offsets = [0, 32], sizes = [39, 8], strides = [1, 1]} : vector<39x96xf32> to vector<39x8xf32>
    %234 = vector.extract_strided_slice %231 {offsets = [0, 64], sizes = [39, 8], strides = [1, 1]} : vector<39x96xf32> to vector<39x8xf32>
    %cst_102 = arith.constant dense<0.000000e+00> : vector<39x39xf32>
    %235 = tpu.matmul %232, %233, %cst_102 {dimension_numbers = #tpu.dot_dimension_numbers<[1], [1], [0], [0], [0, 0, 1, 0], [], []>} : vector<39x8xf32>, vector<39x8xf32>, vector<39x39xf32> -> vector<39x39xf32>
    %cst_103 = arith.constant 0.353553385 : f32
    %236 = vector.broadcast %cst_103 : f32 to vector<39x39xf32>
    %237 = arith.mulf %235, %236 : vector<39x39xf32>
    %238 = vector.broadcast %4 : vector<1x39xf32> to vector<39x39xf32>
    %239 = arith.addf %237, %238 : vector<39x39xf32>
    %cst_104 = arith.constant dense<0xFF800000> : vector<39xf32>
    %240 = vector.multi_reduction <maximumf>, %239, %cst_104 [1] : vector<39x39xf32> to vector<39xf32>
    %241 = vector.shape_cast %240 : vector<39xf32> to vector<39x1xf32>
    %242 = vector.broadcast %241 : vector<39x1xf32> to vector<39x39xf32>
    %243 = arith.subf %239, %242 : vector<39x39xf32>
    %244 = math.exp %243 : vector<39x39xf32>
    %cst_105 = arith.constant dense<0.000000e+00> : vector<39xf32>
    %245 = vector.multi_reduction <add>, %244, %cst_105 [1] : vector<39x39xf32> to vector<39xf32>
    %246 = vector.shape_cast %245 : vector<39xf32> to vector<39x1xf32>
    %247 = tpu.reciprocal %246 {approx = true} : vector<39x1xf32> -> vector<39x1xf32>
    %248 = vector.broadcast %247 : vector<39x1xf32> to vector<39x39xf32>
    %249 = arith.mulf %244, %248 : vector<39x39xf32>
    %cst_106 = arith.constant dense<0.000000e+00> : vector<39x8xf32>
    %250 = tpu.matmul %249, %234, %cst_106 {dimension_numbers = #tpu.dot_dimension_numbers<[1], [0], [0], [1], [0, 0, 1, 1], [], []>} : vector<39x39xf32>, vector<39x8xf32>, vector<39x8xf32> -> vector<39x8xf32>
    %251 = vector.extract_strided_slice %231 {offsets = [0, 8], sizes = [39, 8], strides = [1, 1]} : vector<39x96xf32> to vector<39x8xf32>
    %252 = vector.extract_strided_slice %231 {offsets = [0, 40], sizes = [39, 8], strides = [1, 1]} : vector<39x96xf32> to vector<39x8xf32>
    %253 = vector.extract_strided_slice %231 {offsets = [0, 72], sizes = [39, 8], strides = [1, 1]} : vector<39x96xf32> to vector<39x8xf32>
    %cst_107 = arith.constant dense<0.000000e+00> : vector<39x39xf32>
    %254 = tpu.matmul %251, %252, %cst_107 {dimension_numbers = #tpu.dot_dimension_numbers<[1], [1], [0], [0], [0, 0, 1, 0], [], []>} : vector<39x8xf32>, vector<39x8xf32>, vector<39x39xf32> -> vector<39x39xf32>
    %cst_108 = arith.constant 0.353553385 : f32
    %255 = vector.broadcast %cst_108 : f32 to vector<39x39xf32>
    %256 = arith.mulf %254, %255 : vector<39x39xf32>
    %257 = vector.broadcast %4 : vector<1x39xf32> to vector<39x39xf32>
    %258 = arith.addf %256, %257 : vector<39x39xf32>
    %cst_109 = arith.constant dense<0xFF800000> : vector<39xf32>
    %259 = vector.multi_reduction <maximumf>, %258, %cst_109 [1] : vector<39x39xf32> to vector<39xf32>
    %260 = vector.shape_cast %259 : vector<39xf32> to vector<39x1xf32>
    %261 = vector.broadcast %260 : vector<39x1xf32> to vector<39x39xf32>
    %262 = arith.subf %258, %261 : vector<39x39xf32>
    %263 = math.exp %262 : vector<39x39xf32>
    %cst_110 = arith.constant dense<0.000000e+00> : vector<39xf32>
    %264 = vector.multi_reduction <add>, %263, %cst_110 [1] : vector<39x39xf32> to vector<39xf32>
    %265 = vector.shape_cast %264 : vector<39xf32> to vector<39x1xf32>
    %266 = tpu.reciprocal %265 {approx = true} : vector<39x1xf32> -> vector<39x1xf32>
    %267 = vector.broadcast %266 : vector<39x1xf32> to vector<39x39xf32>
    %268 = arith.mulf %263, %267 : vector<39x39xf32>
    %cst_111 = arith.constant dense<0.000000e+00> : vector<39x8xf32>
    %269 = tpu.matmul %268, %253, %cst_111 {dimension_numbers = #tpu.dot_dimension_numbers<[1], [0], [0], [1], [0, 0, 1, 1], [], []>} : vector<39x39xf32>, vector<39x8xf32>, vector<39x8xf32> -> vector<39x8xf32>
    %270 = vector.extract_strided_slice %231 {offsets = [0, 16], sizes = [39, 8], strides = [1, 1]} : vector<39x96xf32> to vector<39x8xf32>
    %271 = vector.extract_strided_slice %231 {offsets = [0, 48], sizes = [39, 8], strides = [1, 1]} : vector<39x96xf32> to vector<39x8xf32>
    %272 = vector.extract_strided_slice %231 {offsets = [0, 80], sizes = [39, 8], strides = [1, 1]} : vector<39x96xf32> to vector<39x8xf32>
    %cst_112 = arith.constant dense<0.000000e+00> : vector<39x39xf32>
    %273 = tpu.matmul %270, %271, %cst_112 {dimension_numbers = #tpu.dot_dimension_numbers<[1], [1], [0], [0], [0, 0, 1, 0], [], []>} : vector<39x8xf32>, vector<39x8xf32>, vector<39x39xf32> -> vector<39x39xf32>
    %cst_113 = arith.constant 0.353553385 : f32
    %274 = vector.broadcast %cst_113 : f32 to vector<39x39xf32>
    %275 = arith.mulf %273, %274 : vector<39x39xf32>
    %276 = vector.broadcast %4 : vector<1x39xf32> to vector<39x39xf32>
    %277 = arith.addf %275, %276 : vector<39x39xf32>
    %cst_114 = arith.constant dense<0xFF800000> : vector<39xf32>
    %278 = vector.multi_reduction <maximumf>, %277, %cst_114 [1] : vector<39x39xf32> to vector<39xf32>
    %279 = vector.shape_cast %278 : vector<39xf32> to vector<39x1xf32>
    %280 = vector.broadcast %279 : vector<39x1xf32> to vector<39x39xf32>
    %281 = arith.subf %277, %280 : vector<39x39xf32>
    %282 = math.exp %281 : vector<39x39xf32>
    %cst_115 = arith.constant dense<0.000000e+00> : vector<39xf32>
    %283 = vector.multi_reduction <add>, %282, %cst_115 [1] : vector<39x39xf32> to vector<39xf32>
    %284 = vector.shape_cast %283 : vector<39xf32> to vector<39x1xf32>
    %285 = tpu.reciprocal %284 {approx = true} : vector<39x1xf32> -> vector<39x1xf32>
    %286 = vector.broadcast %285 : vector<39x1xf32> to vector<39x39xf32>
    %287 = arith.mulf %282, %286 : vector<39x39xf32>
    %cst_116 = arith.constant dense<0.000000e+00> : vector<39x8xf32>
    %288 = tpu.matmul %287, %272, %cst_116 {dimension_numbers = #tpu.dot_dimension_numbers<[1], [0], [0], [1], [0, 0, 1, 1], [], []>} : vector<39x39xf32>, vector<39x8xf32>, vector<39x8xf32> -> vector<39x8xf32>
    %289 = vector.extract_strided_slice %231 {offsets = [0, 24], sizes = [39, 8], strides = [1, 1]} : vector<39x96xf32> to vector<39x8xf32>
    %290 = vector.extract_strided_slice %231 {offsets = [0, 56], sizes = [39, 8], strides = [1, 1]} : vector<39x96xf32> to vector<39x8xf32>
    %291 = vector.extract_strided_slice %231 {offsets = [0, 88], sizes = [39, 8], strides = [1, 1]} : vector<39x96xf32> to vector<39x8xf32>
    %cst_117 = arith.constant dense<0.000000e+00> : vector<39x39xf32>
    %292 = tpu.matmul %289, %290, %cst_117 {dimension_numbers = #tpu.dot_dimension_numbers<[1], [1], [0], [0], [0, 0, 1, 0], [], []>} : vector<39x8xf32>, vector<39x8xf32>, vector<39x39xf32> -> vector<39x39xf32>
    %cst_118 = arith.constant 0.353553385 : f32
    %293 = vector.broadcast %cst_118 : f32 to vector<39x39xf32>
    %294 = arith.mulf %292, %293 : vector<39x39xf32>
    %295 = vector.broadcast %4 : vector<1x39xf32> to vector<39x39xf32>
    %296 = arith.addf %294, %295 : vector<39x39xf32>
    %cst_119 = arith.constant dense<0xFF800000> : vector<39xf32>
    %297 = vector.multi_reduction <maximumf>, %296, %cst_119 [1] : vector<39x39xf32> to vector<39xf32>
    %298 = vector.shape_cast %297 : vector<39xf32> to vector<39x1xf32>
    %299 = vector.broadcast %298 : vector<39x1xf32> to vector<39x39xf32>
    %300 = arith.subf %296, %299 : vector<39x39xf32>
    %301 = math.exp %300 : vector<39x39xf32>
    %cst_120 = arith.constant dense<0.000000e+00> : vector<39xf32>
    %302 = vector.multi_reduction <add>, %301, %cst_120 [1] : vector<39x39xf32> to vector<39xf32>
    %303 = vector.shape_cast %302 : vector<39xf32> to vector<39x1xf32>
    %304 = tpu.reciprocal %303 {approx = true} : vector<39x1xf32> -> vector<39x1xf32>
    %305 = vector.broadcast %304 : vector<39x1xf32> to vector<39x39xf32>
    %306 = arith.mulf %301, %305 : vector<39x39xf32>
    %cst_121 = arith.constant dense<0.000000e+00> : vector<39x8xf32>
    %307 = tpu.matmul %306, %291, %cst_121 {dimension_numbers = #tpu.dot_dimension_numbers<[1], [0], [0], [1], [0, 0, 1, 1], [], []>} : vector<39x39xf32>, vector<39x8xf32>, vector<39x8xf32> -> vector<39x8xf32>
    %308 = tpu.concatenate %250, %269, %288, %307 in 1 : vector<39x8xf32>, vector<39x8xf32>, vector<39x8xf32>, vector<39x8xf32> -> vector<39x32xf32>
    %c1_122 = arith.constant 1 : index
    %c0_123 = arith.constant 0 : index
    %c0_124 = arith.constant 0 : index
    %309 = vector.load %arg9[%c1_122, %c0_123, %c0_124] : memref<2x32x32xf32, #tpu.memory_space<vmem>>, vector<1x32x32xf32>
    %310 = vector.shape_cast %309 : vector<1x32x32xf32> to vector<32x32xf32>
    %cst_125 = arith.constant dense<0.000000e+00> : vector<39x32xf32>
    %311 = tpu.matmul %308, %310, %cst_125 {dimension_numbers = #tpu.dot_dimension_numbers<[1], [0], [0], [1], [0, 0, 1, 1], [], []>} : vector<39x32xf32>, vector<32x32xf32>, vector<39x32xf32> -> vector<39x32xf32>
    %c1_126 = arith.constant 1 : index
    %c0_127 = arith.constant 0 : index
    %c0_128 = arith.constant 0 : index
    %312 = vector.load %arg10[%c1_126, %c0_127, %c0_128] : memref<2x1x32xf32, #tpu.memory_space<vmem>>, vector<1x1x32xf32>
    %313 = vector.shape_cast %312 : vector<1x1x32xf32> to vector<1x32xf32>
    %314 = vector.broadcast %313 : vector<1x32xf32> to vector<39x32xf32>
    %315 = arith.addf %311, %314 : vector<39x32xf32>
    %316 = arith.addf %224, %315 : vector<39x32xf32>
    %c1_129 = arith.constant 1 : index
    %c0_130 = arith.constant 0 : index
    %c0_131 = arith.constant 0 : index
    %317 = vector.load %arg11[%c1_129, %c0_130, %c0_131] : memref<2x1x32xf32, #tpu.memory_space<vmem>>, vector<1x1x32xf32>
    %318 = vector.shape_cast %317 : vector<1x1x32xf32> to vector<1x32xf32>
    %c1_132 = arith.constant 1 : index
    %c0_133 = arith.constant 0 : index
    %c0_134 = arith.constant 0 : index
    %319 = vector.load %arg12[%c1_132, %c0_133, %c0_134] : memref<2x1x32xf32, #tpu.memory_space<vmem>>, vector<1x1x32xf32>
    %320 = vector.shape_cast %319 : vector<1x1x32xf32> to vector<1x32xf32>
    %cst_135 = arith.constant dense<0.000000e+00> : vector<39xf32>
    %321 = vector.multi_reduction <add>, %316, %cst_135 [1] : vector<39x32xf32> to vector<39xf32>
    %322 = vector.shape_cast %321 : vector<39xf32> to vector<39x1xf32>
    %cst_136 = arith.constant 3.200000e+01 : f32
    %323 = vector.broadcast %cst_136 : f32 to vector<39x1xf32>
    %324 = arith.divf %322, %323 : vector<39x1xf32>
    %325 = vector.broadcast %324 : vector<39x1xf32> to vector<39x32xf32>
    %326 = arith.subf %316, %325 : vector<39x32xf32>
    %327 = arith.mulf %326, %326 : vector<39x32xf32>
    %cst_137 = arith.constant dense<0.000000e+00> : vector<39xf32>
    %328 = vector.multi_reduction <add>, %327, %cst_137 [1] : vector<39x32xf32> to vector<39xf32>
    %329 = vector.shape_cast %328 : vector<39xf32> to vector<39x1xf32>
    %cst_138 = arith.constant 3.200000e+01 : f32
    %330 = vector.broadcast %cst_138 : f32 to vector<39x1xf32>
    %331 = arith.divf %329, %330 : vector<39x1xf32>
    %332 = vector.broadcast %324 : vector<39x1xf32> to vector<39x32xf32>
    %333 = arith.subf %316, %332 : vector<39x32xf32>
    %cst_139 = arith.constant 9.99999974E-6 : f32
    %334 = vector.broadcast %cst_139 : f32 to vector<39x1xf32>
    %335 = arith.addf %331, %334 : vector<39x1xf32>
    %336 = math.rsqrt %335 : vector<39x1xf32>
    %337 = vector.broadcast %336 : vector<39x1xf32> to vector<39x32xf32>
    %338 = arith.mulf %333, %337 : vector<39x32xf32>
    %339 = vector.broadcast %318 : vector<1x32xf32> to vector<39x32xf32>
    %340 = arith.mulf %338, %339 : vector<39x32xf32>
    %341 = vector.broadcast %320 : vector<1x32xf32> to vector<39x32xf32>
    %342 = arith.addf %340, %341 : vector<39x32xf32>
    %c1_140 = arith.constant 1 : index
    %c0_141 = arith.constant 0 : index
    %c0_142 = arith.constant 0 : index
    %343 = vector.load %arg13[%c1_140, %c0_141, %c0_142] : memref<2x32x64xf32, #tpu.memory_space<vmem>>, vector<1x32x64xf32>
    %344 = vector.shape_cast %343 : vector<1x32x64xf32> to vector<32x64xf32>
    %cst_143 = arith.constant dense<0.000000e+00> : vector<39x64xf32>
    %345 = tpu.matmul %342, %344, %cst_143 {dimension_numbers = #tpu.dot_dimension_numbers<[1], [0], [0], [1], [0, 0, 1, 1], [], []>} : vector<39x32xf32>, vector<32x64xf32>, vector<39x64xf32> -> vector<39x64xf32>
    %c1_144 = arith.constant 1 : index
    %c0_145 = arith.constant 0 : index
    %c0_146 = arith.constant 0 : index
    %346 = vector.load %arg14[%c1_144, %c0_145, %c0_146] : memref<2x1x64xf32, #tpu.memory_space<vmem>>, vector<1x1x64xf32>
    %347 = vector.shape_cast %346 : vector<1x1x64xf32> to vector<1x64xf32>
    %348 = vector.broadcast %347 : vector<1x64xf32> to vector<39x64xf32>
    %349 = arith.addf %345, %348 : vector<39x64xf32>
    %cst_147 = arith.constant 5.000000e-01 : f32
    %350 = vector.broadcast %cst_147 : f32 to vector<39x64xf32>
    %351 = arith.mulf %350, %349 : vector<39x64xf32>
    %cst_148 = arith.constant 4.471500e-02 : f32
    %352 = vector.broadcast %cst_148 : f32 to vector<39x64xf32>
    %353 = arith.mulf %352, %349 : vector<39x64xf32>
    %354 = arith.mulf %353, %349 : vector<39x64xf32>
    %355 = arith.mulf %354, %349 : vector<39x64xf32>
    %356 = arith.addf %349, %355 : vector<39x64xf32>
    %cst_149 = arith.constant 0.797884583 : f32
    %357 = vector.broadcast %cst_149 : f32 to vector<39x64xf32>
    %358 = arith.mulf %357, %356 : vector<39x64xf32>
    %359 = math.tanh %358 : vector<39x64xf32>
    %cst_150 = arith.constant 1.000000e+00 : f32
    %360 = vector.broadcast %cst_150 : f32 to vector<39x64xf32>
    %361 = arith.addf %360, %359 : vector<39x64xf32>
    %362 = arith.mulf %351, %361 : vector<39x64xf32>
    %c1_151 = arith.constant 1 : index
    %c0_152 = arith.constant 0 : index
    %c0_153 = arith.constant 0 : index
    %363 = vector.load %arg15[%c1_151, %c0_152, %c0_153] : memref<2x64x32xf32, #tpu.memory_space<vmem>>, vector<1x64x32xf32>
    %364 = vector.shape_cast %363 : vector<1x64x32xf32> to vector<64x32xf32>
    %cst_154 = arith.constant dense<0.000000e+00> : vector<39x32xf32>
    %365 = tpu.matmul %362, %364, %cst_154 {dimension_numbers = #tpu.dot_dimension_numbers<[1], [0], [0], [1], [0, 0, 1, 1], [], []>} : vector<39x64xf32>, vector<64x32xf32>, vector<39x32xf32> -> vector<39x32xf32>
    %c1_155 = arith.constant 1 : index
    %c0_156 = arith.constant 0 : index
    %c0_157 = arith.constant 0 : index
    %366 = vector.load %arg16[%c1_155, %c0_156, %c0_157] : memref<2x1x32xf32, #tpu.memory_space<vmem>>, vector<1x1x32xf32>
    %367 = vector.shape_cast %366 : vector<1x1x32xf32> to vector<1x32xf32>
    %368 = vector.broadcast %367 : vector<1x32xf32> to vector<39x32xf32>
    %369 = arith.addf %365, %368 : vector<39x32xf32>
    %370 = arith.addf %342, %369 : vector<39x32xf32>
    %c1_158 = arith.constant 1 : index
    %c0_159 = arith.constant 0 : index
    %c0_160 = arith.constant 0 : index
    %371 = vector.load %arg17[%c1_158, %c0_159, %c0_160] : memref<2x1x32xf32, #tpu.memory_space<vmem>>, vector<1x1x32xf32>
    %372 = vector.shape_cast %371 : vector<1x1x32xf32> to vector<1x32xf32>
    %c1_161 = arith.constant 1 : index
    %c0_162 = arith.constant 0 : index
    %c0_163 = arith.constant 0 : index
    %373 = vector.load %arg18[%c1_161, %c0_162, %c0_163] : memref<2x1x32xf32, #tpu.memory_space<vmem>>, vector<1x1x32xf32>
    %374 = vector.shape_cast %373 : vector<1x1x32xf32> to vector<1x32xf32>
    %cst_164 = arith.constant dense<0.000000e+00> : vector<39xf32>
    %375 = vector.multi_reduction <add>, %370, %cst_164 [1] : vector<39x32xf32> to vector<39xf32>
    %376 = vector.shape_cast %375 : vector<39xf32> to vector<39x1xf32>
    %cst_165 = arith.constant 3.200000e+01 : f32
    %377 = vector.broadcast %cst_165 : f32 to vector<39x1xf32>
    %378 = arith.divf %376, %377 : vector<39x1xf32>
    %379 = vector.broadcast %378 : vector<39x1xf32> to vector<39x32xf32>
    %380 = arith.subf %370, %379 : vector<39x32xf32>
    %381 = arith.mulf %380, %380 : vector<39x32xf32>
    %cst_166 = arith.constant dense<0.000000e+00> : vector<39xf32>
    %382 = vector.multi_reduction <add>, %381, %cst_166 [1] : vector<39x32xf32> to vector<39xf32>
    %383 = vector.shape_cast %382 : vector<39xf32> to vector<39x1xf32>
    %cst_167 = arith.constant 3.200000e+01 : f32
    %384 = vector.broadcast %cst_167 : f32 to vector<39x1xf32>
    %385 = arith.divf %383, %384 : vector<39x1xf32>
    %386 = vector.broadcast %378 : vector<39x1xf32> to vector<39x32xf32>
    %387 = arith.subf %370, %386 : vector<39x32xf32>
    %cst_168 = arith.constant 9.99999974E-6 : f32
    %388 = vector.broadcast %cst_168 : f32 to vector<39x1xf32>
    %389 = arith.addf %385, %388 : vector<39x1xf32>
    %390 = math.rsqrt %389 : vector<39x1xf32>
    %391 = vector.broadcast %390 : vector<39x1xf32> to vector<39x32xf32>
    %392 = arith.mulf %387, %391 : vector<39x32xf32>
    %393 = vector.broadcast %372 : vector<1x32xf32> to vector<39x32xf32>
    %394 = arith.mulf %392, %393 : vector<39x32xf32>
    %395 = vector.broadcast %374 : vector<1x32xf32> to vector<39x32xf32>
    %396 = arith.addf %394, %395 : vector<39x32xf32>
    %cst_169 = arith.constant dense<0.000000e+00> : vector<39xf32>
    %397 = vector.multi_reduction <add>, %396, %cst_169 [1] : vector<39x32xf32> to vector<39xf32>
    %398 = vector.shape_cast %397 : vector<39xf32> to vector<39x1xf32>
    %cst_170 = arith.constant 3.200000e+01 : f32
    %399 = vector.broadcast %cst_170 : f32 to vector<39x1xf32>
    %400 = arith.divf %398, %399 : vector<39x1xf32>
    %cst_171 = arith.constant dense<0.000000e+00> : vector<1xf32>
    %401 = vector.multi_reduction <add>, %400, %cst_171 [0] : vector<39x1xf32> to vector<1xf32>
    %402 = vector.shape_cast %401 : vector<1xf32> to vector<1x1xf32>
    %cst_172 = arith.constant 3.900000e+01 : f32
    %403 = vector.broadcast %cst_172 : f32 to vector<1x1xf32>
    %404 = arith.divf %402, %403 : vector<1x1xf32>
    %405 = vector.broadcast %404 : vector<1x1xf32> to vector<39x32xf32>
    %406 = arith.subf %396, %405 : vector<39x32xf32>
    %407 = arith.mulf %406, %406 : vector<39x32xf32>
    %cst_173 = arith.constant dense<0.000000e+00> : vector<39xf32>
    %408 = vector.multi_reduction <add>, %407, %cst_173 [1] : vector<39x32xf32> to vector<39xf32>
    %409 = vector.shape_cast %408 : vector<39xf32> to vector<39x1xf32>
    %cst_174 = arith.constant 3.200000e+01 : f32
    %410 = vector.broadcast %cst_174 : f32 to vector<39x1xf32>
    %411 = arith.divf %409, %410 : vector<39x1xf32>
    %cst_175 = arith.constant dense<0.000000e+00> : vector<1xf32>
    %412 = vector.multi_reduction <add>, %411, %cst_175 [0] : vector<39x1xf32> to vector<1xf32>
    %413 = vector.shape_cast %412 : vector<1xf32> to vector<1x1xf32>
    %cst_176 = arith.constant 3.900000e+01 : f32
    %414 = vector.broadcast %cst_176 : f32 to vector<1x1xf32>
    %415 = arith.divf %413, %414 : vector<1x1xf32>
    %416 = vector.broadcast %404 : vector<1x1xf32> to vector<39x32xf32>
    %417 = arith.subf %396, %416 : vector<39x32xf32>
    %cst_177 = arith.constant 9.99999974E-6 : f32
    %418 = vector.broadcast %cst_177 : f32 to vector<1x1xf32>
    %419 = arith.addf %415, %418 : vector<1x1xf32>
    %420 = math.rsqrt %419 : vector<1x1xf32>
    %421 = vector.broadcast %420 : vector<1x1xf32> to vector<39x32xf32>
    %422 = arith.mulf %417, %421 : vector<39x32xf32>
    %c0_178 = arith.constant 0 : index
    %c0_179 = arith.constant 0 : index
    %c0_180 = arith.constant 0 : index
    %423 = vector.load %arg19[%c0_178, %c0_179, %c0_180] : memref<1x39x32xf32, #tpu.memory_space<vmem>>, vector<1x39x32xf32>
    %424 = vector.shape_cast %423 : vector<1x39x32xf32> to vector<39x32xf32>
    %425 = vector.shape_cast %422 : vector<39x32xf32> to vector<1x39x32xf32>
    tpu.vector_store %arg19[%c0_178, %c0_179, %c0_180], %425 {strides = array<i32>} : memref<1x39x32xf32, #tpu.memory_space<vmem>>, vector<1x39x32xf32>,
    return
  }
  func.func @transform_0(%arg0: i32) -> (i32, i32, i32) {
    %c0_i32 = arith.constant 0 : i32
    %c0_i32_0 = arith.constant 0 : i32
    %c0_i32_1 = arith.constant 0 : i32
    return %arg0, %c0_i32, %c0_i32_0 : i32, i32, i32
  }
  func.func @transform_1(%arg0: i32) -> (i32, i32, i32) {
    %c0_i32 = arith.constant 0 : i32
    %c0_i32_0 = arith.constant 0 : i32
    %c0_i32_1 = arith.constant 0 : i32
    return %arg0, %c0_i32, %c0_i32_0 : i32, i32, i32
  }
  func.func @transform_2(%arg0: i32) -> (i32, i32) {
    %c0_i32 = arith.constant 0 : i32
    %c0_i32_0 = arith.constant 0 : i32
    %c0_i32_1 = arith.constant 0 : i32
    return %c0_i32, %c0_i32_0 : i32, i32
  }
  func.func @transform_3(%arg0: i32) -> (i32, i32) {
    %c0_i32 = arith.constant 0 : i32
    %c0_i32_0 = arith.constant 0 : i32
    %c0_i32_1 = arith.constant 0 : i32
    return %c0_i32, %c0_i32_0 : i32, i32
  }
  func.func @transform_4(%arg0: i32) -> (i32, i32) {
    %c0_i32 = arith.constant 0 : i32
    %c0_i32_0 = arith.constant 0 : i32
    %c0_i32_1 = arith.constant 0 : i32
    return %c0_i32, %c0_i32_0 : i32, i32
  }
  func.func @transform_5(%arg0: i32) -> (i32, i32) {
    %c0_i32 = arith.constant 0 : i32
    %c0_i32_0 = arith.constant 0 : i32
    %c0_i32_1 = arith.constant 0 : i32
    return %c0_i32, %c0_i32_0 : i32, i32
  }
  func.func @transform_6(%arg0: i32) -> (i32, i32, i32) {
    %c0_i32 = arith.constant 0 : i32
    %c0_i32_0 = arith.constant 0 : i32
    %c0_i32_1 = arith.constant 0 : i32
    %c0_i32_2 = arith.constant 0 : i32
    return %c0_i32, %c0_i32_0, %c0_i32_1 : i32, i32, i32
  }
  func.func @transform_7(%arg0: i32) -> (i32, i32, i32) {
    %c0_i32 = arith.constant 0 : i32
    %c0_i32_0 = arith.constant 0 : i32
    %c0_i32_1 = arith.constant 0 : i32
    %c0_i32_2 = arith.constant 0 : i32
    return %c0_i32, %c0_i32_0, %c0_i32_1 : i32, i32, i32
  }
  func.func @transform_8(%arg0: i32) -> (i32, i32, i32) {
    %c0_i32 = arith.constant 0 : i32
    %c0_i32_0 = arith.constant 0 : i32
    %c0_i32_1 = arith.constant 0 : i32
    %c0_i32_2 = arith.constant 0 : i32
    return %c0_i32, %c0_i32_0, %c0_i32_1 : i32, i32, i32
  }
  func.func @transform_9(%arg0: i32) -> (i32, i32, i32) {
    %c0_i32 = arith.constant 0 : i32
    %c0_i32_0 = arith.constant 0 : i32
    %c0_i32_1 = arith.constant 0 : i32
    %c0_i32_2 = arith.constant 0 : i32
    return %c0_i32, %c0_i32_0, %c0_i32_1 : i32, i32, i32
  }
  func.func @transform_10(%arg0: i32) -> (i32, i32, i32) {
    %c0_i32 = arith.constant 0 : i32
    %c0_i32_0 = arith.constant 0 : i32
    %c0_i32_1 = arith.constant 0 : i32
    %c0_i32_2 = arith.constant 0 : i32
    return %c0_i32, %c0_i32_0, %c0_i32_1 : i32, i32, i32
  }
  func.func @transform_11(%arg0: i32) -> (i32, i32, i32) {
    %c0_i32 = arith.constant 0 : i32
    %c0_i32_0 = arith.constant 0 : i32
    %c0_i32_1 = arith.constant 0 : i32
    %c0_i32_2 = arith.constant 0 : i32
    return %c0_i32, %c0_i32_0, %c0_i32_1 : i32, i32, i32
  }
  func.func @transform_12(%arg0: i32) -> (i32, i32, i32) {
    %c0_i32 = arith.constant 0 : i32
    %c0_i32_0 = arith.constant 0 : i32
    %c0_i32_1 = arith.constant 0 : i32
    %c0_i32_2 = arith.constant 0 : i32
    return %c0_i32, %c0_i32_0, %c0_i32_1 : i32, i32, i32
  }
  func.func @transform_13(%arg0: i32) -> (i32, i32, i32) {
    %c0_i32 = arith.constant 0 : i32
    %c0_i32_0 = arith.constant 0 : i32
    %c0_i32_1 = arith.constant 0 : i32
    %c0_i32_2 = arith.constant 0 : i32
    return %c0_i32, %c0_i32_0, %c0_i32_1 : i32, i32, i32
  }
  func.func @transform_14(%arg0: i32) -> (i32, i32, i32) {
    %c0_i32 = arith.constant 0 : i32
    %c0_i32_0 = arith.constant 0 : i32
    %c0_i32_1 = arith.constant 0 : i32
    %c0_i32_2 = arith.constant 0 : i32
    return %c0_i32, %c0_i32_0, %c0_i32_1 : i32, i32, i32
  }
  func.func @transform_15(%arg0: i32) -> (i32, i32, i32) {
    %c0_i32 = arith.constant 0 : i32
    %c0_i32_0 = arith.constant 0 : i32
    %c0_i32_1 = arith.constant 0 : i32
    %c0_i32_2 = arith.constant 0 : i32
    return %c0_i32, %c0_i32_0, %c0_i32_1 : i32, i32, i32
  }
  func.func @transform_16(%arg0: i32) -> (i32, i32, i32) {
    %c0_i32 = arith.constant 0 : i32
    %c0_i32_0 = arith.constant 0 : i32
    %c0_i32_1 = arith.constant 0 : i32
    %c0_i32_2 = arith.constant 0 : i32
    return %c0_i32, %c0_i32_0, %c0_i32_1 : i32, i32, i32
  }
  func.func @transform_17(%arg0: i32) -> (i32, i32, i32) {
    %c0_i32 = arith.constant 0 : i32
    %c0_i32_0 = arith.constant 0 : i32
    %c0_i32_1 = arith.constant 0 : i32
    %c0_i32_2 = arith.constant 0 : i32
    return %c0_i32, %c0_i32_0, %c0_i32_1 : i32, i32, i32
  }
  func.func @transform_18(%arg0: i32) -> (i32, i32, i32) {
    %c0_i32 = arith.constant 0 : i32
    %c0_i32_0 = arith.constant 0 : i32
    %c0_i32_1 = arith.constant 0 : i32
    return %arg0, %c0_i32, %c0_i32_0 : i32, i32, i32
  }
}

</mosaic_0001>

<bundles_post_ra>
// kernel: wav2vec2_forward.2
= control target key start
LH: loop header
LB: loop body
LE: loop exit
PB: predicated region body
PF: predicated region fallthrough
CT: control target
= control target key end

     0   :  { %s2241_s30 = smov 0   ;;  %s2875_s0 = inlined_call_operand.vmem [shape: f32[2,80,5], index: 0, kind: input, shape index: {}]   ;;  %s2876_s1 = inlined_call_operand.vmem [shape: f32[10,24], index: 1, kind: input, shape index: {}]   ;;  %s2877_s2 = inlined_call_operand.vmem [shape: f32[1,24], index: 2, kind: input, shape index: {}]   ;;  %s2878_s3 = inlined_call_operand.vmem [shape: f32[1,24], index: 3, kind: input, shape index: {}]   ;;  %s2879_s4 = inlined_call_operand.vmem [shape: f32[72,24], index: 4, kind: input, shape index: {}]   ;;  %s2880_s5 = inlined_call_operand.vmem [shape: f32[1,24], index: 5, kind: input, shape index: {}]   ;;  %s2881_s6 = inlined_call_operand.vmem [shape: f32[1,24], index: 6, kind: input, shape index: {}]   ;;  %s2882_s7 = inlined_call_operand.vmem [shape: f32[24,32], index: 7, kind: input, shape index: {}]   ;;  %s2883_s8 = inlined_call_operand.vmem [shape: f32[1,32], index: 8, kind: input, shape index: {}]   ;;  %s2884_s9 = inlined_call_operand.vmem [shape: f32[2,39,32], index: 9, kind: output, shape index: {}]  }
   0x1 LB: > { %s1788_s10 = sadd.s32 4294967295, %s2184_s30   ;;  %p1792_p0 = scmp.ge.s32.totalorder %s2184_s30, 1  ;;  %s2184_s30 = sphi %s2241_s30, %s19_s30  }
   0x2   : > { %p287_p1 = scmp.lt.s32.totalorder %s2184_s30, 3 }
   0x4   : > { %p288_p2 = pnand %p1792_p0, %p287_p1 }
   0x5   : > { %p323_p3 = scmp.lt.s32.totalorder (!%p288_p2), %s1788_s10, 1  ;;  %s2186_s19 = smov (!%p288_p2), 5  }
   0x6   : > { %291 = sbr.rel (%p288_p2) target bundleno = 1921 (0x781), region = 56  ;;  %s2189_s17 = smov (!%p288_p2), 24  }
   0x7   : > { %s2190_s24 = smov (!%p288_p2), 48  }
   0xb   : > { %s2886_s10 = smov (!%p323_p3, %s1788_s10), 1  ;;  %vm343_vm0 = vcmask 39936   ;;  %vm593_vm1 = vcmask 1041408   ;;  %vm500_vm2 = vcmask 1046528   ;;  %vm562_vm3 = vcmask 80896  }
   0xc   : > { %s2119_s11 = smul.u32 80, %s2886_s10  ;;  %vm712_vm4 = vcmask 195584   ;;  %vm730_vm5 = vcmask 194560   ;;  %vm2188_vm6 = vmmov 0   ;;  %vm951_vm9 = vcmask 646144  }
   0xd   : > { %s2120_s16 = smul.u32 40, %s2886_s10 }
   0xe   : > { %s327_s14 = scalar_lea.vmem %s2875_s0, %s2119_s11 }
   0xf   : > { %v2255_v0 = vld [vmem:[%s327_s14] sm:$0xff]  ;;  %v2257_v1 = vld [vmem:[%s327_s14 + $0x10] sm:$0xff]  ;;  %v2259_v2 = vld [vmem:[%s327_s14 + $0x8] sm:$0xff]  ;;  %s332_s21 = scalar_lea.vmem %s2884_s9, %s2120_s16 }
  0x10   : > { %v344_v3 = vsel %vm343_vm0, %v2255_v0, 0.0  ;;  %v350_v4 = vsel %vm343_vm0, %v2257_v1, 0.0  ;;  %v2265_v5 = vld [vmem:[%s327_s14 + $0x18] sm:$0xff]  ;;  %v347_v6 = vsel %vm343_vm0, %v2259_v2, 0.0  ;;  %v2271_v8 = vld [vmem:[%s327_s14 + $0x20] sm:$0xff]  ;;  %v338_v9 = vld [vmem:[%s327_s14 + $0x28] sm:$0xff] }
  0x11   : > { %345 = vadd.xlane.f32.xlu0 %v344_v3  ;;  %351 = vadd.xlane.f32.xlu1 %v350_v4  ;;  %v353_v7 = vsel %vm343_vm0, %v2265_v5, 0.0  ;;  %v356_v10 = vsel %vm343_vm0, %v2271_v8, 0.0  ;;  %v359_v11 = vsel %vm343_vm0, %v338_v9, 0.0  ;;  %v2276_v12 = vld [vmem:[%s327_s14 + $0x30] sm:$0xff]  ;;  %v2278_v13 = vld [vmem:[%s327_s14 + $0x38] sm:$0xff]  ;;  %v2284_v16 = vld [vmem:[%s327_s14 + $0x40] sm:$0xff] }
  0x12   : > { %v362_v14 = vsel %vm343_vm0, %v2276_v12, 0.0  ;;  %v365_v15 = vsel %vm343_vm0, %v2278_v13, 0.0  ;;  %v2286_v17 = vld [vmem:[%s327_s14 + $0x48] sm:$0xff]  ;;  %v368_v18 = vsel %vm343_vm0, %v2284_v16, 0.0 }
  0x13   : > { %v371_v19 = vsel %vm343_vm0, %v2286_v17, 0.0 }
  0x15   : > { %348 = vadd.xlane.f32.xlu0 %v347_v6  ;;  %354 = vadd.xlane.f32.xlu1 %v353_v7 }
  0x19   : > { %357 = vadd.xlane.f32.xlu0 %v356_v10  ;;  %360 = vadd.xlane.f32.xlu1 %v359_v11 }
  0x1d   : > { %363 = vadd.xlane.f32.xlu0 %v362_v14  ;;  %366 = vadd.xlane.f32.xlu1 %v365_v15 }
  0x21   : > { %369 = vadd.xlane.f32.xlu0 %v368_v18  ;;  %372 = vadd.xlane.f32.xlu1 %v371_v19 }
  0x9a   : > { %v346_v20 = vpop.xlane.xlu0 %345  ;;  %v352_v21 = vpop.xlane.xlu1 %351 }
  0x9b   : > { %v375_v24 = vmul.f32 0.2, %v346_v20  ;;  %v377_v26 = vmul.f32 0.2, %v352_v21 }
  0x9e   : > { %v349_v22 = vpop.xlane.xlu0 %348  ;;  %v355_v23 = vpop.xlane.xlu1 %354 }
  0x9f   : > { %v376_v25 = vmul.f32 0.2, %v349_v22  ;;  %v378_v28 = vmul.f32 0.2, %v355_v23 }
  0xa1   : > { %v385_v27 = vadd.f32 %v376_v25, %v375_v24 }
  0xa2   : > { %v358_v29 = vpop.xlane.xlu0 %357  ;;  %v361_v30 = vpop.xlane.xlu1 %360 }
  0xa3   : > { %v386_v31 = vadd.f32 %v385_v27, %v377_v26  ;;  %v379_v32 = vmul.f32 0.2, %v358_v29  ;;  %v380_v34 = vmul.f32 0.2, %v361_v30 }
  0xa5   : > { %v387_v33 = vadd.f32 %v386_v31, %v378_v28 }
  0xa6   : > { %v364_v35 = vpop.xlane.xlu0 %363  ;;  %v367_v36 = vpop.xlane.xlu1 %366 }
  0xa7   : > { %v388_v37 = vadd.f32 %v387_v33, %v379_v32  ;;  %v381_v38 = vmul.f32 0.2, %v364_v35  ;;  %v382_v40 = vmul.f32 0.2, %v367_v36 }
  0xa9   : > { %v389_v39 = vadd.f32 %v388_v37, %v380_v34 }
  0xaa   : > { %v370_v41 = vpop.xlane.xlu0 %369  ;;  %v373_v42 = vpop.xlane.xlu1 %372 }
  0xab   : > { %v390_v43 = vadd.f32 %v389_v39, %v381_v38  ;;  %v383_v44 = vmul.f32 0.2, %v370_v41  ;;  %v384_v46 = vmul.f32 0.2, %v373_v42 }
  0xad   : > { %v391_v45 = vadd.f32 %v390_v43, %v382_v40 }
  0xaf   : > { %v392_v47 = vadd.f32 %v391_v45, %v383_v44 }
  0xb1   : > { %v393_v48 = vadd.f32 %v392_v47, %v384_v46 }
  0xb3   : > { %v394_v49 = vrot.slane %v393_v48, 4 }
  0xb5   : > { %v395_v50 = vadd.f32 %v394_v49, %v393_v48 }
  0xb7   : > { %v396_v51 = vrot.slane %v395_v50, 2 }
  0xb9   : > { %v397_v52 = vadd.f32 %v396_v51, %v395_v50 }
  0xbb   : > { %v398_v53 = vrot.slane %v397_v52, 1 }
  0xbd   : > { %v399_v54 = vadd.f32 %v398_v53, %v397_v52 }
  0xbf   : > { %v401_v55 = vmul.f32 0.0125, %v399_v54 }
  0xc1   : > { %v2293_v56 = vsub.f32 %v2259_v2, %v401_v55  ;;  %v2296_v57 = vsub.f32 %v2255_v0, %v401_v55  ;;  %v2299_v58 = vsub.f32 %v2265_v5, %v401_v55  ;;  %v2302_v59 = vsub.f32 %v2257_v1, %v401_v55 }
  0xc2   : > { %v2308_v62 = vsub.f32 %v338_v9, %v401_v55  ;;  %v2311_v63 = vsub.f32 %v2271_v8, %v401_v55  ;;  %v2320_v4 = vsub.f32 %v2278_v13, %v401_v55  ;;  %v2323_v5 = vsub.f32 %v2276_v12, %v401_v55 }
  0xc3   : > { %v413_v60 = vmul.f32 %v2293_v56, %v2293_v56  ;;  %v412_v61 = vmul.f32 %v2296_v57, %v2296_v57  ;;  %v415_v3 = vmul.f32 %v2299_v58, %v2299_v58  ;;  %v414_v1 = vmul.f32 %v2302_v59, %v2302_v59 }
  0xc4   : > { %v417_v8 = vmul.f32 %v2308_v62, %v2308_v62  ;;  %v416_v9 = vmul.f32 %v2311_v63, %v2311_v63  ;;  %v419_v10 = vmul.f32 %v2320_v4, %v2320_v4  ;;  %v418_v11 = vmul.f32 %v2323_v5, %v2323_v5 }
  0xc5   : > { %v425_v0 = vsel %vm343_vm0, %v413_v60, 0.0  ;;  %v422_v2 = vsel %vm343_vm0, %v412_v61, 0.0  ;;  %v431_v6 = vsel %vm343_vm0, %v415_v3, 0.0  ;;  %v428_v7 = vsel %vm343_vm0, %v414_v1, 0.0  ;;  %v560_v3 = vld [vmem:[%s2876_s1] sm:$0xff] }
  0xc6   : > { %426 = vadd.xlane.f32.xlu1 %v425_v0  ;;  %423 = vadd.xlane.f32.xlu0 %v422_v2  ;;  %v437_v12 = vsel %vm343_vm0, %v417_v8, 0.0  ;;  %v434_v13 = vsel %vm343_vm0, %v416_v9, 0.0  ;;  %v2338_v14 = vsub.f32 %v2286_v17, %v401_v55  ;;  %v2341_v15 = vsub.f32 %v2284_v16, %v401_v55  ;;  %v561_v16 = vld [vmem:[%s2876_s1 + $0x8] sm:$0x3] }
  0xc7   : > { %v443_v18 = vsel %vm343_vm0, %v419_v10, 0.0  ;;  %v440_v19 = vsel %vm343_vm0, %v418_v11, 0.0  ;;  %1935 = vmatprep.subr.msk.mxu0 %vm593_vm1, %v561_v16 }
  0xc8   : > { %v421_v20 = vmul.f32 %v2338_v14, %v2338_v14  ;;  %v420_v21 = vmul.f32 %v2341_v15, %v2341_v15  ;;  %1936 = vmatpush3.msk.msra.mxu0 %vm593_vm1, %v561_v16 }
  0xc9   : > { %1937 = vmatprep.subr.mxu0 %v560_v3 }
  0xca   : > { %432 = vadd.xlane.f32.xlu1 %v431_v6  ;;  %429 = vadd.xlane.f32.xlu0 %v428_v7  ;;  %v449_v17 = vsel %vm343_vm0, %v421_v20, 0.0  ;;  %v446_v22 = vsel %vm343_vm0, %v420_v21, 0.0 }
  0xcb   : > { %1938 = vmatpush3.msra.mxu0 %v560_v3 }
  0xce   : > { %438 = vadd.xlane.f32.xlu1 %v437_v12  ;;  %435 = vadd.xlane.f32.xlu0 %v434_v13 }
  0xd2   : > { %444 = vadd.xlane.f32.xlu1 %v443_v18  ;;  %441 = vadd.xlane.f32.xlu0 %v440_v19 }
  0xd6   : > { %450 = vadd.xlane.f32.xlu1 %v449_v17  ;;  %447 = vadd.xlane.f32.xlu0 %v446_v22 }
 0x14f   : > { %v427_v23 = vpop.xlane.xlu1 %426  ;;  %v424_v24 = vpop.xlane.xlu0 %423 }
 0x150   : > { %v453_v25 = vmul.f32 0.2, %v427_v23  ;;  %v452_v26 = vmul.f32 0.2, %v424_v24 }
 0x152   : > { %v462_v29 = vadd.f32 %v453_v25, %v452_v26 }
 0x153   : > { %v433_v27 = vpop.xlane.xlu1 %432  ;;  %v430_v28 = vpop.xlane.xlu0 %429 }
 0x154   : > { %v454_v30 = vmul.f32 0.2, %v430_v28  ;;  %v455_v31 = vmul.f32 0.2, %v433_v27 }
 0x156   : > { %v463_v32 = vadd.f32 %v462_v29, %v454_v30 }
 0x157   : > { %v439_v33 = vpop.xlane.xlu1 %438  ;;  %v436_v34 = vpop.xlane.xlu0 %435 }
 0x158   : > { %v464_v35 = vadd.f32 %v463_v32, %v455_v31  ;;  %v456_v36 = vmul.f32 0.2, %v436_v34  ;;  %v457_v37 = vmul.f32 0.2, %v439_v33 }
 0x15a   : > { %v465_v38 = vadd.f32 %v464_v35, %v456_v36 }
 0x15b   : > { %v445_v39 = vpop.xlane.xlu1 %444  ;;  %v442_v40 = vpop.xlane.xlu0 %441 }
 0x15c   : > { %v466_v41 = vadd.f32 %v465_v38, %v457_v37  ;;  %v458_v42 = vmul.f32 0.2, %v442_v40  ;;  %v459_v43 = vmul.f32 0.2, %v445_v39 }
 0x15e   : > { %v467_v44 = vadd.f32 %v466_v41, %v458_v42 }
 0x15f   : > { %v451_v45 = vpop.xlane.xlu1 %450  ;;  %v448_v46 = vpop.xlane.xlu0 %447 }
 0x160   : > { %v468_v47 = vadd.f32 %v467_v44, %v459_v43  ;;  %v460_v48 = vmul.f32 0.2, %v448_v46  ;;  %v461_v49 = vmul.f32 0.2, %v451_v45 }
 0x162   : > { %v469_v50 = vadd.f32 %v468_v47, %v460_v48  ;;  %v2187_v47 = vmov 0.0  }
 0x163   : > { %1954 = vmatprep.subr.mxu1 %v2187_v47  ;;  %1989 = vmatprep.subr.mxu0 %v2187_v47 }
 0x164   : > { %v470_v51 = vadd.f32 %v469_v50, %v461_v49  ;;  %1974 = vmatprep.mubr.msk.f32.mxu1 %vm2188_vm6, %v2187_v47 }
 0x166   : > { %v471_v52 = vrot.slane %v470_v51, 4 }
 0x168   : > { %v472_v53 = vadd.f32 %v471_v52, %v470_v51 }
 0x16a   : > { %v473_v54 = vrot.slane %v472_v53, 2 }
 0x16c   : > { %v474_v55 = vadd.f32 %v473_v54, %v472_v53 }
 0x16e   : > { %v475_v60 = vrot.slane %v474_v55, 1 }
 0x170   : > { %v476_v61 = vadd.f32 %v475_v60, %v474_v55 }
 0x172   : > { %v477_v0 = vmul.f32 0.0125, %v476_v61 }
 0x174   : > { %v478_v2 = vadd.f32 1e-05, %v477_v0 }
 0x176   : > { %2134 = vrsqrt.f32 %v478_v2 }
 0x183   : > { %v2135_v1 = vpop.eup %2134 }
 0x184   : > { %v481_v6 = vmul.f32 %v2135_v1, %v2293_v56  ;;  %v482_v7 = vmul.f32 %v2135_v1, %v2302_v59  ;;  %v480_v8 = vmul.f32 %v2135_v1, %v2296_v57  ;;  %v483_v9 = vmul.f32 %v2135_v1, %v2299_v58 }
 0x185   : > { %v484_v10 = vmul.f32 %v2135_v1, %v2311_v63  ;;  %v485_v11 = vmul.f32 %v2135_v1, %v2308_v62  ;;  %v486_v20 = vmul.f32 %v2135_v1, %v2323_v5  ;;  %v487_v21 = vmul.f32 %v2135_v1, %v2320_v4 }
 0x186   : > { %v502_v12 = vrot.slane %v481_v6, 1  ;;  %v504_v13 = vrot.slane %v482_v7, 1  ;;  %v501_v18 = vrot.slane %v480_v8, 1  ;;  %v506_v19 = vrot.slane %v483_v9, 1 }
 0x187   : > { %v508_v57 = vrot.slane %v484_v10, 1  ;;  %v510_v17 = vrot.slane %v485_v11, 1  ;;  %v512_v58 = vrot.slane %v486_v20, 1  ;;  %v514_v63 = vrot.slane %v487_v21, 1 }
 0x188   : > { %v505_v56 = vsel %vm500_vm2, %v502_v12, %v504_v13  ;;  %v503_v59 = vsel %vm500_vm2, %v501_v18, %v502_v12  ;;  %v507_v62 = vsel %vm500_vm2, %v504_v13, %v506_v19  ;;  %v488_v16 = vmul.f32 %v2135_v1, %v2341_v15 }
 0x189   : > { %522 = vrot.lane.b32.xlu1 %v505_v56, %s2186_s19  ;;  %520 = vrot.lane.b32.xlu0 %v503_v59, %s2186_s19  ;;  %v511_v22 = vsel %vm500_vm2, %v508_v57, %v510_v17  ;;  %v489_v5 = vmul.f32 %v2135_v1, %v2338_v14  ;;  %v509_v4 = vsel %vm500_vm2, %v506_v19, %v508_v57 }
 0x18a   : > { %v515_v23 = vsel %vm500_vm2, %v512_v58, %v514_v63  ;;  %v516_v24 = vrot.slane %v488_v16, 1  ;;  %v513_v26 = vsel %vm500_vm2, %v510_v17, %v512_v58 }
 0x18b   : > { %v518_v25 = vrot.slane %v489_v5, 1 }
 0x18c   : > { %v517_v15 = vsel %vm500_vm2, %v514_v63, %v516_v24 }
 0x18d   : > { %524 = vrot.lane.b32.xlu1 %v507_v62, %s2186_s19  ;;  %528 = vrot.lane.b32.xlu0 %v511_v22, %s2186_s19  ;;  %v519_v27 = vsel %vm500_vm2, %v516_v24, %v518_v25 }
 0x191   : > { %526 = vrot.lane.b32.xlu1 %v509_v4, %s2186_s19  ;;  %532 = vrot.lane.b32.xlu0 %v515_v23, %s2186_s19 }
 0x195   : > { %530 = vrot.lane.b32.xlu1 %v513_v26, %s2186_s19  ;;  %536 = vrot.lane.b32.xlu0 %v519_v27, %s2186_s19 }
 0x199   : > { %534 = vrot.lane.b32.xlu1 %v517_v15, %s2186_s19 }
 0x19d   : > { %538 = vrot.lane.b32.xlu1 %v518_v25, %s2186_s19 }
 0x1fb   : > { %v523_v14 = vpop.permute.xlu1 %522  ;;  %v521_v28 = vpop.permute.xlu0 %520 }
 0x1fc   : > { %v551_v29 = vsel %vm343_vm0, %v481_v6, %v523_v14  ;;  %v550_v30 = vsel %vm343_vm0, %v480_v8, %v521_v28 }
 0x1fd   : > { %1939 = vmatprep.mubr.msk.f32.mxu0 %vm562_vm3, %v550_v30 }
 0x1fe   : > { %1940 = vmatmul.mubr.msk.f32.vlgmr.msra.gmra.mxu0 %vm562_vm3, %v551_v29 }
 0x1ff   : > { %v525_v31 = vpop.permute.xlu1 %524  ;;  %v529_v32 = vpop.permute.xlu0 %528 }
 0x200   : > { %v552_v33 = vsel %vm343_vm0, %v482_v7, %v525_v31  ;;  %v554_v37 = vsel %vm343_vm0, %v484_v10, %v529_v32 }
 0x201   : > { %1942 = vmatprep.mubr.msk.f32.mxu0 %vm562_vm3, %v552_v33 }
 0x203   : > { %v527_v34 = vpop.permute.xlu1 %526  ;;  %v533_v36 = vpop.permute.xlu0 %532 }
 0x204   : > { %v553_v35 = vsel %vm343_vm0, %v483_v9, %v527_v34  ;;  %v556_v40 = vsel %vm343_vm0, %v486_v20, %v533_v36 }
 0x205   : > { %1943 = vmatmul.mubr.msk.f32.gmra.mxu0 %vm562_vm3, %v553_v35 }
 0x206   : > { %1945 = vmatprep.mubr.msk.f32.mxu0 %vm562_vm3, %v554_v37 }
 0x207   : > { %v531_v38 = vpop.permute.xlu1 %530  ;;  %v537_v41 = vpop.permute.xlu0 %536 }
 0x208   : > { %v555_v39 = vsel %vm343_vm0, %v485_v11, %v531_v38  ;;  %v558_v44 = vsel %vm343_vm0, %v488_v16, %v537_v41 }
 0x209   : > { %1946 = vmatmul.mubr.msk.f32.gmra.mxu0 %vm562_vm3, %v555_v39 }
 0x20a   : > { %1948 = vmatprep.mubr.msk.f32.mxu0 %vm562_vm3, %v556_v40 }
 0x20b   : > { %v535_v42 = vpop.permute.xlu1 %534 }
 0x20c   : > { %v557_v43 = vsel %vm343_vm0, %v487_v21, %v535_v42 }
 0x20d   : > { %1949 = vmatmul.mubr.msk.f32.gmra.mxu0 %vm562_vm3, %v557_v43 }
 0x20e   : > { %1951 = vmatprep.mubr.msk.f32.mxu0 %vm562_vm3, %v558_v44 }
 0x20f   : > { %v539_v45 = vpop.permute.xlu1 %538 }
 0x210   : > { %v559_v46 = vsel %vm343_vm0, %v489_v5, %v539_v45 }
 0x211   : > { %1952 = vmatmul.mubr.msk.f32.gmra.mxu0 %vm562_vm3, %v559_v46 }
 0x212   : > { %2009 = vmatprep.mubr.msk.f32.mxu0 %vm2188_vm6, %v2187_v47 }
 0x2be   : > { %v1941_v48 = vpop.f32.mrf.mxu0 }
 0x2bf   : > { %v714_v52 = vsel %vm712_vm4, %v1941_v48, 0.0 }
 0x2c0   : > { %v663_v49 = vpop.f32.mrf.mxu0 }
 0x2c1   : > { %v713_v50 = vsel %vm712_vm4, %v663_v49, 0.0 }
 0x2c2   : > { %v715_v53 = vadd.f32 %v714_v52, %v713_v50 }
 0x2c5   : > { %v1944_v51 = vpop.f32.mrf.mxu0 }
 0x2c6   : > { %v718_v0 = vsel %vm712_vm4, %v1944_v51, 0.0 }
 0x2c7   : > { %v673_v54 = vpop.f32.mrf.mxu0 }
 0x2c8   : > { %v716_v55 = vsel %vm712_vm4, %v673_v54, 0.0 }
 0x2c9   : > { %v717_v60 = vadd.f32 %v716_v55, %v715_v53  ;;  %v1947_v61 = vpop.f32.mrf.mxu0 }
 0x2ca   : > { %v722_v8 = vsel %vm712_vm4, %v1947_v61, 0.0 }
 0x2cb   : > { %v683_v2 = vpop.f32.mrf.mxu0  ;;  %v719_v3 = vadd.f32 %v718_v0, %v717_v60 }
 0x2cc   : > { %v720_v1 = vsel %vm712_vm4, %v683_v2, 0.0 }
 0x2cd   : > { %v721_v6 = vadd.f32 %v720_v1, %v719_v3  ;;  %v1950_v7 = vpop.f32.mrf.mxu0 }
 0x2ce   : > { %v726_v18 = vsel %vm712_vm4, %v1950_v7, 0.0 }
 0x2cf   : > { %v693_v9 = vpop.f32.mrf.mxu0  ;;  %v723_v10 = vadd.f32 %v722_v8, %v721_v6 }
 0x2d0   : > { %v724_v11 = vsel %vm712_vm4, %v693_v9, 0.0 }
 0x2d1   : > { %v725_v12 = vadd.f32 %v724_v11, %v723_v10  ;;  %v1953_v13 = vpop.f32.mrf.mxu0 }
 0x2d2   : > { %v731_v59 = vsel %vm730_vm5, %v1953_v13, 0.0 }
 0x2d3   : > { %v703_v19 = vpop.f32.mrf.mxu0  ;;  %v727_v20 = vadd.f32 %v726_v18, %v725_v12 }
 0x2d4   : > { %v728_v21 = vsel %vm712_vm4, %v703_v19, 0.0 }
 0x2d5   : > { %v729_v56 = vadd.f32 %v728_v21, %v727_v20 }
 0x2d7   : > { %v732_v57 = vadd.f32 %v731_v59, %v729_v56 }
 0x2d9   : > { %v733_v17 = vrot.slane %v732_v57, 4 }
 0x2db   : > { %v734_v58 = vadd.f32 %v733_v17, %v732_v57  ;;  %v2446_v57 = vld [vmem:[%s2878_s3] ss:$0 sm:$0xff] }
 0x2dd   : > { %v735_v63 = vrot.slane %v734_v58, 2 }
 0x2df   : > { %v736_v62 = vadd.f32 %v735_v63, %v734_v58 }
 0x2e1   : > { %v737_v22 = vrot.slane %v736_v62, 1 }
 0x2e3   : > { %v738_v16 = vadd.f32 %v737_v22, %v736_v62 }
 0x2e5   : > { %v740_v5 = vmul.f32 0.012658228, %v738_v16 }
 0x2e7   : > { %v2412_v4 = vsub.f32 %v663_v49, %v740_v5  ;;  %v2414_v23 = vsub.f32 %v1941_v48, %v740_v5  ;;  %v743_v24 = vsub.f32 %v673_v54, %v740_v5  ;;  %v744_v25 = vsub.f32 %v1944_v51, %v740_v5 }
 0x2e8   : > { %v745_v15 = vsub.f32 %v683_v2, %v740_v5  ;;  %v746_v28 = vsub.f32 %v1947_v61, %v740_v5  ;;  %v747_v33 = vsub.f32 %v693_v9, %v740_v5  ;;  %v748_v37 = vsub.f32 %v1950_v7, %v740_v5 }
 0x2e9   : > { %v751_v26 = vmul.f32 %v2412_v4, %v2412_v4  ;;  %v752_v27 = vmul.f32 %v2414_v23, %v2414_v23  ;;  %v753_v14 = vmul.f32 %v743_v24, %v743_v24  ;;  %v754_v29 = vmul.f32 %v744_v25, %v744_v25 }
 0x2ea   : > { %v755_v34 = vmul.f32 %v745_v15, %v745_v15  ;;  %v756_v38 = vmul.f32 %v746_v28, %v746_v28  ;;  %v749_v41 = vsub.f32 %v703_v19, %v740_v5  ;;  %v757_v42 = vmul.f32 %v747_v33, %v747_v33 }
 0x2eb   : > { %v761_v30 = vsel %vm712_vm4, %v751_v26, 0.0  ;;  %v762_v31 = vsel %vm712_vm4, %v752_v27, 0.0  ;;  %v764_v35 = vsel %vm712_vm4, %v753_v14, 0.0  ;;  %v766_v39 = vsel %vm712_vm4, %v754_v29, 0.0 }
 0x2ec   : > { %v763_v32 = vadd.f32 %v762_v31, %v761_v30  ;;  %v768_v43 = vsel %vm712_vm4, %v755_v34, 0.0  ;;  %v750_v45 = vsub.f32 %v1953_v13, %v740_v5  ;;  %v758_v46 = vmul.f32 %v748_v37, %v748_v37  ;;  %v2435_v13 = vld [vmem:[%s2877_s2] ss:$0 sm:$0xff] }
 0x2ed   : > { %v770_v48 = vsel %vm712_vm4, %v756_v38, 0.0  ;;  %v759_v50 = vmul.f32 %v749_v41, %v749_v41  ;;  %v772_v51 = vsel %vm712_vm4, %v757_v42, 0.0 }
 0x2ee   : > { %v765_v36 = vadd.f32 %v764_v35, %v763_v32  ;;  %v760_v53 = vmul.f32 %v750_v45, %v750_v45  ;;  %v774_v54 = vsel %vm712_vm4, %v758_v46, 0.0 }
 0x2ef   : > { %v776_v60 = vsel %vm712_vm4, %v759_v50, 0.0 }
 0x2f0   : > { %v767_v40 = vadd.f32 %v766_v39, %v765_v36  ;;  %v778_v0 = vsel %vm730_vm5, %v760_v53, 0.0 }
 0x2f2   : > { %v769_v44 = vadd.f32 %v768_v43, %v767_v40 }
 0x2f4   : > { %v771_v49 = vadd.f32 %v770_v48, %v769_v44 }
 0x2f6   : > { %v773_v52 = vadd.f32 %v772_v51, %v771_v49 }
 0x2f8   : > { %v775_v55 = vadd.f32 %v774_v54, %v773_v52 }
 0x2fa   : > { %v777_v61 = vadd.f32 %v776_v60, %v775_v55 }
 0x2fc   : > { %v779_v2 = vadd.f32 %v778_v0, %v777_v61 }
 0x2fe   : > { %v780_v3 = vrot.slane %v779_v2, 4 }
 0x300   : > { %v781_v1 = vadd.f32 %v780_v3, %v779_v2 }
 0x302   : > { %v782_v6 = vrot.slane %v781_v1, 2 }
 0x304   : > { %v783_v7 = vadd.f32 %v782_v6, %v781_v1 }
 0x306   : > { %v784_v8 = vrot.slane %v783_v7, 1 }
 0x308   : > { %v785_v9 = vadd.f32 %v784_v8, %v783_v7 }
 0x30a   : > { %v786_v10 = vmul.f32 0.012658228, %v785_v9 }
 0x30c   : > { %v787_v11 = vadd.f32 1e-05, %v786_v10 }
 0x30e   : > { %2136 = vrsqrt.f32 %v787_v11 }
 0x31b   : > { %v2430_v12 = vpop.eup %2136 }
 0x31c   : > { %v793_v18 = vmul.f32 %v2430_v12, %v745_v15  ;;  %v794_v19 = vmul.f32 %v2430_v12, %v746_v28  ;;  %v795_v20 = vmul.f32 %v2430_v12, %v747_v33  ;;  %v796_v21 = vmul.f32 %v2430_v12, %v748_v37 }
 0x31d   : > { %v797_v56 = vmul.f32 %v2430_v12, %v749_v41  ;;  %v798_v59 = vmul.f32 %v2430_v12, %v750_v45  ;;  %v792_v17 = vmul.f32 %v2430_v12, %v744_v25  ;;  %v791_v58 = vmul.f32 %v2430_v12, %v743_v24 }
 0x31e   : > { %v812_v63 = vmul.f32 %v2435_v13, %v795_v20  ;;  %v813_v62 = vmul.f32 %v2435_v13, %v796_v21  ;;  %v811_v22 = vmul.f32 %v2435_v13, %v794_v19  ;;  %v810_v16 = vmul.f32 %v2435_v13, %v793_v18 }
 0x31f   : > { %v814_v5 = vmul.f32 %v2435_v13, %v797_v56  ;;  %v815_v26 = vmul.f32 %v2435_v13, %v798_v59  ;;  %v809_v27 = vmul.f32 %v2435_v13, %v792_v17  ;;  %v808_v32 = vmul.f32 %v2435_v13, %v791_v58 }
 0x320   : > { %v2458_v15 = vadd.f32 %v2446_v57, %v813_v62  ;;  %v2461_v25 = vadd.f32 %v2446_v57, %v812_v63  ;;  %v2464_v24 = vadd.f32 %v2446_v57, %v811_v22  ;;  %v2473_v29 = vadd.f32 %v2446_v57, %v810_v16 }
 0x321   : > { %v2467_v14 = vadd.f32 %v2446_v57, %v814_v5  ;;  %v2470_v28 = vadd.f32 %v2446_v57, %v815_v26  ;;  %v2481_v35 = vadd.f32 %v2446_v57, %v809_v27  ;;  %v2493_v45 = vadd.f32 %v2446_v57, %v808_v32 }
 0x322   : > { %v850_v30 = vmul.f32 0.044715, %v2458_v15  ;;  %v849_v31 = vmul.f32 0.044715, %v2461_v25  ;;  %v848_v38 = vmul.f32 0.044715, %v2464_v24  ;;  %v790_v11 = vmul.f32 %v2430_v12, %v2414_v23 }
 0x323   : > { %v852_v33 = vmul.f32 0.044715, %v2470_v28  ;;  %v851_v34 = vmul.f32 0.044715, %v2467_v14  ;;  %v847_v41 = vmul.f32 0.044715, %v2473_v29  ;;  %v789_v20 = vmul.f32 %v2430_v12, %v2412_v4 }
 0x324   : > { %v860_v36 = vmul.f32 %v850_v30, %v2458_v15  ;;  %v859_v37 = vmul.f32 %v849_v31, %v2461_v25  ;;  %v858_v44 = vmul.f32 %v848_v38, %v2464_v24  ;;  %v846_v50 = vmul.f32 0.044715, %v2481_v35 }
 0x325   : > { %v862_v39 = vmul.f32 %v852_v33, %v2470_v28  ;;  %v861_v40 = vmul.f32 %v851_v34, %v2467_v14  ;;  %v857_v49 = vmul.f32 %v847_v41, %v2473_v29  ;;  %v845_v1 = vmul.f32 0.044715, %v2493_v45 }
 0x326   : > { %v870_v42 = vmul.f32 %v860_v36, %v2458_v15  ;;  %v869_v43 = vmul.f32 %v859_v37, %v2461_v25  ;;  %v868_v53 = vmul.f32 %v858_v44, %v2464_v24  ;;  %v856_v61 = vmul.f32 %v846_v50, %v2481_v35 }
 0x327   : > { %v872_v46 = vmul.f32 %v862_v39, %v2470_v28  ;;  %v871_v48 = vmul.f32 %v861_v40, %v2467_v14  ;;  %v867_v60 = vmul.f32 %v857_v49, %v2473_v29  ;;  %v855_v10 = vmul.f32 %v845_v1, %v2493_v45 }
 0x328   : > { %v880_v51 = vadd.f32 %v870_v42, %v2458_v15  ;;  %v879_v52 = vadd.f32 %v869_v43, %v2461_v25  ;;  %v878_v3 = vadd.f32 %v868_v53, %v2464_v24  ;;  %v866_v9 = vmul.f32 %v856_v61, %v2481_v35 }
 0x329   : > { %v882_v54 = vadd.f32 %v872_v46, %v2470_v28  ;;  %v881_v55 = vadd.f32 %v871_v48, %v2467_v14  ;;  %v877_v8 = vadd.f32 %v867_v60, %v2473_v29  ;;  %v865_v21 = vmul.f32 %v855_v10, %v2493_v45 }
 0x32a   : > { %v890_v0 = vmul.f32 0.7978846, %v880_v51  ;;  %v889_v2 = vmul.f32 0.7978846, %v879_v52  ;;  %v888_v18 = vmul.f32 0.7978846, %v878_v3  ;;  %v876_v19 = vadd.f32 %v866_v9, %v2481_v35 }
 0x32b   : > { %v892_v6 = vmul.f32 0.7978846, %v882_v54  ;;  %v891_v7 = vmul.f32 0.7978846, %v881_v55  ;;  %v807_v56 = vmul.f32 %v2435_v13, %v790_v11  ;;  %v887_v59 = vmul.f32 0.7978846, %v877_v8 }
 0x32c   : > { %2138 = vtanh.f32 %v890_v0  ;;  %v806_v17 = vmul.f32 %v2435_v13, %v789_v20  ;;  %v875_v58 = vadd.f32 %v865_v21, %v2493_v45  ;;  %v886_v63 = vmul.f32 0.7978846, %v876_v19 }
 0x32d   : > { %2140 = vtanh.f32 %v892_v6  ;;  %v2521_v23 = vadd.f32 %v2446_v57, %v807_v56  ;;  %v842_v34 = vmul.f32 0.5, %v2470_v28  ;;  %v923_v40 = vlaneseq }
 0x32e   : > { %2142 = vtanh.f32 %v891_v7  ;;  %v2524_v62 = vadd.f32 %v2446_v57, %v806_v17  ;;  %v885_v12 = vmul.f32 0.7978846, %v875_v58  ;;  %v841_v42 = vmul.f32 0.5, %v2467_v14 }
 0x32f   : > { %2144 = vtanh.f32 %v889_v2  ;;  %v844_v4 = vmul.f32 0.044715, %v2521_v23  ;;  %v840_v46 = vmul.f32 0.5, %v2458_v15  ;;  %v2547_v14 = vshrl.u32 %v923_v40, 7 }
 0x330   : > { %2146 = vtanh.f32 %v888_v18  ;;  %v843_v22 = vmul.f32 0.044715, %v2524_v62  ;;  %v839_v51 = vmul.f32 0.5, %v2461_v25  ;;  %v838_v54 = vmul.f32 0.5, %v2464_v24 }
 0x331   : > { %2148 = vtanh.f32 %v887_v59  ;;  %v854_v16 = vmul.f32 %v844_v4, %v2521_v23  ;;  %v2564_v25 = vmul.u32 2, %v2547_v14  ;;  %v925_v61 = vadd.s32 8, %v2547_v14 }
 0x332   : > { %2150 = vtanh.f32 %v886_v63  ;;  %v853_v13 = vmul.f32 %v843_v22, %v2524_v62  ;;  %v837_v2 = vmul.f32 0.5, %v2473_v29  ;;  %v836_v1 = vmul.f32 0.5, %v2481_v35 }
 0x333   : > { %v864_v5 = vmul.f32 %v854_v16, %v2521_v23  ;;  %2152 = vtanh.f32 %v885_v12  ;;  %v2579_v7 = vand.u32 127, %v923_v40  ;;  %v1060_v29 = vadd.s32 1, %v2564_v25 }
 0x334   : > { %v863_v26 = vmul.f32 %v853_v13, %v2524_v62  ;;  %v2584_v8 = vmul.u32 2, %v925_v61  ;;  %v926_v9 = vadd.s32 16, %v2547_v14  ;;  %v835_v35 = vmul.f32 0.5, %v2493_v45  ;;  %v1362_v61 = vld [vmem:[%s2879_s4 + $0x8] sm:$0xff] }
 0x335   : > { %v874_v27 = vadd.f32 %v864_v5, %v2521_v23  ;;  %v834_v21 = vmul.f32 0.5, %v2521_v23  ;;  %vm936_vm7 = vcmp.eq.s32.totalorder %v2579_v7, %v2564_v25  ;;  %vm1065_vm8 = vcmp.eq.s32.totalorder %v2579_v7, %v1060_v29 }
 0x336   : > { %v873_v30 = vadd.f32 %v863_v26, %v2524_v62  ;;  %v1061_v45 = vadd.s32 1, %v2584_v8  ;;  %v2605_v59 = vmul.u32 2, %v926_v9  ;;  %v927_v17 = vadd.s32 24, %v2547_v14 }
 0x337   : > { %v884_v32 = vmul.f32 0.7978846, %v874_v27  ;;  %v833_v23 = vmul.f32 0.5, %v2524_v62  ;;  %v1808_v4 = vsel %vm936_vm7, 1.0, %v2187_v47  ;;  %v1819_v12 = vsel %vm1065_vm8, 1.0, %v2187_v47 }
 0x338   : > { %v883_v37 = vmul.f32 0.7978846, %v873_v30  ;;  %vm1066_vm10 = vcmp.eq.s32.totalorder %v2579_v7, %v1061_v45  ;;  %v1062_v62 = vadd.s32 1, %v2605_v59  ;;  %v2628_v22 = vmul.u32 2, %v927_v17 }
 0x339   : > { %v2139_v57 = vpop.eup %2138  ;;  %2154 = vtanh.f32 %v884_v32  ;;  %v928_v16 = vadd.s32 32, %v2547_v14  ;;  %vm937_vm11 = vcmp.eq.s32.totalorder %v2579_v7, %v2584_v8  ;;  %v1820_v13 = vsel %vm1066_vm10, 1.0, %v2187_v47  ;;  %v1367_v14 = vld [vmem:[%s2879_s4 + $0x30] sm:$0xff] }
 0x33a   : > { %v2141_v31 = vpop.eup %2140  ;;  %v910_v43 = vadd.f32 1.0, %v2139_v57  ;;  %2156 = vtanh.f32 %v883_v37  ;;  %v1809_v5 = vsel %vm937_vm11, 1.0, %v2187_v47  ;;  %vm1067_vm12 = vcmp.eq.s32.totalorder %v2579_v7, %v1062_v62 }
 0x33b   : > { %v2143_v33 = vpop.eup %2142  ;;  %v912_v36 = vadd.f32 1.0, %v2141_v31  ;;  %v1063_v26 = vadd.s32 1, %v2628_v22  ;;  %v2648_v27 = vmul.u32 2, %v928_v16  ;;  %vm938_vm13 = vcmp.eq.s32.totalorder %v2579_v7, %v2605_v59 }
 0x33c   : > { %v2145_v38 = vpop.eup %2144  ;;  %v911_v39 = vadd.f32 1.0, %v2143_v33  ;;  %v2551_v50 = vmul.f32 %v910_v43, %v840_v46  ;;  %v1821_v57 = vsel %vm1067_vm12, 1.0, %v2187_v47  ;;  %v1810_v30 = vsel %vm938_vm13, 1.0, %v2187_v47 }
 0x33d   : > { %v2535_v41 = vmul.f32 %v912_v36, %v842_v34  ;;  %v2147_v44 = vpop.eup %2146  ;;  %v909_v48 = vadd.f32 1.0, %v2145_v38  ;;  %vm1068_vm14 = vcmp.eq.s32.totalorder %v2579_v7, %v1063_v26  ;;  %v1064_v31 = vadd.s32 1, %v2648_v27 }
 0x33e   : > { %v2542_v28 = vmul.f32 %v911_v39, %v841_v42  ;;  %v2149_v49 = vpop.eup %2148  ;;  %v908_v52 = vadd.f32 1.0, %v2147_v44  ;;  %vm939_vm15 = vcmp.eq.s32.totalorder %v2579_v7, %v2628_v22  ;;  %v1822_v32 = vsel %vm1068_vm14, 1.0, %v2187_v47 }
 0x33f   : > { %1955 = vmatpush3.msk.msra.mxu1 %vm500_vm2, %v2535_v41  ;;  %1990 = vmatpush3.msk.msra.mxu0 %vm500_vm2, %v2535_v41  ;;  %v2151_v53 = vpop.eup %2150  ;;  %v2558_v15 = vmul.f32 %v909_v48, %v839_v51  ;;  %v907_v55 = vadd.f32 1.0, %v2149_v49  ;;  %v1811_v33 = vsel %vm939_vm15, 1.0, %v2187_v47  ;;  %vm1069_vm0 = vcmp.eq.s32.totalorder %v2579_v7, %v1064_v31  ;;  %v1369_v48 = vld [vmem:[%s2879_s4 + $0x40] sm:$0xff]  ;;  %v1368_v49 = vld [vmem:[%s2879_s4 + $0x38] sm:$0xff] }
 0x340   : > { %1956 = vmatprep.subr.mxu1 %v2187_v47  ;;  %1991 = vmatprep.subr.mxu0 %v2187_v47  ;;  %v2153_v60 = vpop.eup %2152  ;;  %v2569_v0 = vmul.f32 %v908_v52, %v838_v54  ;;  %v906_v24 = vadd.f32 1.0, %v2151_v53  ;;  %vm940_vm1 = vcmp.eq.s32.totalorder %v2579_v7, %v2648_v27  ;;  %v1185_v34 = vadd.s32 2, %v2564_v25  ;;  %v1365_v51 = vld [vmem:[%s2879_s4 + $0x20] sm:$0xff]  ;;  %v1363_v25 = vld [vmem:[%s2879_s4 + $0x10] sm:$0xff] }
 0x341   : > { %1957 = vmatpush3.msra.mxu1 %v2542_v28  ;;  %1992 = vmatpush3.msra.mxu0 %v2542_v28  ;;  %v2576_v3 = vmul.f32 %v907_v55, %v837_v2  ;;  %v905_v6 = vadd.f32 1.0, %v2153_v60  ;;  %v1823_v36 = vsel %vm1069_vm0, 1.0, %v2187_v47  ;;  %v1812_v37 = vsel %vm940_vm1, 1.0, %v2187_v47 }
 0x342   : > { %1958 = vmatprep.subr.mxu1 %v2187_v47  ;;  %1993 = vmatprep.subr.mxu0 %v2187_v47  ;;  %v2589_v11 = vmul.f32 %v906_v24, %v836_v1  ;;  %v1186_v38 = vadd.s32 2, %v2584_v8  ;;  %v1187_v40 = vadd.s32 2, %v2605_v59  ;;  %v1188_v42 = vadd.s32 2, %v2628_v22 }
 0x343   : > { %1959 = vmatpush3.msra.mxu1 %v2551_v50  ;;  %1994 = vmatpush3.msra.mxu0 %v2551_v50  ;;  %v2596_v20 = vmul.f32 %v905_v6, %v835_v35  ;;  %v1189_v44 = vadd.s32 2, %v2648_v27  ;;  %v1361_v6 = vld [vmem:[%s2879_s4] sm:$0xff]  ;;  %vm1370_vm11 = vcmask 588800  }
 0x344   : > { %1960 = vmatprep.subr.mxu1 %v2187_v47  ;;  %1995 = vmatprep.subr.mxu0 %v2187_v47  ;;  %vm1191_vm3 = vcmp.eq.s32.totalorder %v2579_v7, %v1186_v38  ;;  %vm1192_vm7 = vcmp.eq.s32.totalorder %v2579_v7, %v1187_v40  ;;  %vm1193_vm8 = vcmp.eq.s32.totalorder %v2579_v7, %v1188_v42 }
 0x345   : > { %1961 = vmatpush3.msra.mxu1 %v2558_v15  ;;  %1996 = vmatpush3.msra.mxu0 %v2558_v15  ;;  %v1832_v43 = vsel %vm1192_vm7, 1.0, %v2187_v47  ;;  %vm1194_vm10 = vcmp.eq.s32.totalorder %v2579_v7, %v1189_v44 }
 0x346   : > { %1962 = vmatprep.subr.mxu1 %v2187_v47  ;;  %1997 = vmatprep.subr.mxu0 %v2187_v47  ;;  %v2155_v10 = vpop.eup %2154  ;;  %v1834_v46 = vsel %vm1194_vm10, 1.0, %v2187_v47 }
 0x347   : > { %1963 = vmatpush3.msra.mxu1 %v2569_v0  ;;  %1998 = vmatpush3.msra.mxu0 %v2569_v0  ;;  %v2157_v18 = vpop.eup %2156  ;;  %v904_v19 = vadd.f32 1.0, %v2155_v10 }
 0x348   : > { %1964 = vmatprep.subr.mxu1 %v2187_v47  ;;  %1999 = vmatprep.subr.mxu0 %v2187_v47  ;;  %v903_v56 = vadd.f32 1.0, %v2157_v18 }
 0x349   : > { %1965 = vmatpush3.msra.mxu1 %v2576_v3  ;;  %2000 = vmatpush3.msra.mxu0 %v2576_v3  ;;  %v2610_v58 = vmul.f32 %v904_v19, %v834_v21 }
 0x34a   : > { %1966 = vmatprep.subr.mxu1 %v2187_v47  ;;  %2001 = vmatprep.subr.mxu0 %v2187_v47  ;;  %v2617_v63 = vmul.f32 %v903_v56, %v833_v23 }
 0x34b   : > { %1967 = vmatpush3.msra.mxu1 %v2589_v11  ;;  %2002 = vmatpush3.msra.mxu0 %v2589_v11 }
 0x34c   : > { %1968 = vmatprep.subr.mxu1 %v2187_v47  ;;  %2003 = vmatprep.subr.mxu0 %v2187_v47 }
 0x34d   : > { %1969 = vmatpush3.msra.mxu1 %v2596_v20  ;;  %2004 = vmatpush3.msra.mxu0 %v2596_v20 }
 0x34e   : > { %1970 = vmatprep.subr.mxu1 %v2187_v47  ;;  %2005 = vmatprep.subr.mxu0 %v2187_v47 }
 0x34f   : > { %1971 = vmatpush3.msra.mxu1 %v2610_v58  ;;  %2006 = vmatpush3.msra.mxu0 %v2610_v58 }
 0x350   : > { %1972 = vmatprep.subr.mxu1 %v2187_v47  ;;  %2007 = vmatprep.subr.mxu0 %v2187_v47 }
 0x351   : > { %1973 = vmatpush3.msra.mxu1 %v2617_v63  ;;  %2008 = vmatpush3.msra.mxu0 %v2617_v63 }
 0x352   : > { %1975 = vmatmul.mubr.msk.f32.vlgmr.msra.gmra.mxu1 %vm951_vm9, %v1808_v4  ;;  %2010 = vmatmul.mubr.msk.f32.vlgmr.msra.gmra.mxu0 %vm951_vm9, %v1819_v12 }
 0x353   : > { %2024 = vmatprep.subr.mxu1 %v2187_v47  ;;  %1977 = vmatprep.mubr.msk.f32.mxu1 %vm2188_vm6, %v2187_v47 }
 0x354   : > { %2025 = vmatpush3.msk.msra.mxu1 %vm500_vm2, %v2535_v41  ;;  %2012 = vmatprep.mubr.msk.f32.mxu0 %vm2188_vm6, %v2187_v47  ;;  %vm1190_vm2 = vcmp.eq.s32.totalorder %v2579_v7, %v1185_v34  ;;  %v1831_v41 = vsel %vm1191_vm3, 1.0, %v2187_v47 }
 0x355   : > { %2026 = vmatprep.subr.mxu1 %v2187_v47  ;;  %2059 = vmatprep.subr.mxu0 %v2187_v47  ;;  %v1830_v39 = vsel %vm1190_vm2, 1.0, %v2187_v47 }
 0x356   : > { %2027 = vmatpush3.msra.mxu1 %v2542_v28  ;;  %2013 = vmatmul.mubr.msk.f32.gmra.mxu0 %vm951_vm9, %v1820_v13  ;;  %v1833_v28 = vsel %vm1193_vm8, 1.0, %v2187_v47 }
 0x357   : > { %1978 = vmatmul.mubr.msk.f32.gmra.mxu1 %vm951_vm9, %v1809_v5  ;;  %2028 = vmatprep.subr.mxu1 %v2187_v47 }
 0x358   : > { %2029 = vmatpush3.msra.mxu1 %v2551_v50  ;;  %1980 = vmatprep.mubr.msk.f32.mxu1 %vm2188_vm6, %v2187_v47  ;;  %v1366_v50 = vld [vmem:[%s2879_s4 + $0x28] sm:$0xff] }
 0x359   : > { %2030 = vmatprep.subr.mxu1 %v2187_v47  ;;  %2015 = vmatprep.mubr.msk.f32.mxu0 %vm2188_vm6, %v2187_v47 }
 0x35a   : > { %2031 = vmatpush3.msra.mxu1 %v2558_v15  ;;  %2016 = vmatmul.mubr.msk.f32.gmra.mxu0 %vm951_vm9, %v1821_v57  ;;  %v1364_v15 = vld [vmem:[%s2879_s4 + $0x18] sm:$0xff] }
 0x35b   : > { %1981 = vmatmul.mubr.msk.f32.gmra.mxu1 %vm951_vm9, %v1810_v30  ;;  %2032 = vmatprep.subr.mxu1 %v2187_v47 }
 0x35c   : > { %2033 = vmatpush3.msra.mxu1 %v2569_v0  ;;  %1983 = vmatprep.mubr.msk.f32.mxu1 %vm2188_vm6, %v2187_v47 }
 0x35d   : > { %2034 = vmatprep.subr.mxu1 %v2187_v47  ;;  %2018 = vmatprep.mubr.msk.f32.mxu0 %vm2188_vm6, %v2187_v47 }
 0x35e   : > { %2035 = vmatpush3.msra.mxu1 %v2576_v3  ;;  %2019 = vmatmul.mubr.msk.f32.gmra.mxu0 %vm951_vm9, %v1822_v32 }
 0x35f   : > { %1984 = vmatmul.mubr.msk.f32.gmra.mxu1 %vm951_vm9, %v1811_v33  ;;  %2036 = vmatprep.subr.mxu1 %v2187_v47 }
 0x360   : > { %2037 = vmatpush3.msra.mxu1 %v2589_v11  ;;  %1986 = vmatprep.mubr.msk.f32.mxu1 %vm2188_vm6, %v2187_v47 }
 0x361   : > { %2038 = vmatprep.subr.mxu1 %v2187_v47  ;;  %2021 = vmatprep.mubr.msk.f32.mxu0 %vm2188_vm6, %v2187_v47 }
 0x362   : > { %2039 = vmatpush3.msra.mxu1 %v2596_v20  ;;  %2022 = vmatmul.mubr.msk.f32.gmra.mxu0 %vm951_vm9, %v1823_v36 }
 0x363   : > { %1987 = vmatmul.mubr.msk.f32.gmra.mxu1 %vm951_vm9, %v1812_v37  ;;  %2040 = vmatprep.subr.mxu1 %v2187_v47 }
 0x364   : > { %2041 = vmatpush3.msra.mxu1 %v2610_v58  ;;  %2044 = vmatprep.mubr.msk.f32.mxu1 %vm2188_vm6, %v2187_v47 }
 0x365   : > { %2042 = vmatprep.subr.mxu1 %v2187_v47  ;;  %2077 = vmatprep.mubr.msk.f32.mxu0 %vm2188_vm6, %v2187_v47 }
 0x366   : > { %2043 = vmatpush3.msra.mxu1 %v2617_v63  ;;  %2060 = vmatpush3.msra.mxu0 %v1369_v48 }
 0x367   : > { %2045 = vmatmul.mubr.msk.f32.vlgmr.msra.gmra.mxu1 %vm951_vm9, %v1830_v39  ;;  %2113 = vmatprep.subr.mxu1 %v2187_v47 }
 0x368   : > { %2047 = vmatprep.mubr.msk.f32.mxu1 %vm2188_vm6, %v2187_v47  ;;  %2061 = vmatprep.subr.mxu0 %v2187_v47 }
 0x369   : > { %2062 = vmatpush3.msra.mxu0 %v1368_v49 }
 0x36a   : > { %2063 = vmatprep.subr.mxu0 %v2187_v47 }
 0x36b   : > { %2048 = vmatmul.mubr.msk.f32.gmra.mxu1 %vm951_vm9, %v1831_v41  ;;  %2064 = vmatpush3.msra.mxu0 %v1367_v14 }
 0x36c   : > { %2050 = vmatprep.mubr.msk.f32.mxu1 %vm2188_vm6, %v2187_v47  ;;  %2065 = vmatprep.subr.mxu0 %v2187_v47 }
 0x36d   : > { %2066 = vmatpush3.msra.mxu0 %v1366_v50 }
 0x36e   : > { %2067 = vmatprep.subr.mxu0 %v2187_v47 }
 0x36f   : > { %2051 = vmatmul.mubr.msk.f32.gmra.mxu1 %vm951_vm9, %v1832_v43  ;;  %2068 = vmatpush3.msra.mxu0 %v1365_v51 }
 0x370   : > { %2053 = vmatprep.mubr.msk.f32.mxu1 %vm2188_vm6, %v2187_v47  ;;  %2069 = vmatprep.subr.mxu0 %v2187_v47 }
 0x371   : > { %2070 = vmatpush3.msra.mxu0 %v1364_v15 }
 0x372   : > { %2071 = vmatprep.subr.mxu0 %v2187_v47 }
 0x373   : > { %2054 = vmatmul.mubr.msk.f32.gmra.mxu1 %vm951_vm9, %v1833_v28  ;;  %2072 = vmatpush3.msra.mxu0 %v1363_v25 }
 0x374   : > { %2056 = vmatprep.mubr.msk.f32.mxu1 %vm2188_vm6, %v2187_v47  ;;  %2073 = vmatprep.subr.mxu0 %v2187_v47 }
 0x375   : > { %2074 = vmatpush3.msra.mxu0 %v1362_v61 }
 0x376   : > { %2075 = vmatprep.subr.mxu0 %v2187_v47 }
 0x377   : > { %2057 = vmatmul.mubr.msk.f32.gmra.mxu1 %vm951_vm9, %v1834_v46  ;;  %2076 = vmatpush3.msra.mxu0 %v1361_v6  ;;  %vm1355_vm9 = vcmask 392192  }
 0x378   : > { %2104 = vmatprep.mubr.msk.f32.mxu1 %vm2188_vm6, %v2187_v47  ;;  %2092 = vmatprep.subr.mxu0 %v2187_v47 }
 0x412   : > { %v1036_v52 = vpop.f32.mrf.mxu1  ;;  %v1161_v53 = vpop.f32.mrf.mxu0 }
 0x413   : > { %1315 = vrot.lane.b32.xlu0 %v1161_v53, %s2189_s17 }
 0x414   : > { %v1976_v54 = vpop.f32.mrf.mxu1  ;;  %v2011_v55 = vpop.f32.mrf.mxu0 }
 0x416   : > { %v1166_v60 = vpop.f32.mrf.mxu0 }
 0x417   : > { %v1041_v0 = vpop.f32.mrf.mxu1  ;;  %1317 = vrot.lane.b32.xlu0 %v1166_v60, %s2189_s17 }
 0x418   : > { %v2014_v2 = vpop.f32.mrf.mxu0 }
 0x419   : > { %v1979_v24 = vpop.f32.mrf.mxu1 }
 0x41a   : > { %v1171_v3 = vpop.f32.mrf.mxu0 }
 0x41b   : > { %v1046_v1 = vpop.f32.mrf.mxu1  ;;  %1319 = vrot.lane.b32.xlu0 %v1171_v3, %s2189_s17 }
 0x41c   : > { %v2017_v7 = vpop.f32.mrf.mxu0 }
 0x41d   : > { %v1982_v29 = vpop.f32.mrf.mxu1 }
 0x41e   : > { %v1176_v8 = vpop.f32.mrf.mxu0 }
 0x41f   : > { %v1051_v9 = vpop.f32.mrf.mxu1  ;;  %1321 = vrot.lane.b32.xlu0 %v1176_v8, %s2189_s17 }
 0x420   : > { %v2020_v10 = vpop.f32.mrf.mxu0 }
 0x421   : > { %v1985_v11 = vpop.f32.mrf.mxu1 }
 0x422   : > { %v1181_v35 = vpop.f32.mrf.mxu0 }
 0x423   : > { %v1056_v18 = vpop.f32.mrf.mxu1  ;;  %1323 = vrot.lane.b32.xlu0 %v1181_v35, %s2189_s17 }
 0x424   : > { %v2023_v19 = vpop.f32.mrf.mxu0 }
 0x425   : > { %v1988_v20 = vpop.f32.mrf.mxu1 }
 0x427   : > { %v1286_v21 = vpop.f32.mrf.mxu1 }
 0x428   : > { %1335 = vrot.lane.b32.xlu1 %v1286_v21, %s2190_s24 }
 0x429   : > { %v2046_v56 = vpop.f32.mrf.mxu1 }
 0x42b   : > { %v1291_v45 = vpop.f32.mrf.mxu1 }
 0x42c   : > { %1337 = vrot.lane.b32.xlu1 %v1291_v45, %s2190_s24 }
 0x42d   : > { %v2049_v59 = vpop.f32.mrf.mxu1 }
 0x42f   : > { %v1296_v17 = vpop.f32.mrf.mxu1 }
 0x430   : > { %1339 = vrot.lane.b32.xlu1 %v1296_v17, %s2190_s24 }
 0x431   : > { %v2052_v58 = vpop.f32.mrf.mxu1 }
 0x433   : > { %v1301_v23 = vpop.f32.mrf.mxu1 }
 0x434   : > { %1341 = vrot.lane.b32.xlu1 %v1301_v23, %s2190_s24 }
 0x435   : > { %v2055_v63 = vpop.f32.mrf.mxu1 }
 0x437   : > { %v1306_v4 = vpop.f32.mrf.mxu1 }
 0x438   : > { %1343 = vrot.lane.b32.xlu1 %v1306_v4, %s2190_s24 }
 0x439   : > { %v2058_v12 = vpop.f32.mrf.mxu1 }
 0x485   : > { %v1316_v62 = vpop.permute.xlu0 %1315 }
 0x486   : > { %v1350_v16 = vsel %vm712_vm4, %v1036_v52, %v1316_v62 }
 0x489   : > { %v1318_v22 = vpop.permute.xlu0 %1317 }
 0x48a   : > { %v1351_v27 = vsel %vm712_vm4, %v1041_v0, %v1318_v22 }
 0x48d   : > { %v1320_v5 = vpop.permute.xlu0 %1319 }
 0x48e   : > { %v1352_v32 = vsel %vm712_vm4, %v1046_v1, %v1320_v5 }
 0x491   : > { %v1322_v31 = vpop.permute.xlu0 %1321 }
 0x492   : > { %v1353_v36 = vsel %vm712_vm4, %v1051_v9, %v1322_v31 }
 0x495   : > { %v1324_v38 = vpop.permute.xlu0 %1323 }
 0x496   : > { %v1354_v40 = vsel %vm712_vm4, %v1056_v18, %v1324_v38 }
 0x49a   : > { %v1336_v13 = vpop.permute.xlu1 %1335 }
 0x49b   : > { %v1356_v26 = vsel %vm1355_vm9, %v1350_v16, %v1336_v13 }
 0x49c   : > { %2078 = vmatmul.mubr.msk.f32.vlgmr.msra.gmra.mxu0 %vm1370_vm11, %v1356_v26 }
 0x49d   : > { %2080 = vmatprep.mubr.msk.f32.mxu0 %vm2188_vm6, %v2187_v47 }
 0x49e   : > { %v1338_v57 = vpop.permute.xlu1 %1337 }
 0x49f   : > { %v1357_v30 = vsel %vm1355_vm9, %v1351_v27, %v1338_v57 }
 0x4a0   : > { %2081 = vmatmul.mubr.msk.f32.gmra.mxu0 %vm1370_vm11, %v1357_v30 }
 0x4a1   : > { %2083 = vmatprep.mubr.msk.f32.mxu0 %vm2188_vm6, %v2187_v47 }
 0x4a2   : > { %v1340_v33 = vpop.permute.xlu1 %1339 }
 0x4a3   : > { %v1358_v34 = vsel %vm1355_vm9, %v1352_v32, %v1340_v33 }
 0x4a4   : > { %2084 = vmatmul.mubr.msk.f32.gmra.mxu0 %vm1370_vm11, %v1358_v34 }
 0x4a5   : > { %2086 = vmatprep.mubr.msk.f32.mxu0 %vm2188_vm6, %v2187_v47 }
 0x4a6   : > { %v1342_v37 = vpop.permute.xlu1 %1341 }
 0x4a7   : > { %v1359_v39 = vsel %vm1355_vm9, %v1353_v36, %v1342_v37 }
 0x4a8   : > { %2087 = vmatmul.mubr.msk.f32.gmra.mxu0 %vm1370_vm11, %v1359_v39 }
 0x4a9   : > { %2089 = vmatprep.mubr.msk.f32.mxu0 %vm2188_vm6, %v2187_v47 }
 0x4aa   : > { %v1344_v41 = vpop.permute.xlu1 %1343 }
 0x4ab   : > { %v1360_v42 = vsel %vm1355_vm9, %v1354_v40, %v1344_v41 }
 0x4ac   : > { %2090 = vmatmul.mubr.msk.f32.gmra.mxu0 %vm1370_vm11, %v1360_v42 }
 0x4ad   : > { %2098 = vmatprep.mubr.msk.f32.mxu0 %vm2188_vm6, %v2187_v47 }
 0x55c   : > { %v1452_v43 = vpop.f32.mrf.mxu0 }
 0x55d   : > { %v1481_v44 = vmul.f32 0.044715, %v1452_v43  ;;  %v1476_v45 = vmul.f32 0.5, %v1452_v43 }
 0x55e   : > { %v2079_v28 = vpop.f32.mrf.mxu0 }
 0x55f   : > { %v1486_v46 = vmul.f32 %v1481_v44, %v1452_v43 }
 0x560   : > { %v1457_v48 = vpop.f32.mrf.mxu0 }
 0x561   : > { %v1491_v49 = vmul.f32 %v1486_v46, %v1452_v43  ;;  %v1482_v14 = vmul.f32 0.044715, %v1457_v48  ;;  %v1477_v4 = vmul.f32 0.5, %v1457_v48 }
 0x562   : > { %v2082_v50 = vpop.f32.mrf.mxu0 }
 0x563   : > { %v1496_v51 = vadd.f32 %v1491_v49, %v1452_v43  ;;  %v1487_v52 = vmul.f32 %v1482_v14, %v1457_v48 }
 0x564   : > { %v1462_v53 = vpop.f32.mrf.mxu0 }
 0x565   : > { %v1492_v15 = vmul.f32 %v1487_v52, %v1457_v48  ;;  %v1483_v54 = vmul.f32 0.044715, %v1462_v53  ;;  %v1501_v55 = vmul.f32 0.7978846, %v1496_v51  ;;  %v1478_v13 = vmul.f32 0.5, %v1462_v53 }
 0x566   : > { %v2085_v60 = vpop.f32.mrf.mxu0 }
 0x567   : > { %v1497_v25 = vadd.f32 %v1492_v15, %v1457_v48  ;;  %v1488_v61 = vmul.f32 %v1483_v54, %v1462_v53  ;;  %2158 = vtanh.f32 %v1501_v55 }
 0x568   : > { %v1467_v0 = vpop.f32.mrf.mxu0 }
 0x569   : > { %v1493_v2 = vmul.f32 %v1488_v61, %v1462_v53  ;;  %v1484_v24 = vmul.f32 0.044715, %v1467_v0  ;;  %v1502_v3 = vmul.f32 0.7978846, %v1497_v25  ;;  %v1479_v30 = vmul.f32 0.5, %v1467_v0 }
 0x56a   : > { %v2088_v1 = vpop.f32.mrf.mxu0 }
 0x56b   : > { %v1498_v6 = vadd.f32 %v1493_v2, %v1462_v53  ;;  %v1489_v7 = vmul.f32 %v1484_v24, %v1467_v0  ;;  %2160 = vtanh.f32 %v1502_v3 }
 0x56c   : > { %v1472_v29 = vpop.f32.mrf.mxu0 }
 0x56d   : > { %v1494_v8 = vmul.f32 %v1489_v7, %v1467_v0  ;;  %v1485_v9 = vmul.f32 0.044715, %v1472_v29  ;;  %v1503_v10 = vmul.f32 0.7978846, %v1498_v6  ;;  %v1480_v36 = vmul.f32 0.5, %v1472_v29  ;;  %v1613_v6 = vld [vmem:[%s2882_s7 + $0x10] sm:$0xff] }
 0x56e   : > { %v2091_v11 = vpop.f32.mrf.mxu0  ;;  %v1612_v7 = vld [vmem:[%s2882_s7 + $0x8] sm:$0xff]  ;;  %2116 = vmatpush3.msra.mxu1 %v1613_v6  ;;  %2093 = vmatpush3.msra.mxu0 %v1613_v6 }
 0x56f   : > { %v1499_v35 = vadd.f32 %v1494_v8, %v1467_v0  ;;  %v1490_v18 = vmul.f32 %v1485_v9, %v1472_v29  ;;  %2162 = vtanh.f32 %v1503_v10  ;;  %2114 = vmatprep.subr.mxu1 %v2187_v47  ;;  %2094 = vmatprep.subr.mxu0 %v2187_v47 }
 0x570   : > { %2117 = vmatpush3.msra.mxu1 %v1612_v7  ;;  %2095 = vmatpush3.msra.mxu0 %v1612_v7 }
 0x571   : > { %v1495_v19 = vmul.f32 %v1490_v18, %v1472_v29  ;;  %v1504_v20 = vmul.f32 0.7978846, %v1499_v35  ;;  %2096 = vmatprep.subr.mxu0 %v2187_v47  ;;  %2115 = vmatprep.subr.mxu1 %v2187_v47 }
 0x573   : > { %v1500_v21 = vadd.f32 %v1495_v19, %v1472_v29  ;;  %2164 = vtanh.f32 %v1504_v20  ;;  %v1611_v29 = vld [vmem:[%s2882_s7] sm:$0xff] }
 0x574   : > { %v2159_v56 = vpop.eup %2158  ;;  %2097 = vmatpush3.msra.mxu0 %v1611_v29  ;;  %2118 = vmatpush3.msra.mxu1 %v1611_v29 }
 0x575   : > { %v1511_v59 = vadd.f32 1.0, %v2159_v56  ;;  %v1505_v17 = vmul.f32 0.7978846, %v1500_v21 }
 0x577   : > { %v1516_v58 = vmul.f32 %v1511_v59, %v1476_v45  ;;  %2166 = vtanh.f32 %v1505_v17 }
 0x578   : > { %v2161_v23 = vpop.eup %2160 }
 0x579   : > { %v1521_v63 = vsel %vm712_vm4, %v1516_v58, 0.0  ;;  %v1512_v12 = vadd.f32 1.0, %v2161_v23 }
 0x57a   : > { %1522 = vadd.xlane.f32.xlu1 %v1521_v63  ;;  %v1846_v63 = vld [vmem:[%s2880_s5] ss:$0 sm:$0xff] }
 0x57b   : > { %v1517_v62 = vmul.f32 %v1512_v12, %v1477_v4 }
 0x57c   : > { %v2163_v22 = vpop.eup %2162 }
 0x57d   : > { %v1524_v16 = vsel %vm712_vm4, %v1517_v62, 0.0  ;;  %v1513_v5 = vadd.f32 1.0, %v2163_v22 }
 0x57e   : > { %1525 = vadd.xlane.f32.xlu0 %v1524_v16 }
 0x57f   : > { %v1518_v26 = vmul.f32 %v1513_v5, %v1478_v13 }
 0x580   : > { %v2165_v27 = vpop.eup %2164 }
 0x581   : > { %v1527_v57 = vsel %vm712_vm4, %v1518_v26, 0.0  ;;  %v1514_v31 = vadd.f32 1.0, %v2165_v27 }
 0x582   : > { %1528 = vadd.xlane.f32.xlu0 %v1527_v57 }
 0x583   : > { %v1519_v32 = vmul.f32 %v1514_v31, %v1479_v30 }
 0x584   : > { %v2167_v33 = vpop.eup %2166 }
 0x585   : > { %v1530_v34 = vsel %vm712_vm4, %v1519_v32, 0.0  ;;  %v1515_v37 = vadd.f32 1.0, %v2167_v33 }
 0x586   : > { %1531 = vadd.xlane.f32.xlu0 %v1530_v34 }
 0x587   : > { %v1520_v38 = vmul.f32 %v1515_v37, %v1480_v36 }
 0x589   : > { %v1533_v39 = vsel %vm730_vm5, %v1520_v38, 0.0 }
 0x58a   : > { %1534 = vadd.xlane.f32.xlu0 %v1533_v39 }
 0x603   : > { %v1523_v40 = vpop.xlane.xlu1 %1522 }
 0x604   : > { %v1537_v41 = vmul.f32 0.041666668, %v1523_v40 }
 0x606   : > { %v1542_v42 = vsub.f32 %v1516_v58, %v1537_v41 }
 0x607   : > { %v1526_v43 = vpop.xlane.xlu0 %1525 }
 0x608   : > { %v1538_v44 = vmul.f32 0.041666668, %v1526_v43  ;;  %v1547_v28 = vmul.f32 %v1542_v42, %v1542_v42 }
 0x60a   : > { %v2810_v46 = vsub.f32 %v1517_v62, %v1538_v44  ;;  %v1552_v48 = vsel %vm712_vm4, %v1547_v28, 0.0  ;;  %v1847_v62 = vld [vmem:[%s2881_s6] ss:$0 sm:$0xff] }
 0x60b   : > { %v1529_v49 = vpop.xlane.xlu0 %1528  ;;  %1553 = vadd.xlane.f32.xlu0 %v1552_v48 }
 0x60c   : > { %v1539_v14 = vmul.f32 0.041666668, %v1529_v49  ;;  %v1548_v50 = vmul.f32 %v2810_v46, %v2810_v46 }
 0x60e   : > { %v2815_v51 = vsub.f32 %v1518_v26, %v1539_v14  ;;  %v1555_v52 = vsel %vm712_vm4, %v1548_v50, 0.0 }
 0x60f   : > { %v1532_v53 = vpop.xlane.xlu0 %1531  ;;  %1556 = vadd.xlane.f32.xlu0 %v1555_v52 }
 0x610   : > { %v1540_v15 = vmul.f32 0.041666668, %v1532_v53  ;;  %v1549_v54 = vmul.f32 %v2815_v51, %v2815_v51 }
 0x612   : > { %v2820_v55 = vsub.f32 %v1519_v32, %v1540_v15  ;;  %v1558_v60 = vsel %vm712_vm4, %v1549_v54, 0.0 }
 0x613   : > { %1559 = vadd.xlane.f32.xlu1 %v1558_v60  ;;  %v1535_v25 = vpop.xlane.xlu0 %1534 }
 0x614   : > { %v1541_v61 = vmul.f32 0.041666668, %v1535_v25  ;;  %v1550_v0 = vmul.f32 %v2820_v55, %v2820_v55 }
 0x616   : > { %v2825_v2 = vsub.f32 %v1520_v38, %v1541_v61  ;;  %v1561_v24 = vsel %vm712_vm4, %v1550_v0, 0.0 }
 0x617   : > { %1562 = vadd.xlane.f32.xlu1 %v1561_v24 }
 0x618   : > { %v1551_v3 = vmul.f32 %v2825_v2, %v2825_v2 }
 0x61a   : > { %v1564_v1 = vsel %vm730_vm5, %v1551_v3, 0.0  ;;  %vm1726_vm5 = vcmask 261120  }
 0x61b   : > { %1565 = vadd.xlane.f32.xlu1 %v1564_v1 }
 0x694   : > { %v1554_v8 = vpop.xlane.xlu0 %1553 }
 0x695   : > { %v1567_v9 = vmul.f32 0.041666668, %v1554_v8 }
 0x697   : > { %v1572_v10 = vadd.f32 1e-05, %v1567_v9 }
 0x698   : > { %v1557_v11 = vpop.xlane.xlu0 %1556 }
 0x699   : > { %2168 = vrsqrt.f32 %v1572_v10  ;;  %v1568_v35 = vmul.f32 0.041666668, %v1557_v11 }
 0x69b   : > { %v1573_v18 = vadd.f32 1e-05, %v1568_v35 }
 0x69c   : > { %v1560_v19 = vpop.xlane.xlu1 %1559 }
 0x69d   : > { %2170 = vrsqrt.f32 %v1573_v18  ;;  %v1569_v20 = vmul.f32 0.041666668, %v1560_v19 }
 0x69f   : > { %v1574_v21 = vadd.f32 1e-05, %v1569_v20 }
 0x6a0   : > { %v1563_v56 = vpop.xlane.xlu1 %1562 }
 0x6a1   : > { %2172 = vrsqrt.f32 %v1574_v21  ;;  %v1570_v45 = vmul.f32 0.041666668, %v1563_v56 }
 0x6a3   : > { %v1575_v59 = vadd.f32 1e-05, %v1570_v45 }
 0x6a4   : > { %v1566_v17 = vpop.xlane.xlu1 %1565 }
 0x6a5   : > { %2174 = vrsqrt.f32 %v1575_v59  ;;  %v1571_v58 = vmul.f32 0.041666668, %v1566_v17 }
 0x6a6   : > { %v2169_v23 = vpop.eup %2168 }
 0x6a7   : > { %v1582_v4 = vmul.f32 %v2169_v23, %v1542_v42  ;;  %v1576_v12 = vadd.f32 1e-05, %v1571_v58  ;;  %v1848_v42 = vld [vmem:[%s2883_s8] ss:$0 sm:$0xff] }
 0x6a9   : > { %v1594_v22 = vmul.f32 %v1846_v63, %v1582_v4  ;;  %2176 = vrsqrt.f32 %v1576_v12 }
 0x6aa   : > { %v2171_v16 = vpop.eup %2170 }
 0x6ab   : > { %v1606_v13 = vadd.f32 %v1847_v62, %v1594_v22  ;;  %v1583_v5 = vmul.f32 %v2171_v16, %v2810_v46 }
 0x6ad   : > { %2099 = vmatmul.mubr.msk.f32.vlgmr.msra.gmra.mxu0 %vm712_vm4, %v1606_v13  ;;  %v1595_v26 = vmul.f32 %v1846_v63, %v1583_v5 }
 0x6ae   : > { %v2173_v27 = vpop.eup %2172  ;;  %2101 = vmatprep.mubr.msk.f32.mxu0 %vm2188_vm6, %v2187_v47 }
 0x6af   : > { %v1584_v57 = vmul.f32 %v2173_v27, %v2815_v51  ;;  %v1607_v30 = vadd.f32 %v1847_v62, %v1595_v26 }
 0x6b1   : > { %v1596_v31 = vmul.f32 %v1846_v63, %v1584_v57  ;;  %2102 = vmatmul.mubr.msk.f32.gmra.mxu0 %vm712_vm4, %v1607_v30 }
 0x6b2   : > { %v2175_v32 = vpop.eup %2174 }
 0x6b3   : > { %v1608_v33 = vadd.f32 %v1847_v62, %v1596_v31  ;;  %v1585_v34 = vmul.f32 %v2175_v32, %v2820_v55 }
 0x6b5   : > { %2105 = vmatmul.mubr.msk.f32.vlgmr.msra.gmra.mxu1 %vm712_vm4, %v1608_v33  ;;  %v1597_v36 = vmul.f32 %v1846_v63, %v1585_v34 }
 0x6b6   : > { %v2177_v37 = vpop.eup %2176  ;;  %2107 = vmatprep.mubr.msk.f32.mxu1 %vm2188_vm6, %v2187_v47 }
 0x6b7   : > { %v1609_v38 = vadd.f32 %v1847_v62, %v1597_v36  ;;  %v1586_v39 = vmul.f32 %v2177_v37, %v2825_v2 }
 0x6b9   : > { %2108 = vmatmul.mubr.msk.f32.gmra.mxu1 %vm712_vm4, %v1609_v38  ;;  %v1598_v40 = vmul.f32 %v1846_v63, %v1586_v39 }
 0x6ba   : > { %2110 = vmatprep.mubr.msk.f32.mxu1 %vm2188_vm6, %v2187_v47 }
 0x6bb   : > { %v1610_v41 = vadd.f32 %v1847_v62, %v1598_v40 }
 0x6bd   : > { %2111 = vmatmul.mubr.msk.f32.gmra.mxu1 %vm712_vm4, %v1610_v41  ;;  %vm1731_vm4 = vcmask 260096  }
 0x76d   : > { %v1702_v43 = vpop.f32.mrf.mxu0 }
 0x76e   : > { %v1703_v44 = vadd.f32 %v1848_v42, %v1702_v43 }
 0x76f   : > { %v2100_v28 = vpop.f32.mrf.mxu0 }
 0x770   : > { %1727 = vst.msk [vmem:[%s332_s21] sm:$0xff] %vm1726_vm5, %v1703_v44 }
 0x771   : > { %v1707_v46 = vpop.f32.mrf.mxu0 }
 0x772   : > { %v1708_v48 = vadd.f32 %v1848_v42, %v1707_v46 }
 0x773   : > { %v2103_v47 = vpop.f32.mrf.mxu0 }
 0x774   : > { %1728 = vst.msk [vmem:[%s332_s21 + $0x8] sm:$0xff] %vm1726_vm5, %v1708_v48 }
 0x775   : > { %v1712_v49 = vpop.f32.mrf.mxu1 }
 0x776   : > { %v1713_v14 = vadd.f32 %v1848_v42, %v1712_v49 }
 0x777   : > { %v2106_v50 = vpop.f32.mrf.mxu1 }
 0x778   : > { %1729 = vst.msk [vmem:[%s332_s21 + $0x10] sm:$0xff] %vm1726_vm5, %v1713_v14 }
 0x779   : > { %v1717_v51 = vpop.f32.mrf.mxu1 }
 0x77a   : > { %v1718_v52 = vadd.f32 %v1848_v42, %v1717_v51 }
 0x77b   : > { %v2109_v53 = vpop.f32.mrf.mxu1 }
 0x77c   : > { %1730 = vst.msk [vmem:[%s332_s21 + $0x18] sm:$0xff] %vm1726_vm5, %v1718_v52 }
 0x77d   : > { %v1722_v15 = vpop.f32.mrf.mxu1 }
 0x77e   : > { %v1723_v54 = vadd.f32 %v1848_v42, %v1722_v15 }
 0x77f   : > { %v2112_v55 = vpop.f32.mrf.mxu1 }
 0x780   : > { %1732 = vst.msk [vmem:[%s332_s21 + $0x20] sm:$0x7f] %vm1731_vm4, %v1723_v54 }
 0x781 PF: > { %s19_s30 = sadd.s32 1, %s2184_s30  }
 0x782   : > { %p16_p4 = scmp.ge.s32.totalorder %s19_s30, 4  }
 0x784   :  { %18 = sbr.rel (!%p16_p4) target bundleno = 1 (0x1), region = 86 }

// kernel: wav2vec2_forward.3
= control target key start
LH: loop header
LB: loop body
LE: loop exit
PB: predicated region body
PF: predicated region fallthrough
CT: control target
= control target key end

     0   :  { %s7042_s27 = smov 0   ;;  %s9162_s0 = inlined_call_operand.vmem [shape: f32[2,43,32], index: 0, kind: input, shape index: {}]   ;;  %s9163_s1 = inlined_call_operand.vmem [shape: f32[2,1,39], index: 1, kind: input, shape index: {}]   ;;  %s9164_s2 = inlined_call_operand.vmem [shape: f32[128,32], index: 2, kind: input, shape index: {}]   ;;  %s9165_s3 = inlined_call_operand.vmem [shape: f32[1,32], index: 3, kind: input, shape index: {}]   ;;  %s9166_s4 = inlined_call_operand.vmem [shape: f32[1,32], index: 4, kind: input, shape index: {}]   ;;  %s9167_s5 = inlined_call_operand.vmem [shape: f32[1,32], index: 5, kind: input, shape index: {}]   ;;  %s9168_s6 = inlined_call_operand.vmem [shape: f32[2,32,96], index: 6, kind: input, shape index: {}]   ;;  %s9169_s7 = inlined_call_operand.vmem [shape: f32[2,1,96], index: 7, kind: input, shape index: {}]   ;;  %s9170_s8 = inlined_call_operand.vmem [shape: f32[2,32,32], index: 8, kind: input, shape index: {}]   ;;  %s9171_s9 = inlined_call_operand.vmem [shape: f32[2,1,32], index: 9, kind: input, shape index: {}]   ;;  %s9172_s10 = inlined_call_operand.vmem [shape: f32[2,1,32], index: 10, kind: input, shape index: {}]   ;;  %s9173_s11 = inlined_call_operand.vmem [shape: f32[2,1,32], index: 11, kind: input, shape index: {}]   ;;  %s9174_s12 = inlined_call_operand.vmem [shape: f32[2,32,64], index: 12, kind: input, shape index: {}]   ;;  %s9175_s13 = inlined_call_operand.vmem [shape: f32[2,1,64], index: 13, kind: input, shape index: {}]   ;;  %s9176_s14 = inlined_call_operand.vmem [shape: f32[2,64,32], index: 14, kind: input, shape index: {}]   ;;  %s9177_s15 = inlined_call_operand.vmem [shape: f32[2,1,32], index: 15, kind: input, shape index: {}]   ;;  %s9178_s16 = inlined_call_operand.vmem [shape: f32[2,1,32], index: 16, kind: input, shape index: {}]   ;;  %s9179_s17 = inlined_call_operand.vmem [shape: f32[2,1,32], index: 17, kind: input, shape index: {}]   ;;  %s9180_s18 = inlined_call_operand.vmem [shape: f32[2,39,32], index: 18, kind: output, shape index: {}]  }
   0x1   :  { %9204 = sst [smem:[#allocation2_spill]] %s9162_s0 }
   0x2   :  { %9205 = sst [smem:[#allocation3_spill]] %s9163_s1 }
   0x3   :  { %9206 = sst [smem:[#allocation4_spill]] %s9164_s2 }
   0x4 LB: > { %s5484_s28 = sadd.s32 4294967295, %s6928_s27   ;;  %p5488_p0 = scmp.ge.s32.totalorder %s6928_s27, 1  ;;  %s6928_s27 = sphi %s7042_s27, %s28_s27  }
   0x5   : > { %p520_p1 = scmp.lt.s32.totalorder %s6928_s27, 3 }
   0x7   : > { %p521_p2 = pnand %p5488_p0, %p520_p1 }
   0x8   : > { %p577_p3 = scmp.lt.s32.totalorder (!%p521_p2), %s5484_s28, 1  ;;  %s9207_s0 = sld [smem:[#allocation4_spill]] (!%p521_p2) }
   0x9   : > { %524 = sbr.rel (%p521_p2) target bundleno = 6101 (0x17d5), region = 92  ;;  %s9208_s26 = sld [smem:[#allocation2_spill]] (!%p521_p2) }
   0xa   : > { %s6932_s2 = smov (!%p521_p2), 32   ;;  %s6933_s25 = smov (!%p521_p2), 96  }
   0xb   : > { %s9184_s19 = smov (!%p521_p2), 64   ;;  %s6935_s20 = smov (!%p521_p2), 88  }
   0xc   : > { %s6936_s21 = smov (!%p521_p2), 120   ;;  %s9190_s23 = smov (!%p521_p2), 104  }
   0xd   : > { %s9182_s24 = smov (!%p521_p2), 56   ;;  %s9202_s30 = smov (!%p521_p2), 8  }
   0xe   : > { %v6930_v0 = vmov 0.0   ;;  %v715_v1 = vld [vmem:[%s9207_s0 + $0x78] sm:$0xff]  ;;  %v714_v2 = vld [vmem:[%s9207_s0 + $0x70] sm:$0xff]  ;;  %s9222_s28 = smov (!%p577_p3, %s5484_s28), 1  ;;  %v713_v3 = vld [vmem:[%s9207_s0 + $0x68] sm:$0xff]  ;;  %vm6931_vm0 = vmmov 0  }
   0xf   : > { %5970 = vmatprep.subr.mxu0 %v6930_v0  ;;  %6017 = vmatprep.subr.mxu1 %v6930_v0  ;;  %s6617_s22 = smul.u32 48, %s9222_s28  ;;  %v712_v4 = vld [vmem:[%s9207_s0 + $0x60] sm:$0xff]  ;;  %v711_v5 = vld [vmem:[%s9207_s0 + $0x58] sm:$0xff]  ;;  %vm602_vm1 = vcmask 1046528   ;;  %vm628_vm2 = vcmask 1045504   ;;  %vm655_vm3 = vcmask 1044480  }
  0x10   : > { %5971 = vmatpush3.msra.mxu0 %v715_v1  ;;  %6002 = vmatprep.mubr.msk.f32.mxu0 %vm6931_vm0, %v6930_v0  ;;  %v710_v19 = vld [vmem:[%s9207_s0 + $0x50] sm:$0xff]  ;;  %v709_v28 = vld [vmem:[%s9207_s0 + $0x48] sm:$0xff]  ;;  %v708_v37 = vld [vmem:[%s9207_s0 + $0x40] sm:$0xff]  ;;  %vm682_vm4 = vcmask 261120   ;;  %vm688_vm5 = vcmask 523264   ;;  %vm694_vm6 = vcmask 785408  }
  0x11   : > { %5972 = vmatprep.subr.mxu0 %v6930_v0  ;;  %s7074_s29 = scalar_lea.vmem %s9208_s26, %s6617_s22  ;;  %6025 = vmatprep.mubr.msk.f32.mxu1 %vm6931_vm0, %v6930_v0  ;;  %v707_v42 = vld [vmem:[%s9207_s0 + $0x38] sm:$0xff]  ;;  %v706_v45 = vld [vmem:[%s9207_s0 + $0x30] sm:$0xff]  ;;  %v705_v48 = vld [vmem:[%s9207_s0 + $0x28] sm:$0xff]  ;;  %vm887_vm7 = vcmask 261122   ;;  %vm863_vm8 = vcmask 1041408   ;;  %vm903_vm9 = vcmask 253952  }
  0x12   : > { %5973 = vmatpush3.msra.mxu0 %v714_v2  ;;  %v7082_v6 = vld [vmem:[%s7074_s29] sm:$0xff]  ;;  %v7085_v7 = vld [vmem:[%s7074_s29 + $0x8] sm:$0xff]  ;;  %v7088_v8 = vld [vmem:[%s7074_s29 + $0x10] sm:$0xff]  ;;  %s9196_s22 = smov 80   ;;  %s9188_s26 = smov 48   ;;  %vm1135_vm10 = vcmask 64512  }
  0x13   : > { %5974 = vmatprep.subr.mxu0 %v6930_v0  ;;  %v603_v9 = vrot.slane %v7082_v6, 1  ;;  %v604_v10 = vrot.slane %v7085_v7, 1  ;;  %v606_v11 = vrot.slane %v7088_v8, 1  ;;  %v629_v12 = vrot.slane %v7082_v6, 2  ;;  %v7096_v13 = vld [vmem:[%s7074_s29 + $0x18] sm:$0xff]  ;;  %v7103_v18 = vld [vmem:[%s7074_s29 + $0x20] sm:$0xff] }
  0x14   : > { %5975 = vmatpush3.msra.mxu0 %v713_v3  ;;  %v630_v14 = vrot.slane %v7085_v7, 2  ;;  %v632_v15 = vrot.slane %v7088_v8, 2  ;;  %v656_v16 = vrot.slane %v7082_v6, 3  ;;  %v657_v17 = vrot.slane %v7085_v7, 3  ;;  %v7147_v46 = vld [vmem:[%s7074_s29 + $0x28] sm:$0x7] }
  0x15   : > { %5976 = vmatprep.subr.mxu0 %v6930_v0  ;;  %v605_v20 = vsel %vm602_vm1, %v603_v9, %v604_v10  ;;  %v607_v21 = vsel %vm602_vm1, %v604_v10, %v606_v11  ;;  %v659_v22 = vrot.slane %v7088_v8, 3  ;;  %v608_v23 = vrot.slane %v7096_v13, 1  ;;  %v704_v51 = vld [vmem:[%s9207_s0 + $0x20] sm:$0xff]  ;;  %v703_v53 = vld [vmem:[%s9207_s0 + $0x18] sm:$0xff]  ;;  %v702_v55 = vld [vmem:[%s9207_s0 + $0x10] sm:$0xff]  ;;  %s9194_s29 = smov 112  }
  0x16   : > { %5977 = vmatpush3.msra.mxu0 %v712_v4  ;;  %v6644_v24 = vpack.i.bf16 %v607_v21, %v605_v20  ;;  %v631_v25 = vsel %vm628_vm2, %v629_v12, %v630_v14  ;;  %v633_v26 = vsel %vm628_vm2, %v630_v14, %v632_v15  ;;  %v658_v27 = vsel %vm655_vm3, %v656_v16, %v657_v17  ;;  %v701_v57 = vld [vmem:[%s9207_s0 + $0x8] sm:$0xff]  ;;  %v700_v58 = vld [vmem:[%s9207_s0] sm:$0xff]  ;;  %s9219_s1 = smov 16  }
  0x17   : > { %5978 = vmatprep.subr.mxu0 %v6930_v0  ;;  %v660_v29 = vsel %vm655_vm3, %v657_v17, %v659_v22  ;;  %v609_v30 = vsel %vm602_vm1, %v606_v11, %v608_v23  ;;  %v610_v31 = vrot.slane %v7103_v18, 1  ;;  %v6649_v32 = vpack.i.bf16 %v633_v26, %v631_v25 }
  0x18   : > { %5979 = vmatpush3.msra.mxu0 %v711_v5  ;;  %6645 = vrot.lane.b32.xlu0 %v6644_v24, %s6932_s2  ;;  %v6654_v33 = vpack.i.bf16 %v660_v29, %v658_v27  ;;  %v634_v34 = vrot.slane %v7096_v13, 2  ;;  %v636_v35 = vrot.slane %v7103_v18, 2  ;;  %v661_v41 = vrot.slane %v7096_v13, 3 }
  0x19   : > { %5980 = vmatprep.subr.mxu0 %v6930_v0  ;;  %v611_v36 = vsel %vm602_vm1, %v608_v23, %v610_v31  ;;  %v663_v44 = vrot.slane %v7103_v18, 3  ;;  %v638_v50 = vrot.slane %v7147_v46, 2  ;;  %v665_v52 = vrot.slane %v7147_v46, 3 }
  0x1a   : > { %5981 = vmatpush3.msra.mxu0 %v710_v19  ;;  %6655 = vrot.lane.b32.xlu1 %v6654_v33, %s6933_s25  ;;  %v6659_v38 = vpack.i.bf16 %v611_v36, %v609_v30  ;;  %v635_v39 = vsel %vm628_vm2, %v632_v15, %v634_v34  ;;  %v637_v40 = vsel %vm628_vm2, %v634_v34, %v636_v35  ;;  %v5491_v36 = vld [vmem:[%s9165_s3] ss:$0 sm:$0xff]  ;;  %vm1262_vm11 = vcmask 318464  }
  0x1b   : > { %5982 = vmatprep.subr.mxu0 %v6930_v0  ;;  %v6664_v43 = vpack.i.bf16 %v637_v40, %v635_v39  ;;  %v662_v47 = vsel %vm655_vm3, %v659_v22, %v661_v41  ;;  %v664_v49 = vsel %vm655_vm3, %v661_v41, %v663_v44  ;;  %v639_v54 = vsel %vm628_vm2, %v636_v35, %v638_v50 }
  0x1c   : > { %5983 = vmatpush3.msra.mxu0 %v709_v28  ;;  %6650 = vrot.lane.b32.xlu0 %v6649_v32, %s9184_s19  ;;  %v666_v56 = vsel %vm655_vm3, %v663_v44, %v665_v52  ;;  %vm1275_vm12 = vcmask 317440   ;;  %vm2453_vm13 = vcmask 130048   ;;  %vm2459_vm14 = vcmask 195584  }
  0x1d   : > { %5984 = vmatprep.subr.mxu0 %v6930_v0 }
  0x1e   : > { %5985 = vmatpush3.msra.mxu0 %v708_v37  ;;  %6660 = vrot.lane.b32.xlu1 %v6659_v38, %s6932_s2 }
  0x1f   : > { %5986 = vmatprep.subr.mxu0 %v6930_v0 }
  0x20   : > { %5987 = vmatpush3.msra.mxu0 %v707_v42  ;;  %6665 = vrot.lane.b32.xlu0 %v6664_v43, %s9184_s19 }
  0x21   : > { %5988 = vmatprep.subr.mxu0 %v6930_v0 }
  0x22   : > { %5989 = vmatpush3.msra.mxu0 %v706_v45  ;;  %671 = vrot.lane.b32.xlu1 %v662_v47, %s6933_s25 }
  0x23   : > { %5990 = vmatprep.subr.mxu0 %v6930_v0 }
  0x24   : > { %5991 = vmatpush3.msra.mxu0 %v705_v48  ;;  %673 = vrot.lane.b32.xlu0 %v664_v49, %s6933_s25 }
  0x25   : > { %5992 = vmatprep.subr.mxu0 %v6930_v0 }
  0x26   : > { %5993 = vmatpush3.msra.mxu0 %v704_v51  ;;  %620 = vrot.lane.b32.xlu1 %v610_v31, %s6932_s2  ;;  %s9192_s2 = smov 72  }
  0x27   : > { %5994 = vmatprep.subr.mxu0 %v6930_v0 }
  0x28   : > { %5995 = vmatpush3.msra.mxu0 %v703_v53  ;;  %648 = vrot.lane.b32.xlu0 %v639_v54, %s9184_s19 }
  0x29   : > { %5996 = vmatprep.subr.mxu0 %v6930_v0 }
  0x2a   : > { %5997 = vmatpush3.msra.mxu0 %v702_v55  ;;  %675 = vrot.lane.b32.xlu1 %v666_v56, %s6933_s25 }
  0x2b   : > { %5998 = vmatprep.subr.mxu0 %v6930_v0 }
  0x2c   : > { %5999 = vmatpush3.msra.mxu0 %v701_v57 }
  0x2d   : > { %6000 = vmatprep.subr.mxu0 %v6930_v0 }
  0x2e   : > { %6001 = vmatpush3.msra.mxu0 %v700_v58 }
  0x2f   : > { %6090 = vmatprep.subr.mxu0 %v6930_v0 }
  0x8a   : > { %v6646_v59 = vpop.permute.xlu0 %6645 }
  0x8b   : > { %v6647_v60 = vunpack.i.l.bf16 %v6646_v59  ;;  %v6648_v62 = vunpack.i.h.bf16 %v6646_v59 }
  0x8c   : > { %v6656_v61 = vpop.permute.xlu1 %6655 }
  0x8d   : > { %v6657_v1 = vunpack.i.l.bf16 %v6656_v61  ;;  %v683_v5 = vsel %vm682_vm4, %v7082_v6, %v6647_v60  ;;  %v6658_v11 = vunpack.i.h.bf16 %v6656_v61  ;;  %v684_v15 = vsel %vm682_vm4, %v7085_v7, %v6648_v62 }
  0x8e   : > { %v6651_v63 = vpop.permute.xlu0 %6650 }
  0x8f   : > { %v6653_v2 = vunpack.i.h.bf16 %v6651_v63  ;;  %v6652_v3 = vunpack.i.l.bf16 %v6651_v63 }
  0x90   : > { %v6661_v4 = vpop.permute.xlu1 %6660 }
  0x91   : > { %v6662_v9 = vunpack.i.l.bf16 %v6661_v4  ;;  %v689_v10 = vsel %vm688_vm5, %v683_v5, %v6652_v3  ;;  %v690_v17 = vsel %vm688_vm5, %v684_v15, %v6653_v2  ;;  %v6663_v20 = vunpack.i.h.bf16 %v6661_v4 }
  0x92   : > { %v695_v12 = vsel %vm694_vm6, %v689_v10, %v6657_v1  ;;  %v6666_v14 = vpop.permute.xlu0 %6665  ;;  %v696_v23 = vsel %vm694_vm6, %v690_v17, %v6658_v11 }
  0x93   : > { %6003 = vmatmul.mubr.f32.vlgmr.msra.gmra.mxu0 %v695_v12  ;;  %v6667_v16 = vunpack.i.l.bf16 %v6666_v14  ;;  %v685_v19 = vsel %vm682_vm4, %v7088_v8, %v6662_v9  ;;  %v6668_v25 = vunpack.i.h.bf16 %v6666_v14  ;;  %v686_v27 = vsel %vm682_vm4, %v7096_v13, %v6663_v20 }
  0x94   : > { %6005 = vmatprep.mubr.msk.f32.mxu0 %vm6931_vm0, %v6930_v0  ;;  %v672_v21 = vpop.permute.xlu1 %671 }
  0x95   : > { %v691_v22 = vsel %vm688_vm5, %v685_v19, %v6667_v16  ;;  %v692_v29 = vsel %vm688_vm5, %v686_v27, %v6668_v25 }
  0x96   : > { %v674_v24 = vpop.permute.xlu0 %673  ;;  %v697_v26 = vsel %vm694_vm6, %v691_v22, %v672_v21 }
  0x97   : > { %6006 = vmatmul.mubr.f32.gmra.mxu0 %v696_v23  ;;  %v698_v32 = vsel %vm694_vm6, %v692_v29, %v674_v24 }
  0x98   : > { %6008 = vmatprep.mubr.msk.f32.mxu0 %vm6931_vm0, %v6930_v0  ;;  %v621_v28 = vpop.permute.xlu1 %620 }
  0x99   : > { %v687_v30 = vsel %vm682_vm4, %v7103_v18, %v621_v28 }
  0x9a   : > { %v649_v31 = vpop.permute.xlu0 %648 }
  0x9b   : > { %6009 = vmatmul.mubr.f32.gmra.mxu0 %v697_v26  ;;  %v693_v33 = vsel %vm688_vm5, %v687_v30, %v649_v31 }
  0x9c   : > { %6011 = vmatprep.mubr.msk.f32.mxu0 %vm6931_vm0, %v6930_v0  ;;  %v676_v34 = vpop.permute.xlu1 %675 }
  0x9d   : > { %v699_v35 = vsel %vm694_vm6, %v693_v33, %v676_v34 }
  0x9f   : > { %6012 = vmatmul.mubr.f32.gmra.mxu0 %v698_v32 }
  0xa0   : > { %6014 = vmatprep.mubr.msk.f32.mxu0 %vm6931_vm0, %v6930_v0 }
  0xa3   : > { %6015 = vmatmul.mubr.f32.gmra.mxu0 %v699_v35 }
  0xa4   : > { %6100 = vmatprep.mubr.msk.f32.mxu0 %vm6931_vm0, %v6930_v0 }
 0x153   : > { %v789_v37 = vpop.f32.mrf.mxu0 }
 0x154   : > { %v790_v38 = vadd.f32 %v5491_v36, %v789_v37 }
 0x155   : > { %v6004_v39 = vpop.f32.mrf.mxu0 }
 0x156   : > { %v818_v40 = vmul.f32 0.044715, %v790_v38  ;;  %v813_v20 = vmul.f32 0.5, %v790_v38 }
 0x157   : > { %v794_v41 = vpop.f32.mrf.mxu0 }
 0x158   : > { %v823_v42 = vmul.f32 %v818_v40, %v790_v38  ;;  %v795_v43 = vadd.f32 %v5491_v36, %v794_v41 }
 0x159   : > { %v6007_v44 = vpop.f32.mrf.mxu0 }
 0x15a   : > { %v828_v45 = vmul.f32 %v823_v42, %v790_v38  ;;  %v819_v47 = vmul.f32 0.044715, %v795_v43  ;;  %v814_v26 = vmul.f32 0.5, %v795_v43 }
 0x15b   : > { %v799_v48 = vpop.f32.mrf.mxu0 }
 0x15c   : > { %v824_v49 = vmul.f32 %v819_v47, %v795_v43  ;;  %v800_v50 = vadd.f32 %v5491_v36, %v799_v48  ;;  %v833_v51 = vadd.f32 %v828_v45, %v790_v38 }
 0x15d   : > { %v6010_v52 = vpop.f32.mrf.mxu0 }
 0x15e   : > { %v829_v53 = vmul.f32 %v824_v49, %v795_v43  ;;  %v820_v54 = vmul.f32 0.044715, %v800_v50  ;;  %v838_v55 = vmul.f32 0.7978846, %v833_v51  ;;  %v815_v33 = vmul.f32 0.5, %v800_v50 }
 0x15f   : > { %v804_v56 = vpop.f32.mrf.mxu0 }
 0x160   : > { %v834_v57 = vadd.f32 %v829_v53, %v795_v43  ;;  %v825_v58 = vmul.f32 %v820_v54, %v800_v50  ;;  %v805_v59 = vadd.f32 %v5491_v36, %v804_v56  ;;  %6669 = vtanh.f32 %v838_v55 }
 0x161   : > { %v6013_v60 = vpop.f32.mrf.mxu0 }
 0x162   : > { %v839_v61 = vmul.f32 0.7978846, %v834_v57  ;;  %v830_v62 = vmul.f32 %v825_v58, %v800_v50  ;;  %v821_v63 = vmul.f32 0.044715, %v805_v59  ;;  %v816_v40 = vmul.f32 0.5, %v805_v59 }
 0x163   : > { %v809_v1 = vpop.f32.mrf.mxu0 }
 0x164   : > { %v835_v2 = vadd.f32 %v830_v62, %v800_v50  ;;  %v826_v3 = vmul.f32 %v821_v63, %v805_v59  ;;  %v810_v4 = vadd.f32 %v5491_v36, %v809_v1  ;;  %6671 = vtanh.f32 %v839_v61 }
 0x165   : > { %v6016_v5 = vpop.f32.mrf.mxu0 }
 0x166   : > { %v840_v9 = vmul.f32 0.7978846, %v835_v2  ;;  %v831_v10 = vmul.f32 %v826_v3, %v805_v59  ;;  %v822_v11 = vmul.f32 0.044715, %v810_v4  ;;  %v817_v48 = vmul.f32 0.5, %v810_v4 }
 0x168   : > { %v836_v12 = vadd.f32 %v831_v10, %v805_v59  ;;  %v827_v14 = vmul.f32 %v822_v11, %v810_v4  ;;  %6673 = vtanh.f32 %v840_v9 }
 0x16a   : > { %v841_v15 = vmul.f32 0.7978846, %v836_v12  ;;  %v832_v16 = vmul.f32 %v827_v14, %v810_v4 }
 0x16c   : > { %6675 = vtanh.f32 %v841_v15  ;;  %v837_v17 = vadd.f32 %v832_v16, %v810_v4 }
 0x16d   : > { %v6670_v19 = vpop.eup %6669 }
 0x16e   : > { %v848_v21 = vadd.f32 1.0, %v6670_v19  ;;  %v842_v22 = vmul.f32 0.7978846, %v837_v17 }
 0x170   : > { %v853_v23 = vmul.f32 %v848_v21, %v813_v20  ;;  %6677 = vtanh.f32 %v842_v22 }
 0x171   : > { %v6672_v24 = vpop.eup %6671 }
 0x172   : > { %v864_v25 = vrot.slane %v853_v23, 6  ;;  %v849_v27 = vadd.f32 1.0, %v6672_v24 }
 0x174   : > { %v879_v28 = vadd.f32 %v864_v25, %v7082_v6  ;;  %v854_v29 = vmul.f32 %v849_v27, %v814_v26 }
 0x175   : > { %v6674_v30 = vpop.eup %6673 }
 0x176   : > { %v888_v31 = vsel %vm887_vm7, %v879_v28, 0.0  ;;  %v865_v32 = vrot.slane %v854_v29, 6  ;;  %v850_v34 = vadd.f32 1.0, %v6674_v30  ;;  %v994_v29 = vld [vmem:[%s9168_s6 + $0x10] sm:$0xff]  ;;  %v993_v30 = vld [vmem:[%s9168_s6 + $0x8] sm:$0xff] }
 0x177   : > { %889 = vadd.xlane.f32.xlu0 %v888_v31  ;;  %v992_v31 = vld [vmem:[%s9168_s6] sm:$0xff] }
 0x178   : > { %v866_v35 = vsel %vm863_vm8, %v864_v25, %v865_v32  ;;  %v855_v36 = vmul.f32 %v850_v34, %v815_v33 }
 0x179   : > { %v6676_v37 = vpop.eup %6675  ;;  %v880_v38 = vadd.f32 %v866_v35, %v7085_v7 }
 0x17a   : > { %v867_v39 = vrot.slane %v855_v36, 6  ;;  %v851_v41 = vadd.f32 1.0, %v6676_v37 }
 0x17b   : > { %v891_v6 = vsel %vm682_vm4, %v880_v38, 0.0 }
 0x17c   : > { %892 = vadd.xlane.f32.xlu1 %v891_v6  ;;  %v868_v42 = vsel %vm863_vm8, %v865_v32, %v867_v39  ;;  %v856_v43 = vmul.f32 %v851_v41, %v816_v40 }
 0x17d   : > { %v6678_v44 = vpop.eup %6677  ;;  %v881_v45 = vadd.f32 %v868_v42, %v7088_v8 }
 0x17e   : > { %v869_v47 = vrot.slane %v856_v43, 6  ;;  %v852_v49 = vadd.f32 1.0, %v6678_v44 }
 0x17f   : > { %v894_v50 = vsel %vm682_vm4, %v881_v45, 0.0 }
 0x180   : > { %895 = vadd.xlane.f32.xlu0 %v894_v50  ;;  %v870_v7 = vsel %vm863_vm8, %v867_v39, %v869_v47  ;;  %v857_v51 = vmul.f32 %v852_v49, %v817_v48  ;;  %v5492_v49 = vld [vmem:[%s9166_s4] ss:$0 sm:$0xff] }
 0x181   : > { %v882_v52 = vadd.f32 %v870_v7, %v7096_v13 }
 0x182   : > { %v871_v53 = vrot.slane %v857_v51, 6 }
 0x183   : > { %v897_v54 = vsel %vm682_vm4, %v882_v52, 0.0 }
 0x184   : > { %898 = vadd.xlane.f32.xlu0 %v897_v54  ;;  %v884_v55 = vadd.f32 %v871_v53, %v7147_v46  ;;  %v872_v8 = vsel %vm863_vm8, %v869_v47, %v871_v53  ;;  %v5493_v54 = vld [vmem:[%s9167_s5] ss:$0 sm:$0xff] }
 0x185   : > { %v883_v56 = vadd.f32 %v872_v8, %v7103_v18 }
 0x186   : > { %v904_v57 = vsel %vm903_vm9, %v884_v55, 0.0 }
 0x187   : > { %v900_v58 = vsel %vm682_vm4, %v883_v56, 0.0 }
 0x188   : > { %905 = vadd.xlane.f32.xlu0 %v904_v57  ;;  %901 = vadd.xlane.f32.xlu1 %v900_v58 }
 0x200   : > { %v890_v59 = vpop.xlane.xlu0 %889 }
 0x201   : > { %v908_v60 = vmul.f32 0.03125, %v890_v59 }
 0x203   : > { %v7236_v13 = vsub.f32 %v879_v28, %v908_v60  ;;  %v995_v28 = vld [vmem:[%s9168_s6 + $0x18] sm:$0xff] }
 0x204   : > { %6018 = vmatpush3.msra.mxu1 %v995_v28 }
 0x205   : > { %v893_v61 = vpop.xlane.xlu1 %892  ;;  %v920_v62 = vmul.f32 %v7236_v13, %v7236_v13  ;;  %6019 = vmatprep.subr.mxu1 %v6930_v0 }
 0x206   : > { %v909_v63 = vmul.f32 0.03125, %v893_v61  ;;  %6020 = vmatpush3.msra.mxu1 %v994_v29 }
 0x207   : > { %v926_v46 = vsel %vm887_vm7, %v920_v62, 0.0  ;;  %6021 = vmatprep.subr.mxu1 %v6930_v0 }
 0x208   : > { %v7241_v1 = vsub.f32 %v880_v38, %v909_v63  ;;  %927 = vadd.xlane.f32.xlu1 %v926_v46  ;;  %6022 = vmatpush3.msra.mxu1 %v993_v30  ;;  %v5494_v30 = vld [vmem:[%s9169_s7] ss:$0 sm:$0xff] }
 0x209   : > { %v896_v18 = vpop.xlane.xlu0 %895  ;;  %6023 = vmatprep.subr.mxu1 %v6930_v0 }
 0x20a   : > { %v910_v2 = vmul.f32 0.03125, %v896_v18  ;;  %v921_v3 = vmul.f32 %v7241_v1, %v7241_v1  ;;  %6024 = vmatpush3.msra.mxu1 %v992_v31 }
 0x20b   : > { %6040 = vmatprep.subr.mxu1 %v6930_v0 }
 0x20c   : > { %v7245_v4 = vsub.f32 %v881_v45, %v910_v2  ;;  %v929_v5 = vsel %vm682_vm4, %v921_v3, 0.0 }
 0x20d   : > { %v899_v9 = vpop.xlane.xlu0 %898  ;;  %930 = vadd.xlane.f32.xlu0 %v929_v5 }
 0x20e   : > { %v911_v10 = vmul.f32 0.03125, %v899_v9  ;;  %v922_v11 = vmul.f32 %v7245_v4, %v7245_v4 }
 0x210   : > { %v7250_v12 = vsub.f32 %v882_v52, %v911_v10  ;;  %v932_v14 = vsel %vm682_vm4, %v922_v11, 0.0 }
 0x211   : > { %v906_v15 = vpop.xlane.xlu0 %905  ;;  %933 = vadd.xlane.f32.xlu1 %v932_v14  ;;  %v902_v16 = vpop.xlane.xlu1 %901 }
 0x212   : > { %v913_v17 = vmul.f32 0.03125, %v906_v15  ;;  %v912_v19 = vmul.f32 0.03125, %v902_v16  ;;  %v923_v20 = vmul.f32 %v7250_v12, %v7250_v12 }
 0x214   : > { %v7255_v21 = vsub.f32 %v884_v55, %v913_v17  ;;  %v7257_v22 = vsub.f32 %v883_v56, %v912_v19  ;;  %v935_v23 = vsel %vm682_vm4, %v923_v20, 0.0 }
 0x215   : > { %936 = vadd.xlane.f32.xlu0 %v935_v23 }
 0x216   : > { %v925_v24 = vmul.f32 %v7255_v21, %v7255_v21  ;;  %v924_v25 = vmul.f32 %v7257_v22, %v7257_v22 }
 0x218   : > { %v941_v26 = vsel %vm903_vm9, %v925_v24, 0.0  ;;  %v938_v27 = vsel %vm682_vm4, %v924_v25, 0.0 }
 0x219   : > { %942 = vadd.xlane.f32.xlu0 %v941_v26  ;;  %939 = vadd.xlane.f32.xlu1 %v938_v27 }
 0x291   : > { %v928_v32 = vpop.xlane.xlu1 %927 }
 0x292   : > { %v944_v33 = vmul.f32 0.03125, %v928_v32 }
 0x294   : > { %v950_v34 = vadd.f32 1e-05, %v944_v33 }
 0x296   : > { %6679 = vrsqrt.f32 %v950_v34  ;;  %v931_v35 = vpop.xlane.xlu0 %930 }
 0x297   : > { %v945_v36 = vmul.f32 0.03125, %v931_v35 }
 0x299   : > { %v951_v37 = vadd.f32 1e-05, %v945_v36 }
 0x29a   : > { %v934_v38 = vpop.xlane.xlu1 %933 }
 0x29b   : > { %6681 = vrsqrt.f32 %v951_v37  ;;  %v946_v39 = vmul.f32 0.03125, %v934_v38 }
 0x29d   : > { %v952_v40 = vadd.f32 1e-05, %v946_v39 }
 0x29e   : > { %v937_v41 = vpop.xlane.xlu0 %936 }
 0x29f   : > { %6683 = vrsqrt.f32 %v952_v40  ;;  %v947_v6 = vmul.f32 0.03125, %v937_v41 }
 0x2a1   : > { %v953_v42 = vadd.f32 1e-05, %v947_v6 }
 0x2a2   : > { %v943_v43 = vpop.xlane.xlu0 %942  ;;  %v940_v44 = vpop.xlane.xlu1 %939 }
 0x2a3   : > { %v6680_v45 = vpop.eup %6679  ;;  %6685 = vrsqrt.f32 %v953_v42  ;;  %v949_v47 = vmul.f32 0.03125, %v943_v43  ;;  %v948_v48 = vmul.f32 0.03125, %v940_v44 }
 0x2a4   : > { %v962_v50 = vmul.f32 %v6680_v45, %v7236_v13 }
 0x2a5   : > { %v955_v7 = vadd.f32 1e-05, %v949_v47  ;;  %v954_v51 = vadd.f32 1e-05, %v948_v48 }
 0x2a6   : > { %v974_v52 = vmul.f32 %v5492_v49, %v962_v50 }
 0x2a7   : > { %6687 = vrsqrt.f32 %v955_v7 }
 0x2a8   : > { %v6682_v53 = vpop.eup %6681  ;;  %6689 = vrsqrt.f32 %v954_v51  ;;  %v7290_v56 = vadd.f32 %v5493_v54, %v974_v52 }
 0x2a9   : > { %v963_v55 = vmul.f32 %v6682_v53, %v7241_v1 }
 0x2aa   : > { %v1009_v60 = vrot.slane %v7290_v56, 2 }
 0x2ab   : > { %v975_v8 = vmul.f32 %v5492_v49, %v963_v55 }
 0x2ac   : > { %v6684_v57 = vpop.eup %6683 }
 0x2ad   : > { %v7292_v58 = vadd.f32 %v5493_v54, %v975_v8  ;;  %v964_v59 = vmul.f32 %v6684_v57, %v7245_v4 }
 0x2af   : > { %v1010_v13 = vrot.slane %v7292_v58, 2  ;;  %v976_v61 = vmul.f32 %v5492_v49, %v964_v59 }
 0x2b0   : > { %v6686_v62 = vpop.eup %6685 }
 0x2b1   : > { %v1011_v63 = vsel %vm628_vm2, %v1009_v60, %v1010_v13  ;;  %v7298_v46 = vadd.f32 %v5493_v54, %v976_v61  ;;  %v965_v1 = vmul.f32 %v6686_v62, %v7250_v12 }
 0x2b2   : > { %6026 = vmatmul.mubr.msk.f32.vlgmr.msra.gmra.mxu1 %vm682_vm4, %v1011_v63 }
 0x2b3   : > { %6028 = vmatprep.mubr.msk.f32.mxu1 %vm6931_vm0, %v6930_v0  ;;  %v1012_v18 = vrot.slane %v7298_v46, 2  ;;  %v977_v2 = vmul.f32 %v5492_v49, %v965_v1 }
 0x2b4   : > { %v6688_v3 = vpop.eup %6687 }
 0x2b5   : > { %v6690_v4 = vpop.eup %6689  ;;  %v1013_v5 = vsel %vm628_vm2, %v1010_v13, %v1012_v18  ;;  %v7306_v9 = vadd.f32 %v5493_v54, %v977_v2  ;;  %v967_v10 = vmul.f32 %v6688_v3, %v7255_v21 }
 0x2b6   : > { %6029 = vmatmul.mubr.msk.f32.gmra.mxu1 %vm682_vm4, %v1013_v5  ;;  %v966_v11 = vmul.f32 %v6690_v4, %v7257_v22 }
 0x2b7   : > { %6031 = vmatprep.mubr.msk.f32.mxu1 %vm6931_vm0, %v6930_v0  ;;  %v1014_v12 = vrot.slane %v7306_v9, 2  ;;  %v979_v14 = vmul.f32 %v5492_v49, %v967_v10 }
 0x2b8   : > { %v978_v15 = vmul.f32 %v5492_v49, %v966_v11 }
 0x2b9   : > { %v1015_v16 = vsel %vm628_vm2, %v1012_v18, %v1014_v12  ;;  %v7318_v19 = vadd.f32 %v5493_v54, %v979_v14 }
 0x2ba   : > { %6032 = vmatmul.mubr.msk.f32.gmra.mxu1 %vm682_vm4, %v1015_v16  ;;  %v7316_v17 = vadd.f32 %v5493_v54, %v978_v15 }
 0x2bb   : > { %6034 = vmatprep.mubr.msk.f32.mxu1 %vm6931_vm0, %v6930_v0  ;;  %v1018_v22 = vrot.slane %v7318_v19, 2 }
 0x2bc   : > { %v1016_v20 = vrot.slane %v7316_v17, 2 }
 0x2be   : > { %v1017_v21 = vsel %vm628_vm2, %v1014_v12, %v1016_v20  ;;  %v1019_v23 = vsel %vm628_vm2, %v1016_v20, %v1018_v22 }
 0x2bf   : > { %6035 = vmatmul.mubr.msk.f32.gmra.mxu1 %vm682_vm4, %v1017_v21 }
 0x2c0   : > { %6037 = vmatprep.mubr.msk.f32.mxu1 %vm6931_vm0, %v6930_v0 }
 0x2c3   : > { %6038 = vmatmul.mubr.msk.f32.gmra.mxu1 %vm682_vm4, %v1019_v23 }
 0x2c4   : > { %6050 = vmatprep.mubr.msk.f32.mxu1 %vm6931_vm0, %v6930_v0 }
 0x372   : > { %v1096_v24 = vpop.f32.mrf.mxu1 }
 0x373   : > { %v7339_v35 = vadd.f32 %v5494_v30, %v1096_v24 }
 0x374   : > { %v6027_v25 = vpop.f32.mrf.mxu1 }
 0x376   : > { %v1101_v26 = vpop.f32.mrf.mxu1 }
 0x377   : > { %v7353_v39 = vadd.f32 %v5494_v30, %v1101_v26 }
 0x378   : > { %v6030_v27 = vpop.f32.mrf.mxu1 }
 0x37a   : > { %v1106_v28 = vpop.f32.mrf.mxu1 }
 0x37b   : > { %v7347_v38 = vadd.f32 %v5494_v30, %v1106_v28 }
 0x37c   : > { %v6033_v29 = vpop.f32.mrf.mxu1 }
 0x37f   : > { %v1111_v31 = vpop.f32.mrf.mxu1 }
 0x380   : > { %v7335_v32 = vadd.f32 %v5494_v30, %v1111_v31 }
 0x381   : > { %v6036_v33 = vpop.f32.mrf.mxu1 }
 0x382   : > { %1131 = vrot.lane.b32.xlu0 %v7335_v32, %s6933_s25 }
 0x383   : > { %v1116_v34 = vpop.f32.mrf.mxu1 }
 0x384   : > { %v7341_v36 = vadd.f32 %v5494_v30, %v1116_v34 }
 0x385   : > { %v6039_v37 = vpop.f32.mrf.mxu1 }
 0x386   : > { %1125 = vrot.lane.b32.xlu0 %v7339_v35, %s6933_s25  ;;  %1133 = vrot.lane.b32.xlu1 %v7341_v36, %s6933_s25 }
 0x38a   : > { %1456 = vrot.lane.b32.xlu0 %v7335_v32, %s6935_s20  ;;  %1129 = vrot.lane.b32.xlu1 %v7347_v38, %s6933_s25 }
 0x38e   : > { %1452 = vrot.lane.b32.xlu0 %v7353_v39, %s6935_s20  ;;  %1127 = vrot.lane.b32.xlu1 %v7353_v39, %s6933_s25 }
 0x392   : > { %1440 = vrot.lane.b32.xlu0 %v7339_v35, %s6936_s21  ;;  %1458 = vrot.lane.b32.xlu1 %v7341_v36, %s6935_s20 }
 0x396   : > { %1442 = vrot.lane.b32.xlu0 %v7353_v39, %s6936_s21  ;;  %1454 = vrot.lane.b32.xlu1 %v7347_v38, %s6935_s20 }
 0x39a   : > { %1444 = vrot.lane.b32.xlu0 %v7347_v38, %s6936_s21  ;;  %1450 = vrot.lane.b32.xlu1 %v7339_v35, %s6935_s20 }
 0x39e   : > { %1446 = vrot.lane.b32.xlu0 %v7335_v32, %s6936_s21  ;;  %1774 = vrot.lane.b32.xlu1 %v7341_v36, %s9196_s22 }
 0x3a2   : > { %1448 = vrot.lane.b32.xlu0 %v7341_v36, %s6936_s21  ;;  %1772 = vrot.lane.b32.xlu1 %v7335_v32, %s9196_s22 }
 0x3a6   : > { %1756 = vrot.lane.b32.xlu0 %v7339_v35, %s9194_s29  ;;  %1770 = vrot.lane.b32.xlu1 %v7347_v38, %s9196_s22 }
 0x3aa   : > { %1758 = vrot.lane.b32.xlu0 %v7353_v39, %s9194_s29  ;;  %1768 = vrot.lane.b32.xlu1 %v7353_v39, %s9196_s22 }
 0x3ae   : > { %1760 = vrot.lane.b32.xlu0 %v7347_v38, %s9194_s29  ;;  %1766 = vrot.lane.b32.xlu1 %v7339_v35, %s9196_s22  ;;  %s9198_s22 = smov 24  }
 0x3b2   : > { %1762 = vrot.lane.b32.xlu0 %v7335_v32, %s9194_s29  ;;  %2090 = vrot.lane.b32.xlu1 %v7341_v36, %s9192_s2 }
 0x3b6   : > { %1764 = vrot.lane.b32.xlu0 %v7341_v36, %s9194_s29  ;;  %2088 = vrot.lane.b32.xlu1 %v7335_v32, %s9192_s2  ;;  %s9211_s29 = smov 112  }
 0x3ba   : > { %2072 = vrot.lane.b32.xlu0 %v7339_v35, %s9190_s23  ;;  %2086 = vrot.lane.b32.xlu1 %v7347_v38, %s9192_s2 }
 0x3be   : > { %2076 = vrot.lane.b32.xlu0 %v7347_v38, %s9190_s23  ;;  %2084 = vrot.lane.b32.xlu1 %v7353_v39, %s9192_s2 }
 0x3c2   : > { %2080 = vrot.lane.b32.xlu0 %v7341_v36, %s9190_s23  ;;  %2082 = vrot.lane.b32.xlu1 %v7339_v35, %s9192_s2  ;;  %s9214_s2 = smov 64  }
 0x3c6   : > { %1325 = vrot.lane.b32.xlu0 %v7335_v32, %s9184_s19  ;;  %2074 = vrot.lane.b32.xlu1 %v7353_v39, %s9190_s23 }
 0x3ca   : > { %1321 = vrot.lane.b32.xlu0 %v7353_v39, %s9184_s19  ;;  %2078 = vrot.lane.b32.xlu1 %v7335_v32, %s9190_s23  ;;  %s6618_s23 = smul.u32 40, %s9222_s28 }
 0x3ce   : > { %1319 = vrot.lane.b32.xlu0 %v7339_v35, %s9184_s19  ;;  %1323 = vrot.lane.b32.xlu1 %v7347_v38, %s9184_s19 }
 0x3d2   : > { %1641 = vrot.lane.b32.xlu0 %v7335_v32, %s9182_s24  ;;  %1639 = vrot.lane.b32.xlu1 %v7347_v38, %s9182_s24 }
 0x3d6   : > { %1637 = vrot.lane.b32.xlu0 %v7353_v39, %s9182_s24  ;;  %1955 = vrot.lane.b32.xlu1 %v7347_v38, %s9188_s26 }
 0x3da   : > { %1635 = vrot.lane.b32.xlu0 %v7339_v35, %s9182_s24  ;;  %1327 = vrot.lane.b32.xlu1 %v7341_v36, %s9184_s19 }
 0x3de   : > { %1957 = vrot.lane.b32.xlu0 %v7335_v32, %s9188_s26  ;;  %1643 = vrot.lane.b32.xlu1 %v7341_v36, %s9182_s24  ;;  %s9209_s24 = sld [smem:[#allocation3_spill]] }
 0x3e2   : > { %1953 = vrot.lane.b32.xlu0 %v7353_v39, %s9188_s26  ;;  %1959 = vrot.lane.b32.xlu1 %v7341_v36, %s9188_s26 }
 0x3e4   : > { %s7562_s19 = scalar_lea.vmem %s9209_s24, %s9222_s28  ;;  %s9186_s24 = smov 40  }
 0x3e5   : > { %v7565_v25 = vld [vmem:[%s7562_s19] ss:$0 sm:$0xff] }
 0x3f4   : > { %v1132_v40 = vpop.permute.xlu0 %1131 }
 0x3f8   : > { %v1126_v41 = vpop.permute.xlu0 %1125  ;;  %v1134_v6 = vpop.permute.xlu1 %1133 }
 0x3f9   : > { %6041 = vmatpush3.xpose.msk.msra.mxu1 %vm1135_vm10, %v1134_v6 }
 0x3fa   : > { %6042 = vmatprep.subr.mxu1 %v6930_v0 }
 0x3fc   : > { %v1457_v42 = vpop.permute.xlu0 %1456  ;;  %v1130_v43 = vpop.permute.xlu1 %1129 }
 0x3fd   : > { %6043 = vmatpush3.xpose.msk.msra.mxu1 %vm1135_vm10, %v1132_v40 }
 0x3fe   : > { %6044 = vmatprep.subr.mxu1 %v6930_v0 }
 0x400   : > { %v1453_v44 = vpop.permute.xlu0 %1452  ;;  %v1128_v45 = vpop.permute.xlu1 %1127 }
 0x401   : > { %6045 = vmatpush3.xpose.msk.msra.mxu1 %vm1135_vm10, %v1130_v43 }
 0x402   : > { %6046 = vmatprep.subr.mxu1 %v6930_v0 }
 0x404   : > { %v1441_v47 = vpop.permute.xlu0 %1440  ;;  %v1459_v48 = vpop.permute.xlu1 %1458 }
 0x405   : > { %6047 = vmatpush3.xpose.msk.msra.mxu1 %vm1135_vm10, %v1128_v45  ;;  %6091 = vmatpush3.xpose.msk.msra.mxu0 %vm1135_vm10, %v1459_v48 }
 0x406   : > { %6048 = vmatprep.subr.mxu1 %v6930_v0  ;;  %6092 = vmatprep.subr.mxu0 %v6930_v0 }
 0x408   : > { %v1443_v49 = vpop.permute.xlu0 %1442  ;;  %v1455_v50 = vpop.permute.xlu1 %1454 }
 0x409   : > { %6049 = vmatpush3.xpose.msk.msra.mxu1 %vm1135_vm10, %v1126_v41  ;;  %6093 = vmatpush3.xpose.msk.msra.mxu0 %vm1135_vm10, %v1457_v42 }
 0x40a   : > { %6094 = vmatprep.subr.mxu0 %v6930_v0  ;;  %6065 = vmatprep.subr.mxu1 %v6930_v0 }
 0x40c   : > { %v1445_v7 = vpop.permute.xlu0 %1444  ;;  %6051 = vmatmul.mubr.msk.f32.vlgmr.msra.gmra.mxu1 %vm1135_vm10, %v7339_v35  ;;  %v1451_v51 = vpop.permute.xlu1 %1450 }
 0x40d   : > { %6095 = vmatpush3.xpose.msk.msra.mxu0 %vm1135_vm10, %v1455_v50  ;;  %6053 = vmatprep.mubr.msk.f32.mxu1 %vm6931_vm0, %v6930_v0 }
 0x40e   : > { %6096 = vmatprep.subr.mxu0 %v6930_v0 }
 0x410   : > { %v1447_v52 = vpop.permute.xlu0 %1446  ;;  %6054 = vmatmul.mubr.msk.f32.gmra.mxu1 %vm1135_vm10, %v7353_v39  ;;  %v1775_v53 = vpop.permute.xlu1 %1774 }
 0x411   : > { %6097 = vmatpush3.xpose.msk.msra.mxu0 %vm1135_vm10, %v1453_v44  ;;  %6056 = vmatprep.mubr.msk.f32.mxu1 %vm6931_vm0, %v6930_v0 }
 0x412   : > { %6098 = vmatprep.subr.mxu0 %v6930_v0 }
 0x414   : > { %v1449_v54 = vpop.permute.xlu0 %1448  ;;  %6057 = vmatmul.mubr.msk.f32.gmra.mxu1 %vm1135_vm10, %v7347_v38  ;;  %v1773_v55 = vpop.permute.xlu1 %1772 }
 0x415   : > { %6099 = vmatpush3.xpose.msk.msra.mxu0 %vm1135_vm10, %v1451_v51  ;;  %6059 = vmatprep.mubr.msk.f32.mxu1 %vm6931_vm0, %v6930_v0 }
 0x416   : > { %6140 = vmatprep.subr.mxu0 %v6930_v0 }
 0x418   : > { %v1757_v8 = vpop.permute.xlu0 %1756  ;;  %6060 = vmatmul.mubr.msk.f32.gmra.mxu1 %vm1135_vm10, %v7335_v32  ;;  %6101 = vmatmul.mubr.msk.f32.vlgmr.msra.gmra.mxu0 %vm1135_vm10, %v1441_v47  ;;  %v1771_v57 = vpop.permute.xlu1 %1770 }
 0x419   : > { %6141 = vmatpush3.xpose.msk.msra.mxu0 %vm1135_vm10, %v1775_v53  ;;  %6062 = vmatprep.mubr.msk.f32.mxu1 %vm6931_vm0, %v6930_v0 }
 0x41a   : > { %6103 = vmatprep.mubr.msk.f32.mxu0 %vm6931_vm0, %v6930_v0  ;;  %6142 = vmatprep.subr.mxu0 %v6930_v0 }
 0x41c   : > { %6063 = vmatmul.mubr.msk.f32.gmra.mxu1 %vm1135_vm10, %v7341_v36  ;;  %6104 = vmatmul.mubr.msk.f32.gmra.mxu0 %vm1135_vm10, %v1443_v49  ;;  %v1769_v59 = vpop.permute.xlu1 %1768  ;;  %v1759_v60 = vpop.permute.xlu0 %1758 }
 0x41d   : > { %6143 = vmatpush3.xpose.msk.msra.mxu0 %vm1135_vm10, %v1773_v55  ;;  %6106 = vmatprep.mubr.msk.f32.mxu0 %vm6931_vm0, %v6930_v0 }
 0x41e   : > { %6144 = vmatprep.subr.mxu0 %v6930_v0  ;;  %6075 = vmatprep.mubr.msk.f32.mxu1 %vm6931_vm0, %v6930_v0 }
 0x420   : > { %6107 = vmatmul.mubr.msk.f32.gmra.mxu0 %vm1135_vm10, %v1445_v7  ;;  %v1767_v13 = vpop.permute.xlu1 %1766  ;;  %v1761_v61 = vpop.permute.xlu0 %1760 }
 0x421   : > { %6145 = vmatpush3.xpose.msk.msra.mxu0 %vm1135_vm10, %v1771_v57  ;;  %6109 = vmatprep.mubr.msk.f32.mxu0 %vm6931_vm0, %v6930_v0 }
 0x422   : > { %6146 = vmatprep.subr.mxu0 %v6930_v0 }
 0x424   : > { %6110 = vmatmul.mubr.msk.f32.gmra.mxu0 %vm1135_vm10, %v1447_v52  ;;  %v2091_v62 = vpop.permute.xlu1 %2090  ;;  %v1763_v1 = vpop.permute.xlu0 %1762 }
 0x425   : > { %6147 = vmatpush3.xpose.msk.msra.mxu0 %vm1135_vm10, %v1769_v59  ;;  %6112 = vmatprep.mubr.msk.f32.mxu0 %vm6931_vm0, %v6930_v0 }
 0x426   : > { %6148 = vmatprep.subr.mxu0 %v6930_v0 }
 0x428   : > { %6113 = vmatmul.mubr.msk.f32.gmra.mxu0 %vm1135_vm10, %v1449_v54  ;;  %v2089_v63 = vpop.permute.xlu1 %2088  ;;  %v1765_v2 = vpop.permute.xlu0 %1764 }
 0x429   : > { %6149 = vmatpush3.xpose.msk.msra.mxu0 %vm1135_vm10, %v1767_v13  ;;  %6150 = vmatprep.mubr.msk.f32.mxu0 %vm6931_vm0, %v6930_v0 }
 0x42a   : > { %6190 = vmatprep.subr.mxu0 %v6930_v0 }
 0x42c   : > { %6151 = vmatmul.mubr.msk.f32.vlgmr.msra.gmra.mxu0 %vm1135_vm10, %v1757_v8  ;;  %v2087_v18 = vpop.permute.xlu1 %2086  ;;  %v2073_v5 = vpop.permute.xlu0 %2072 }
 0x42d   : > { %6191 = vmatpush3.xpose.msk.msra.mxu0 %vm1135_vm10, %v2091_v62  ;;  %6153 = vmatprep.mubr.msk.f32.mxu0 %vm6931_vm0, %v6930_v0 }
 0x42e   : > { %6192 = vmatprep.subr.mxu0 %v6930_v0 }
 0x430   : > { %6154 = vmatmul.mubr.msk.f32.gmra.mxu0 %vm1135_vm10, %v1759_v60  ;;  %v2085_v3 = vpop.permute.xlu1 %2084  ;;  %v2077_v11 = vpop.permute.xlu0 %2076 }
 0x431   : > { %6193 = vmatpush3.xpose.msk.msra.mxu0 %vm1135_vm10, %v2089_v63  ;;  %6156 = vmatprep.mubr.msk.f32.mxu0 %vm6931_vm0, %v6930_v0 }
 0x432   : > { %6194 = vmatprep.subr.mxu0 %v6930_v0 }
 0x434   : > { %6157 = vmatmul.mubr.msk.f32.gmra.mxu0 %vm1135_vm10, %v1761_v61  ;;  %v2083_v4 = vpop.permute.xlu1 %2082  ;;  %v2081_v15 = vpop.permute.xlu0 %2080 }
 0x435   : > { %6195 = vmatpush3.xpose.msk.msra.mxu0 %vm1135_vm10, %v2087_v18  ;;  %6159 = vmatprep.mubr.msk.f32.mxu0 %vm6931_vm0, %v6930_v0 }
 0x436   : > { %6196 = vmatprep.subr.mxu0 %v6930_v0 }
 0x438   : > { %6160 = vmatmul.mubr.msk.f32.gmra.mxu0 %vm1135_vm10, %v1763_v1  ;;  %v2075_v10 = vpop.permute.xlu1 %2074  ;;  %v1326_v20 = vpop.permute.xlu0 %1325 }
 0x439   : > { %6197 = vmatpush3.xpose.msk.msra.mxu0 %vm1135_vm10, %v2085_v3  ;;  %6162 = vmatprep.mubr.msk.f32.mxu0 %vm6931_vm0, %v6930_v0 }
 0x43a   : > { %6198 = vmatprep.subr.mxu0 %v6930_v0 }
 0x43c   : > { %6163 = vmatmul.mubr.msk.f32.gmra.mxu0 %vm1135_vm10, %v1765_v2  ;;  %v2079_v12 = vpop.permute.xlu1 %2078  ;;  %v1322_v23 = vpop.permute.xlu0 %1321 }
 0x43d   : > { %6199 = vmatpush3.xpose.msk.msra.mxu0 %vm1135_vm10, %v2083_v4  ;;  %6200 = vmatprep.mubr.msk.f32.mxu0 %vm6931_vm0, %v6930_v0 }
 0x43e   : > { %6240 = vmatprep.subr.mxu0 %v6930_v0 }
 0x440   : > { %6201 = vmatmul.mubr.msk.f32.vlgmr.msra.gmra.mxu0 %vm1135_vm10, %v2073_v5  ;;  %v1324_v14 = vpop.permute.xlu1 %1323  ;;  %v1320_v24 = vpop.permute.xlu0 %1319 }
 0x441   : > { %6203 = vmatprep.mubr.msk.f32.mxu0 %vm6931_vm0, %v6930_v0 }
 0x444   : > { %6204 = vmatmul.mubr.msk.f32.gmra.mxu0 %vm1135_vm10, %v2075_v10  ;;  %v7537_v16 = vpop.permute.xlu1 %1639 }
 0x445   : > { %6206 = vmatprep.mubr.msk.f32.mxu0 %vm6931_vm0, %v6930_v0 }
 0x448   : > { %6207 = vmatmul.mubr.msk.f32.gmra.mxu0 %vm1135_vm10, %v2077_v11  ;;  %v7542_v21 = vpop.permute.xlu1 %1955 }
 0x449   : > { %6209 = vmatprep.mubr.msk.f32.mxu0 %vm6931_vm0, %v6930_v0 }
 0x44c   : > { %6210 = vmatmul.mubr.msk.f32.gmra.mxu0 %vm1135_vm10, %v2079_v12  ;;  %v1328_v22 = vpop.permute.xlu1 %1327 }
 0x44d   : > { %6066 = vmatpush3.msk.msra.mxu1 %vm602_vm1, %v1328_v22  ;;  %6212 = vmatprep.mubr.msk.f32.mxu0 %vm6931_vm0, %v6930_v0 }
 0x44e   : > { %6067 = vmatprep.subr.mxu1 %v6930_v0 }
 0x44f   : > { %6068 = vmatpush3.msra.mxu1 %v1326_v20 }
 0x450   : > { %6069 = vmatprep.subr.mxu1 %v6930_v0  ;;  %6213 = vmatmul.mubr.msk.f32.gmra.mxu0 %vm1135_vm10, %v2081_v15 }
 0x451   : > { %6070 = vmatpush3.msra.mxu1 %v1324_v14  ;;  %6248 = vmatprep.mubr.msk.f32.mxu0 %vm6931_vm0, %v6930_v0 }
 0x452   : > { %6071 = vmatprep.subr.mxu1 %v6930_v0 }
 0x453   : > { %6072 = vmatpush3.msra.mxu1 %v1322_v23 }
 0x454   : > { %6073 = vmatprep.subr.mxu1 %v6930_v0 }
 0x455   : > { %6074 = vmatpush3.msra.mxu1 %v1320_v24 }
 0x456   : > { %6115 = vmatprep.subr.mxu1 %v6930_v0 }
 0x4cc   : > { %v1222_v26 = vpop.f32.mrf.mxu1 }
 0x4cd   : > { %v1246_v27 = vmul.f32 0.35355338, %v1222_v26 }
 0x4ce   : > { %v6052_v28 = vpop.f32.mrf.mxu1 }
 0x4cf   : > { %v7568_v29 = vadd.f32 %v7565_v25, %v1246_v27 }
 0x4d0   : > { %v1227_v30 = vpop.f32.mrf.mxu1 }
 0x4d1   : > { %v1247_v31 = vmul.f32 0.35355338, %v1227_v30  ;;  %v1263_v33 = vsel %vm1262_vm11, %v7568_v29, -inf }
 0x4d2   : > { %1264 = vmax.xlane.f32.xlu1 %v1263_v33  ;;  %v6055_v34 = vpop.f32.mrf.mxu1 }
 0x4d3   : > { %v7573_v37 = vadd.f32 %v7565_v25, %v1247_v31 }
 0x4d4   : > { %v1232_v40 = vpop.f32.mrf.mxu1 }
 0x4d5   : > { %v1266_v41 = vsel %vm1262_vm11, %v7573_v37, -inf  ;;  %v1248_v49 = vmul.f32 0.35355338, %v1232_v40 }
 0x4d6   : > { %1267 = vmax.xlane.f32.xlu0 %v1266_v41  ;;  %v6058_v6 = vpop.f32.mrf.mxu1 }
 0x4d7   : > { %v7586_v57 = vadd.f32 %v7565_v25, %v1248_v49 }
 0x4d8   : > { %v1237_v42 = vpop.f32.mrf.mxu1  ;;  %v1546_v43 = vpop.f32.mrf.mxu0 }
 0x4d9   : > { %v1570_v44 = vmul.f32 0.35355338, %v1546_v43  ;;  %v1249_v59 = vmul.f32 0.35355338, %v1237_v42  ;;  %v1269_v1 = vsel %vm1262_vm11, %v7586_v57, -inf }
 0x4da   : > { %v6061_v45 = vpop.f32.mrf.mxu1  ;;  %v6102_v47 = vpop.f32.mrf.mxu0 }
 0x4db   : > { %v7578_v48 = vadd.f32 %v7565_v25, %v1570_v44  ;;  %v7598_v4 = vadd.f32 %v7565_v25, %v1249_v59 }
 0x4dc   : > { %v1242_v50 = vpop.f32.mrf.mxu1  ;;  %v1551_v7 = vpop.f32.mrf.mxu0 }
 0x4dd   : > { %v1571_v51 = vmul.f32 0.35355338, %v1551_v7  ;;  %v1580_v52 = vsel %vm1262_vm11, %v7578_v48, -inf  ;;  %v1250_v18 = vmul.f32 0.35355338, %v1242_v50  ;;  %v1272_v14 = vsel %vm1262_vm11, %v7598_v4, -inf }
 0x4de   : > { %v6064_v53 = vpop.f32.mrf.mxu1  ;;  %1581 = vmax.xlane.f32.xlu1 %v1580_v52  ;;  %v6105_v54 = vpop.f32.mrf.mxu0 }
 0x4df   : > { %v7583_v55 = vadd.f32 %v7565_v25, %v1571_v51  ;;  %v7608_v20 = vadd.f32 %v7565_v25, %v1250_v18 }
 0x4e0   : > { %v1556_v8 = vpop.f32.mrf.mxu0 }
 0x4e1   : > { %v1572_v60 = vmul.f32 0.35355338, %v1556_v8  ;;  %v1583_v13 = vsel %vm1262_vm11, %v7583_v55, -inf  ;;  %v1276_v27 = vsel %vm1275_vm12, %v7608_v20, -inf }
 0x4e2   : > { %1584 = vmax.xlane.f32.xlu0 %v1583_v13  ;;  %v6108_v61 = vpop.f32.mrf.mxu0 }
 0x4e3   : > { %v7591_v62 = vadd.f32 %v7565_v25, %v1572_v60 }
 0x4e4   : > { %v1561_v63 = vpop.f32.mrf.mxu0 }
 0x4e5   : > { %v1573_v2 = vmul.f32 0.35355338, %v1561_v63  ;;  %v1586_v3 = vsel %vm1262_vm11, %v7591_v62, -inf }
 0x4e6   : > { %1270 = vmax.xlane.f32.xlu0 %v1269_v1  ;;  %1587 = vmax.xlane.f32.xlu1 %v1586_v3  ;;  %v6111_v5 = vpop.f32.mrf.mxu0 }
 0x4e7   : > { %v7601_v10 = vadd.f32 %v7565_v25, %v1573_v2 }
 0x4e8   : > { %v1566_v11 = vpop.f32.mrf.mxu0 }
 0x4e9   : > { %v1574_v12 = vmul.f32 0.35355338, %v1566_v11  ;;  %v1589_v15 = vsel %vm1262_vm11, %v7601_v10, -inf }
 0x4ea   : > { %1273 = vmax.xlane.f32.xlu1 %v1272_v14  ;;  %1590 = vmax.xlane.f32.xlu0 %v1589_v15  ;;  %v6114_v22 = vpop.f32.mrf.mxu0 }
 0x4eb   : > { %v7611_v23 = vadd.f32 %v7565_v25, %v1574_v12 }
 0x4ec   : > { %v1862_v24 = vpop.f32.mrf.mxu0 }
 0x4ed   : > { %v1886_v26 = vmul.f32 0.35355338, %v1862_v24  ;;  %v1592_v28 = vsel %vm1275_vm12, %v7611_v23, -inf }
 0x4ee   : > { %1277 = vmax.xlane.f32.xlu0 %v1276_v27  ;;  %1593 = vmax.xlane.f32.xlu1 %v1592_v28  ;;  %v6152_v30 = vpop.f32.mrf.mxu0 }
 0x4ef   : > { %v7618_v31 = vadd.f32 %v7565_v25, %v1886_v26 }
 0x4f0   : > { %v1867_v33 = vpop.f32.mrf.mxu0 }
 0x4f1   : > { %v1896_v34 = vsel %vm1262_vm11, %v7618_v31, -inf  ;;  %v1887_v60 = vmul.f32 0.35355338, %v1867_v33 }
 0x4f2   : > { %1897 = vmax.xlane.f32.xlu0 %v1896_v34  ;;  %v6155_v40 = vpop.f32.mrf.mxu0 }
 0x4f3   : > { %v7627_v63 = vadd.f32 %v7565_v25, %v1887_v60 }
 0x4f4   : > { %v1872_v41 = vpop.f32.mrf.mxu0 }
 0x4f5   : > { %v1888_v13 = vmul.f32 0.35355338, %v1872_v41  ;;  %v1899_v18 = vsel %vm1262_vm11, %v7627_v63, -inf }
 0x4f6   : > { %v6158_v6 = vpop.f32.mrf.mxu0 }
 0x4f7   : > { %v7632_v2 = vadd.f32 %v7565_v25, %v1888_v13 }
 0x4f8   : > { %v1877_v42 = vpop.f32.mrf.mxu0 }
 0x4f9   : > { %v1889_v61 = vmul.f32 0.35355338, %v1877_v42  ;;  %v1902_v15 = vsel %vm1262_vm11, %v7632_v2, -inf }
 0x4fa   : > { %v6161_v43 = vpop.f32.mrf.mxu0 }
 0x4fb   : > { %v7635_v3 = vadd.f32 %v7565_v25, %v1889_v61 }
 0x4fc   : > { %v1882_v44 = vpop.f32.mrf.mxu0 }
 0x4fd   : > { %v1905_v22 = vsel %vm1262_vm11, %v7635_v3, -inf }
 0x4fe   : > { %v6164_v45 = vpop.f32.mrf.mxu0 }
 0x4ff   : > { %2275 = vrot.lane.b32.xlu1 %v7341_v36, %s9186_s24  ;;  %v1890_v36 = vmul.f32 0.35355338, %v1882_v44  ;;  %v7671_v44 = vpop.permute.xlu0 %1641 }
 0x500   : > { %v2178_v47 = vpop.f32.mrf.mxu0 }
 0x501   : > { %v2202_v1 = vmul.f32 0.35355338, %v2178_v47  ;;  %v7638_v5 = vadd.f32 %v7565_v25, %v1890_v36 }
 0x502   : > { %v6202_v49 = vpop.f32.mrf.mxu0 }
 0x503   : > { %v7641_v11 = vadd.f32 %v7565_v25, %v2202_v1  ;;  %v1908_v24 = vsel %vm1275_vm12, %v7638_v5, -inf  ;;  %v7673_v45 = vpop.permute.xlu0 %1637  ;;  %v7677_v49 = vpop.permute.xlu1 %1643 }
 0x504   : > { %v2183_v50 = vpop.f32.mrf.mxu0 }
 0x505   : > { %v2203_v12 = vmul.f32 0.35355338, %v2183_v50  ;;  %v2212_v26 = vsel %vm1262_vm11, %v7641_v11, -inf }
 0x506   : > { %v6205_v7 = vpop.f32.mrf.mxu0 }
 0x507   : > { %v7652_v30 = vadd.f32 %v7565_v25, %v2203_v12  ;;  %v7675_v47 = vpop.permute.xlu0 %1635  ;;  %v7681_v50 = vpop.permute.xlu1 %1959 }
 0x508   : > { %1951 = vrot.lane.b32.xlu0 %v7339_v35, %s9188_s26  ;;  %v2188_v51 = vpop.f32.mrf.mxu0  ;;  %s9200_s26 = smov 16  }
 0x509   : > { %v2204_v14 = vmul.f32 0.35355338, %v2188_v51  ;;  %v2215_v34 = vsel %vm1262_vm11, %v7652_v30, -inf }
 0x50a   : > { %v6208_v52 = vpop.f32.mrf.mxu0 }
 0x50b   : > { %v7655_v33 = vadd.f32 %v7565_v25, %v2204_v14 }
 0x50c   : > { %v2193_v53 = vpop.f32.mrf.mxu0 }
 0x50d   : > { %v2205_v27 = vmul.f32 0.35355338, %v2193_v53  ;;  %v2218_v40 = vsel %vm1262_vm11, %v7655_v33, -inf }
 0x50e   : > { %v6211_v54 = vpop.f32.mrf.mxu0 }
 0x50f   : > { %v7662_v41 = vadd.f32 %v7565_v25, %v2205_v27 }
 0x510   : > { %v2198_v8 = vpop.f32.mrf.mxu0 }
 0x511   : > { %v2206_v28 = vmul.f32 0.35355338, %v2198_v8  ;;  %v2221_v42 = vsel %vm1262_vm11, %v7662_v41, -inf }
 0x512   : > { %v6214_v59 = vpop.f32.mrf.mxu0 }
 0x513   : > { %v7665_v6 = vadd.f32 %v7565_v25, %v2206_v28  ;;  %v7679_v25 = vpop.permute.xlu0 %1957 }
 0x515   : > { %v2224_v43 = vsel %vm1275_vm12, %v7665_v6, -inf }
 0x517   : > { %v7683_v7 = vpop.permute.xlu0 %1953 }
 0x523   : > { %1900 = vmax.xlane.f32.xlu1 %v1899_v18 }
 0x527   : > { %1903 = vmax.xlane.f32.xlu0 %v1902_v15  ;;  %1906 = vmax.xlane.f32.xlu1 %v1905_v22 }
 0x52b   : > { %1909 = vmax.xlane.f32.xlu0 %v1908_v24  ;;  %2213 = vmax.xlane.f32.xlu1 %v2212_v26 }
 0x52f   : > { %2216 = vmax.xlane.f32.xlu0 %v2215_v34  ;;  %2219 = vmax.xlane.f32.xlu1 %v2218_v40 }
 0x533   : > { %2222 = vmax.xlane.f32.xlu0 %v2221_v42  ;;  %2225 = vmax.xlane.f32.xlu1 %v2224_v43 }
 0x55b   : > { %v1265_v51 = vpop.xlane.xlu1 %1264 }
 0x55c   : > { %v1279_v52 = vsub.f32 %v7568_v29, %v1265_v51 }
 0x55e   : > { %v1284_v53 = vmul.f32 1.442695, %v1279_v52 }
 0x55f   : > { %v1268_v54 = vpop.xlane.xlu0 %1267 }
 0x560   : > { %6691 = vpow2.f32 %v1284_v53  ;;  %v1280_v8 = vsub.f32 %v7573_v37, %v1268_v54 }
 0x562   : > { %v1286_v59 = vmul.f32 1.442695, %v1280_v8 }
 0x564   : > { %6693 = vpow2.f32 %v1286_v59 }
 0x567   : > { %v1582_v60 = vpop.xlane.xlu1 %1581 }
 0x568   : > { %v1595_v13 = vsub.f32 %v7578_v48, %v1582_v60 }
 0x56a   : > { %v1600_v61 = vmul.f32 1.442695, %v1595_v13 }
 0x56b   : > { %v1585_v36 = vpop.xlane.xlu0 %1584 }
 0x56c   : > { %6695 = vpow2.f32 %v1600_v61  ;;  %v1596_v1 = vsub.f32 %v7583_v55, %v1585_v36 }
 0x56d   : > { %v7689_v18 = vpop.eup %6691 }
 0x56e   : > { %v1602_v12 = vmul.f32 1.442695, %v1596_v1  ;;  %v1294_v29 = vsel %vm1262_vm11, %v7689_v18, 0.0 }
 0x56f   : > { %v1271_v14 = vpop.xlane.xlu0 %1270  ;;  %v1588_v15 = vpop.xlane.xlu1 %1587  ;;  %1295 = vadd.xlane.f32.xlu0 %v1294_v29 }
 0x570   : > { %6697 = vpow2.f32 %v1602_v12  ;;  %v1281_v37 = vsub.f32 %v7586_v57, %v1271_v14  ;;  %v1597_v22 = vsub.f32 %v7591_v62, %v1588_v15 }
 0x571   : > { %v7695_v48 = vpop.eup %6693 }
 0x572   : > { %v1288_v24 = vmul.f32 1.442695, %v1281_v37  ;;  %v1604_v26 = vmul.f32 1.442695, %v1597_v22  ;;  %v1297_v55 = vsel %vm1262_vm11, %v7695_v48, 0.0 }
 0x573   : > { %v1274_v27 = vpop.xlane.xlu1 %1273  ;;  %v1591_v28 = vpop.xlane.xlu0 %1590  ;;  %1298 = vadd.xlane.f32.xlu1 %v1297_v55 }
 0x574   : > { %6699 = vpow2.f32 %v1288_v24  ;;  %v1282_v34 = vsub.f32 %v7598_v4, %v1274_v27  ;;  %v1598_v40 = vsub.f32 %v7601_v10, %v1591_v28 }
 0x575   : > { %6701 = vpow2.f32 %v1604_v26 }
 0x576   : > { %v1290_v42 = vmul.f32 1.442695, %v1282_v34  ;;  %v1606_v57 = vmul.f32 1.442695, %v1598_v40 }
 0x577   : > { %v1278_v43 = vpop.xlane.xlu0 %1277  ;;  %v1594_v62 = vpop.xlane.xlu1 %1593 }
 0x578   : > { %6703 = vpow2.f32 %v1290_v42  ;;  %v1283_v51 = vsub.f32 %v7608_v20, %v1278_v43  ;;  %v1599_v52 = vsub.f32 %v7611_v23, %v1594_v62 }
 0x579   : > { %v7703_v53 = vpop.eup %6695  ;;  %6705 = vpow2.f32 %v1606_v57 }
 0x57a   : > { %v1292_v54 = vmul.f32 1.442695, %v1283_v51  ;;  %v1608_v8 = vmul.f32 1.442695, %v1599_v52  ;;  %v1610_v4 = vsel %vm1262_vm11, %v7703_v53, 0.0 }
 0x57b   : > { %v1898_v59 = vpop.xlane.xlu0 %1897  ;;  %1611 = vadd.xlane.f32.xlu0 %v1610_v4  ;;  %v7744_v27 = vpop.permute.xlu1 %2275 }
 0x57c   : > { %6707 = vpow2.f32 %v1292_v54  ;;  %v1911_v10 = vsub.f32 %v7618_v31, %v1898_v59 }
 0x57d   : > { %v7708_v60 = vpop.eup %6697  ;;  %6709 = vpow2.f32 %v1608_v8 }
 0x57e   : > { %v1916_v13 = vmul.f32 1.442695, %v1911_v10  ;;  %v1613_v20 = vsel %vm1262_vm11, %v7708_v60, 0.0 }
 0x57f   : > { %1614 = vadd.xlane.f32.xlu1 %v1613_v20  ;;  %v7746_v28 = vpop.permute.xlu0 %1951 }
 0x580   : > { %6711 = vpow2.f32 %v1916_v13 }
 0x581   : > { %v7712_v23 = vpop.eup %6699 }
 0x582   : > { %v1300_v61 = vsel %vm1262_vm11, %v7712_v23, 0.0  ;;  %v7716_v36 = vpop.eup %6701 }
 0x583   : > { %1301 = vadd.xlane.f32.xlu0 %v1300_v61  ;;  %v1616_v31 = vsel %vm1262_vm11, %v7716_v36, 0.0 }
 0x585   : > { %v7718_v1 = vpop.eup %6703 }
 0x586   : > { %v1303_v12 = vsel %vm1262_vm11, %v7718_v1, 0.0  ;;  %v7724_v29 = vpop.eup %6705 }
 0x587   : > { %1617 = vadd.xlane.f32.xlu0 %v1616_v31  ;;  %1304 = vadd.xlane.f32.xlu1 %v1303_v12  ;;  %v1619_v37 = vsel %vm1262_vm11, %v7724_v29, 0.0 }
 0x589   : > { %v7726_v14 = vpop.eup %6707 }
 0x58a   : > { %v1306_v15 = vsel %vm1275_vm12, %v7726_v14, 0.0  ;;  %v7732_v22 = vpop.eup %6709 }
 0x58b   : > { %1307 = vadd.xlane.f32.xlu0 %v1306_v15  ;;  %1620 = vadd.xlane.f32.xlu1 %v1619_v37  ;;  %v1622_v55 = vsel %vm1275_vm12, %v7732_v22, 0.0 }
 0x58d   : > { %v7734_v24 = vpop.eup %6711 }
 0x58e   : > { %v1926_v26 = vsel %vm1262_vm11, %v7734_v24, 0.0 }
 0x58f   : > { %1927 = vadd.xlane.f32.xlu0 %v1926_v26  ;;  %1623 = vadd.xlane.f32.xlu1 %v1622_v55 }
 0x5a0   : > { %2271 = vrot.lane.b32.xlu1 %v7347_v38, %s9186_s24 }
 0x5a5   : > { %2273 = vrot.lane.b32.xlu0 %v7335_v32, %s9186_s24 }
 0x5ac   : > { %v1901_v34 = vpop.xlane.xlu1 %1900 }
 0x5ad   : > { %v1912_v40 = vsub.f32 %v7627_v63, %v1901_v34 }
 0x5af   : > { %v1918_v42 = vmul.f32 1.442695, %v1912_v40 }
 0x5b0   : > { %v1904_v57 = vpop.xlane.xlu0 %1903  ;;  %v1907_v43 = vpop.xlane.xlu1 %1906 }
 0x5b1   : > { %v1913_v62 = vsub.f32 %v7632_v2, %v1904_v57  ;;  %v1914_v51 = vsub.f32 %v7635_v3, %v1907_v43  ;;  %6713 = vpow2.f32 %v1918_v42 }
 0x5b3   : > { %v1920_v52 = vmul.f32 1.442695, %v1913_v62  ;;  %v1922_v38 = vmul.f32 1.442695, %v1914_v51 }
 0x5b4   : > { %v1910_v54 = vpop.xlane.xlu0 %1909  ;;  %v2214_v8 = vpop.xlane.xlu1 %2213 }
 0x5b5   : > { %6715 = vpow2.f32 %v1920_v52  ;;  %v1915_v32 = vsub.f32 %v7638_v5, %v1910_v54  ;;  %v2227_v4 = vsub.f32 %v7641_v11, %v2214_v8 }
 0x5b6   : > { %6717 = vpow2.f32 %v1922_v38 }
 0x5b7   : > { %v1924_v59 = vmul.f32 1.442695, %v1915_v32  ;;  %v2232_v63 = vmul.f32 1.442695, %v2227_v4 }
 0x5b8   : > { %v2217_v10 = vpop.xlane.xlu0 %2216  ;;  %v2220_v13 = vpop.xlane.xlu1 %2219 }
 0x5b9   : > { %v2228_v20 = vsub.f32 %v7652_v30, %v2217_v10  ;;  %v2229_v2 = vsub.f32 %v7655_v33, %v2220_v13  ;;  %6719 = vpow2.f32 %v2232_v63 }
 0x5ba   : > { %6721 = vpow2.f32 %v1924_v59 }
 0x5bb   : > { %v2234_v3 = vmul.f32 1.442695, %v2228_v20  ;;  %v2236_v61 = vmul.f32 1.442695, %v2229_v2 }
 0x5bc   : > { %v2223_v31 = vpop.xlane.xlu0 %2222  ;;  %v2226_v12 = vpop.xlane.xlu1 %2225 }
 0x5bd   : > { %v2230_v15 = vsub.f32 %v7662_v41, %v2223_v31  ;;  %6723 = vpow2.f32 %v2236_v61  ;;  %v2231_v11 = vsub.f32 %v7665_v6, %v2226_v12 }
 0x5be   : > { %6725 = vpow2.f32 %v2234_v3  ;;  %v7757_v37 = vpop.eup %6713 }
 0x5bf   : > { %v2238_v5 = vmul.f32 1.442695, %v2230_v15  ;;  %v2240_v30 = vmul.f32 1.442695, %v2231_v11  ;;  %v1929_v55 = vsel %vm1262_vm11, %v7757_v37, 0.0 }
 0x5c1   : > { %6727 = vpow2.f32 %v2238_v5 }
 0x5c2   : > { %v7759_v26 = vpop.eup %6715  ;;  %6729 = vpow2.f32 %v2240_v30 }
 0x5c3   : > { %v1932_v33 = vsel %vm1262_vm11, %v7759_v26, 0.0  ;;  %v7765_v34 = vpop.eup %6717 }
 0x5c4   : > { %1933 = vadd.xlane.f32.xlu0 %v1932_v33  ;;  %1930 = vadd.xlane.f32.xlu1 %v1929_v55  ;;  %v1935_v6 = vsel %vm1262_vm11, %v7765_v34, 0.0 }
 0x5c6   : > { %v7767_v41 = vpop.eup %6719 }
 0x5c7   : > { %v7771_v40 = vpop.eup %6721  ;;  %v2242_v42 = vsel %vm1262_vm11, %v7767_v41, 0.0 }
 0x5c8   : > { %1936 = vadd.xlane.f32.xlu1 %v1935_v6  ;;  %2243 = vadd.xlane.f32.xlu0 %v2242_v42  ;;  %v1938_v43 = vsel %vm1275_vm12, %v7771_v40, 0.0 }
 0x5ca   : > { %v7775_v57 = vpop.eup %6723 }
 0x5cb   : > { %v7779_v62 = vpop.eup %6725  ;;  %v2248_v51 = vsel %vm1262_vm11, %v7775_v57, 0.0 }
 0x5cc   : > { %1939 = vadd.xlane.f32.xlu1 %v1938_v43  ;;  %2249 = vadd.xlane.f32.xlu0 %v2248_v51  ;;  %v2245_v52 = vsel %vm1262_vm11, %v7779_v62, 0.0 }
 0x5ce   : > { %v7785_v38 = vpop.eup %6727 }
 0x5cf   : > { %v2251_v54 = vsel %vm1262_vm11, %v7785_v38, 0.0  ;;  %v7789_v8 = vpop.eup %6729 }
 0x5d0   : > { %2246 = vadd.xlane.f32.xlu1 %v2245_v52  ;;  %v2254_v32 = vsel %vm1275_vm12, %v7789_v8, 0.0 }
 0x5d4   : > { %2252 = vadd.xlane.f32.xlu1 %v2251_v54 }
 0x5d8   : > { %2255 = vadd.xlane.f32.xlu1 %v2254_v32 }
 0x5e2   : > { %2267 = vrot.lane.b32.xlu0 %v7339_v35, %s9186_s24 }
 0x5e9   : > { %2269 = vrot.lane.b32.xlu1 %v7353_v39, %s9186_s24 }
 0x5f8   : > { %v1296_v4 = vpop.xlane.xlu0 %1295 }
 0x5f9   : > { %6731 = vrcp.f32 %v1296_v4 }
 0x5fc   : > { %v1299_v59 = vpop.xlane.xlu1 %1298 }
 0x5fd   : > { %6733 = vrcp.f32 %v1299_v59 }
 0x604   : > { %v1612_v13 = vpop.xlane.xlu0 %1611 }
 0x606   : > { %v6732_v63 = vpop.eup %6731 }
 0x607   : > { %v1314_v10 = vmul.f32 %v6732_v63, %v7689_v18 }
 0x608   : > { %v1615_v39 = vpop.xlane.xlu1 %1614 }
 0x609   : > { %6076 = vmatmul.mubr.msk.f32.vlgmr.msra.gmra.mxu1 %vm1262_vm11, %v1314_v10 }
 0x60a   : > { %v6734_v20 = vpop.eup %6733  ;;  %6116 = vmatpush3.msk.msra.mxu1 %vm602_vm1, %v7677_v49  ;;  %6078 = vmatprep.mubr.msk.f32.mxu1 %vm6931_vm0, %v6930_v0 }
 0x60b   : > { %6117 = vmatprep.subr.mxu1 %v6930_v0  ;;  %v1315_v35 = vmul.f32 %v6734_v20, %v7695_v48 }
 0x60c   : > { %6118 = vmatpush3.msra.mxu1 %v7671_v44  ;;  %v1302_v2 = vpop.xlane.xlu0 %1301 }
 0x60d   : > { %6119 = vmatprep.subr.mxu1 %v6930_v0  ;;  %6735 = vrcp.f32 %v1302_v2  ;;  %6079 = vmatmul.mubr.msk.f32.gmra.mxu1 %vm1262_vm11, %v1315_v35 }
 0x60e   : > { %6120 = vmatpush3.msra.mxu1 %v7537_v16  ;;  %6081 = vmatprep.mubr.msk.f32.mxu1 %vm6931_vm0, %v6930_v0 }
 0x60f   : > { %6121 = vmatprep.subr.mxu1 %v6930_v0 }
 0x610   : > { %6122 = vmatpush3.msra.mxu1 %v7673_v45  ;;  %v1618_v49 = vpop.xlane.xlu0 %1617  ;;  %v1305_v18 = vpop.xlane.xlu1 %1304 }
 0x611   : > { %6123 = vmatprep.subr.mxu1 %v6930_v0  ;;  %6737 = vrcp.f32 %v1305_v18 }
 0x612   : > { %6124 = vmatpush3.msra.mxu1 %v7675_v47 }
 0x613   : > { %6165 = vmatprep.subr.mxu1 %v6930_v0 }
 0x614   : > { %v1308_v44 = vpop.xlane.xlu0 %1307  ;;  %v1621_v3 = vpop.xlane.xlu1 %1620 }
 0x615   : > { %6739 = vrcp.f32 %v1308_v44 }
 0x616   : > { %6741 = vrcp.f32 %v1612_v13 }
 0x617   : > { %6743 = vrcp.f32 %v1615_v39 }
 0x618   : > { %6745 = vrcp.f32 %v1618_v49  ;;  %v1624_v12 = vpop.xlane.xlu1 %1623  ;;  %v1928_v5 = vpop.xlane.xlu0 %1927 }
 0x619   : > { %6747 = vrcp.f32 %v1621_v3 }
 0x61a   : > { %v6736_v16 = vpop.eup %6735  ;;  %6749 = vrcp.f32 %v1624_v12 }
 0x61b   : > { %v1316_v48 = vmul.f32 %v6736_v16, %v7712_v23  ;;  %6751 = vrcp.f32 %v1928_v5 }
 0x61d   : > { %6082 = vmatmul.mubr.msk.f32.gmra.mxu1 %vm1262_vm11, %v1316_v48 }
 0x61e   : > { %6084 = vmatprep.mubr.msk.f32.mxu1 %vm6931_vm0, %v6930_v0  ;;  %v6738_v45 = vpop.eup %6737 }
 0x61f   : > { %v1317_v61 = vmul.f32 %v6738_v45, %v7718_v1 }
 0x621   : > { %6085 = vmatmul.mubr.msk.f32.gmra.mxu1 %vm1262_vm11, %v1317_v61 }
 0x622   : > { %v6740_v47 = vpop.eup %6739  ;;  %6087 = vmatprep.mubr.msk.f32.mxu1 %vm6931_vm0, %v6930_v0 }
 0x623   : > { %v1318_v31 = vmul.f32 %v6740_v47, %v7726_v14  ;;  %v6742_v23 = vpop.eup %6741 }
 0x624   : > { %v1630_v15 = vmul.f32 %v6742_v23, %v7703_v53  ;;  %v6744_v1 = vpop.eup %6743 }
 0x625   : > { %6088 = vmatmul.mubr.msk.f32.gmra.mxu1 %vm1262_vm11, %v1318_v31  ;;  %v1631_v14 = vmul.f32 %v6744_v1, %v7708_v60  ;;  %v6746_v11 = vpop.eup %6745  ;;  %v2468_v1 = vld [vmem:[%s9170_s8 + $0x18] sm:$0xff] }
 0x626   : > { %6125 = vmatprep.mubr.msk.f32.mxu1 %vm6931_vm0, %v6930_v0  ;;  %v6748_v53 = vpop.eup %6747  ;;  %6241 = vmatpush3.msra.mxu0 %v2468_v1 }
 0x627   : > { %6242 = vmatprep.subr.mxu0 %v6930_v0 }
 0x629   : > { %6126 = vmatmul.mubr.msk.f32.vlgmr.msra.gmra.mxu1 %vm1262_vm11, %v1630_v15 }
 0x62a   : > { %6166 = vmatpush3.msk.msra.mxu1 %vm602_vm1, %v7681_v50  ;;  %6128 = vmatprep.mubr.msk.f32.mxu1 %vm6931_vm0, %v6930_v0  ;;  %v1632_v50 = vmul.f32 %v6746_v11, %v7716_v36 }
 0x62b   : > { %6167 = vmatprep.subr.mxu1 %v6930_v0 }
 0x62c   : > { %6168 = vmatpush3.msra.mxu1 %v7679_v25  ;;  %v6750_v25 = vpop.eup %6749 }
 0x62d   : > { %6169 = vmatprep.subr.mxu1 %v6930_v0  ;;  %6129 = vmatmul.mubr.msk.f32.gmra.mxu1 %vm1262_vm11, %v1631_v14  ;;  %v6752_v60 = vpop.eup %6751 }
 0x62e   : > { %6170 = vmatpush3.msra.mxu1 %v7542_v21  ;;  %6131 = vmatprep.mubr.msk.f32.mxu1 %vm6931_vm0, %v6930_v0  ;;  %v1633_v21 = vmul.f32 %v6748_v53, %v7724_v29  ;;  %v1946_v36 = vmul.f32 %v6752_v60, %v7734_v24  ;;  %v2274_v29 = vpop.permute.xlu0 %2273  ;;  %v2466_v60 = vld [vmem:[%s9170_s8 + $0x8] sm:$0xff] }
 0x62f   : > { %6171 = vmatprep.subr.mxu1 %v6930_v0 }
 0x630   : > { %6172 = vmatpush3.msra.mxu1 %v7683_v7  ;;  %v1634_v7 = vmul.f32 %v6750_v25, %v7732_v22  ;;  %v2272_v22 = vpop.permute.xlu1 %2271 }
 0x631   : > { %6173 = vmatprep.subr.mxu1 %v6930_v0  ;;  %6132 = vmatmul.mubr.msk.f32.gmra.mxu1 %vm1262_vm11, %v1632_v50 }
 0x632   : > { %6174 = vmatpush3.msra.mxu1 %v7746_v28  ;;  %6134 = vmatprep.mubr.msk.f32.mxu1 %vm6931_vm0, %v6930_v0 }
 0x633   : > { %6215 = vmatprep.subr.mxu1 %v6930_v0 }
 0x635   : > { %6135 = vmatmul.mubr.msk.f32.gmra.mxu1 %vm1262_vm11, %v1633_v21 }
 0x636   : > { %6137 = vmatprep.mubr.msk.f32.mxu1 %vm6931_vm0, %v6930_v0 }
 0x639   : > { %6138 = vmatmul.mubr.msk.f32.gmra.mxu1 %vm1262_vm11, %v1634_v7  ;;  %v2467_v7 = vld [vmem:[%s9170_s8 + $0x10] sm:$0xff] }
 0x63a   : > { %6175 = vmatprep.mubr.msk.f32.mxu1 %vm6931_vm0, %v6930_v0  ;;  %6243 = vmatpush3.msra.mxu0 %v2467_v7 }
 0x63b   : > { %6244 = vmatprep.subr.mxu0 %v6930_v0 }
 0x63c   : > { %6245 = vmatpush3.msra.mxu0 %v2466_v60 }
 0x63d   : > { %6176 = vmatmul.mubr.msk.f32.vlgmr.msra.gmra.mxu1 %vm1262_vm11, %v1946_v36  ;;  %v2465_v36 = vld [vmem:[%s9170_s8] sm:$0xff]  ;;  %6246 = vmatprep.subr.mxu0 %v6930_v0 }
 0x63e   : > { %6216 = vmatpush3.msk.msra.mxu1 %vm602_vm1, %v7744_v27  ;;  %6178 = vmatprep.mubr.msk.f32.mxu1 %vm6931_vm0, %v6930_v0 }
 0x63f   : > { %6217 = vmatprep.subr.mxu1 %v6930_v0  ;;  %6247 = vmatpush3.msra.mxu0 %v2465_v36 }
 0x640   : > { %6218 = vmatpush3.msra.mxu1 %v2274_v29  ;;  %6286 = vmatprep.subr.mxu0 %v6930_v0 }
 0x641   : > { %6219 = vmatprep.subr.mxu1 %v6930_v0 }
 0x642   : > { %6220 = vmatpush3.msra.mxu1 %v2272_v22 }
 0x643   : > { %6221 = vmatprep.subr.mxu1 %v6930_v0 }
 0x64d   : > { %v1931_v28 = vpop.xlane.xlu1 %1930  ;;  %v1934_v24 = vpop.xlane.xlu0 %1933 }
 0x64e   : > { %6753 = vrcp.f32 %v1931_v28 }
 0x64f   : > { %6755 = vrcp.f32 %v1934_v24 }
 0x651   : > { %v1937_v30 = vpop.xlane.xlu1 %1936  ;;  %v2244_v55 = vpop.xlane.xlu0 %2243 }
 0x652   : > { %6757 = vrcp.f32 %v1937_v30 }
 0x655   : > { %v1940_v27 = vpop.xlane.xlu1 %1939  ;;  %v2250_v52 = vpop.xlane.xlu0 %2249 }
 0x656   : > { %6759 = vrcp.f32 %v1940_v27 }
 0x657   : > { %6761 = vrcp.f32 %v2244_v55 }
 0x659   : > { %v2247_v33 = vpop.xlane.xlu1 %2246  ;;  %v2268_v10 = vpop.permute.xlu0 %2267 }
 0x65a   : > { %6763 = vrcp.f32 %v2247_v33 }
 0x65b   : > { %v6754_v6 = vpop.eup %6753  ;;  %6765 = vrcp.f32 %v2250_v52 }
 0x65c   : > { %v1947_v43 = vmul.f32 %v6754_v6, %v7757_v37  ;;  %v6756_v51 = vpop.eup %6755 }
 0x65d   : > { %v2253_v42 = vpop.xlane.xlu1 %2252  ;;  %v1948_v32 = vmul.f32 %v6756_v51, %v7759_v26 }
 0x65e   : > { %6179 = vmatmul.mubr.msk.f32.gmra.mxu1 %vm1262_vm11, %v1947_v43  ;;  %6767 = vrcp.f32 %v2253_v42 }
 0x65f   : > { %6181 = vmatprep.mubr.msk.f32.mxu1 %vm6931_vm0, %v6930_v0  ;;  %v6758_v4 = vpop.eup %6757 }
 0x660   : > { %v1949_v37 = vmul.f32 %v6758_v4, %v7765_v34 }
 0x661   : > { %v2256_v54 = vpop.xlane.xlu1 %2255 }
 0x662   : > { %6182 = vmatmul.mubr.msk.f32.gmra.mxu1 %vm1262_vm11, %v1948_v32  ;;  %6769 = vrcp.f32 %v2256_v54 }
 0x663   : > { %6184 = vmatprep.mubr.msk.f32.mxu1 %vm6931_vm0, %v6930_v0  ;;  %v6760_v63 = vpop.eup %6759 }
 0x664   : > { %v1950_v26 = vmul.f32 %v6760_v63, %v7771_v40  ;;  %v6762_v13 = vpop.eup %6761 }
 0x665   : > { %v2270_v59 = vpop.permute.xlu1 %2269  ;;  %v2262_v34 = vmul.f32 %v6762_v13, %v7767_v41 }
 0x666   : > { %6222 = vmatpush3.msra.mxu1 %v2270_v59 }
 0x667   : > { %6185 = vmatmul.mubr.msk.f32.gmra.mxu1 %vm1262_vm11, %v1949_v37  ;;  %6223 = vmatprep.subr.mxu1 %v6930_v0  ;;  %v6764_v20 = vpop.eup %6763 }
 0x668   : > { %6224 = vmatpush3.msra.mxu1 %v2268_v10  ;;  %6187 = vmatprep.mubr.msk.f32.mxu1 %vm6931_vm0, %v6930_v0  ;;  %v2263_v35 = vmul.f32 %v6764_v20, %v7779_v62  ;;  %v6766_v40 = vpop.eup %6765 }
 0x669   : > { %6263 = vmatprep.subr.mxu1 %v6930_v0  ;;  %v2264_v39 = vmul.f32 %v6766_v40, %v7775_v57 }
 0x66b   : > { %6188 = vmatmul.mubr.msk.f32.gmra.mxu1 %vm1262_vm11, %v1950_v26  ;;  %v6768_v2 = vpop.eup %6767 }
 0x66c   : > { %6225 = vmatprep.mubr.msk.f32.mxu1 %vm6931_vm0, %v6930_v0  ;;  %v2265_v41 = vmul.f32 %v6768_v2, %v7785_v38 }
 0x66f   : > { %6226 = vmatmul.mubr.msk.f32.vlgmr.msra.gmra.mxu1 %vm1262_vm11, %v2262_v34  ;;  %v6770_v49 = vpop.eup %6769 }
 0x670   : > { %6228 = vmatprep.mubr.msk.f32.mxu1 %vm6931_vm0, %v6930_v0  ;;  %v2266_v62 = vmul.f32 %v6770_v49, %v7789_v8 }
 0x673   : > { %6229 = vmatmul.mubr.msk.f32.gmra.mxu1 %vm1262_vm11, %v2263_v35 }
 0x674   : > { %6231 = vmatprep.mubr.msk.f32.mxu1 %vm6931_vm0, %v6930_v0 }
 0x677   : > { %6232 = vmatmul.mubr.msk.f32.gmra.mxu1 %vm1262_vm11, %v2264_v39 }
 0x678   : > { %6234 = vmatprep.mubr.msk.f32.mxu1 %vm6931_vm0, %v6930_v0 }
 0x67b   : > { %6235 = vmatmul.mubr.msk.f32.gmra.mxu1 %vm1262_vm11, %v2265_v41 }
 0x67c   : > { %6237 = vmatprep.mubr.msk.f32.mxu1 %vm6931_vm0, %v6930_v0 }
 0x67f   : > { %6238 = vmatmul.mubr.msk.f32.gmra.mxu1 %vm1262_vm11, %v2266_v62 }
 0x680   : > { %6271 = vmatprep.mubr.msk.f32.mxu1 %vm6931_vm0, %v6930_v0 }
 0x6c9   : > { %v7906_v57 = vpop.f32.mrf.mxu1 }
 0x6cb   : > { %v6077_v18 = vpop.f32.mrf.mxu1 }
 0x6cd   : > { %v7908_v44 = vpop.f32.mrf.mxu1 }
 0x6cf   : > { %v6080_v16 = vpop.f32.mrf.mxu1 }
 0x6dd   : > { %v7910_v38 = vpop.f32.mrf.mxu1 }
 0x6df   : > { %v6083_v48 = vpop.f32.mrf.mxu1 }
 0x6e1   : > { %v7912_v45 = vpop.f32.mrf.mxu1 }
 0x6e3   : > { %v6086_v3 = vpop.f32.mrf.mxu1 }
 0x6e5   : > { %v7914_v61 = vpop.f32.mrf.mxu1 }
 0x6e7   : > { %v6089_v8 = vpop.f32.mrf.mxu1 }
 0x6e9   : > { %v1732_v47 = vpop.f32.mrf.mxu1 }
 0x6ea   : > { %2393 = vrot.lane.b32.xlu1 %v1732_v47, %s9202_s30 }
 0x6eb   : > { %v6127_v31 = vpop.f32.mrf.mxu1 }
 0x6ed   : > { %v1737_v23 = vpop.f32.mrf.mxu1 }
 0x6ee   : > { %2395 = vrot.lane.b32.xlu0 %v1737_v23, %s9202_s30 }
 0x6ef   : > { %v6130_v12 = vpop.f32.mrf.mxu1 }
 0x6f1   : > { %v1742_v15 = vpop.f32.mrf.mxu1 }
 0x6f2   : > { %2397 = vrot.lane.b32.xlu1 %v1742_v15, %s9202_s30 }
 0x6f3   : > { %v6133_v5 = vpop.f32.mrf.mxu1 }
 0x6f5   : > { %v1747_v14 = vpop.f32.mrf.mxu1 }
 0x6f7   : > { %v6136_v11 = vpop.f32.mrf.mxu1 }
 0x6f8   : > { %v5565_v11 = vld [vmem:[%s9171_s9] ss:$0 sm:$0xff] }
 0x6f9   : > { %v1752_v50 = vpop.f32.mrf.mxu1 }
 0x6fb   : > { %v6139_v53 = vpop.f32.mrf.mxu1 }
 0x6fd   : > { %v2048_v21 = vpop.f32.mrf.mxu1 }
 0x6fe   : > { %2413 = vrot.lane.b32.xlu0 %v2048_v21, %s9200_s26 }
 0x6ff   : > { %v6177_v25 = vpop.f32.mrf.mxu1 }
 0x71e   : > { %v2053_v29 = vpop.f32.mrf.mxu1 }
 0x71f   : > { %2415 = vrot.lane.b32.xlu1 %v2053_v29, %s9200_s26 }
 0x720   : > { %v6180_v22 = vpop.f32.mrf.mxu1 }
 0x722   : > { %v2058_v28 = vpop.f32.mrf.mxu1 }
 0x723   : > { %2417 = vrot.lane.b32.xlu0 %v2058_v28, %s9200_s26 }
 0x724   : > { %v6183_v24 = vpop.f32.mrf.mxu1 }
 0x727   : > { %v2063_v30 = vpop.f32.mrf.mxu1 }
 0x729   : > { %v6186_v27 = vpop.f32.mrf.mxu1 }
 0x72b   : > { %v2068_v33 = vpop.f32.mrf.mxu1 }
 0x72d   : > { %v6189_v55 = vpop.f32.mrf.mxu1 }
 0x72f   : > { %v2364_v6 = vpop.f32.mrf.mxu1 }
 0x730   : > { %2433 = vrot.lane.b32.xlu1 %v2364_v6, %s9198_s22 }
 0x731   : > { %v6227_v42 = vpop.f32.mrf.mxu1 }
 0x733   : > { %v2369_v43 = vpop.f32.mrf.mxu1 }
 0x734   : > { %2419 = vrot.lane.b32.xlu1 %v2063_v30, %s9200_s26  ;;  %2435 = vrot.lane.b32.xlu0 %v2369_v43, %s9198_s22 }
 0x735   : > { %v6230_v51 = vpop.f32.mrf.mxu1 }
 0x737   : > { %v2374_v52 = vpop.f32.mrf.mxu1 }
 0x738   : > { %2399 = vrot.lane.b32.xlu0 %v1747_v14, %s9202_s30  ;;  %2437 = vrot.lane.b32.xlu1 %v2374_v52, %s9198_s22 }
 0x739   : > { %v6233_v54 = vpop.f32.mrf.mxu1 }
 0x73b   : > { %v2379_v32 = vpop.f32.mrf.mxu1 }
 0x73c   : > { %2401 = vrot.lane.b32.xlu1 %v1752_v50, %s9202_s30  ;;  %2439 = vrot.lane.b32.xlu0 %v2379_v32, %s9198_s22  ;;  %s9216_s30 = smov 48  }
 0x73d   : > { %v6236_v4 = vpop.f32.mrf.mxu1 }
 0x73f   : > { %v2384_v59 = vpop.f32.mrf.mxu1 }
 0x740   : > { %2421 = vrot.lane.b32.xlu0 %v2068_v33, %s9200_s26  ;;  %2441 = vrot.lane.b32.xlu1 %v2384_v59, %s9198_s22  ;;  %s9215_s26 = smov 56   ;;  %s9218_s22 = smov 8  }
 0x741   : > { %v6239_v37 = vpop.f32.mrf.mxu1 }
 0x75c   : > { %v2394_v63 = vpop.permute.xlu1 %2393 }
 0x75d   : > { %v2448_v20 = vsel %vm1135_vm10, %v7906_v57, %v2394_v63 }
 0x760   : > { %v2396_v10 = vpop.permute.xlu0 %2395 }
 0x761   : > { %v2449_v41 = vsel %vm1135_vm10, %v7908_v44, %v2396_v10 }
 0x764   : > { %v2398_v26 = vpop.permute.xlu1 %2397 }
 0x765   : > { %v2450_v16 = vsel %vm1135_vm10, %v7910_v38, %v2398_v26 }
 0x770   : > { %v2414_v13 = vpop.permute.xlu0 %2413 }
 0x771   : > { %v2454_v35 = vsel %vm2453_vm13, %v2448_v20, %v2414_v13 }
 0x791   : > { %v2416_v34 = vpop.permute.xlu1 %2415 }
 0x792   : > { %v2455_v49 = vsel %vm2453_vm13, %v2449_v41, %v2416_v34 }
 0x795   : > { %v2418_v40 = vpop.permute.xlu0 %2417 }
 0x796   : > { %v2456_v48 = vsel %vm2453_vm13, %v2450_v16, %v2418_v40 }
 0x7a2   : > { %v2434_v39 = vpop.permute.xlu1 %2433 }
 0x7a3   : > { %v2460_v2 = vsel %vm2459_vm14, %v2454_v35, %v2434_v39 }
 0x7a4   : > { %6249 = vmatmul.mubr.msk.f32.vlgmr.msra.gmra.mxu0 %vm682_vm4, %v2460_v2 }
 0x7a5   : > { %6251 = vmatprep.mubr.msk.f32.mxu0 %vm6931_vm0, %v6930_v0 }
 0x7a6   : > { %v2436_v62 = vpop.permute.xlu0 %2435  ;;  %v2420_v18 = vpop.permute.xlu1 %2419 }
 0x7a7   : > { %v2461_v57 = vsel %vm2459_vm14, %v2455_v49, %v2436_v62 }
 0x7a8   : > { %6252 = vmatmul.mubr.msk.f32.gmra.mxu0 %vm682_vm4, %v2461_v57 }
 0x7a9   : > { %6254 = vmatprep.mubr.msk.f32.mxu0 %vm6931_vm0, %v6930_v0 }
 0x7aa   : > { %v2400_v44 = vpop.permute.xlu0 %2399  ;;  %v2438_v3 = vpop.permute.xlu1 %2437 }
 0x7ab   : > { %v2451_v8 = vsel %vm1135_vm10, %v7912_v45, %v2400_v44  ;;  %v2462_v47 = vsel %vm2459_vm14, %v2456_v48, %v2438_v3 }
 0x7ac   : > { %6255 = vmatmul.mubr.msk.f32.gmra.mxu0 %vm682_vm4, %v2462_v47  ;;  %v2457_v38 = vsel %vm2453_vm13, %v2451_v8, %v2420_v18 }
 0x7ad   : > { %6257 = vmatprep.mubr.msk.f32.mxu0 %vm6931_vm0, %v6930_v0 }
 0x7ae   : > { %v2440_v31 = vpop.permute.xlu0 %2439  ;;  %v2402_v23 = vpop.permute.xlu1 %2401 }
 0x7af   : > { %v2463_v12 = vsel %vm2459_vm14, %v2457_v38, %v2440_v31  ;;  %v2452_v45 = vsel %vm1135_vm10, %v7914_v61, %v2402_v23 }
 0x7b0   : > { %6258 = vmatmul.mubr.msk.f32.gmra.mxu0 %vm682_vm4, %v2463_v12 }
 0x7b1   : > { %6260 = vmatprep.mubr.msk.f32.mxu0 %vm6931_vm0, %v6930_v0 }
 0x7b2   : > { %v2422_v15 = vpop.permute.xlu0 %2421  ;;  %v2442_v1 = vpop.permute.xlu1 %2441 }
 0x7b3   : > { %v2458_v5 = vsel %vm2453_vm13, %v2452_v45, %v2422_v15 }
 0x7b4   : > { %v2464_v14 = vsel %vm2459_vm14, %v2458_v5, %v2442_v1 }
 0x7b5   : > { %6261 = vmatmul.mubr.msk.f32.gmra.mxu0 %vm682_vm4, %v2464_v14 }
 0x7b6   : > { %6302 = vmatprep.mubr.msk.f32.mxu0 %vm6931_vm0, %v6930_v0 }
 0x864   : > { %v2557_v50 = vpop.f32.mrf.mxu0 }
 0x865   : > { %v2558_v53 = vadd.f32 %v5565_v11, %v2557_v50 }
 0x866   : > { %v6250_v21 = vpop.f32.mrf.mxu0 }
 0x867   : > { %v2586_v25 = vrot.slane %v2558_v53, 6 }
 0x868   : > { %v2562_v61 = vpop.f32.mrf.mxu0 }
 0x869   : > { %v2601_v7 = vadd.f32 %v2586_v25, %v7290_v56  ;;  %v2563_v60 = vadd.f32 %v5565_v11, %v2562_v61  ;;  %v2713_v61 = vld [vmem:[%s9174_s12 + $0x10] sm:$0xff] }
 0x86a   : > { %v6253_v36 = vpop.f32.mrf.mxu0 }
 0x86b   : > { %v2587_v29 = vrot.slane %v2563_v60, 6  ;;  %v2609_v22 = vsel %vm887_vm7, %v2601_v7, 0.0  ;;  %v2711_v60 = vld [vmem:[%s9174_s12] sm:$0xff] }
 0x86c   : > { %2610 = vadd.xlane.f32.xlu0 %v2609_v22  ;;  %v2567_v28 = vpop.f32.mrf.mxu0 }
 0x86d   : > { %v2568_v24 = vadd.f32 %v5565_v11, %v2567_v28  ;;  %v2588_v30 = vsel %vm863_vm8, %v2586_v25, %v2587_v29  ;;  %v2714_v25 = vld [vmem:[%s9174_s12 + $0x18] sm:$0xff] }
 0x86e   : > { %v6256_v27 = vpop.f32.mrf.mxu0  ;;  %v2602_v33 = vadd.f32 %v2588_v30, %v7292_v58  ;;  %6264 = vmatpush3.msra.mxu1 %v2714_v25  ;;  %v2887_v25 = vld [vmem:[%s9176_s14 + $0x18] sm:$0xff] }
 0x86f   : > { %v2589_v55 = vrot.slane %v2568_v24, 6  ;;  %6265 = vmatprep.subr.mxu1 %v6930_v0 }
 0x870   : > { %v2572_v6 = vpop.f32.mrf.mxu0  ;;  %v2612_v42 = vsel %vm682_vm4, %v2602_v33, 0.0  ;;  %6266 = vmatpush3.msra.mxu1 %v2713_v61  ;;  %v2886_v61 = vld [vmem:[%s9176_s14 + $0x10] sm:$0xff] }
 0x871   : > { %v2573_v43 = vadd.f32 %v5565_v11, %v2572_v6  ;;  %2613 = vadd.xlane.f32.xlu1 %v2612_v42  ;;  %v2590_v56 = vsel %vm863_vm8, %v2587_v29, %v2589_v55  ;;  %6267 = vmatprep.subr.mxu1 %v6930_v0 }
 0x872   : > { %v6259_v51 = vpop.f32.mrf.mxu0  ;;  %v2603_v52 = vadd.f32 %v2590_v56, %v7298_v46 }
 0x873   : > { %v2591_v54 = vrot.slane %v2573_v43, 6 }
 0x874   : > { %v2615_v32 = vsel %vm682_vm4, %v2603_v52, 0.0 }
 0x875   : > { %2616 = vadd.xlane.f32.xlu0 %v2615_v32  ;;  %v2577_v4 = vpop.f32.mrf.mxu0  ;;  %v2592_v59 = vsel %vm863_vm8, %v2589_v55, %v2591_v54 }
 0x876   : > { %v2578_v37 = vadd.f32 %v5565_v11, %v2577_v4  ;;  %v2604_v58 = vadd.f32 %v2592_v59, %v7306_v9  ;;  %v5571_v59 = vld [vmem:[%s9172_s10] ss:$0 sm:$0xff] }
 0x877   : > { %v6262_v63 = vpop.f32.mrf.mxu0 }
 0x878   : > { %v2593_v10 = vrot.slane %v2578_v37, 6  ;;  %v2618_v26 = vsel %vm682_vm4, %v2604_v58, 0.0 }
 0x879   : > { %2619 = vadd.xlane.f32.xlu0 %v2618_v26  ;;  %v5572_v26 = vld [vmem:[%s9173_s11] ss:$0 sm:$0xff] }
 0x87a   : > { %v2606_v13 = vadd.f32 %v2593_v10, %v7318_v19  ;;  %v2594_v34 = vsel %vm863_vm8, %v2591_v54, %v2593_v10 }
 0x87b   : > { %v2605_v46 = vadd.f32 %v2594_v34, %v7316_v17 }
 0x87c   : > { %v2624_v20 = vsel %vm903_vm9, %v2606_v13, 0.0 }
 0x87d   : > { %2625 = vadd.xlane.f32.xlu0 %v2624_v20  ;;  %v2621_v35 = vsel %vm682_vm4, %v2605_v46, 0.0 }
 0x87e   : > { %2622 = vadd.xlane.f32.xlu1 %v2621_v35 }
 0x8f5   : > { %v2611_v40 = vpop.xlane.xlu0 %2610 }
 0x8f6   : > { %v2627_v39 = vmul.f32 0.03125, %v2611_v40 }
 0x8f8   : > { %v8001_v9 = vsub.f32 %v2601_v7, %v2627_v39  ;;  %v2712_v7 = vld [vmem:[%s9174_s12 + $0x8] sm:$0xff] }
 0x8f9   : > { %6268 = vmatpush3.msra.mxu1 %v2712_v7  ;;  %v2885_v7 = vld [vmem:[%s9176_s14 + $0x8] sm:$0xff] }
 0x8fa   : > { %v2614_v2 = vpop.xlane.xlu1 %2613  ;;  %v2639_v41 = vmul.f32 %v8001_v9, %v8001_v9  ;;  %6269 = vmatprep.subr.mxu1 %v6930_v0 }
 0x8fb   : > { %v2628_v49 = vmul.f32 0.03125, %v2614_v2  ;;  %6270 = vmatpush3.msra.mxu1 %v2711_v60  ;;  %v2884_v60 = vld [vmem:[%s9176_s14] sm:$0xff] }
 0x8fc   : > { %v2645_v19 = vsel %vm887_vm7, %v2639_v41, 0.0  ;;  %6317 = vmatprep.subr.mxu1 %v6930_v0 }
 0x8fd   : > { %v8006_v62 = vsub.f32 %v2602_v33, %v2628_v49  ;;  %2646 = vadd.xlane.f32.xlu1 %v2645_v19 }
 0x8fe   : > { %v2617_v17 = vpop.xlane.xlu0 %2616 }
 0x8ff   : > { %v2629_v18 = vmul.f32 0.03125, %v2617_v17  ;;  %v2640_v57 = vmul.f32 %v8006_v62, %v8006_v62 }
 0x901   : > { %v8010_v16 = vsub.f32 %v2603_v52, %v2629_v18  ;;  %v2648_v48 = vsel %vm682_vm4, %v2640_v57, 0.0 }
 0x902   : > { %v2620_v44 = vpop.xlane.xlu0 %2619  ;;  %2649 = vadd.xlane.f32.xlu0 %v2648_v48 }
 0x903   : > { %v2630_v3 = vmul.f32 0.03125, %v2620_v44  ;;  %v2641_v8 = vmul.f32 %v8010_v16, %v8010_v16 }
 0x905   : > { %v8015_v47 = vsub.f32 %v2604_v58, %v2630_v3  ;;  %v2651_v31 = vsel %vm682_vm4, %v2641_v8, 0.0 }
 0x906   : > { %v2626_v38 = vpop.xlane.xlu0 %2625  ;;  %2652 = vadd.xlane.f32.xlu1 %v2651_v31 }
 0x907   : > { %v2632_v23 = vmul.f32 0.03125, %v2626_v38  ;;  %v2623_v12 = vpop.xlane.xlu1 %2622  ;;  %v2642_v45 = vmul.f32 %v8015_v47, %v8015_v47 }
 0x908   : > { %v2631_v15 = vmul.f32 0.03125, %v2623_v12 }
 0x909   : > { %v8020_v1 = vsub.f32 %v2606_v13, %v2632_v23  ;;  %v2654_v5 = vsel %vm682_vm4, %v2642_v45, 0.0 }
 0x90a   : > { %v8023_v14 = vsub.f32 %v2605_v46, %v2631_v15  ;;  %2655 = vadd.xlane.f32.xlu0 %v2654_v5 }
 0x90b   : > { %v2644_v11 = vmul.f32 %v8020_v1, %v8020_v1 }
 0x90c   : > { %v2643_v50 = vmul.f32 %v8023_v14, %v8023_v14 }
 0x90d   : > { %v2660_v53 = vsel %vm903_vm9, %v2644_v11, 0.0  ;;  %v2891_v11 = vld [vmem:[%s9176_s14 + $0x38] sm:$0xff] }
 0x90e   : > { %2661 = vadd.xlane.f32.xlu0 %v2660_v53  ;;  %v2657_v21 = vsel %vm682_vm4, %v2643_v50, 0.0  ;;  %6287 = vmatpush3.msra.mxu0 %v2891_v11  ;;  %v2890_v50 = vld [vmem:[%s9176_s14 + $0x30] sm:$0xff]  ;;  %v2889_v53 = vld [vmem:[%s9176_s14 + $0x28] sm:$0xff] }
 0x90f   : > { %2658 = vadd.xlane.f32.xlu1 %v2657_v21  ;;  %6288 = vmatprep.subr.mxu0 %v6930_v0  ;;  %v2888_v21 = vld [vmem:[%s9176_s14 + $0x20] sm:$0xff] }
 0x910   : > { %6289 = vmatpush3.msra.mxu0 %v2890_v50 }
 0x911   : > { %6290 = vmatprep.subr.mxu0 %v6930_v0 }
 0x912   : > { %6291 = vmatpush3.msra.mxu0 %v2889_v53 }
 0x913   : > { %6292 = vmatprep.subr.mxu0 %v6930_v0 }
 0x914   : > { %6293 = vmatpush3.msra.mxu0 %v2888_v21 }
 0x915   : > { %6294 = vmatprep.subr.mxu0 %v6930_v0 }
 0x916   : > { %6295 = vmatpush3.msra.mxu0 %v2887_v25 }
 0x917   : > { %6296 = vmatprep.subr.mxu0 %v6930_v0 }
 0x918   : > { %6297 = vmatpush3.msra.mxu0 %v2886_v61 }
 0x919   : > { %6298 = vmatprep.subr.mxu0 %v6930_v0 }
 0x91a   : > { %6299 = vmatpush3.msra.mxu0 %v2885_v7 }
 0x91b   : > { %6300 = vmatprep.subr.mxu0 %v6930_v0 }
 0x91c   : > { %6301 = vmatpush3.msra.mxu0 %v2884_v60 }
 0x91d   : > { %6340 = vmatprep.subr.mxu0 %v6930_v0 }
 0x986   : > { %v2647_v36 = vpop.xlane.xlu1 %2646 }
 0x987   : > { %v2663_v29 = vmul.f32 0.03125, %v2647_v36  ;;  %v5573_v36 = vld [vmem:[%s9175_s13] ss:$0 sm:$0xff] }
 0x989   : > { %v2669_v22 = vadd.f32 1e-05, %v2663_v29 }
 0x98b   : > { %6771 = vrsqrt.f32 %v2669_v22  ;;  %v2650_v28 = vpop.xlane.xlu0 %2649 }
 0x98c   : > { %v2664_v24 = vmul.f32 0.03125, %v2650_v28 }
 0x98e   : > { %v2670_v30 = vadd.f32 1e-05, %v2664_v24 }
 0x98f   : > { %v2653_v27 = vpop.xlane.xlu1 %2652 }
 0x990   : > { %6773 = vrsqrt.f32 %v2670_v30  ;;  %v2665_v33 = vmul.f32 0.03125, %v2653_v27 }
 0x992   : > { %v2671_v55 = vadd.f32 1e-05, %v2665_v33 }
 0x993   : > { %v2656_v6 = vpop.xlane.xlu0 %2655 }
 0x994   : > { %6775 = vrsqrt.f32 %v2671_v55  ;;  %v2666_v42 = vmul.f32 0.03125, %v2656_v6 }
 0x996   : > { %v2672_v43 = vadd.f32 1e-05, %v2666_v42 }
 0x997   : > { %v2662_v56 = vpop.xlane.xlu0 %2661 }
 0x998   : > { %v6772_v51 = vpop.eup %6771  ;;  %6777 = vrsqrt.f32 %v2672_v43  ;;  %v2668_v52 = vmul.f32 0.03125, %v2662_v56  ;;  %v2659_v54 = vpop.xlane.xlu1 %2658 }
 0x999   : > { %v2681_v32 = vmul.f32 %v6772_v51, %v8001_v9  ;;  %v2667_v4 = vmul.f32 0.03125, %v2659_v54 }
 0x99a   : > { %v2674_v37 = vadd.f32 1e-05, %v2668_v52 }
 0x99b   : > { %v2673_v58 = vadd.f32 1e-05, %v2667_v4  ;;  %v2693_v63 = vmul.f32 %v5571_v59, %v2681_v32 }
 0x99c   : > { %6779 = vrsqrt.f32 %v2674_v37 }
 0x99d   : > { %v6774_v10 = vpop.eup %6773  ;;  %6781 = vrsqrt.f32 %v2673_v58  ;;  %v8055_v46 = vadd.f32 %v5572_v26, %v2693_v63 }
 0x99e   : > { %v2682_v13 = vmul.f32 %v6774_v10, %v8006_v62 }
 0x99f   : > { %v2728_v39 = vrot.slane %v8055_v46, 2 }
 0x9a0   : > { %v2694_v34 = vmul.f32 %v5571_v59, %v2682_v13 }
 0x9a1   : > { %v6776_v20 = vpop.eup %6775 }
 0x9a2   : > { %v8057_v35 = vadd.f32 %v5572_v26, %v2694_v34  ;;  %v2683_v40 = vmul.f32 %v6776_v20, %v8010_v16 }
 0x9a4   : > { %v2729_v9 = vrot.slane %v8057_v35, 2  ;;  %v2695_v2 = vmul.f32 %v5571_v59, %v2683_v40 }
 0x9a5   : > { %v6778_v41 = vpop.eup %6777 }
 0x9a6   : > { %v2730_v49 = vsel %vm628_vm2, %v2728_v39, %v2729_v9  ;;  %v8063_v19 = vadd.f32 %v5572_v26, %v2695_v2  ;;  %v2684_v62 = vmul.f32 %v6778_v41, %v8015_v47 }
 0x9a7   : > { %6272 = vmatmul.mubr.msk.f32.vlgmr.msra.gmra.mxu1 %vm682_vm4, %v2730_v49 }
 0x9a8   : > { %6274 = vmatprep.mubr.msk.f32.mxu1 %vm6931_vm0, %v6930_v0  ;;  %v2731_v17 = vrot.slane %v8063_v19, 2  ;;  %v2696_v18 = vmul.f32 %v5571_v59, %v2684_v62 }
 0x9a9   : > { %v6780_v57 = vpop.eup %6779 }
 0x9aa   : > { %v6782_v16 = vpop.eup %6781  ;;  %v2732_v48 = vsel %vm628_vm2, %v2729_v9, %v2731_v17  ;;  %v8071_v44 = vadd.f32 %v5572_v26, %v2696_v18  ;;  %v2686_v3 = vmul.f32 %v6780_v57, %v8020_v1 }
 0x9ab   : > { %6275 = vmatmul.mubr.msk.f32.gmra.mxu1 %vm682_vm4, %v2732_v48  ;;  %v2685_v8 = vmul.f32 %v6782_v16, %v8023_v14 }
 0x9ac   : > { %6277 = vmatprep.mubr.msk.f32.mxu1 %vm6931_vm0, %v6930_v0  ;;  %v2733_v47 = vrot.slane %v8071_v44, 2  ;;  %v2698_v31 = vmul.f32 %v5571_v59, %v2686_v3 }
 0x9ad   : > { %v2697_v38 = vmul.f32 %v5571_v59, %v2685_v8 }
 0x9ae   : > { %v2734_v23 = vsel %vm628_vm2, %v2731_v17, %v2733_v47  ;;  %v8083_v45 = vadd.f32 %v5572_v26, %v2698_v31 }
 0x9af   : > { %6278 = vmatmul.mubr.msk.f32.gmra.mxu1 %vm682_vm4, %v2734_v23  ;;  %v8081_v12 = vadd.f32 %v5572_v26, %v2697_v38 }
 0x9b0   : > { %6280 = vmatprep.mubr.msk.f32.mxu1 %vm6931_vm0, %v6930_v0  ;;  %v2737_v5 = vrot.slane %v8083_v45, 2 }
 0x9b1   : > { %v2735_v15 = vrot.slane %v8081_v12, 2 }
 0x9b3   : > { %v2736_v1 = vsel %vm628_vm2, %v2733_v47, %v2735_v15  ;;  %v2738_v14 = vsel %vm628_vm2, %v2735_v15, %v2737_v5 }
 0x9b4   : > { %6281 = vmatmul.mubr.msk.f32.gmra.mxu1 %vm682_vm4, %v2736_v1 }
 0x9b5   : > { %6283 = vmatprep.mubr.msk.f32.mxu1 %vm6931_vm0, %v6930_v0 }
 0x9b8   : > { %6284 = vmatmul.mubr.msk.f32.gmra.mxu1 %vm682_vm4, %v2738_v14 }
 0x9b9   : > { %6325 = vmatprep.mubr.msk.f32.mxu1 %vm6931_vm0, %v6930_v0 }
 0xa67   : > { %v2815_v29 = vpop.f32.mrf.mxu1 }
 0xa68   : > { %v2816_v22 = vadd.f32 %v5573_v36, %v2815_v29 }
 0xa69   : > { %v6273_v28 = vpop.f32.mrf.mxu1 }
 0xa6a   : > { %v2844_v24 = vmul.f32 0.044715, %v2816_v22  ;;  %v2839_v47 = vmul.f32 0.5, %v2816_v22 }
 0xa6b   : > { %v2820_v30 = vpop.f32.mrf.mxu1 }
 0xa6c   : > { %v2849_v27 = vmul.f32 %v2844_v24, %v2816_v22  ;;  %v2821_v33 = vadd.f32 %v5573_v36, %v2820_v30  ;;  %v5579_v24 = vld [vmem:[%s9177_s15] ss:$0 sm:$0xff] }
 0xa6d   : > { %v6276_v55 = vpop.f32.mrf.mxu1 }
 0xa6e   : > { %v2854_v6 = vmul.f32 %v2849_v27, %v2816_v22  ;;  %v2845_v42 = vmul.f32 0.044715, %v2821_v33  ;;  %v2840_v1 = vmul.f32 0.5, %v2821_v33 }
 0xa6f   : > { %v2825_v43 = vpop.f32.mrf.mxu1 }
 0xa70   : > { %v2859_v56 = vadd.f32 %v2854_v6, %v2816_v22  ;;  %v2850_v51 = vmul.f32 %v2845_v42, %v2821_v33  ;;  %v2826_v52 = vadd.f32 %v5573_v36, %v2825_v43 }
 0xa71   : > { %v6279_v54 = vpop.f32.mrf.mxu1 }
 0xa72   : > { %v2864_v32 = vmul.f32 0.7978846, %v2859_v56  ;;  %v2855_v4 = vmul.f32 %v2850_v51, %v2821_v33  ;;  %v2846_v59 = vmul.f32 0.044715, %v2826_v52  ;;  %v2841_v50 = vmul.f32 0.5, %v2826_v52 }
 0xa74   : > { %6783 = vtanh.f32 %v2864_v32  ;;  %v2860_v37 = vadd.f32 %v2855_v4, %v2821_v33  ;;  %v2851_v58 = vmul.f32 %v2846_v59, %v2826_v52  ;;  %v2830_v63 = vpop.f32.mrf.mxu1 }
 0xa75   : > { %v2831_v10 = vadd.f32 %v5573_v36, %v2830_v63 }
 0xa76   : > { %v2856_v26 = vmul.f32 %v2851_v58, %v2826_v52  ;;  %v6282_v13 = vpop.f32.mrf.mxu1  ;;  %v2865_v34 = vmul.f32 0.7978846, %v2860_v37 }
 0xa77   : > { %v2847_v20 = vmul.f32 0.044715, %v2831_v10  ;;  %v2842_v61 = vmul.f32 0.5, %v2831_v10 }
 0xa78   : > { %v2861_v40 = vadd.f32 %v2856_v26, %v2826_v52  ;;  %v2835_v39 = vpop.f32.mrf.mxu1  ;;  %6785 = vtanh.f32 %v2865_v34 }
 0xa79   : > { %v2852_v9 = vmul.f32 %v2847_v20, %v2831_v10  ;;  %v2836_v2 = vadd.f32 %v5573_v36, %v2835_v39 }
 0xa7a   : > { %v6285_v41 = vpop.f32.mrf.mxu1  ;;  %v2866_v49 = vmul.f32 0.7978846, %v2861_v40 }
 0xa7b   : > { %v2857_v62 = vmul.f32 %v2852_v9, %v2831_v10  ;;  %v2848_v17 = vmul.f32 0.044715, %v2836_v2  ;;  %v2843_v29 = vmul.f32 0.5, %v2836_v2 }
 0xa7c   : > { %6787 = vtanh.f32 %v2866_v49 }
 0xa7d   : > { %v2862_v18 = vadd.f32 %v2857_v62, %v2831_v10  ;;  %v2853_v57 = vmul.f32 %v2848_v17, %v2836_v2 }
 0xa7f   : > { %v2858_v16 = vmul.f32 %v2853_v57, %v2836_v2  ;;  %v2867_v48 = vmul.f32 0.7978846, %v2862_v18 }
 0xa81   : > { %v6784_v3 = vpop.eup %6783  ;;  %v2863_v8 = vadd.f32 %v2858_v16, %v2836_v2  ;;  %6789 = vtanh.f32 %v2867_v48 }
 0xa82   : > { %v2874_v31 = vadd.f32 1.0, %v6784_v3 }
 0xa83   : > { %v2868_v38 = vmul.f32 0.7978846, %v2863_v8 }
 0xa84   : > { %v2879_v23 = vmul.f32 %v2874_v31, %v2839_v47 }
 0xa85   : > { %v6786_v15 = vpop.eup %6785  ;;  %6791 = vtanh.f32 %v2868_v38 }
 0xa86   : > { %6303 = vmatmul.mubr.msk.f32.vlgmr.msra.gmra.mxu0 %vm688_vm5, %v2879_v23  ;;  %v2875_v5 = vadd.f32 1.0, %v6786_v15 }
 0xa87   : > { %6305 = vmatprep.mubr.msk.f32.mxu0 %vm6931_vm0, %v6930_v0 }
 0xa88   : > { %v2880_v14 = vmul.f32 %v2875_v5, %v2840_v1 }
 0xa89   : > { %v6788_v11 = vpop.eup %6787 }
 0xa8a   : > { %6306 = vmatmul.mubr.msk.f32.gmra.mxu0 %vm688_vm5, %v2880_v14  ;;  %v2876_v53 = vadd.f32 1.0, %v6788_v11 }
 0xa8b   : > { %6308 = vmatprep.mubr.msk.f32.mxu0 %vm6931_vm0, %v6930_v0 }
 0xa8c   : > { %v2881_v21 = vmul.f32 %v2876_v53, %v2841_v50 }
 0xa8e   : > { %v6790_v25 = vpop.eup %6789  ;;  %6309 = vmatmul.mubr.msk.f32.gmra.mxu0 %vm688_vm5, %v2881_v21 }
 0xa8f   : > { %6311 = vmatprep.mubr.msk.f32.mxu0 %vm6931_vm0, %v6930_v0  ;;  %v2877_v7 = vadd.f32 1.0, %v6790_v25 }
 0xa91   : > { %v2882_v60 = vmul.f32 %v2877_v7, %v2842_v61 }
 0xa92   : > { %v6792_v36 = vpop.eup %6791 }
 0xa93   : > { %6312 = vmatmul.mubr.msk.f32.gmra.mxu0 %vm688_vm5, %v2882_v60  ;;  %v2878_v22 = vadd.f32 1.0, %v6792_v36 }
 0xa94   : > { %6314 = vmatprep.mubr.msk.f32.mxu0 %vm6931_vm0, %v6930_v0 }
 0xa95   : > { %v2883_v28 = vmul.f32 %v2878_v22, %v2843_v29 }
 0xa97   : > { %6315 = vmatmul.mubr.msk.f32.gmra.mxu0 %vm688_vm5, %v2883_v28 }
 0xa98   : > { %6350 = vmatprep.mubr.msk.f32.mxu0 %vm6931_vm0, %v6930_v0 }
 0xb46   : > { %v2980_v30 = vpop.f32.mrf.mxu0 }
 0xb47   : > { %v2981_v27 = vadd.f32 %v5579_v24, %v2980_v30 }
 0xb48   : > { %v6304_v33 = vpop.f32.mrf.mxu0 }
 0xb49   : > { %v3009_v55 = vrot.slane %v2981_v27, 6 }
 0xb4a   : > { %v2985_v6 = vpop.f32.mrf.mxu0 }
 0xb4b   : > { %v3024_v42 = vadd.f32 %v3009_v55, %v8055_v46  ;;  %v2986_v43 = vadd.f32 %v5579_v24, %v2985_v6  ;;  %v5589_v6 = vld [vmem:[%s9168_s6 + $0x30] sm:$0xff] }
 0xb4c   : > { %v6307_v56 = vpop.f32.mrf.mxu0 }
 0xb4d   : > { %v3010_v51 = vrot.slane %v2986_v43, 6  ;;  %v3032_v52 = vsel %vm887_vm7, %v3024_v42, 0.0  ;;  %v5587_v43 = vld [vmem:[%s9168_s6 + $0x20] sm:$0xff] }
 0xb4e   : > { %3033 = vadd.xlane.f32.xlu1 %v3032_v52  ;;  %v2990_v54 = vpop.f32.mrf.mxu0 }
 0xb4f   : > { %v2991_v32 = vadd.f32 %v5579_v24, %v2990_v54  ;;  %v3011_v4 = vsel %vm863_vm8, %v3009_v55, %v3010_v51  ;;  %v5590_v55 = vld [vmem:[%s9168_s6 + $0x38] sm:$0xff] }
 0xb50   : > { %v6310_v59 = vpop.f32.mrf.mxu0  ;;  %v3025_v37 = vadd.f32 %v3011_v4, %v8057_v35  ;;  %6318 = vmatpush3.msra.mxu1 %v5590_v55 }
 0xb51   : > { %v3012_v58 = vrot.slane %v2991_v32, 6  ;;  %6319 = vmatprep.subr.mxu1 %v6930_v0 }
 0xb52   : > { %v3035_v63 = vsel %vm682_vm4, %v3025_v37, 0.0  ;;  %6320 = vmatpush3.msra.mxu1 %v5589_v6 }
 0xb53   : > { %3036 = vadd.xlane.f32.xlu0 %v3035_v63  ;;  %v2995_v10 = vpop.f32.mrf.mxu0  ;;  %v3013_v46 = vsel %vm863_vm8, %v3010_v51, %v3012_v58  ;;  %6321 = vmatprep.subr.mxu1 %v6930_v0 }
 0xb54   : > { %v2996_v26 = vadd.f32 %v5579_v24, %v2995_v10  ;;  %v3026_v13 = vadd.f32 %v3013_v46, %v8063_v19 }
 0xb55   : > { %v6313_v34 = vpop.f32.mrf.mxu0 }
 0xb56   : > { %v3014_v20 = vrot.slane %v2996_v26, 6  ;;  %v3038_v40 = vsel %vm682_vm4, %v3026_v13, 0.0 }
 0xb57   : > { %3039 = vadd.xlane.f32.xlu1 %v3038_v40  ;;  %v3000_v39 = vpop.f32.mrf.mxu0 }
 0xb58   : > { %v3001_v9 = vadd.f32 %v5579_v24, %v3000_v39  ;;  %v3015_v2 = vsel %vm863_vm8, %v3012_v58, %v3014_v20 }
 0xb59   : > { %v6316_v35 = vpop.f32.mrf.mxu0  ;;  %v3027_v41 = vadd.f32 %v3015_v2, %v8071_v44 }
 0xb5a   : > { %v3016_v49 = vrot.slane %v3001_v9, 6  ;;  %v5585_v9 = vld [vmem:[%s9178_s16] ss:$0 sm:$0xff] }
 0xb5b   : > { %v3041_v62 = vsel %vm682_vm4, %v3027_v41, 0.0 }
 0xb5c   : > { %v3029_v17 = vadd.f32 %v3016_v49, %v8083_v45  ;;  %3042 = vadd.xlane.f32.xlu0 %v3041_v62  ;;  %v3017_v19 = vsel %vm863_vm8, %v3014_v20, %v3016_v49  ;;  %v5586_v62 = vld [vmem:[%s9179_s17] ss:$0 sm:$0xff] }
 0xb5d   : > { %v3028_v18 = vadd.f32 %v3017_v19, %v8081_v12 }
 0xb5e   : > { %v3047_v57 = vsel %vm903_vm9, %v3029_v17, 0.0 }
 0xb5f   : > { %v3044_v16 = vsel %vm682_vm4, %v3028_v18, 0.0 }
 0xb60   : > { %3048 = vadd.xlane.f32.xlu0 %v3047_v57  ;;  %3045 = vadd.xlane.f32.xlu1 %v3044_v16 }
 0xbd7   : > { %v3034_v48 = vpop.xlane.xlu1 %3033 }
 0xbd8   : > { %v3050_v3 = vmul.f32 0.03125, %v3034_v48 }
 0xbda   : > { %v8166_v8 = vsub.f32 %v3024_v42, %v3050_v3  ;;  %v5588_v42 = vld [vmem:[%s9168_s6 + $0x28] sm:$0xff] }
 0xbdb   : > { %6322 = vmatpush3.msra.mxu1 %v5588_v42  ;;  %v5592_v42 = vld [vmem:[%s9169_s7 + $0x1] ss:$0 sm:$0xff] }
 0xbdc   : > { %v3037_v44 = vpop.xlane.xlu0 %3036  ;;  %v3062_v47 = vmul.f32 %v8166_v8, %v8166_v8  ;;  %6323 = vmatprep.subr.mxu1 %v6930_v0 }
 0xbdd   : > { %v3051_v45 = vmul.f32 0.03125, %v3037_v44  ;;  %6324 = vmatpush3.msra.mxu1 %v5587_v43 }
 0xbde   : > { %v3068_v31 = vsel %vm887_vm7, %v3062_v47, 0.0  ;;  %6365 = vmatprep.subr.mxu1 %v6930_v0 }
 0xbdf   : > { %v8171_v38 = vsub.f32 %v3025_v37, %v3051_v45  ;;  %3069 = vadd.xlane.f32.xlu1 %v3068_v31 }
 0xbe0   : > { %v3040_v12 = vpop.xlane.xlu1 %3039 }
 0xbe1   : > { %v3052_v23 = vmul.f32 0.03125, %v3040_v12  ;;  %v3063_v15 = vmul.f32 %v8171_v38, %v8171_v38 }
 0xbe3   : > { %v8175_v1 = vsub.f32 %v3026_v13, %v3052_v23  ;;  %v3071_v5 = vsel %vm682_vm4, %v3063_v15, 0.0 }
 0xbe4   : > { %3072 = vadd.xlane.f32.xlu0 %v3071_v5 }
 0xbe5   : > { %v3043_v14 = vpop.xlane.xlu0 %3042  ;;  %v3064_v11 = vmul.f32 %v8175_v1, %v8175_v1 }
 0xbe6   : > { %v3053_v50 = vmul.f32 0.03125, %v3043_v14 }
 0xbe7   : > { %v3074_v53 = vsel %vm682_vm4, %v3064_v11, 0.0 }
 0xbe8   : > { %v8181_v21 = vsub.f32 %v3027_v41, %v3053_v50  ;;  %3075 = vadd.xlane.f32.xlu1 %v3074_v53 }
 0xbe9   : > { %v3049_v25 = vpop.xlane.xlu0 %3048  ;;  %v3046_v61 = vpop.xlane.xlu1 %3045 }
 0xbea   : > { %v3055_v7 = vmul.f32 0.03125, %v3049_v25  ;;  %v3054_v60 = vmul.f32 0.03125, %v3046_v61  ;;  %v3065_v36 = vmul.f32 %v8181_v21, %v8181_v21 }
 0xbec   : > { %v8185_v29 = vsub.f32 %v3029_v17, %v3055_v7  ;;  %v8187_v22 = vsub.f32 %v3028_v18, %v3054_v60  ;;  %v3077_v28 = vsel %vm682_vm4, %v3065_v36, 0.0 }
 0xbed   : > { %3078 = vadd.xlane.f32.xlu0 %v3077_v28 }
 0xbee   : > { %v3067_v24 = vmul.f32 %v8185_v29, %v8185_v29  ;;  %v3066_v30 = vmul.f32 %v8187_v22, %v8187_v22 }
 0xbf0   : > { %v3083_v27 = vsel %vm903_vm9, %v3067_v24, 0.0  ;;  %v3080_v33 = vsel %vm682_vm4, %v3066_v30, 0.0 }
 0xbf1   : > { %3084 = vadd.xlane.f32.xlu0 %v3083_v27  ;;  %3081 = vadd.xlane.f32.xlu1 %v3080_v33 }
 0xc68   : > { %v3070_v56 = vpop.xlane.xlu1 %3069 }
 0xc69   : > { %v3086_v51 = vmul.f32 0.03125, %v3070_v56 }
 0xc6b   : > { %v3092_v52 = vadd.f32 1e-05, %v3086_v51 }
 0xc6d   : > { %6793 = vrsqrt.f32 %v3092_v52  ;;  %v3073_v54 = vpop.xlane.xlu0 %3072 }
 0xc6e   : > { %v3087_v32 = vmul.f32 0.03125, %v3073_v54 }
 0xc70   : > { %v3093_v4 = vadd.f32 1e-05, %v3087_v32 }
 0xc71   : > { %v3076_v59 = vpop.xlane.xlu1 %3075 }
 0xc72   : > { %6795 = vrsqrt.f32 %v3093_v4  ;;  %v3088_v37 = vmul.f32 0.03125, %v3076_v59 }
 0xc74   : > { %v3094_v58 = vadd.f32 1e-05, %v3088_v37 }
 0xc76   : > { %6797 = vrsqrt.f32 %v3094_v58  ;;  %v3079_v63 = vpop.xlane.xlu0 %3078 }
 0xc77   : > { %v3089_v10 = vmul.f32 0.03125, %v3079_v63 }
 0xc79   : > { %v3095_v46 = vadd.f32 1e-05, %v3089_v10 }
 0xc7a   : > { %v6794_v26 = vpop.eup %6793  ;;  %v3085_v13 = vpop.xlane.xlu0 %3084 }
 0xc7b   : > { %v3082_v34 = vpop.xlane.xlu1 %3081  ;;  %v3104_v20 = vmul.f32 %v6794_v26, %v8166_v8  ;;  %6799 = vrsqrt.f32 %v3095_v46  ;;  %v3091_v40 = vmul.f32 0.03125, %v3085_v13 }
 0xc7c   : > { %v3090_v39 = vmul.f32 0.03125, %v3082_v34 }
 0xc7d   : > { %v3097_v2 = vadd.f32 1e-05, %v3091_v40  ;;  %v3116_v41 = vmul.f32 %v5585_v9, %v3104_v20 }
 0xc7e   : > { %v3096_v35 = vadd.f32 1e-05, %v3090_v39 }
 0xc7f   : > { %v6796_v49 = vpop.eup %6795  ;;  %6801 = vrsqrt.f32 %v3097_v2  ;;  %v8220_v18 = vadd.f32 %v5586_v62, %v3116_v41 }
 0xc80   : > { %v3105_v17 = vmul.f32 %v6796_v49, %v8171_v38  ;;  %6803 = vrsqrt.f32 %v3096_v35 }
 0xc81   : > { %v3153_v3 = vrot.slane %v8220_v18, 2 }
 0xc82   : > { %v3117_v19 = vmul.f32 %v5585_v9, %v3105_v17 }
 0xc83   : > { %v6798_v57 = vpop.eup %6797 }
 0xc84   : > { %v8222_v16 = vadd.f32 %v5586_v62, %v3117_v19  ;;  %v3106_v48 = vmul.f32 %v6798_v57, %v8175_v1 }
 0xc86   : > { %v3154_v8 = vrot.slane %v8222_v16, 2  ;;  %v3118_v44 = vmul.f32 %v5585_v9, %v3106_v48 }
 0xc88   : > { %v6800_v47 = vpop.eup %6799  ;;  %v3155_v45 = vsel %vm628_vm2, %v3153_v3, %v3154_v8  ;;  %v8228_v31 = vadd.f32 %v5586_v62, %v3118_v44 }
 0xc89   : > { %6326 = vmatmul.mubr.msk.f32.vlgmr.msra.gmra.mxu1 %vm682_vm4, %v3155_v45  ;;  %v3107_v38 = vmul.f32 %v6800_v47, %v8181_v21 }
 0xc8a   : > { %6328 = vmatprep.mubr.msk.f32.mxu1 %vm6931_vm0, %v6930_v0  ;;  %v3156_v12 = vrot.slane %v8228_v31, 2 }
 0xc8b   : > { %v3119_v23 = vmul.f32 %v5585_v9, %v3107_v38 }
 0xc8c   : > { %v6802_v15 = vpop.eup %6801  ;;  %v3157_v1 = vsel %vm628_vm2, %v3154_v8, %v3156_v12 }
 0xc8d   : > { %v6804_v5 = vpop.eup %6803  ;;  %6329 = vmatmul.mubr.msk.f32.gmra.mxu1 %vm682_vm4, %v3157_v1  ;;  %v8237_v14 = vadd.f32 %v5586_v62, %v3119_v23  ;;  %v3109_v11 = vmul.f32 %v6802_v15, %v8185_v29 }
 0xc8e   : > { %6331 = vmatprep.mubr.msk.f32.mxu1 %vm6931_vm0, %v6930_v0  ;;  %v3108_v50 = vmul.f32 %v6804_v5, %v8187_v22 }
 0xc8f   : > { %v3158_v53 = vrot.slane %v8237_v14, 2  ;;  %v3121_v21 = vmul.f32 %v5585_v9, %v3109_v11 }
 0xc90   : > { %v3120_v25 = vmul.f32 %v5585_v9, %v3108_v50 }
 0xc91   : > { %v3159_v61 = vsel %vm628_vm2, %v3156_v12, %v3158_v53  ;;  %v8248_v60 = vadd.f32 %v5586_v62, %v3121_v21 }
 0xc92   : > { %6332 = vmatmul.mubr.msk.f32.gmra.mxu1 %vm682_vm4, %v3159_v61  ;;  %v8246_v7 = vadd.f32 %v5586_v62, %v3120_v25 }
 0xc93   : > { %6334 = vmatprep.mubr.msk.f32.mxu1 %vm6931_vm0, %v6930_v0  ;;  %v3162_v22 = vrot.slane %v8248_v60, 2 }
 0xc94   : > { %v3160_v36 = vrot.slane %v8246_v7, 2 }
 0xc96   : > { %v3161_v29 = vsel %vm628_vm2, %v3158_v53, %v3160_v36  ;;  %v3163_v28 = vsel %vm628_vm2, %v3160_v36, %v3162_v22 }
 0xc97   : > { %6335 = vmatmul.mubr.msk.f32.gmra.mxu1 %vm682_vm4, %v3161_v29 }
 0xc98   : > { %6337 = vmatprep.mubr.msk.f32.mxu1 %vm6931_vm0, %v6930_v0 }
 0xc9b   : > { %6338 = vmatmul.mubr.msk.f32.gmra.mxu1 %vm682_vm4, %v3163_v28 }
 0xc9c   : > { %6375 = vmatprep.mubr.msk.f32.mxu1 %vm6931_vm0, %v6930_v0 }
 0xd49   : > { %v3240_v24 = vpop.f32.mrf.mxu1 }
 0xd4a   : > { %v8269_v54 = vadd.f32 %v5592_v42, %v3240_v24 }
 0xd4b   : > { %v6327_v30 = vpop.f32.mrf.mxu1 }
 0xd4d   : > { %v3245_v27 = vpop.f32.mrf.mxu1 }
 0xd4e   : > { %v8283_v37 = vadd.f32 %v5592_v42, %v3245_v27 }
 0xd4f   : > { %v6330_v33 = vpop.f32.mrf.mxu1 }
 0xd52   : > { %v3250_v55 = vpop.f32.mrf.mxu1 }
 0xd53   : > { %v8277_v59 = vadd.f32 %v5592_v42, %v3250_v55  ;;  %v8489_v55 = vld [vmem:[%s7562_s19] ss:$0 sm:$0xff]  ;;  %s9217_s19 = smov 40  }
 0xd54   : > { %v6333_v6 = vpop.f32.mrf.mxu1 }
 0xd57   : > { %v3255_v43 = vpop.f32.mrf.mxu1 }
 0xd58   : > { %v8265_v56 = vadd.f32 %v5592_v42, %v3255_v43 }
 0xd59   : > { %v6336_v51 = vpop.f32.mrf.mxu1 }
 0xd5a   : > { %3275 = vrot.lane.b32.xlu0 %v8265_v56, %s6933_s25 }
 0xd5b   : > { %v3260_v52 = vpop.f32.mrf.mxu1 }
 0xd5c   : > { %v8271_v32 = vadd.f32 %v5592_v42, %v3260_v52 }
 0xd5d   : > { %v6339_v4 = vpop.f32.mrf.mxu1 }
 0xd5e   : > { %3269 = vrot.lane.b32.xlu0 %v8269_v54, %s6933_s25  ;;  %3277 = vrot.lane.b32.xlu1 %v8271_v32, %s6933_s25 }
 0xd62   : > { %3591 = vrot.lane.b32.xlu0 %v8265_v56, %s6935_s20  ;;  %3273 = vrot.lane.b32.xlu1 %v8277_v59, %s6933_s25 }
 0xd66   : > { %3587 = vrot.lane.b32.xlu0 %v8283_v37, %s6935_s20  ;;  %3271 = vrot.lane.b32.xlu1 %v8283_v37, %s6933_s25  ;;  %s9210_s25 = smov 80  }
 0xd6a   : > { %3575 = vrot.lane.b32.xlu0 %v8269_v54, %s6936_s21  ;;  %3593 = vrot.lane.b32.xlu1 %v8271_v32, %s6935_s20 }
 0xd6e   : > { %3577 = vrot.lane.b32.xlu0 %v8283_v37, %s6936_s21  ;;  %3589 = vrot.lane.b32.xlu1 %v8277_v59, %s6935_s20 }
 0xd72   : > { %3579 = vrot.lane.b32.xlu0 %v8277_v59, %s6936_s21  ;;  %3585 = vrot.lane.b32.xlu1 %v8269_v54, %s6935_s20  ;;  %s9212_s20 = smov 72  }
 0xd76   : > { %3581 = vrot.lane.b32.xlu0 %v8265_v56, %s6936_s21  ;;  %3909 = vrot.lane.b32.xlu1 %v8271_v32, %s9210_s25 }
 0xd7a   : > { %3583 = vrot.lane.b32.xlu0 %v8271_v32, %s6936_s21  ;;  %3907 = vrot.lane.b32.xlu1 %v8265_v56, %s9210_s25  ;;  %s9213_s21 = smov 104  }
 0xd7e   : > { %3891 = vrot.lane.b32.xlu0 %v8269_v54, %s9211_s29  ;;  %3905 = vrot.lane.b32.xlu1 %v8277_v59, %s9210_s25 }
 0xd82   : > { %3893 = vrot.lane.b32.xlu0 %v8283_v37, %s9211_s29  ;;  %3903 = vrot.lane.b32.xlu1 %v8283_v37, %s9210_s25 }
 0xd86   : > { %3895 = vrot.lane.b32.xlu0 %v8277_v59, %s9211_s29  ;;  %3901 = vrot.lane.b32.xlu1 %v8269_v54, %s9210_s25  ;;  %s589_s25 = scalar_lea.vmem %s9180_s18, %s6618_s23 }
 0xd8a   : > { %3897 = vrot.lane.b32.xlu0 %v8265_v56, %s9211_s29  ;;  %4225 = vrot.lane.b32.xlu1 %v8271_v32, %s9212_s20 }
 0xd8e   : > { %3899 = vrot.lane.b32.xlu0 %v8271_v32, %s9211_s29  ;;  %4223 = vrot.lane.b32.xlu1 %v8265_v56, %s9212_s20 }
 0xd92   : > { %4207 = vrot.lane.b32.xlu0 %v8269_v54, %s9213_s21  ;;  %4221 = vrot.lane.b32.xlu1 %v8277_v59, %s9212_s20 }
 0xd96   : > { %4211 = vrot.lane.b32.xlu0 %v8277_v59, %s9213_s21  ;;  %4219 = vrot.lane.b32.xlu1 %v8283_v37, %s9212_s20 }
 0xd9a   : > { %4215 = vrot.lane.b32.xlu0 %v8271_v32, %s9213_s21  ;;  %4217 = vrot.lane.b32.xlu1 %v8269_v54, %s9212_s20 }
 0xd9e   : > { %3460 = vrot.lane.b32.xlu0 %v8265_v56, %s9214_s2  ;;  %4209 = vrot.lane.b32.xlu1 %v8283_v37, %s9213_s21 }
 0xda2   : > { %3456 = vrot.lane.b32.xlu0 %v8283_v37, %s9214_s2  ;;  %4213 = vrot.lane.b32.xlu1 %v8265_v56, %s9213_s21 }
 0xda6   : > { %3454 = vrot.lane.b32.xlu0 %v8269_v54, %s9214_s2  ;;  %3458 = vrot.lane.b32.xlu1 %v8277_v59, %s9214_s2 }
 0xdaa   : > { %3776 = vrot.lane.b32.xlu0 %v8265_v56, %s9215_s26  ;;  %3774 = vrot.lane.b32.xlu1 %v8277_v59, %s9215_s26 }
 0xdae   : > { %3772 = vrot.lane.b32.xlu0 %v8283_v37, %s9215_s26  ;;  %4090 = vrot.lane.b32.xlu1 %v8277_v59, %s9216_s30 }
 0xdb2   : > { %3770 = vrot.lane.b32.xlu0 %v8269_v54, %s9215_s26  ;;  %3462 = vrot.lane.b32.xlu1 %v8271_v32, %s9214_s2 }
 0xdb6   : > { %4092 = vrot.lane.b32.xlu0 %v8265_v56, %s9216_s30  ;;  %3778 = vrot.lane.b32.xlu1 %v8271_v32, %s9215_s26 }
 0xdba   : > { %4088 = vrot.lane.b32.xlu0 %v8283_v37, %s9216_s30  ;;  %4094 = vrot.lane.b32.xlu1 %v8271_v32, %s9216_s30 }
 0xdcc   : > { %v3276_v58 = vpop.permute.xlu0 %3275 }
 0xdd0   : > { %v3270_v63 = vpop.permute.xlu0 %3269  ;;  %v3278_v10 = vpop.permute.xlu1 %3277 }
 0xdd1   : > { %6341 = vmatpush3.xpose.msk.msra.mxu0 %vm1135_vm10, %v3278_v10 }
 0xdd2   : > { %6342 = vmatprep.subr.mxu0 %v6930_v0 }
 0xdd4   : > { %v3592_v46 = vpop.permute.xlu0 %3591  ;;  %v3274_v26 = vpop.permute.xlu1 %3273 }
 0xdd5   : > { %6343 = vmatpush3.xpose.msk.msra.mxu0 %vm1135_vm10, %v3276_v58 }
 0xdd6   : > { %6344 = vmatprep.subr.mxu0 %v6930_v0 }
 0xdd8   : > { %v3588_v13 = vpop.permute.xlu0 %3587  ;;  %v3272_v34 = vpop.permute.xlu1 %3271 }
 0xdd9   : > { %6345 = vmatpush3.xpose.msk.msra.mxu0 %vm1135_vm10, %v3274_v26 }
 0xdda   : > { %6346 = vmatprep.subr.mxu0 %v6930_v0 }
 0xddc   : > { %v3576_v20 = vpop.permute.xlu0 %3575  ;;  %v3594_v40 = vpop.permute.xlu1 %3593 }
 0xddd   : > { %6347 = vmatpush3.xpose.msk.msra.mxu0 %vm1135_vm10, %v3272_v34 }
 0xdde   : > { %6348 = vmatprep.subr.mxu0 %v6930_v0 }
 0xde0   : > { %v3578_v39 = vpop.permute.xlu0 %3577  ;;  %v3590_v9 = vpop.permute.xlu1 %3589 }
 0xde1   : > { %6349 = vmatpush3.xpose.msk.msra.mxu0 %vm1135_vm10, %v3270_v63 }
 0xde2   : > { %6390 = vmatprep.subr.mxu0 %v6930_v0 }
 0xde4   : > { %v3580_v2 = vpop.permute.xlu0 %3579  ;;  %6351 = vmatmul.mubr.msk.f32.vlgmr.msra.gmra.mxu0 %vm1135_vm10, %v8269_v54  ;;  %v3586_v35 = vpop.permute.xlu1 %3585 }
 0xde5   : > { %6391 = vmatpush3.xpose.msk.msra.mxu0 %vm1135_vm10, %v3594_v40  ;;  %6353 = vmatprep.mubr.msk.f32.mxu0 %vm6931_vm0, %v6930_v0 }
 0xde6   : > { %6392 = vmatprep.subr.mxu0 %v6930_v0 }
 0xde8   : > { %v3582_v41 = vpop.permute.xlu0 %3581  ;;  %6354 = vmatmul.mubr.msk.f32.gmra.mxu0 %vm1135_vm10, %v8283_v37  ;;  %v3910_v49 = vpop.permute.xlu1 %3909 }
 0xde9   : > { %6393 = vmatpush3.xpose.msk.msra.mxu0 %vm1135_vm10, %v3592_v46  ;;  %6356 = vmatprep.mubr.msk.f32.mxu0 %vm6931_vm0, %v6930_v0 }
 0xdea   : > { %6394 = vmatprep.subr.mxu0 %v6930_v0 }
 0xdec   : > { %v3584_v62 = vpop.permute.xlu0 %3583  ;;  %6357 = vmatmul.mubr.msk.f32.gmra.mxu0 %vm1135_vm10, %v8277_v59  ;;  %v3908_v17 = vpop.permute.xlu1 %3907 }
 0xded   : > { %6395 = vmatpush3.xpose.msk.msra.mxu0 %vm1135_vm10, %v3590_v9  ;;  %6359 = vmatprep.mubr.msk.f32.mxu0 %vm6931_vm0, %v6930_v0 }
 0xdee   : > { %6396 = vmatprep.subr.mxu0 %v6930_v0 }
 0xdf0   : > { %v3892_v19 = vpop.permute.xlu0 %3891  ;;  %6360 = vmatmul.mubr.msk.f32.gmra.mxu0 %vm1135_vm10, %v8265_v56  ;;  %v3906_v57 = vpop.permute.xlu1 %3905 }
 0xdf1   : > { %6397 = vmatpush3.xpose.msk.msra.mxu0 %vm1135_vm10, %v3588_v13  ;;  %6362 = vmatprep.mubr.msk.f32.mxu0 %vm6931_vm0, %v6930_v0 }
 0xdf2   : > { %6398 = vmatprep.subr.mxu0 %v6930_v0 }
 0xdf4   : > { %6363 = vmatmul.mubr.msk.f32.gmra.mxu0 %vm1135_vm10, %v8271_v32  ;;  %v3904_v48 = vpop.permute.xlu1 %3903  ;;  %v3894_v3 = vpop.permute.xlu0 %3893 }
 0xdf5   : > { %6399 = vmatpush3.xpose.msk.msra.mxu0 %vm1135_vm10, %v3586_v35  ;;  %6400 = vmatprep.mubr.msk.f32.mxu0 %vm6931_vm0, %v6930_v0 }
 0xdf6   : > { %6440 = vmatprep.subr.mxu0 %v6930_v0 }
 0xdf8   : > { %6401 = vmatmul.mubr.msk.f32.vlgmr.msra.gmra.mxu0 %vm1135_vm10, %v3576_v20  ;;  %v3902_v8 = vpop.permute.xlu1 %3901  ;;  %v3896_v44 = vpop.permute.xlu0 %3895 }
 0xdf9   : > { %6441 = vmatpush3.xpose.msk.msra.mxu0 %vm1135_vm10, %v3910_v49  ;;  %6403 = vmatprep.mubr.msk.f32.mxu0 %vm6931_vm0, %v6930_v0 }
 0xdfa   : > { %6442 = vmatprep.subr.mxu0 %v6930_v0 }
 0xdfc   : > { %6404 = vmatmul.mubr.msk.f32.gmra.mxu0 %vm1135_vm10, %v3578_v39  ;;  %v4226_v47 = vpop.permute.xlu1 %4225  ;;  %v3898_v38 = vpop.permute.xlu0 %3897 }
 0xdfd   : > { %6443 = vmatpush3.xpose.msk.msra.mxu0 %vm1135_vm10, %v3908_v17  ;;  %6406 = vmatprep.mubr.msk.f32.mxu0 %vm6931_vm0, %v6930_v0 }
 0xdfe   : > { %6444 = vmatprep.subr.mxu0 %v6930_v0 }
 0xe00   : > { %6407 = vmatmul.mubr.msk.f32.gmra.mxu0 %vm1135_vm10, %v3580_v2  ;;  %v4224_v45 = vpop.permute.xlu1 %4223  ;;  %v3900_v23 = vpop.permute.xlu0 %3899 }
 0xe01   : > { %6445 = vmatpush3.xpose.msk.msra.mxu0 %vm1135_vm10, %v3906_v57  ;;  %6409 = vmatprep.mubr.msk.f32.mxu0 %vm6931_vm0, %v6930_v0 }
 0xe02   : > { %6446 = vmatprep.subr.mxu0 %v6930_v0 }
 0xe04   : > { %6410 = vmatmul.mubr.msk.f32.gmra.mxu0 %vm1135_vm10, %v3582_v41  ;;  %v4222_v12 = vpop.permute.xlu1 %4221  ;;  %v4208_v5 = vpop.permute.xlu0 %4207 }
 0xe05   : > { %6447 = vmatpush3.xpose.msk.msra.mxu0 %vm1135_vm10, %v3904_v48  ;;  %6412 = vmatprep.mubr.msk.f32.mxu0 %vm6931_vm0, %v6930_v0 }
 0xe06   : > { %6448 = vmatprep.subr.mxu0 %v6930_v0 }
 0xe08   : > { %6413 = vmatmul.mubr.msk.f32.gmra.mxu0 %vm1135_vm10, %v3584_v62  ;;  %v4220_v15 = vpop.permute.xlu1 %4219  ;;  %v4212_v50 = vpop.permute.xlu0 %4211 }
 0xe09   : > { %6449 = vmatpush3.xpose.msk.msra.mxu0 %vm1135_vm10, %v3902_v8  ;;  %6450 = vmatprep.mubr.msk.f32.mxu0 %vm6931_vm0, %v6930_v0 }
 0xe0a   : > { %6490 = vmatprep.subr.mxu0 %v6930_v0 }
 0xe0c   : > { %6451 = vmatmul.mubr.msk.f32.vlgmr.msra.gmra.mxu0 %vm1135_vm10, %v3892_v19  ;;  %v4218_v1 = vpop.permute.xlu1 %4217  ;;  %v4216_v25 = vpop.permute.xlu0 %4215 }
 0xe0d   : > { %6491 = vmatpush3.xpose.msk.msra.mxu0 %vm1135_vm10, %v4226_v47  ;;  %6453 = vmatprep.mubr.msk.f32.mxu0 %vm6931_vm0, %v6930_v0 }
 0xe0e   : > { %6492 = vmatprep.subr.mxu0 %v6930_v0 }
 0xe10   : > { %6454 = vmatmul.mubr.msk.f32.gmra.mxu0 %vm1135_vm10, %v3894_v3  ;;  %v4210_v11 = vpop.permute.xlu1 %4209  ;;  %v3461_v36 = vpop.permute.xlu0 %3460 }
 0xe11   : > { %6493 = vmatpush3.xpose.msk.msra.mxu0 %vm1135_vm10, %v4224_v45  ;;  %6456 = vmatprep.mubr.msk.f32.mxu0 %vm6931_vm0, %v6930_v0 }
 0xe12   : > { %6494 = vmatprep.subr.mxu0 %v6930_v0 }
 0xe14   : > { %6457 = vmatmul.mubr.msk.f32.gmra.mxu0 %vm1135_vm10, %v3896_v44  ;;  %v4214_v53 = vpop.permute.xlu1 %4213  ;;  %v3457_v28 = vpop.permute.xlu0 %3456 }
 0xe15   : > { %6495 = vmatpush3.xpose.msk.msra.mxu0 %vm1135_vm10, %v4222_v12  ;;  %6459 = vmatprep.mubr.msk.f32.mxu0 %vm6931_vm0, %v6930_v0 }
 0xe16   : > { %6496 = vmatprep.subr.mxu0 %v6930_v0 }
 0xe18   : > { %6460 = vmatmul.mubr.msk.f32.gmra.mxu0 %vm1135_vm10, %v3898_v38  ;;  %v3459_v21 = vpop.permute.xlu1 %3458  ;;  %v3455_v24 = vpop.permute.xlu0 %3454 }
 0xe19   : > { %6497 = vmatpush3.xpose.msk.msra.mxu0 %vm1135_vm10, %v4220_v15  ;;  %6462 = vmatprep.mubr.msk.f32.mxu0 %vm6931_vm0, %v6930_v0 }
 0xe1a   : > { %6498 = vmatprep.subr.mxu0 %v6930_v0 }
 0xe1c   : > { %6463 = vmatmul.mubr.msk.f32.gmra.mxu0 %vm1135_vm10, %v3900_v23  ;;  %v8459_v61 = vpop.permute.xlu1 %3774 }
 0xe1d   : > { %6499 = vmatpush3.xpose.msk.msra.mxu0 %vm1135_vm10, %v4218_v1  ;;  %6500 = vmatprep.mubr.msk.f32.mxu0 %vm6931_vm0, %v6930_v0 }
 0xe1e   : > { %6540 = vmatprep.subr.mxu0 %v6930_v0 }
 0xe20   : > { %6501 = vmatmul.mubr.msk.f32.vlgmr.msra.gmra.mxu0 %vm1135_vm10, %v4208_v5  ;;  %v8466_v29 = vpop.permute.xlu1 %4090 }
 0xe21   : > { %6503 = vmatprep.mubr.msk.f32.mxu0 %vm6931_vm0, %v6930_v0 }
 0xe24   : > { %6504 = vmatmul.mubr.msk.f32.gmra.mxu0 %vm1135_vm10, %v4210_v11  ;;  %v3463_v22 = vpop.permute.xlu1 %3462 }
 0xe25   : > { %6366 = vmatpush3.msk.msra.mxu1 %vm602_vm1, %v3463_v22  ;;  %6506 = vmatprep.mubr.msk.f32.mxu0 %vm6931_vm0, %v6930_v0 }
 0xe26   : > { %6367 = vmatprep.subr.mxu1 %v6930_v0 }
 0xe27   : > { %6368 = vmatpush3.msra.mxu1 %v3461_v36 }
 0xe28   : > { %6369 = vmatprep.subr.mxu1 %v6930_v0  ;;  %6507 = vmatmul.mubr.msk.f32.gmra.mxu0 %vm1135_vm10, %v4212_v50 }
 0xe29   : > { %6370 = vmatpush3.msra.mxu1 %v3459_v21  ;;  %6509 = vmatprep.mubr.msk.f32.mxu0 %vm6931_vm0, %v6930_v0 }
 0xe2a   : > { %6371 = vmatprep.subr.mxu1 %v6930_v0 }
 0xe2b   : > { %6372 = vmatpush3.msra.mxu1 %v3457_v28 }
 0xe2c   : > { %6373 = vmatprep.subr.mxu1 %v6930_v0  ;;  %6510 = vmatmul.mubr.msk.f32.gmra.mxu0 %vm1135_vm10, %v4214_v53 }
 0xe2d   : > { %6374 = vmatpush3.msra.mxu1 %v3455_v24  ;;  %6512 = vmatprep.mubr.msk.f32.mxu0 %vm6931_vm0, %v6930_v0 }
 0xe2e   : > { %6415 = vmatprep.subr.mxu1 %v6930_v0 }
 0xe30   : > { %6513 = vmatmul.mubr.msk.f32.gmra.mxu0 %vm1135_vm10, %v4216_v25 }
 0xe31   : > { %6548 = vmatprep.mubr.msk.f32.mxu0 %vm6931_vm0, %v6930_v0 }
 0xea4   : > { %v3365_v30 = vpop.f32.mrf.mxu0 }
 0xea5   : > { %v3389_v27 = vmul.f32 0.35355338, %v3365_v30 }
 0xea6   : > { %v6352_v33 = vpop.f32.mrf.mxu0 }
 0xea7   : > { %v8492_v6 = vadd.f32 %v8489_v55, %v3389_v27 }
 0xea8   : > { %v3370_v42 = vpop.f32.mrf.mxu0 }
 0xea9   : > { %v3390_v43 = vmul.f32 0.35355338, %v3370_v42  ;;  %v3399_v51 = vsel %vm1262_vm11, %v8492_v6, -inf }
 0xeaa   : > { %3400 = vmax.xlane.f32.xlu1 %v3399_v51  ;;  %v6355_v52 = vpop.f32.mrf.mxu0 }
 0xeab   : > { %v8497_v4 = vadd.f32 %v8489_v55, %v3390_v43 }
 0xeac   : > { %v3375_v58 = vpop.f32.mrf.mxu0 }
 0xead   : > { %v3391_v63 = vmul.f32 0.35355338, %v3375_v58  ;;  %v3402_v10 = vsel %vm1262_vm11, %v8497_v4, -inf }
 0xeae   : > { %3403 = vmax.xlane.f32.xlu0 %v3402_v10  ;;  %v6358_v46 = vpop.f32.mrf.mxu0 }
 0xeaf   : > { %v8502_v26 = vadd.f32 %v8489_v55, %v3391_v63 }
 0xeb0   : > { %v3380_v13 = vpop.f32.mrf.mxu0 }
 0xeb1   : > { %v3392_v34 = vmul.f32 0.35355338, %v3380_v13  ;;  %v3405_v20 = vsel %vm1262_vm11, %v8502_v26, -inf }
 0xeb2   : > { %3406 = vmax.xlane.f32.xlu0 %v3405_v20  ;;  %v6361_v40 = vpop.f32.mrf.mxu0 }
 0xeb3   : > { %v8507_v39 = vadd.f32 %v8489_v55, %v3392_v34 }
 0xeb4   : > { %v3385_v9 = vpop.f32.mrf.mxu0 }
 0xeb5   : > { %v3393_v2 = vmul.f32 0.35355338, %v3385_v9  ;;  %v3408_v35 = vsel %vm1262_vm11, %v8507_v39, -inf }
 0xeb6   : > { %3409 = vmax.xlane.f32.xlu1 %v3408_v35  ;;  %v6364_v41 = vpop.f32.mrf.mxu0 }
 0xeb7   : > { %v8512_v49 = vadd.f32 %v8489_v55, %v3393_v2 }
 0xeb8   : > { %v3681_v62 = vpop.f32.mrf.mxu0 }
 0xeb9   : > { %v3705_v17 = vmul.f32 0.35355338, %v3681_v62  ;;  %v3411_v19 = vsel %vm1275_vm12, %v8512_v49, -inf }
 0xeba   : > { %3412 = vmax.xlane.f32.xlu0 %v3411_v19  ;;  %v6402_v57 = vpop.f32.mrf.mxu0 }
 0xebb   : > { %v8517_v48 = vadd.f32 %v8489_v55, %v3705_v17 }
 0xebc   : > { %v3686_v3 = vpop.f32.mrf.mxu0 }
 0xebd   : > { %v3706_v8 = vmul.f32 0.35355338, %v3686_v3  ;;  %v3715_v44 = vsel %vm1262_vm11, %v8517_v48, -inf }
 0xebe   : > { %3716 = vmax.xlane.f32.xlu1 %v3715_v44  ;;  %v6405_v47 = vpop.f32.mrf.mxu0 }
 0xebf   : > { %v8522_v45 = vadd.f32 %v8489_v55, %v3706_v8 }
 0xec0   : > { %v3691_v38 = vpop.f32.mrf.mxu0 }
 0xec1   : > { %v3707_v12 = vmul.f32 0.35355338, %v3691_v38  ;;  %v3718_v23 = vsel %vm1262_vm11, %v8522_v45, -inf }
 0xec2   : > { %3719 = vmax.xlane.f32.xlu0 %v3718_v23  ;;  %v6408_v15 = vpop.f32.mrf.mxu0 }
 0xec3   : > { %v8527_v1 = vadd.f32 %v8489_v55, %v3707_v12 }
 0xec4   : > { %v3696_v5 = vpop.f32.mrf.mxu0 }
 0xec5   : > { %v3708_v11 = vmul.f32 0.35355338, %v3696_v5  ;;  %v3721_v50 = vsel %vm1262_vm11, %v8527_v1, -inf }
 0xec6   : > { %3722 = vmax.xlane.f32.xlu1 %v3721_v50  ;;  %v6411_v53 = vpop.f32.mrf.mxu0 }
 0xec7   : > { %v8532_v21 = vadd.f32 %v8489_v55, %v3708_v11 }
 0xec8   : > { %v3701_v25 = vpop.f32.mrf.mxu0 }
 0xec9   : > { %v3709_v36 = vmul.f32 0.35355338, %v3701_v25  ;;  %v3724_v22 = vsel %vm1262_vm11, %v8532_v21, -inf }
 0xeca   : > { %3725 = vmax.xlane.f32.xlu0 %v3724_v22  ;;  %v6414_v28 = vpop.f32.mrf.mxu0 }
 0xecb   : > { %v8537_v24 = vadd.f32 %v8489_v55, %v3709_v36 }
 0xecc   : > { %v3997_v30 = vpop.f32.mrf.mxu0 }
 0xecd   : > { %v4021_v27 = vmul.f32 0.35355338, %v3997_v30  ;;  %v3727_v33 = vsel %vm1275_vm12, %v8537_v24, -inf }
 0xece   : > { %3728 = vmax.xlane.f32.xlu1 %v3727_v33  ;;  %v6452_v42 = vpop.f32.mrf.mxu0 }
 0xecf   : > { %v8542_v43 = vadd.f32 %v8489_v55, %v4021_v27 }
 0xed0   : > { %v4002_v51 = vpop.f32.mrf.mxu0 }
 0xed1   : > { %v4031_v52 = vsel %vm1262_vm11, %v8542_v43, -inf  ;;  %v4022_v8 = vmul.f32 0.35355338, %v4002_v51 }
 0xed2   : > { %4032 = vmax.xlane.f32.xlu0 %v4031_v52  ;;  %v6455_v58 = vpop.f32.mrf.mxu0 }
 0xed3   : > { %v8551_v44 = vadd.f32 %v8489_v55, %v4022_v8 }
 0xed4   : > { %v4007_v63 = vpop.f32.mrf.mxu0 }
 0xed5   : > { %v4023_v47 = vmul.f32 0.35355338, %v4007_v63  ;;  %v4034_v5 = vsel %vm1262_vm11, %v8551_v44, -inf }
 0xed6   : > { %v6458_v10 = vpop.f32.mrf.mxu0 }
 0xed7   : > { %v8554_v23 = vadd.f32 %v8489_v55, %v4023_v47 }
 0xed8   : > { %v4012_v46 = vpop.f32.mrf.mxu0 }
 0xed9   : > { %v4024_v38 = vmul.f32 0.35355338, %v4012_v46  ;;  %v4037_v36 = vsel %vm1262_vm11, %v8554_v23, -inf }
 0xeda   : > { %v6461_v13 = vpop.f32.mrf.mxu0 }
 0xedb   : > { %v8557_v15 = vadd.f32 %v8489_v55, %v4024_v38 }
 0xedc   : > { %v4017_v34 = vpop.f32.mrf.mxu0 }
 0xedd   : > { %v4040_v22 = vsel %vm1262_vm11, %v8557_v15, -inf }
 0xede   : > { %v6464_v20 = vpop.f32.mrf.mxu0 }
 0xedf   : > { %4410 = vrot.lane.b32.xlu1 %v8271_v32, %s9217_s19  ;;  %v4025_v32 = vmul.f32 0.35355338, %v4017_v34  ;;  %v8595_v34 = vpop.permute.xlu0 %3776 }
 0xee0   : > { %v4313_v40 = vpop.f32.mrf.mxu0 }
 0xee1   : > { %v4337_v12 = vmul.f32 0.35355338, %v4313_v40  ;;  %v8562_v11 = vadd.f32 %v8489_v55, %v4025_v32  ;;  %v8601_v40 = vpop.permute.xlu1 %3778 }
 0xee2   : > { %v6502_v9 = vpop.f32.mrf.mxu0 }
 0xee3   : > { %v8565_v50 = vadd.f32 %v8489_v55, %v4337_v12  ;;  %v4043_v28 = vsel %vm1275_vm12, %v8562_v11, -inf }
 0xee4   : > { %v4318_v2 = vpop.f32.mrf.mxu0 }
 0xee5   : > { %v4338_v53 = vmul.f32 0.35355338, %v4318_v2  ;;  %v4347_v30 = vsel %vm1262_vm11, %v8565_v50, -inf  ;;  %v8605_v2 = vpop.permute.xlu1 %4094 }
 0xee6   : > { %v6505_v35 = vpop.f32.mrf.mxu0 }
 0xee7   : > { %v8576_v27 = vadd.f32 %v8489_v55, %v4338_v53 }
 0xee8   : > { %4086 = vrot.lane.b32.xlu0 %v8269_v54, %s9216_s30  ;;  %v4323_v41 = vpop.f32.mrf.mxu0  ;;  %s9220_s30 = smov 24  }
 0xee9   : > { %v4339_v25 = vmul.f32 0.35355338, %v4323_v41  ;;  %v4350_v63 = vsel %vm1262_vm11, %v8576_v27, -inf }
 0xeea   : > { %v6508_v62 = vpop.f32.mrf.mxu0 }
 0xeeb   : > { %v8579_v33 = vadd.f32 %v8489_v55, %v4339_v25 }
 0xeec   : > { %v4328_v17 = vpop.f32.mrf.mxu0 }
 0xeed   : > { %v4340_v42 = vmul.f32 0.35355338, %v4328_v17  ;;  %v4353_v10 = vsel %vm1262_vm11, %v8579_v33, -inf }
 0xeee   : > { %v6511_v19 = vpop.f32.mrf.mxu0 }
 0xeef   : > { %v8582_v52 = vadd.f32 %v8489_v55, %v4340_v42 }
 0xef0   : > { %v4333_v57 = vpop.f32.mrf.mxu0 }
 0xef1   : > { %v4341_v51 = vmul.f32 0.35355338, %v4333_v57  ;;  %v4356_v46 = vsel %vm1262_vm11, %v8582_v52, -inf }
 0xef2   : > { %v6514_v3 = vpop.f32.mrf.mxu0 }
 0xef3   : > { %v8585_v58 = vadd.f32 %v8489_v55, %v4341_v51  ;;  %v8597_v55 = vpop.permute.xlu0 %3772 }
 0xef5   : > { %v4359_v13 = vsel %vm1275_vm12, %v8585_v58, -inf }
 0xef7   : > { %v8599_v20 = vpop.permute.xlu0 %3770 }
 0xefb   : > { %v8603_v9 = vpop.permute.xlu0 %4092 }
 0xeff   : > { %v8607_v35 = vpop.permute.xlu0 %4088 }
 0xf03   : > { %4035 = vmax.xlane.f32.xlu1 %v4034_v5 }
 0xf07   : > { %4038 = vmax.xlane.f32.xlu0 %v4037_v36  ;;  %4041 = vmax.xlane.f32.xlu1 %v4040_v22 }
 0xf0b   : > { %4044 = vmax.xlane.f32.xlu0 %v4043_v28  ;;  %4348 = vmax.xlane.f32.xlu1 %v4347_v30 }
 0xf0f   : > { %4351 = vmax.xlane.f32.xlu0 %v4350_v63  ;;  %4354 = vmax.xlane.f32.xlu1 %v4353_v10 }
 0xf13   : > { %4357 = vmax.xlane.f32.xlu0 %v4356_v46  ;;  %4360 = vmax.xlane.f32.xlu1 %v4359_v13 }
 0xf33   : > { %v3401_v41 = vpop.xlane.xlu1 %3400 }
 0xf34   : > { %v3414_v62 = vsub.f32 %v8492_v6, %v3401_v41 }
 0xf36   : > { %v3419_v17 = vmul.f32 1.442695, %v3414_v62 }
 0xf37   : > { %v3404_v19 = vpop.xlane.xlu0 %3403 }
 0xf38   : > { %6805 = vpow2.f32 %v3419_v17  ;;  %v3415_v57 = vsub.f32 %v8497_v4, %v3404_v19 }
 0xf3a   : > { %v3421_v3 = vmul.f32 1.442695, %v3415_v57 }
 0xf3b   : > { %v3407_v8 = vpop.xlane.xlu0 %3406 }
 0xf3c   : > { %6807 = vpow2.f32 %v3421_v3  ;;  %v3416_v47 = vsub.f32 %v8502_v26, %v3407_v8 }
 0xf3e   : > { %v3423_v38 = vmul.f32 1.442695, %v3416_v47 }
 0xf3f   : > { %v3410_v32 = vpop.xlane.xlu1 %3409 }
 0xf40   : > { %6809 = vpow2.f32 %v3423_v38  ;;  %v3417_v12 = vsub.f32 %v8507_v39, %v3410_v32 }
 0xf42   : > { %v3425_v5 = vmul.f32 1.442695, %v3417_v12 }
 0xf43   : > { %v3413_v53 = vpop.xlane.xlu0 %3412 }
 0xf44   : > { %6811 = vpow2.f32 %v3425_v5  ;;  %v3418_v6 = vsub.f32 %v8512_v49, %v3413_v53 }
 0xf45   : > { %v8614_v25 = vpop.eup %6805 }
 0xf46   : > { %v3427_v36 = vmul.f32 1.442695, %v3418_v6  ;;  %v3429_v4 = vsel %vm1262_vm11, %v8614_v25, 0.0 }
 0xf47   : > { %v3717_v22 = vpop.xlane.xlu1 %3716  ;;  %3430 = vadd.xlane.f32.xlu0 %v3429_v4 }
 0xf48   : > { %6813 = vpow2.f32 %v3427_v36  ;;  %v3730_v26 = vsub.f32 %v8517_v48, %v3717_v22 }
 0xf49   : > { %v8619_v28 = vpop.eup %6807 }
 0xf4a   : > { %v3735_v30 = vmul.f32 1.442695, %v3730_v26  ;;  %v3432_v39 = vsel %vm1262_vm11, %v8619_v28, 0.0 }
 0xf4b   : > { %v3720_v42 = vpop.xlane.xlu0 %3719  ;;  %3433 = vadd.xlane.f32.xlu1 %v3432_v39 }
 0xf4c   : > { %6815 = vpow2.f32 %v3735_v30  ;;  %v3731_v49 = vsub.f32 %v8522_v45, %v3720_v42 }
 0xf4d   : > { %v8624_v51 = vpop.eup %6809 }
 0xf4e   : > { %v3737_v63 = vmul.f32 1.442695, %v3731_v49  ;;  %v3435_v10 = vsel %vm1262_vm11, %v8624_v51, 0.0 }
 0xf4f   : > { %v3723_v46 = vpop.xlane.xlu1 %3722  ;;  %3436 = vadd.xlane.f32.xlu0 %v3435_v10 }
 0xf50   : > { %6817 = vpow2.f32 %v3737_v63  ;;  %v3732_v48 = vsub.f32 %v8527_v1, %v3723_v46 }
 0xf51   : > { %v8629_v13 = vpop.eup %6811 }
 0xf52   : > { %v3739_v41 = vmul.f32 1.442695, %v3732_v48  ;;  %v3438_v62 = vsel %vm1262_vm11, %v8629_v13, 0.0 }
 0xf53   : > { %v3726_v17 = vpop.xlane.xlu0 %3725  ;;  %3439 = vadd.xlane.f32.xlu1 %v3438_v62 }
 0xf54   : > { %6819 = vpow2.f32 %v3739_v41  ;;  %v3733_v45 = vsub.f32 %v8532_v21, %v3726_v17 }
 0xf55   : > { %v8634_v19 = vpop.eup %6813 }
 0xf56   : > { %v3741_v57 = vmul.f32 1.442695, %v3733_v45  ;;  %v3441_v3 = vsel %vm1275_vm12, %v8634_v19, 0.0 }
 0xf57   : > { %v3729_v8 = vpop.xlane.xlu1 %3728  ;;  %3442 = vadd.xlane.f32.xlu0 %v3441_v3 }
 0xf58   : > { %6821 = vpow2.f32 %v3741_v57  ;;  %v3734_v1 = vsub.f32 %v8537_v24, %v3729_v8 }
 0xf59   : > { %v8639_v47 = vpop.eup %6815 }
 0xf5a   : > { %v3743_v38 = vmul.f32 1.442695, %v3734_v1  ;;  %v3745_v32 = vsel %vm1262_vm11, %v8639_v47, 0.0 }
 0xf5b   : > { %v4033_v12 = vpop.xlane.xlu0 %4032  ;;  %3746 = vadd.xlane.f32.xlu0 %v3745_v32  ;;  %v8668_v42 = vpop.permute.xlu1 %4410 }
 0xf5c   : > { %6823 = vpow2.f32 %v3743_v38  ;;  %v4046_v21 = vsub.f32 %v8542_v43, %v4033_v12 }
 0xf5d   : > { %v8644_v5 = vpop.eup %6817 }
 0xf5e   : > { %v4051_v53 = vmul.f32 1.442695, %v4046_v21  ;;  %v3748_v6 = vsel %vm1262_vm11, %v8644_v5, 0.0 }
 0xf5f   : > { %3749 = vadd.xlane.f32.xlu1 %v3748_v6  ;;  %v8670_v49 = vpop.permute.xlu0 %4086 }
 0xf60   : > { %6825 = vpow2.f32 %v4051_v53 }
 0xf61   : > { %v8648_v24 = vpop.eup %6819 }
 0xf62   : > { %v3751_v36 = vsel %vm1262_vm11, %v8648_v24, 0.0 }
 0xf63   : > { %3752 = vadd.xlane.f32.xlu0 %v3751_v36 }
 0xf65   : > { %v8652_v4 = vpop.eup %6821 }
 0xf66   : > { %v3754_v22 = vsel %vm1262_vm11, %v8652_v4, 0.0 }
 0xf67   : > { %3755 = vadd.xlane.f32.xlu1 %v3754_v22 }
 0xf69   : > { %v8656_v43 = vpop.eup %6823 }
 0xf6a   : > { %v3757_v26 = vsel %vm1275_vm12, %v8656_v43, 0.0 }
 0xf6b   : > { %3758 = vadd.xlane.f32.xlu1 %v3757_v26 }
 0xf6d   : > { %v8660_v30 = vpop.eup %6825 }
 0xf6e   : > { %v4061_v39 = vsel %vm1262_vm11, %v8660_v30, 0.0 }
 0xf6f   : > { %4062 = vadd.xlane.f32.xlu0 %v4061_v39 }
 0xf7c   : > { %4406 = vrot.lane.b32.xlu1 %v8277_v59, %s9217_s19 }
 0xf85   : > { %4408 = vrot.lane.b32.xlu0 %v8265_v56, %s9217_s19 }
 0xf8c   : > { %v4036_v63 = vpop.xlane.xlu1 %4035 }
 0xf8d   : > { %v4047_v10 = vsub.f32 %v8551_v44, %v4036_v63 }
 0xf8f   : > { %v4053_v46 = vmul.f32 1.442695, %v4047_v10 }
 0xf90   : > { %v4039_v48 = vpop.xlane.xlu0 %4038  ;;  %v4042_v41 = vpop.xlane.xlu1 %4041 }
 0xf91   : > { %6827 = vpow2.f32 %v4053_v46  ;;  %v4048_v62 = vsub.f32 %v8554_v23, %v4039_v48  ;;  %v4049_v17 = vsub.f32 %v8557_v15, %v4042_v41 }
 0xf93   : > { %v4055_v45 = vmul.f32 1.442695, %v4048_v62  ;;  %v4057_v59 = vmul.f32 1.442695, %v4049_v17 }
 0xf94   : > { %v4045_v57 = vpop.xlane.xlu0 %4044  ;;  %v4349_v3 = vpop.xlane.xlu1 %4348 }
 0xf95   : > { %6829 = vpow2.f32 %v4055_v45  ;;  %v4050_v56 = vsub.f32 %v8562_v11, %v4045_v57  ;;  %v4362_v8 = vsub.f32 %v8565_v50, %v4349_v3 }
 0xf96   : > { %6831 = vpow2.f32 %v4057_v59 }
 0xf97   : > { %v4059_v1 = vmul.f32 1.442695, %v4050_v56  ;;  %v4367_v44 = vmul.f32 1.442695, %v4362_v8 }
 0xf98   : > { %v4352_v38 = vpop.xlane.xlu0 %4351  ;;  %v4355_v32 = vpop.xlane.xlu1 %4354 }
 0xf99   : > { %6833 = vpow2.f32 %v4059_v1  ;;  %v4363_v12 = vsub.f32 %v8576_v27, %v4352_v38  ;;  %v4364_v23 = vsub.f32 %v8579_v33, %v4355_v32 }
 0xf9a   : > { %6835 = vpow2.f32 %v4367_v44 }
 0xf9b   : > { %v4369_v15 = vmul.f32 1.442695, %v4363_v12  ;;  %v4371_v21 = vmul.f32 1.442695, %v4364_v23 }
 0xf9c   : > { %v4358_v53 = vpop.xlane.xlu0 %4357  ;;  %v4361_v6 = vpop.xlane.xlu1 %4360 }
 0xf9d   : > { %6837 = vpow2.f32 %v4369_v15  ;;  %v4365_v11 = vsub.f32 %v8582_v52, %v4358_v53  ;;  %v4366_v50 = vsub.f32 %v8585_v58, %v4361_v6 }
 0xf9e   : > { %v8681_v36 = vpop.eup %6827  ;;  %6839 = vpow2.f32 %v4371_v21 }
 0xf9f   : > { %v4373_v22 = vmul.f32 1.442695, %v4365_v11  ;;  %v4064_v26 = vsel %vm1262_vm11, %v8681_v36, 0.0  ;;  %v4375_v27 = vmul.f32 1.442695, %v4366_v50 }
 0xfa0   : > { %4065 = vadd.xlane.f32.xlu1 %v4064_v26 }
 0xfa1   : > { %6841 = vpow2.f32 %v4373_v22 }
 0xfa2   : > { %v8685_v33 = vpop.eup %6829  ;;  %6843 = vpow2.f32 %v4375_v27 }
 0xfa3   : > { %v8687_v39 = vpop.eup %6831  ;;  %v4067_v63 = vsel %vm1262_vm11, %v8685_v33, 0.0 }
 0xfa4   : > { %4068 = vadd.xlane.f32.xlu0 %v4067_v63  ;;  %v4070_v52 = vsel %vm1262_vm11, %v8687_v39, 0.0 }
 0xfa5   : > { %4071 = vadd.xlane.f32.xlu1 %v4070_v52 }
 0xfa6   : > { %v8693_v58 = vpop.eup %6833 }
 0xfa7   : > { %v8695_v10 = vpop.eup %6835  ;;  %v4073_v46 = vsel %vm1275_vm12, %v8693_v58, 0.0 }
 0xfa8   : > { %v4377_v48 = vsel %vm1262_vm11, %v8695_v10, 0.0 }
 0xfa9   : > { %4378 = vadd.xlane.f32.xlu0 %v4377_v48  ;;  %4074 = vadd.xlane.f32.xlu1 %v4073_v46 }
 0xfaa   : > { %v8701_v41 = vpop.eup %6837 }
 0xfab   : > { %v8703_v62 = vpop.eup %6839  ;;  %v4380_v17 = vsel %vm1262_vm11, %v8701_v41, 0.0 }
 0xfac   : > { %v4383_v45 = vsel %vm1262_vm11, %v8703_v62, 0.0 }
 0xfad   : > { %4384 = vadd.xlane.f32.xlu0 %v4383_v45  ;;  %4381 = vadd.xlane.f32.xlu1 %v4380_v17 }
 0xfae   : > { %v8709_v59 = vpop.eup %6841 }
 0xfaf   : > { %v4386_v57 = vsel %vm1262_vm11, %v8709_v59, 0.0  ;;  %v8713_v3 = vpop.eup %6843 }
 0xfb0   : > { %v4389_v56 = vsel %vm1275_vm12, %v8713_v3, 0.0 }
 0xfb1   : > { %4387 = vadd.xlane.f32.xlu1 %v4386_v57 }
 0xfb5   : > { %4390 = vadd.xlane.f32.xlu1 %v4389_v56 }
 0xfc3   : > { %4402 = vrot.lane.b32.xlu0 %v8269_v54, %s9217_s19 }
 0xfc6   : > { %4404 = vrot.lane.b32.xlu1 %v8283_v37, %s9217_s19 }
 0xfd0   : > { %v3431_v8 = vpop.xlane.xlu0 %3430 }
 0xfd1   : > { %6845 = vrcp.f32 %v3431_v8 }
 0xfd4   : > { %v3434_v1 = vpop.xlane.xlu1 %3433 }
 0xfd5   : > { %6847 = vrcp.f32 %v3434_v1 }
 0xfd8   : > { %v3437_v44 = vpop.xlane.xlu0 %3436 }
 0xfd9   : > { %6849 = vrcp.f32 %v3437_v44 }
 0xfdc   : > { %v3440_v38 = vpop.xlane.xlu1 %3439 }
 0xfdd   : > { %6851 = vrcp.f32 %v3440_v38 }
 0xfde   : > { %v6846_v32 = vpop.eup %6845 }
 0xfdf   : > { %v3449_v12 = vmul.f32 %v6846_v32, %v8614_v25 }
 0xfe0   : > { %v3443_v23 = vpop.xlane.xlu0 %3442 }
 0xfe1   : > { %6853 = vrcp.f32 %v3443_v23  ;;  %6376 = vmatmul.mubr.msk.f32.vlgmr.msra.gmra.mxu1 %vm1262_vm11, %v3449_v12 }
 0xfe2   : > { %v6848_v15 = vpop.eup %6847  ;;  %6416 = vmatpush3.msk.msra.mxu1 %vm602_vm1, %v8601_v40  ;;  %6378 = vmatprep.mubr.msk.f32.mxu1 %vm6931_vm0, %v6930_v0 }
 0xfe3   : > { %6417 = vmatprep.subr.mxu1 %v6930_v0  ;;  %v3450_v54 = vmul.f32 %v6848_v15, %v8619_v28 }
 0xfe4   : > { %6418 = vmatpush3.msra.mxu1 %v8595_v34  ;;  %v3747_v37 = vpop.xlane.xlu0 %3746 }
 0xfe5   : > { %6419 = vmatprep.subr.mxu1 %v6930_v0  ;;  %6855 = vrcp.f32 %v3747_v37  ;;  %6379 = vmatmul.mubr.msk.f32.gmra.mxu1 %vm1262_vm11, %v3450_v54 }
 0xfe6   : > { %v6850_v25 = vpop.eup %6849  ;;  %6420 = vmatpush3.msra.mxu1 %v8459_v61  ;;  %6381 = vmatprep.mubr.msk.f32.mxu1 %vm6931_vm0, %v6930_v0 }
 0xfe7   : > { %6421 = vmatprep.subr.mxu1 %v6930_v0  ;;  %v3451_v40 = vmul.f32 %v6850_v25, %v8624_v51 }
 0xfe8   : > { %6422 = vmatpush3.msra.mxu1 %v8597_v55  ;;  %v3750_v28 = vpop.xlane.xlu1 %3749 }
 0xfe9   : > { %6423 = vmatprep.subr.mxu1 %v6930_v0  ;;  %6857 = vrcp.f32 %v3750_v28  ;;  %6382 = vmatmul.mubr.msk.f32.gmra.mxu1 %vm1262_vm11, %v3451_v40 }
 0xfea   : > { %v6852_v34 = vpop.eup %6851  ;;  %6424 = vmatpush3.msra.mxu1 %v8599_v20  ;;  %6384 = vmatprep.mubr.msk.f32.mxu1 %vm6931_vm0, %v6930_v0 }
 0xfeb   : > { %v3452_v61 = vmul.f32 %v6852_v34, %v8629_v13  ;;  %6465 = vmatprep.subr.mxu1 %v6930_v0 }
 0xfec   : > { %v3753_v21 = vpop.xlane.xlu0 %3752 }
 0xfed   : > { %6859 = vrcp.f32 %v3753_v21  ;;  %6385 = vmatmul.mubr.msk.f32.gmra.mxu1 %vm1262_vm11, %v3452_v61 }
 0xfee   : > { %v6854_v55 = vpop.eup %6853  ;;  %6387 = vmatprep.mubr.msk.f32.mxu1 %vm6931_vm0, %v6930_v0 }
 0xfef   : > { %v3453_v51 = vmul.f32 %v6854_v55, %v8634_v19 }
 0xff0   : > { %v3756_v53 = vpop.xlane.xlu1 %3755 }
 0xff1   : > { %6861 = vrcp.f32 %v3756_v53  ;;  %6388 = vmatmul.mubr.msk.f32.gmra.mxu1 %vm1262_vm11, %v3453_v51 }
 0xff2   : > { %v6856_v20 = vpop.eup %6855  ;;  %6425 = vmatprep.mubr.msk.f32.mxu1 %vm6931_vm0, %v6930_v0 }
 0xff3   : > { %v3765_v13 = vmul.f32 %v6856_v20, %v8639_v47 }
 0xff4   : > { %v3759_v6 = vpop.xlane.xlu1 %3758 }
 0xff5   : > { %6863 = vrcp.f32 %v3759_v6  ;;  %6426 = vmatmul.mubr.msk.f32.vlgmr.msra.gmra.mxu1 %vm1262_vm11, %v3765_v13 }
 0xff6   : > { %v6858_v11 = vpop.eup %6857  ;;  %6466 = vmatpush3.msk.msra.mxu1 %vm602_vm1, %v8605_v2  ;;  %6428 = vmatprep.mubr.msk.f32.mxu1 %vm6931_vm0, %v6930_v0 }
 0xff7   : > { %6467 = vmatprep.subr.mxu1 %v6930_v0  ;;  %v3766_v19 = vmul.f32 %v6858_v11, %v8644_v5  ;;  %v5665_v11 = vld [vmem:[%s9170_s8 + $0x38] sm:$0xff] }
 0xff8   : > { %6468 = vmatpush3.msra.mxu1 %v8603_v9  ;;  %v4063_v50 = vpop.xlane.xlu0 %4062  ;;  %6541 = vmatpush3.msra.mxu0 %v5665_v11 }
 0xff9   : > { %6865 = vrcp.f32 %v4063_v50  ;;  %6469 = vmatprep.subr.mxu1 %v6930_v0  ;;  %6429 = vmatmul.mubr.msk.f32.gmra.mxu1 %vm1262_vm11, %v3766_v19 }
 0xffa   : > { %v6860_v47 = vpop.eup %6859  ;;  %6470 = vmatpush3.msra.mxu1 %v8466_v29  ;;  %6431 = vmatprep.mubr.msk.f32.mxu1 %vm6931_vm0, %v6930_v0 }
 0xffb   : > { %6471 = vmatprep.subr.mxu1 %v6930_v0  ;;  %v3767_v2 = vmul.f32 %v6860_v47, %v8648_v24  ;;  %6542 = vmatprep.subr.mxu0 %v6930_v0 }
 0xffc   : > { %6472 = vmatpush3.msra.mxu1 %v8607_v35 }
 0xffd   : > { %6473 = vmatprep.subr.mxu1 %v6930_v0  ;;  %6432 = vmatmul.mubr.msk.f32.gmra.mxu1 %vm1262_vm11, %v3767_v2 }
 0xffe   : > { %v6862_v9 = vpop.eup %6861  ;;  %6474 = vmatpush3.msra.mxu1 %v8670_v49  ;;  %6434 = vmatprep.mubr.msk.f32.mxu1 %vm6931_vm0, %v6930_v0 }
 0xfff   : > { %v3768_v29 = vmul.f32 %v6862_v9, %v8652_v4  ;;  %6515 = vmatprep.subr.mxu1 %v6930_v0  ;;  %v4409_v4 = vpop.permute.xlu0 %4408 }
0x1001   : > { %6435 = vmatmul.mubr.msk.f32.gmra.mxu1 %vm1262_vm11, %v3768_v29 }
0x1002   : > { %v6864_v5 = vpop.eup %6863  ;;  %6437 = vmatprep.mubr.msk.f32.mxu1 %vm6931_vm0, %v6930_v0 }
0x1003   : > { %v3769_v35 = vmul.f32 %v6864_v5, %v8656_v43  ;;  %v4407_v43 = vpop.permute.xlu1 %4406 }
0x1005   : > { %6438 = vmatmul.mubr.msk.f32.gmra.mxu1 %vm1262_vm11, %v3769_v35  ;;  %v5664_v35 = vld [vmem:[%s9170_s8 + $0x30] sm:$0xff] }
0x1006   : > { %v6866_v24 = vpop.eup %6865  ;;  %6475 = vmatprep.mubr.msk.f32.mxu1 %vm6931_vm0, %v6930_v0  ;;  %6543 = vmatpush3.msra.mxu0 %v5664_v35 }
0x1007   : > { %v4081_v49 = vmul.f32 %v6866_v24, %v8660_v30  ;;  %v5663_v24 = vld [vmem:[%s9170_s8 + $0x28] sm:$0xff]  ;;  %6544 = vmatprep.subr.mxu0 %v6930_v0 }
0x1008   : > { %6545 = vmatpush3.msra.mxu0 %v5663_v24 }
0x1009   : > { %6476 = vmatmul.mubr.msk.f32.vlgmr.msra.gmra.mxu1 %vm1262_vm11, %v4081_v49  ;;  %v5662_v49 = vld [vmem:[%s9170_s8 + $0x20] sm:$0xff]  ;;  %6546 = vmatprep.subr.mxu0 %v6930_v0 }
0x100a   : > { %6516 = vmatpush3.msk.msra.mxu1 %vm602_vm1, %v8668_v42  ;;  %6478 = vmatprep.mubr.msk.f32.mxu1 %vm6931_vm0, %v6930_v0 }
0x100b   : > { %6517 = vmatprep.subr.mxu1 %v6930_v0  ;;  %6547 = vmatpush3.msra.mxu0 %v5662_v49 }
0x100c   : > { %6518 = vmatpush3.msra.mxu1 %v4409_v4  ;;  %6586 = vmatprep.subr.mxu0 %v6930_v0 }
0x100d   : > { %6519 = vmatprep.subr.mxu1 %v6930_v0 }
0x100e   : > { %6520 = vmatpush3.msra.mxu1 %v4407_v43 }
0x100f   : > { %6521 = vmatprep.subr.mxu1 %v6930_v0 }
0x1029   : > { %v4066_v22 = vpop.xlane.xlu1 %4065 }
0x102a   : > { %6867 = vrcp.f32 %v4066_v22 }
0x102d   : > { %v4069_v30 = vpop.xlane.xlu0 %4068 }
0x102e   : > { %6869 = vrcp.f32 %v4069_v30  ;;  %v4072_v26 = vpop.xlane.xlu1 %4071 }
0x102f   : > { %6871 = vrcp.f32 %v4072_v26 }
0x1032   : > { %v4075_v42 = vpop.xlane.xlu1 %4074  ;;  %v4379_v27 = vpop.xlane.xlu0 %4378 }
0x1033   : > { %6873 = vrcp.f32 %v4075_v42 }
0x1034   : > { %6875 = vrcp.f32 %v4379_v27 }
0x1036   : > { %v4382_v63 = vpop.xlane.xlu1 %4381  ;;  %v4385_v56 = vpop.xlane.xlu0 %4384 }
0x1037   : > { %v6868_v52 = vpop.eup %6867  ;;  %6877 = vrcp.f32 %v4382_v63 }
0x1038   : > { %v4082_v46 = vmul.f32 %v6868_v52, %v8681_v36  ;;  %6879 = vrcp.f32 %v4385_v56 }
0x103a   : > { %v4388_v48 = vpop.xlane.xlu1 %4387  ;;  %6479 = vmatmul.mubr.msk.f32.gmra.mxu1 %vm1262_vm11, %v4082_v46 }
0x103b   : > { %v6870_v17 = vpop.eup %6869  ;;  %6481 = vmatprep.mubr.msk.f32.mxu1 %vm6931_vm0, %v6930_v0  ;;  %6881 = vrcp.f32 %v4388_v48 }
0x103c   : > { %v4083_v45 = vmul.f32 %v6870_v17, %v8685_v33  ;;  %v6872_v57 = vpop.eup %6871  ;;  %v4403_v33 = vpop.permute.xlu0 %4402 }
0x103d   : > { %v4084_v36 = vmul.f32 %v6872_v57, %v8687_v39 }
0x103e   : > { %v4391_v8 = vpop.xlane.xlu1 %4390  ;;  %6482 = vmatmul.mubr.msk.f32.gmra.mxu1 %vm1262_vm11, %v4083_v45 }
0x103f   : > { %6484 = vmatprep.mubr.msk.f32.mxu1 %vm6931_vm0, %v6930_v0  ;;  %6883 = vrcp.f32 %v4391_v8 }
0x1040   : > { %v6874_v1 = vpop.eup %6873 }
0x1041   : > { %v4085_v38 = vmul.f32 %v6874_v1, %v8693_v58  ;;  %v6876_v32 = vpop.eup %6875 }
0x1042   : > { %v4405_v44 = vpop.permute.xlu1 %4404  ;;  %6485 = vmatmul.mubr.msk.f32.gmra.mxu1 %vm1262_vm11, %v4084_v36  ;;  %v4397_v39 = vmul.f32 %v6876_v32, %v8695_v10 }
0x1043   : > { %6522 = vmatpush3.msra.mxu1 %v4405_v44  ;;  %6487 = vmatprep.mubr.msk.f32.mxu1 %vm6931_vm0, %v6930_v0 }
0x1044   : > { %6523 = vmatprep.subr.mxu1 %v6930_v0  ;;  %v6878_v12 = vpop.eup %6877 }
0x1045   : > { %6524 = vmatpush3.msra.mxu1 %v4403_v33  ;;  %v4398_v58 = vmul.f32 %v6878_v12, %v8701_v41  ;;  %v6880_v23 = vpop.eup %6879 }
0x1046   : > { %6488 = vmatmul.mubr.msk.f32.gmra.mxu1 %vm1262_vm11, %v4085_v38  ;;  %6563 = vmatprep.subr.mxu1 %v6930_v0  ;;  %v4399_v15 = vmul.f32 %v6880_v23, %v8703_v62 }
0x1047   : > { %6525 = vmatprep.mubr.msk.f32.mxu1 %vm6931_vm0, %v6930_v0 }
0x1048   : > { %v6882_v54 = vpop.eup %6881 }
0x1049   : > { %v4400_v10 = vmul.f32 %v6882_v54, %v8709_v59 }
0x104a   : > { %6526 = vmatmul.mubr.msk.f32.vlgmr.msra.gmra.mxu1 %vm1262_vm11, %v4397_v39 }
0x104b   : > { %6528 = vmatprep.mubr.msk.f32.mxu1 %vm6931_vm0, %v6930_v0 }
0x104c   : > { %v6884_v37 = vpop.eup %6883 }
0x104d   : > { %v4401_v41 = vmul.f32 %v6884_v37, %v8713_v3 }
0x104e   : > { %6529 = vmatmul.mubr.msk.f32.gmra.mxu1 %vm1262_vm11, %v4398_v58 }
0x104f   : > { %6531 = vmatprep.mubr.msk.f32.mxu1 %vm6931_vm0, %v6930_v0 }
0x1052   : > { %6532 = vmatmul.mubr.msk.f32.gmra.mxu1 %vm1262_vm11, %v4399_v15 }
0x1053   : > { %6534 = vmatprep.mubr.msk.f32.mxu1 %vm6931_vm0, %v6930_v0 }
0x1056   : > { %6535 = vmatmul.mubr.msk.f32.gmra.mxu1 %vm1262_vm11, %v4400_v10 }
0x1057   : > { %6537 = vmatprep.mubr.msk.f32.mxu1 %vm6931_vm0, %v6930_v0 }
0x105a   : > { %6538 = vmatmul.mubr.msk.f32.gmra.mxu1 %vm1262_vm11, %v4401_v41 }
0x105b   : > { %6571 = vmatprep.mubr.msk.f32.mxu1 %vm6931_vm0, %v6930_v0 }
0x10a1   : > { %v8830_v62 = vpop.f32.mrf.mxu1 }
0x10a3   : > { %v6377_v25 = vpop.f32.mrf.mxu1 }
0x10a5   : > { %v8832_v40 = vpop.f32.mrf.mxu1 }
0x10a7   : > { %v6380_v28 = vpop.f32.mrf.mxu1 }
0x10a9   : > { %v8834_v59 = vpop.f32.mrf.mxu1 }
0x10ab   : > { %v6383_v34 = vpop.f32.mrf.mxu1 }
0x10ad   : > { %v8836_v61 = vpop.f32.mrf.mxu1 }
0x10af   : > { %v6386_v21 = vpop.f32.mrf.mxu1 }
0x10b1   : > { %v8838_v55 = vpop.f32.mrf.mxu1 }
0x10b3   : > { %v6389_v3 = vpop.f32.mrf.mxu1 }
0x10b5   : > { %v3867_v51 = vpop.f32.mrf.mxu1 }
0x10b6   : > { %4528 = vrot.lane.b32.xlu1 %v3867_v51, %s9218_s22 }
0x10b7   : > { %v6427_v53 = vpop.f32.mrf.mxu1 }
0x10b9   : > { %v3872_v20 = vpop.f32.mrf.mxu1 }
0x10ba   : > { %4530 = vrot.lane.b32.xlu0 %v3872_v20, %s9218_s22 }
0x10bb   : > { %v6430_v13 = vpop.f32.mrf.mxu1 }
0x10bd   : > { %v3877_v6 = vpop.f32.mrf.mxu1 }
0x10be   : > { %4532 = vrot.lane.b32.xlu1 %v3877_v6, %s9218_s22 }
0x10bf   : > { %v6433_v19 = vpop.f32.mrf.mxu1 }
0x10c1   : > { %v3882_v50 = vpop.f32.mrf.mxu1 }
0x10c3   : > { %v6436_v47 = vpop.f32.mrf.mxu1 }
0x10c4   : > { %v5667_v47 = vld [vmem:[%s9171_s9 + $0x1] ss:$0 sm:$0xff] }
0x10c5   : > { %v3887_v2 = vpop.f32.mrf.mxu1 }
0x10c7   : > { %v6439_v9 = vpop.f32.mrf.mxu1 }
0x10c9   : > { %v4183_v29 = vpop.f32.mrf.mxu1 }
0x10ca   : > { %4548 = vrot.lane.b32.xlu0 %v4183_v29, %s9219_s1 }
0x10cb   : > { %v6477_v5 = vpop.f32.mrf.mxu1 }
0x10fa   : > { %v4188_v4 = vpop.f32.mrf.mxu1 }
0x10fb   : > { %4550 = vrot.lane.b32.xlu1 %v4188_v4, %s9219_s1 }
0x10fc   : > { %v6480_v43 = vpop.f32.mrf.mxu1 }
0x10fe   : > { %v4193_v22 = vpop.f32.mrf.mxu1 }
0x10ff   : > { %4552 = vrot.lane.b32.xlu0 %v4193_v22, %s9219_s1 }
0x1100   : > { %v6483_v30 = vpop.f32.mrf.mxu1 }
0x1102   : > { %v4198_v26 = vpop.f32.mrf.mxu1 }
0x1104   : > { %v6486_v42 = vpop.f32.mrf.mxu1 }
0x1106   : > { %v4203_v27 = vpop.f32.mrf.mxu1 }
0x1108   : > { %v6489_v63 = vpop.f32.mrf.mxu1 }
0x110a   : > { %v4499_v52 = vpop.f32.mrf.mxu1 }
0x110b   : > { %4568 = vrot.lane.b32.xlu1 %v4499_v52, %s9220_s30 }
0x110c   : > { %v6527_v46 = vpop.f32.mrf.mxu1 }
0x110e   : > { %v4504_v48 = vpop.f32.mrf.mxu1 }
0x110f   : > { %4554 = vrot.lane.b32.xlu1 %v4198_v26, %s9219_s1  ;;  %4570 = vrot.lane.b32.xlu0 %v4504_v48, %s9220_s30 }
0x1110   : > { %v6530_v17 = vpop.f32.mrf.mxu1 }
0x1112   : > { %v4509_v45 = vpop.f32.mrf.mxu1 }
0x1113   : > { %4534 = vrot.lane.b32.xlu0 %v3882_v50, %s9218_s22  ;;  %4572 = vrot.lane.b32.xlu1 %v4509_v45, %s9220_s30 }
0x1114   : > { %v6533_v57 = vpop.f32.mrf.mxu1 }
0x1116   : > { %v4514_v56 = vpop.f32.mrf.mxu1 }
0x1117   : > { %4536 = vrot.lane.b32.xlu1 %v3887_v2, %s9218_s22  ;;  %4574 = vrot.lane.b32.xlu0 %v4514_v56, %s9220_s30 }
0x1118   : > { %v6536_v8 = vpop.f32.mrf.mxu1 }
0x111a   : > { %v4519_v36 = vpop.f32.mrf.mxu1 }
0x111b   : > { %4556 = vrot.lane.b32.xlu0 %v4203_v27, %s9219_s1  ;;  %4576 = vrot.lane.b32.xlu1 %v4519_v36, %s9220_s30 }
0x111c   : > { %v6539_v1 = vpop.f32.mrf.mxu1 }
0x1128   : > { %v4529_v44 = vpop.permute.xlu1 %4528 }
0x1129   : > { %v4583_v12 = vsel %vm1135_vm10, %v8830_v62, %v4529_v44 }
0x112c   : > { %v4531_v33 = vpop.permute.xlu0 %4530 }
0x112d   : > { %v4584_v10 = vsel %vm1135_vm10, %v8832_v40, %v4531_v33 }
0x1130   : > { %v4533_v38 = vpop.permute.xlu1 %4532 }
0x1131   : > { %v4585_v28 = vsel %vm1135_vm10, %v8834_v59, %v4533_v38 }
0x113c   : > { %v4549_v32 = vpop.permute.xlu0 %4548 }
0x113d   : > { %v4588_v58 = vsel %vm2453_vm13, %v4583_v12, %v4549_v32 }
0x116d   : > { %v4551_v39 = vpop.permute.xlu1 %4550 }
0x116e   : > { %v4589_v37 = vsel %vm2453_vm13, %v4584_v10, %v4551_v39 }
0x1171   : > { %v4553_v23 = vpop.permute.xlu0 %4552 }
0x1172   : > { %v4590_v34 = vsel %vm2453_vm13, %v4585_v28, %v4553_v23 }
0x117d   : > { %v4569_v15 = vpop.permute.xlu1 %4568 }
0x117e   : > { %v4593_v54 = vsel %vm2459_vm14, %v4588_v58, %v4569_v15 }
0x117f   : > { %6549 = vmatmul.mubr.msk.f32.vlgmr.msra.gmra.mxu0 %vm682_vm4, %v4593_v54 }
0x1180   : > { %6551 = vmatprep.mubr.msk.f32.mxu0 %vm6931_vm0, %v6930_v0 }
0x1181   : > { %v4571_v41 = vpop.permute.xlu0 %4570  ;;  %v4555_v25 = vpop.permute.xlu1 %4554 }
0x1182   : > { %v4594_v62 = vsel %vm2459_vm14, %v4589_v37, %v4571_v41 }
0x1183   : > { %6552 = vmatmul.mubr.msk.f32.gmra.mxu0 %vm682_vm4, %v4594_v62 }
0x1184   : > { %6554 = vmatprep.mubr.msk.f32.mxu0 %vm6931_vm0, %v6930_v0 }
0x1185   : > { %v4535_v40 = vpop.permute.xlu0 %4534  ;;  %v4573_v21 = vpop.permute.xlu1 %4572 }
0x1186   : > { %v4586_v3 = vsel %vm1135_vm10, %v8836_v61, %v4535_v40  ;;  %v4595_v51 = vsel %vm2459_vm14, %v4590_v34, %v4573_v21 }
0x1187   : > { %6555 = vmatmul.mubr.msk.f32.gmra.mxu0 %vm682_vm4, %v4595_v51  ;;  %v4591_v59 = vsel %vm2453_vm13, %v4586_v3, %v4555_v25 }
0x1188   : > { %6557 = vmatprep.mubr.msk.f32.mxu0 %vm6931_vm0, %v6930_v0 }
0x1189   : > { %v4575_v53 = vpop.permute.xlu0 %4574  ;;  %v4537_v20 = vpop.permute.xlu1 %4536 }
0x118a   : > { %v4596_v13 = vsel %vm2459_vm14, %v4591_v59, %v4575_v53  ;;  %v4587_v61 = vsel %vm1135_vm10, %v8838_v55, %v4537_v20 }
0x118b   : > { %6558 = vmatmul.mubr.msk.f32.gmra.mxu0 %vm682_vm4, %v4596_v13 }
0x118c   : > { %6560 = vmatprep.mubr.msk.f32.mxu0 %vm6931_vm0, %v6930_v0 }
0x118d   : > { %v4557_v6 = vpop.permute.xlu0 %4556  ;;  %v4577_v11 = vpop.permute.xlu1 %4576 }
0x118e   : > { %v4592_v19 = vsel %vm2453_vm13, %v4587_v61, %v4557_v6 }
0x118f   : > { %v4597_v50 = vsel %vm2459_vm14, %v4592_v19, %v4577_v11 }
0x1190   : > { %6561 = vmatmul.mubr.msk.f32.gmra.mxu0 %vm682_vm4, %v4597_v50 }
0x1191   : > { %6602 = vmatprep.mubr.msk.f32.mxu0 %vm6931_vm0, %v6930_v0 }
0x123f   : > { %v4692_v2 = vpop.f32.mrf.mxu0 }
0x1240   : > { %v4693_v9 = vadd.f32 %v5667_v47, %v4692_v2 }
0x1241   : > { %v6550_v29 = vpop.f32.mrf.mxu0 }
0x1242   : > { %v4721_v5 = vrot.slane %v4693_v9, 6 }
0x1243   : > { %v4697_v55 = vpop.f32.mrf.mxu0 }
0x1244   : > { %v4736_v35 = vadd.f32 %v4721_v5, %v8220_v18  ;;  %v4698_v24 = vadd.f32 %v5667_v47, %v4697_v55  ;;  %v5679_v55 = vld [vmem:[%s9174_s12 + $0x30] sm:$0xff] }
0x1245   : > { %v6553_v49 = vpop.f32.mrf.mxu0 }
0x1246   : > { %v4722_v4 = vrot.slane %v4698_v24, 6  ;;  %v4746_v43 = vsel %vm887_vm7, %v4736_v35, 0.0  ;;  %v5677_v24 = vld [vmem:[%s9174_s12 + $0x20] sm:$0xff] }
0x1247   : > { %4747 = vadd.xlane.f32.xlu0 %v4746_v43  ;;  %v4702_v22 = vpop.f32.mrf.mxu0 }
0x1248   : > { %v4703_v30 = vadd.f32 %v5667_v47, %v4702_v22  ;;  %v4723_v26 = vsel %vm863_vm8, %v4721_v5, %v4722_v4  ;;  %v5680_v5 = vld [vmem:[%s9174_s12 + $0x38] sm:$0xff] }
0x1249   : > { %v6556_v42 = vpop.f32.mrf.mxu0  ;;  %v4737_v27 = vadd.f32 %v4723_v26, %v8222_v16  ;;  %6564 = vmatpush3.msra.mxu1 %v5680_v5  ;;  %v5691_v5 = vld [vmem:[%s9176_s14 + $0x58] sm:$0xff] }
0x124a   : > { %v4724_v63 = vrot.slane %v4703_v30, 6  ;;  %6565 = vmatprep.subr.mxu1 %v6930_v0 }
0x124b   : > { %v4707_v52 = vpop.f32.mrf.mxu0  ;;  %v4749_v46 = vsel %vm682_vm4, %v4737_v27, 0.0  ;;  %6566 = vmatpush3.msra.mxu1 %v5679_v55  ;;  %v5690_v55 = vld [vmem:[%s9176_s14 + $0x50] sm:$0xff] }
0x124c   : > { %v4708_v48 = vadd.f32 %v5667_v47, %v4707_v52  ;;  %4750 = vadd.xlane.f32.xlu1 %v4749_v46  ;;  %v4725_v18 = vsel %vm863_vm8, %v4722_v4, %v4724_v63  ;;  %6567 = vmatprep.subr.mxu1 %v6930_v0 }
0x124d   : > { %v6559_v17 = vpop.f32.mrf.mxu0  ;;  %v4738_v45 = vadd.f32 %v4725_v18, %v8228_v31 }
0x124e   : > { %v4726_v57 = vrot.slane %v4708_v48, 6 }
0x124f   : > { %v4752_v56 = vsel %vm682_vm4, %v4738_v45, 0.0 }
0x1250   : > { %4753 = vadd.xlane.f32.xlu0 %v4752_v56  ;;  %v4712_v8 = vpop.f32.mrf.mxu0  ;;  %v4727_v36 = vsel %vm863_vm8, %v4724_v63, %v4726_v57  ;;  %v5675_v56 = vld [vmem:[%s9172_s10 + $0x1] ss:$0 sm:$0xff] }
0x1251   : > { %v4713_v1 = vadd.f32 %v5667_v47, %v4712_v8  ;;  %v4739_v16 = vadd.f32 %v4727_v36, %v8237_v14 }
0x1252   : > { %v6562_v44 = vpop.f32.mrf.mxu0 }
0x1253   : > { %v4728_v33 = vrot.slane %v4713_v1, 6  ;;  %v4755_v38 = vsel %vm682_vm4, %v4739_v16, 0.0 }
0x1254   : > { %4756 = vadd.xlane.f32.xlu0 %v4755_v38  ;;  %v5676_v38 = vld [vmem:[%s9173_s11 + $0x1] ss:$0 sm:$0xff] }
0x1255   : > { %v4741_v32 = vadd.f32 %v4728_v33, %v8248_v60  ;;  %v4729_v39 = vsel %vm863_vm8, %v4726_v57, %v4728_v33 }
0x1256   : > { %v4740_v31 = vadd.f32 %v4729_v39, %v8246_v7 }
0x1257   : > { %v4761_v12 = vsel %vm903_vm9, %v4741_v32, 0.0 }
0x1258   : > { %4762 = vadd.xlane.f32.xlu0 %v4761_v12  ;;  %v4758_v58 = vsel %vm682_vm4, %v4740_v31, 0.0 }
0x1259   : > { %4759 = vadd.xlane.f32.xlu1 %v4758_v58 }
0x12d0   : > { %v4748_v23 = vpop.xlane.xlu0 %4747 }
0x12d1   : > { %v4764_v15 = vmul.f32 0.03125, %v4748_v23 }
0x12d3   : > { %v8925_v14 = vsub.f32 %v4736_v35, %v4764_v15  ;;  %v5678_v35 = vld [vmem:[%s9174_s12 + $0x28] sm:$0xff] }
0x12d4   : > { %6568 = vmatpush3.msra.mxu1 %v5678_v35  ;;  %v5689_v35 = vld [vmem:[%s9176_s14 + $0x48] sm:$0xff] }
0x12d5   : > { %v4751_v54 = vpop.xlane.xlu1 %4750  ;;  %v4776_v10 = vmul.f32 %v8925_v14, %v8925_v14  ;;  %6569 = vmatprep.subr.mxu1 %v6930_v0 }
0x12d6   : > { %v4765_v37 = vmul.f32 0.03125, %v4751_v54  ;;  %6570 = vmatpush3.msra.mxu1 %v5677_v24  ;;  %v5688_v24 = vld [vmem:[%s9176_s14 + $0x40] sm:$0xff] }
0x12d7   : > { %v4782_v60 = vsel %vm887_vm7, %v4776_v10, 0.0 }
0x12d8   : > { %v8930_v41 = vsub.f32 %v4737_v27, %v4765_v37  ;;  %4783 = vadd.xlane.f32.xlu1 %v4782_v60 }
0x12d9   : > { %v4754_v7 = vpop.xlane.xlu0 %4753 }
0x12da   : > { %v4766_v25 = vmul.f32 0.03125, %v4754_v7  ;;  %v4777_v62 = vmul.f32 %v8930_v41, %v8930_v41 }
0x12dc   : > { %v8934_v28 = vsub.f32 %v4738_v45, %v4766_v25  ;;  %v4785_v34 = vsel %vm682_vm4, %v4777_v62, 0.0 }
0x12dd   : > { %v4757_v40 = vpop.xlane.xlu0 %4756  ;;  %4786 = vadd.xlane.f32.xlu0 %v4785_v34 }
0x12de   : > { %v4767_v21 = vmul.f32 0.03125, %v4757_v40  ;;  %v4778_v3 = vmul.f32 %v8934_v28, %v8934_v28 }
0x12e0   : > { %v8939_v51 = vsub.f32 %v4739_v16, %v4767_v21  ;;  %v4788_v53 = vsel %vm682_vm4, %v4778_v3, 0.0 }
0x12e1   : > { %v4763_v59 = vpop.xlane.xlu0 %4762  ;;  %4789 = vadd.xlane.f32.xlu1 %v4788_v53 }
0x12e2   : > { %v4769_v20 = vmul.f32 0.03125, %v4763_v59  ;;  %v4760_v13 = vpop.xlane.xlu1 %4759  ;;  %v4779_v61 = vmul.f32 %v8939_v51, %v8939_v51 }
0x12e3   : > { %v4768_v6 = vmul.f32 0.03125, %v4760_v13 }
0x12e4   : > { %v8944_v11 = vsub.f32 %v4741_v32, %v4769_v20  ;;  %v4791_v19 = vsel %vm682_vm4, %v4779_v61, 0.0 }
0x12e5   : > { %v8947_v50 = vsub.f32 %v4740_v31, %v4768_v6  ;;  %4792 = vadd.xlane.f32.xlu0 %v4791_v19 }
0x12e6   : > { %v4781_v47 = vmul.f32 %v8944_v11, %v8944_v11 }
0x12e7   : > { %v4780_v2 = vmul.f32 %v8947_v50, %v8947_v50 }
0x12e8   : > { %v4797_v9 = vsel %vm903_vm9, %v4781_v47, 0.0  ;;  %v5695_v47 = vld [vmem:[%s9176_s14 + $0x78] sm:$0xff] }
0x12e9   : > { %4798 = vadd.xlane.f32.xlu0 %v4797_v9  ;;  %v4794_v29 = vsel %vm682_vm4, %v4780_v2, 0.0  ;;  %6587 = vmatpush3.msra.mxu0 %v5695_v47  ;;  %v5694_v2 = vld [vmem:[%s9176_s14 + $0x70] sm:$0xff]  ;;  %v5693_v9 = vld [vmem:[%s9176_s14 + $0x68] sm:$0xff] }
0x12ea   : > { %4795 = vadd.xlane.f32.xlu1 %v4794_v29  ;;  %6588 = vmatprep.subr.mxu0 %v6930_v0  ;;  %v5692_v29 = vld [vmem:[%s9176_s14 + $0x60] sm:$0xff] }
0x12eb   : > { %6589 = vmatpush3.msra.mxu0 %v5694_v2 }
0x12ec   : > { %6590 = vmatprep.subr.mxu0 %v6930_v0 }
0x12ed   : > { %6591 = vmatpush3.msra.mxu0 %v5693_v9 }
0x12ee   : > { %6592 = vmatprep.subr.mxu0 %v6930_v0 }
0x12ef   : > { %6593 = vmatpush3.msra.mxu0 %v5692_v29 }
0x12f0   : > { %6594 = vmatprep.subr.mxu0 %v6930_v0 }
0x12f1   : > { %6595 = vmatpush3.msra.mxu0 %v5691_v5 }
0x12f2   : > { %6596 = vmatprep.subr.mxu0 %v6930_v0 }
0x12f3   : > { %6597 = vmatpush3.msra.mxu0 %v5690_v55 }
0x12f4   : > { %6598 = vmatprep.subr.mxu0 %v6930_v0 }
0x12f5   : > { %6599 = vmatpush3.msra.mxu0 %v5689_v35 }
0x12f6   : > { %6600 = vmatprep.subr.mxu0 %v6930_v0 }
0x12f7   : > { %6601 = vmatpush3.msra.mxu0 %v5688_v24 }
0x1361   : > { %v4784_v49 = vpop.xlane.xlu1 %4783 }
0x1362   : > { %v4800_v4 = vmul.f32 0.03125, %v4784_v49  ;;  %v5682_v49 = vld [vmem:[%s9175_s13 + $0x1] ss:$0 sm:$0xff] }
0x1364   : > { %v4806_v43 = vadd.f32 1e-05, %v4800_v4 }
0x1366   : > { %6885 = vrsqrt.f32 %v4806_v43  ;;  %v4787_v22 = vpop.xlane.xlu0 %4786 }
0x1367   : > { %v4801_v30 = vmul.f32 0.03125, %v4787_v22 }
0x1369   : > { %v4807_v26 = vadd.f32 1e-05, %v4801_v30 }
0x136a   : > { %v4790_v42 = vpop.xlane.xlu1 %4789 }
0x136b   : > { %6887 = vrsqrt.f32 %v4807_v26  ;;  %v4802_v27 = vmul.f32 0.03125, %v4790_v42 }
0x136d   : > { %v4808_v63 = vadd.f32 1e-05, %v4802_v27 }
0x136e   : > { %v4793_v52 = vpop.xlane.xlu0 %4792 }
0x136f   : > { %6889 = vrsqrt.f32 %v4808_v63  ;;  %v4803_v46 = vmul.f32 0.03125, %v4793_v52 }
0x1371   : > { %v4809_v48 = vadd.f32 1e-05, %v4803_v46 }
0x1372   : > { %v4799_v18 = vpop.xlane.xlu0 %4798 }
0x1373   : > { %v6886_v17 = vpop.eup %6885  ;;  %6891 = vrsqrt.f32 %v4809_v48  ;;  %v4805_v45 = vmul.f32 0.03125, %v4799_v18  ;;  %v4796_v57 = vpop.xlane.xlu1 %4795 }
0x1374   : > { %v4818_v8 = vmul.f32 %v6886_v17, %v8925_v14  ;;  %v4804_v36 = vmul.f32 0.03125, %v4796_v57 }
0x1375   : > { %v4811_v1 = vadd.f32 1e-05, %v4805_v45 }
0x1376   : > { %v4810_v16 = vadd.f32 1e-05, %v4804_v36  ;;  %v4830_v44 = vmul.f32 %v5675_v56, %v4818_v8 }
0x1377   : > { %6893 = vrsqrt.f32 %v4811_v1 }
0x1378   : > { %v6888_v33 = vpop.eup %6887  ;;  %6895 = vrsqrt.f32 %v4810_v16  ;;  %v8978_v31 = vadd.f32 %v5676_v38, %v4830_v44 }
0x1379   : > { %v4819_v32 = vmul.f32 %v6888_v33, %v8930_v41 }
0x137a   : > { %v4867_v15 = vrot.slane %v8978_v31, 2 }
0x137b   : > { %v4831_v39 = vmul.f32 %v5675_v56, %v4819_v32 }
0x137c   : > { %v6890_v12 = vpop.eup %6889 }
0x137d   : > { %v4820_v58 = vmul.f32 %v6890_v12, %v8934_v28  ;;  %v8981_v23 = vadd.f32 %v5676_v38, %v4831_v39 }
0x137f   : > { %v4868_v14 = vrot.slane %v8981_v23, 2  ;;  %v4832_v54 = vmul.f32 %v5675_v56, %v4820_v58 }
0x1380   : > { %v6892_v10 = vpop.eup %6891 }
0x1381   : > { %v4821_v37 = vmul.f32 %v6892_v10, %v8939_v51  ;;  %v4869_v60 = vsel %vm628_vm2, %v4867_v15, %v4868_v14  ;;  %v8987_v7 = vadd.f32 %v5676_v38, %v4832_v54 }
0x1382   : > { %6572 = vmatmul.mubr.msk.f32.vlgmr.msra.gmra.mxu1 %vm682_vm4, %v4869_v60 }
0x1383   : > { %6574 = vmatprep.mubr.msk.f32.mxu1 %vm6931_vm0, %v6930_v0  ;;  %v4870_v41 = vrot.slane %v8987_v7, 2  ;;  %v4833_v25 = vmul.f32 %v5675_v56, %v4821_v37 }
0x1384   : > { %v6894_v62 = vpop.eup %6893 }
0x1385   : > { %v6896_v28 = vpop.eup %6895  ;;  %v4823_v34 = vmul.f32 %v6894_v62, %v8944_v11  ;;  %v4871_v40 = vsel %vm628_vm2, %v4868_v14, %v4870_v41  ;;  %v8995_v21 = vadd.f32 %v5676_v38, %v4833_v25 }
0x1386   : > { %v4822_v3 = vmul.f32 %v6896_v28, %v8947_v50  ;;  %6575 = vmatmul.mubr.msk.f32.gmra.mxu1 %vm682_vm4, %v4871_v40 }
0x1387   : > { %6577 = vmatprep.mubr.msk.f32.mxu1 %vm6931_vm0, %v6930_v0  ;;  %v4872_v51 = vrot.slane %v8995_v21, 2  ;;  %v4835_v53 = vmul.f32 %v5675_v56, %v4823_v34 }
0x1388   : > { %v4834_v59 = vmul.f32 %v5675_v56, %v4822_v3 }
0x1389   : > { %v4873_v20 = vsel %vm628_vm2, %v4870_v41, %v4872_v51  ;;  %v9006_v61 = vadd.f32 %v5676_v38, %v4835_v53 }
0x138a   : > { %6578 = vmatmul.mubr.msk.f32.gmra.mxu1 %vm682_vm4, %v4873_v20  ;;  %v9004_v13 = vadd.f32 %v5676_v38, %v4834_v59 }
0x138b   : > { %6580 = vmatprep.mubr.msk.f32.mxu1 %vm6931_vm0, %v6930_v0  ;;  %v4876_v19 = vrot.slane %v9006_v61, 2 }
0x138c   : > { %v4874_v6 = vrot.slane %v9004_v13, 2 }
0x138e   : > { %v4875_v11 = vsel %vm628_vm2, %v4872_v51, %v4874_v6  ;;  %v4877_v50 = vsel %vm628_vm2, %v4874_v6, %v4876_v19 }
0x138f   : > { %6581 = vmatmul.mubr.msk.f32.gmra.mxu1 %vm682_vm4, %v4875_v11 }
0x1390   : > { %6583 = vmatprep.mubr.msk.f32.mxu1 %vm6931_vm0, %v6930_v0 }
0x1393   : > { %6584 = vmatmul.mubr.msk.f32.gmra.mxu1 %vm682_vm4, %v4877_v50 }
0x1442   : > { %v4954_v4 = vpop.f32.mrf.mxu1 }
0x1443   : > { %v4955_v43 = vadd.f32 %v5682_v49, %v4954_v4 }
0x1444   : > { %v6573_v22 = vpop.f32.mrf.mxu1 }
0x1445   : > { %v4983_v30 = vmul.f32 0.044715, %v4955_v43  ;;  %v4978_v51 = vmul.f32 0.5, %v4955_v43 }
0x1446   : > { %v4959_v26 = vpop.f32.mrf.mxu1 }
0x1447   : > { %v4988_v42 = vmul.f32 %v4983_v30, %v4955_v43  ;;  %v4960_v27 = vadd.f32 %v5682_v49, %v4959_v26  ;;  %v5697_v30 = vld [vmem:[%s9177_s15 + $0x1] ss:$0 sm:$0xff] }
0x1448   : > { %v6576_v63 = vpop.f32.mrf.mxu1 }
0x1449   : > { %v4993_v52 = vmul.f32 %v4988_v42, %v4955_v43  ;;  %v4984_v46 = vmul.f32 0.044715, %v4960_v27  ;;  %v4979_v11 = vmul.f32 0.5, %v4960_v27 }
0x144a   : > { %v4964_v48 = vpop.f32.mrf.mxu1 }
0x144b   : > { %v4998_v18 = vadd.f32 %v4993_v52, %v4955_v43  ;;  %v4989_v17 = vmul.f32 %v4984_v46, %v4960_v27  ;;  %v4965_v45 = vadd.f32 %v5682_v49, %v4964_v48 }
0x144c   : > { %v6579_v57 = vpop.f32.mrf.mxu1 }
0x144d   : > { %v5003_v56 = vmul.f32 0.7978846, %v4998_v18  ;;  %v4994_v8 = vmul.f32 %v4989_v17, %v4960_v27  ;;  %v4985_v36 = vmul.f32 0.044715, %v4965_v45  ;;  %v4980_v2 = vmul.f32 0.5, %v4965_v45 }
0x144f   : > { %6897 = vtanh.f32 %v5003_v56  ;;  %v4999_v1 = vadd.f32 %v4994_v8, %v4960_v27  ;;  %v4990_v16 = vmul.f32 %v4985_v36, %v4965_v45  ;;  %v4969_v44 = vpop.f32.mrf.mxu1 }
0x1450   : > { %v4970_v33 = vadd.f32 %v5682_v49, %v4969_v44 }
0x1451   : > { %v5004_v38 = vmul.f32 0.7978846, %v4999_v1  ;;  %v4995_v32 = vmul.f32 %v4990_v16, %v4965_v45  ;;  %v6582_v39 = vpop.f32.mrf.mxu1 }
0x1452   : > { %v4986_v12 = vmul.f32 0.044715, %v4970_v33  ;;  %v4981_v55 = vmul.f32 0.5, %v4970_v33 }
0x1453   : > { %6899 = vtanh.f32 %v5004_v38  ;;  %v5000_v58 = vadd.f32 %v4995_v32, %v4965_v45  ;;  %v4974_v15 = vpop.f32.mrf.mxu1 }
0x1454   : > { %v4991_v14 = vmul.f32 %v4986_v12, %v4970_v33  ;;  %v4975_v54 = vadd.f32 %v5682_v49, %v4974_v15 }
0x1455   : > { %v5005_v10 = vmul.f32 0.7978846, %v5000_v58  ;;  %v6585_v37 = vpop.f32.mrf.mxu1 }
0x1456   : > { %v4996_v60 = vmul.f32 %v4991_v14, %v4970_v33  ;;  %v4987_v41 = vmul.f32 0.044715, %v4975_v54  ;;  %v4982_v4 = vmul.f32 0.5, %v4975_v54 }
0x1457   : > { %6901 = vtanh.f32 %v5005_v10 }
0x1458   : > { %v5001_v25 = vadd.f32 %v4996_v60, %v4970_v33  ;;  %v4992_v62 = vmul.f32 %v4987_v41, %v4975_v54 }
0x145a   : > { %v5006_v28 = vmul.f32 0.7978846, %v5001_v25  ;;  %v4997_v34 = vmul.f32 %v4992_v62, %v4975_v54 }
0x145c   : > { %v6898_v40 = vpop.eup %6897  ;;  %6903 = vtanh.f32 %v5006_v28  ;;  %v5002_v3 = vadd.f32 %v4997_v34, %v4975_v54 }
0x145d   : > { %v5013_v53 = vadd.f32 1.0, %v6898_v40 }
0x145e   : > { %v5007_v59 = vmul.f32 0.7978846, %v5002_v3 }
0x145f   : > { %v5018_v20 = vmul.f32 %v5013_v53, %v4978_v51 }
0x1460   : > { %v6900_v6 = vpop.eup %6899  ;;  %6905 = vtanh.f32 %v5007_v59 }
0x1461   : > { %6603 = vmatmul.mubr.msk.f32.vlgmr.msra.gmra.mxu0 %vm688_vm5, %v5018_v20  ;;  %v5014_v19 = vadd.f32 1.0, %v6900_v6 }
0x1462   : > { %6605 = vmatprep.mubr.msk.f32.mxu0 %vm6931_vm0, %v6930_v0 }
0x1463   : > { %v5019_v50 = vmul.f32 %v5014_v19, %v4979_v11 }
0x1464   : > { %v6902_v47 = vpop.eup %6901 }
0x1465   : > { %6606 = vmatmul.mubr.msk.f32.gmra.mxu0 %vm688_vm5, %v5019_v50  ;;  %v5015_v9 = vadd.f32 1.0, %v6902_v47 }
0x1466   : > { %6608 = vmatprep.mubr.msk.f32.mxu0 %vm6931_vm0, %v6930_v0 }
0x1467   : > { %v5020_v29 = vmul.f32 %v5015_v9, %v4980_v2 }
0x1469   : > { %v6904_v5 = vpop.eup %6903  ;;  %6609 = vmatmul.mubr.msk.f32.gmra.mxu0 %vm688_vm5, %v5020_v29 }
0x146a   : > { %6611 = vmatprep.mubr.msk.f32.mxu0 %vm6931_vm0, %v6930_v0  ;;  %v5016_v35 = vadd.f32 1.0, %v6904_v5 }
0x146c   : > { %v5021_v24 = vmul.f32 %v5016_v35, %v4981_v55 }
0x146d   : > { %v6906_v49 = vpop.eup %6905 }
0x146e   : > { %6612 = vmatmul.mubr.msk.f32.gmra.mxu0 %vm688_vm5, %v5021_v24  ;;  %v5017_v43 = vadd.f32 1.0, %v6906_v49 }
0x146f   : > { %6614 = vmatprep.mubr.msk.f32.mxu0 %vm6931_vm0, %v6930_v0 }
0x1470   : > { %v5022_v22 = vmul.f32 %v5017_v43, %v4982_v4 }
0x1472   : > { %6615 = vmatmul.mubr.msk.f32.gmra.mxu0 %vm688_vm5, %v5022_v22 }
0x1521   : > { %v5121_v26 = vpop.f32.mrf.mxu0 }
0x1522   : > { %v5122_v42 = vadd.f32 %v5697_v30, %v5121_v26 }
0x1523   : > { %v6604_v27 = vpop.f32.mrf.mxu0 }
0x1524   : > { %v5150_v63 = vrot.slane %v5122_v42, 6 }
0x1525   : > { %v5126_v52 = vpop.f32.mrf.mxu0 }
0x1526   : > { %v5165_v46 = vadd.f32 %v5150_v63, %v8978_v31  ;;  %v5127_v48 = vadd.f32 %v5697_v30, %v5126_v52 }
0x1527   : > { %v6607_v18 = vpop.f32.mrf.mxu0 }
0x1528   : > { %v5151_v17 = vrot.slane %v5127_v48, 6  ;;  %v5175_v45 = vsel %vm887_vm7, %v5165_v46, 0.0 }
0x1529   : > { %5176 = vadd.xlane.f32.xlu1 %v5175_v45  ;;  %v5131_v0 = vpop.f32.mrf.mxu0 }
0x152a   : > { %v5132_v57 = vadd.f32 %v5697_v30, %v5131_v0  ;;  %v5152_v56 = vsel %vm863_vm8, %v5150_v63, %v5151_v17 }
0x152b   : > { %v6610_v8 = vpop.f32.mrf.mxu0  ;;  %v5166_v36 = vadd.f32 %v5152_v56, %v8981_v23 }
0x152c   : > { %v5153_v1 = vrot.slane %v5132_v57, 6 }
0x152d   : > { %v5178_v16 = vsel %vm682_vm4, %v5166_v36, 0.0 }
0x152e   : > { %5179 = vadd.xlane.f32.xlu0 %v5178_v16  ;;  %v5136_v44 = vpop.f32.mrf.mxu0  ;;  %v5154_v31 = vsel %vm863_vm8, %v5151_v17, %v5153_v1 }
0x152f   : > { %v5137_v33 = vadd.f32 %v5697_v30, %v5136_v44  ;;  %v5167_v38 = vadd.f32 %v5154_v31, %v8987_v7  ;;  %v5705_v44 = vld [vmem:[%s9178_s16 + $0x1] ss:$0 sm:$0xff] }
0x1530   : > { %v6613_v32 = vpop.f32.mrf.mxu0 }
0x1531   : > { %v5155_v39 = vrot.slane %v5137_v33, 6  ;;  %v5181_v12 = vsel %vm682_vm4, %v5167_v38, 0.0  ;;  %v5706_v32 = vld [vmem:[%s9179_s17 + $0x1] ss:$0 sm:$0xff] }
0x1532   : > { %5182 = vadd.xlane.f32.xlu1 %v5181_v12  ;;  %v5141_v58 = vpop.f32.mrf.mxu0 }
0x1533   : > { %v5142_v15 = vadd.f32 %v5697_v30, %v5141_v58  ;;  %v5156_v14 = vsel %vm863_vm8, %v5153_v1, %v5155_v39 }
0x1534   : > { %v6616_v23 = vpop.f32.mrf.mxu0  ;;  %v5168_v54 = vadd.f32 %v5156_v14, %v8995_v21 }
0x1535   : > { %v5157_v10 = vrot.slane %v5142_v15, 6 }
0x1536   : > { %v5184_v37 = vsel %vm682_vm4, %v5168_v54, 0.0 }
0x1537   : > { %v5170_v60 = vadd.f32 %v5157_v10, %v9006_v61  ;;  %5185 = vadd.xlane.f32.xlu0 %v5184_v37  ;;  %v5158_v7 = vsel %vm863_vm8, %v5155_v39, %v5157_v10 }
0x1538   : > { %v5169_v41 = vadd.f32 %v5158_v7, %v9004_v13 }
0x1539   : > { %v5190_v25 = vsel %vm903_vm9, %v5170_v60, 0.0 }
0x153a   : > { %v5187_v62 = vsel %vm682_vm4, %v5169_v41, 0.0 }
0x153b   : > { %5191 = vadd.xlane.f32.xlu0 %v5190_v25  ;;  %5188 = vadd.xlane.f32.xlu1 %v5187_v62 }
0x15b2   : > { %v5177_v28 = vpop.xlane.xlu1 %5176 }
0x15b3   : > { %v5193_v34 = vmul.f32 0.03125, %v5177_v28 }
0x15b5   : > { %v5199_v40 = vsub.f32 %v5165_v46, %v5193_v34 }
0x15b7   : > { %v5180_v21 = vpop.xlane.xlu0 %5179  ;;  %v5205_v3 = vmul.f32 %v5199_v40, %v5199_v40 }
0x15b8   : > { %v5194_v51 = vmul.f32 0.03125, %v5180_v21 }
0x15b9   : > { %v5211_v53 = vsel %vm887_vm7, %v5205_v3, 0.0 }
0x15ba   : > { %v5200_v61 = vsub.f32 %v5166_v36, %v5194_v51  ;;  %5212 = vadd.xlane.f32.xlu1 %v5211_v53 }
0x15bb   : > { %v5183_v59 = vpop.xlane.xlu1 %5182 }
0x15bc   : > { %v5195_v20 = vmul.f32 0.03125, %v5183_v59  ;;  %v5206_v6 = vmul.f32 %v5200_v61, %v5200_v61 }
0x15be   : > { %v5201_v13 = vsub.f32 %v5167_v38, %v5195_v20  ;;  %v5214_v11 = vsel %vm682_vm4, %v5206_v6, 0.0 }
0x15bf   : > { %5215 = vadd.xlane.f32.xlu0 %v5214_v11 }
0x15c0   : > { %v5186_v19 = vpop.xlane.xlu0 %5185  ;;  %v5207_v50 = vmul.f32 %v5201_v13, %v5201_v13 }
0x15c1   : > { %v5196_v47 = vmul.f32 0.03125, %v5186_v19 }
0x15c2   : > { %v5217_v2 = vsel %vm682_vm4, %v5207_v50, 0.0 }
0x15c3   : > { %v5202_v9 = vsub.f32 %v5168_v54, %v5196_v47  ;;  %5218 = vadd.xlane.f32.xlu1 %v5217_v2 }
0x15c4   : > { %v5192_v29 = vpop.xlane.xlu0 %5191  ;;  %v5189_v5 = vpop.xlane.xlu1 %5188 }
0x15c5   : > { %v5198_v55 = vmul.f32 0.03125, %v5192_v29  ;;  %v5197_v35 = vmul.f32 0.03125, %v5189_v5  ;;  %v5208_v24 = vmul.f32 %v5202_v9, %v5202_v9 }
0x15c7   : > { %v5204_v49 = vsub.f32 %v5170_v60, %v5198_v55  ;;  %v5203_v4 = vsub.f32 %v5169_v41, %v5197_v35  ;;  %v5220_v43 = vsel %vm682_vm4, %v5208_v24, 0.0 }
0x15c8   : > { %5221 = vadd.xlane.f32.xlu0 %v5220_v43 }
0x15c9   : > { %v5210_v22 = vmul.f32 %v5204_v49, %v5204_v49  ;;  %v5209_v30 = vmul.f32 %v5203_v4, %v5203_v4 }
0x15cb   : > { %v5226_v26 = vsel %vm903_vm9, %v5210_v22, 0.0  ;;  %v5223_v42 = vsel %vm682_vm4, %v5209_v30, 0.0 }
0x15cc   : > { %5227 = vadd.xlane.f32.xlu0 %v5226_v26  ;;  %5224 = vadd.xlane.f32.xlu1 %v5223_v42 }
0x1643   : > { %v5213_v27 = vpop.xlane.xlu1 %5212 }
0x1644   : > { %v5229_v63 = vmul.f32 0.03125, %v5213_v27 }
0x1646   : > { %v5235_v52 = vadd.f32 1e-05, %v5229_v63 }
0x1648   : > { %6907 = vrsqrt.f32 %v5235_v52  ;;  %v5216_v46 = vpop.xlane.xlu0 %5215 }
0x1649   : > { %v5230_v48 = vmul.f32 0.03125, %v5216_v46 }
0x164b   : > { %v5236_v18 = vadd.f32 1e-05, %v5230_v48 }
0x164c   : > { %v5219_v17 = vpop.xlane.xlu1 %5218 }
0x164d   : > { %6909 = vrsqrt.f32 %v5236_v18  ;;  %v5231_v45 = vmul.f32 0.03125, %v5219_v17 }
0x164f   : > { %v5237_v0 = vadd.f32 1e-05, %v5231_v45 }
0x1651   : > { %6911 = vrsqrt.f32 %v5237_v0  ;;  %v5222_v57 = vpop.xlane.xlu0 %5221 }
0x1652   : > { %v5232_v56 = vmul.f32 0.03125, %v5222_v57 }
0x1654   : > { %v5238_v8 = vadd.f32 1e-05, %v5232_v56 }
0x1655   : > { %v6908_v36 = vpop.eup %6907  ;;  %v5228_v1 = vpop.xlane.xlu0 %5227 }
0x1656   : > { %v5225_v16 = vpop.xlane.xlu1 %5224  ;;  %6913 = vrsqrt.f32 %v5238_v8  ;;  %v5234_v31 = vmul.f32 0.03125, %v5228_v1  ;;  %v5247_v38 = vmul.f32 %v6908_v36, %v5199_v40 }
0x1657   : > { %v5233_v33 = vmul.f32 0.03125, %v5225_v16 }
0x1658   : > { %v5240_v39 = vadd.f32 1e-05, %v5234_v31  ;;  %v5259_v58 = vmul.f32 %v5705_v44, %v5247_v38 }
0x1659   : > { %v5239_v12 = vadd.f32 1e-05, %v5233_v33 }
0x165a   : > { %v6910_v15 = vpop.eup %6909  ;;  %6915 = vrsqrt.f32 %v5240_v39  ;;  %v9096_v14 = vadd.f32 %v5706_v32, %v5259_v58 }
0x165b   : > { %6917 = vrsqrt.f32 %v5239_v12  ;;  %v5248_v23 = vmul.f32 %v6910_v15, %v5200_v61 }
0x165c   : > { %v5277_v54 = vsel %vm887_vm7, %v9096_v14, 0.0 }
0x165d   : > { %5278 = vadd.xlane.f32.xlu1 %v5277_v54  ;;  %v5260_v10 = vmul.f32 %v5705_v44, %v5248_v23 }
0x165e   : > { %v6912_v37 = vpop.eup %6911 }
0x165f   : > { %v5272_v60 = vadd.f32 %v5706_v32, %v5260_v10  ;;  %v5249_v7 = vmul.f32 %v6912_v37, %v5201_v13 }
0x1661   : > { %v5280_v41 = vsel %vm682_vm4, %v5272_v60, 0.0  ;;  %v5261_v25 = vmul.f32 %v5705_v44, %v5249_v7 }
0x1662   : > { %5281 = vadd.xlane.f32.xlu0 %v5280_v41 }
0x1663   : > { %v6914_v62 = vpop.eup %6913  ;;  %v5273_v28 = vadd.f32 %v5706_v32, %v5261_v25 }
0x1664   : > { %v5250_v34 = vmul.f32 %v6914_v62, %v5202_v9 }
0x1665   : > { %v5283_v40 = vsel %vm682_vm4, %v5273_v28, 0.0 }
0x1666   : > { %5284 = vadd.xlane.f32.xlu1 %v5283_v40  ;;  %v5262_v21 = vmul.f32 %v5705_v44, %v5250_v34 }
0x1667   : > { %v6916_v3 = vpop.eup %6915 }
0x1668   : > { %v6918_v51 = vpop.eup %6917  ;;  %v5274_v53 = vadd.f32 %v5706_v32, %v5262_v21  ;;  %v5252_v61 = vmul.f32 %v6916_v3, %v5204_v49 }
0x1669   : > { %v5251_v59 = vmul.f32 %v6918_v51, %v5203_v4 }
0x166a   : > { %v5286_v20 = vsel %vm682_vm4, %v5274_v53, 0.0  ;;  %v5264_v6 = vmul.f32 %v5705_v44, %v5252_v61 }
0x166b   : > { %5287 = vadd.xlane.f32.xlu0 %v5286_v20  ;;  %v5263_v13 = vmul.f32 %v5705_v44, %v5251_v59 }
0x166c   : > { %v5276_v11 = vadd.f32 %v5706_v32, %v5264_v6 }
0x166d   : > { %v5275_v19 = vadd.f32 %v5706_v32, %v5263_v13 }
0x166e   : > { %v5292_v50 = vsel %vm903_vm9, %v5276_v11, 0.0 }
0x166f   : > { %5293 = vadd.xlane.f32.xlu0 %v5292_v50  ;;  %v5289_v47 = vsel %vm682_vm4, %v5275_v19, 0.0 }
0x1670   : > { %5290 = vadd.xlane.f32.xlu1 %v5289_v47 }
0x16e6   : > { %v5279_v2 = vpop.xlane.xlu1 %5278 }
0x16e7   : > { %v5295_v35 = vmul.f32 0.03125, %v5279_v2 }
0x16e9   : > { %v5307_v30 = vrot.slane %v5295_v35, 2 }
0x16eb   : > { %v5282_v9 = vpop.xlane.xlu0 %5281 }
0x16ec   : > { %v5296_v55 = vmul.f32 0.03125, %v5282_v9 }
0x16ee   : > { %v5308_v43 = vrot.slane %v5296_v55, 2 }
0x16ef   : > { %v5285_v29 = vpop.xlane.xlu1 %5284 }
0x16f0   : > { %v5297_v5 = vmul.f32 0.03125, %v5285_v29  ;;  %v5309_v52 = vsel %vm628_vm2, %v5307_v30, %v5308_v43 }
0x16f2   : > { %v5310_v24 = vrot.slane %v5297_v5, 2 }
0x16f4   : > { %v5288_v49 = vpop.xlane.xlu0 %5287  ;;  %v5311_v26 = vsel %vm628_vm2, %v5308_v43, %v5310_v24 }
0x16f5   : > { %v5298_v4 = vmul.f32 0.03125, %v5288_v49  ;;  %v5323_v18 = vadd.f32 %v5311_v26, %v5309_v52 }
0x16f7   : > { %v5312_v22 = vrot.slane %v5298_v4, 2 }
0x16f8   : > { %v5294_v42 = vpop.xlane.xlu0 %5293 }
0x16f9   : > { %v5300_v27 = vmul.f32 0.03125, %v5294_v42  ;;  %v5291_v63 = vpop.xlane.xlu1 %5290  ;;  %v5313_v46 = vsel %vm628_vm2, %v5310_v24, %v5312_v22 }
0x16fa   : > { %v5299_v48 = vmul.f32 0.03125, %v5291_v63  ;;  %v5324_v0 = vadd.f32 %v5323_v18, %v5313_v46 }
0x16fb   : > { %v5316_v17 = vrot.slane %v5300_v27, 2 }
0x16fc   : > { %v5314_v45 = vrot.slane %v5299_v48, 2 }
0x16fe   : > { %v5315_v57 = vsel %vm628_vm2, %v5312_v22, %v5314_v45  ;;  %v5317_v56 = vsel %vm628_vm2, %v5314_v45, %v5316_v17 }
0x16ff   : > { %v5325_v8 = vadd.f32 %v5324_v0, %v5315_v57  ;;  %v5326_v36 = vsel %vm602_vm1, %v5317_v56, 0.0 }
0x1701   : > { %v5327_v1 = vadd.f32 %v5326_v36, %v5325_v8 }
0x1703   : > { %v5328_v16 = vrot.slane %v5327_v1, 4 }
0x1705   : > { %v5329_v44 = vadd.f32 %v5328_v16, %v5327_v1 }
0x1707   : > { %v5330_v31 = vrot.slane %v5329_v44, 2 }
0x1709   : > { %v5331_v33 = vadd.f32 %v5330_v31, %v5329_v44 }
0x170b   : > { %v5332_v38 = vrot.slane %v5331_v33, 1 }
0x170d   : > { %v5333_v32 = vadd.f32 %v5332_v38, %v5331_v33 }
0x170f   : > { %v5335_v39 = vmul.f32 0.025641026, %v5333_v32 }
0x1711   : > { %v9111_v12 = vsub.f32 %v5272_v60, %v5335_v39  ;;  %v9114_v58 = vsub.f32 %v9096_v14, %v5335_v39  ;;  %v9116_v15 = vsub.f32 %v5274_v53, %v5335_v39  ;;  %v9118_v23 = vsub.f32 %v5273_v28, %v5335_v39 }
0x1712   : > { %v9124_v37 = vsub.f32 %v5276_v11, %v5335_v39  ;;  %v5340_v7 = vsub.f32 %v5275_v19, %v5335_v39 }
0x1713   : > { %v5343_v54 = vmul.f32 %v9111_v12, %v9111_v12  ;;  %v5342_v10 = vmul.f32 %v9114_v58, %v9114_v58  ;;  %v5345_v14 = vmul.f32 %v9116_v15, %v9116_v15  ;;  %v5344_v25 = vmul.f32 %v9118_v23, %v9118_v23 }
0x1714   : > { %v5347_v34 = vmul.f32 %v9124_v37, %v9124_v37  ;;  %v5346_v40 = vmul.f32 %v5340_v7, %v5340_v7 }
0x1715   : > { %v5351_v41 = vsel %vm682_vm4, %v5343_v54, 0.0  ;;  %v5348_v60 = vsel %vm887_vm7, %v5342_v10, 0.0  ;;  %v5357_v62 = vsel %vm682_vm4, %v5345_v14, 0.0  ;;  %v5354_v28 = vsel %vm682_vm4, %v5344_v25, 0.0 }
0x1716   : > { %5352 = vadd.xlane.f32.xlu0 %v5351_v41  ;;  %5349 = vadd.xlane.f32.xlu1 %v5348_v60  ;;  %v5363_v21 = vsel %vm903_vm9, %v5347_v34, 0.0  ;;  %v5360_v3 = vsel %vm682_vm4, %v5346_v40, 0.0 }
0x171a   : > { %5358 = vadd.xlane.f32.xlu0 %v5357_v62  ;;  %5355 = vadd.xlane.f32.xlu1 %v5354_v28 }
0x171e   : > { %5364 = vadd.xlane.f32.xlu0 %v5363_v21  ;;  %5361 = vadd.xlane.f32.xlu1 %v5360_v3 }
0x179f   : > { %v5353_v51 = vpop.xlane.xlu0 %5352  ;;  %v5350_v53 = vpop.xlane.xlu1 %5349 }
0x17a0   : > { %v5367_v61 = vmul.f32 0.03125, %v5353_v51  ;;  %v5366_v59 = vmul.f32 0.03125, %v5350_v53 }
0x17a2   : > { %v5379_v13 = vrot.slane %v5367_v61, 2  ;;  %v5378_v11 = vrot.slane %v5366_v59, 2 }
0x17a3   : > { %v5359_v20 = vpop.xlane.xlu0 %5358  ;;  %v5356_v6 = vpop.xlane.xlu1 %5355 }
0x17a4   : > { %v5369_v19 = vmul.f32 0.03125, %v5359_v20  ;;  %v5368_v50 = vmul.f32 0.03125, %v5356_v6  ;;  %v5380_v5 = vsel %vm628_vm2, %v5378_v11, %v5379_v13 }
0x17a6   : > { %v5383_v47 = vrot.slane %v5369_v19, 2  ;;  %v5381_v2 = vrot.slane %v5368_v50, 2 }
0x17a7   : > { %v5365_v9 = vpop.xlane.xlu0 %5364  ;;  %v5362_v29 = vpop.xlane.xlu1 %5361 }
0x17a8   : > { %v5382_v55 = vsel %vm628_vm2, %v5379_v13, %v5381_v2  ;;  %v5371_v35 = vmul.f32 0.03125, %v5365_v9  ;;  %v5370_v24 = vmul.f32 0.03125, %v5362_v29  ;;  %v5384_v4 = vsel %vm628_vm2, %v5381_v2, %v5383_v47 }
0x17a9   : > { %v5394_v49 = vadd.f32 %v5382_v55, %v5380_v5 }
0x17aa   : > { %v5387_v43 = vrot.slane %v5371_v35, 2  ;;  %v5385_v22 = vrot.slane %v5370_v24, 2 }
0x17ab   : > { %v5395_v30 = vadd.f32 %v5394_v49, %v5384_v4 }
0x17ac   : > { %v5386_v26 = vsel %vm628_vm2, %v5383_v47, %v5385_v22  ;;  %v5388_v42 = vsel %vm628_vm2, %v5385_v22, %v5387_v43 }
0x17ad   : > { %v5396_v27 = vadd.f32 %v5395_v30, %v5386_v26  ;;  %v5397_v63 = vsel %vm602_vm1, %v5388_v42, 0.0 }
0x17af   : > { %v5398_v52 = vadd.f32 %v5397_v63, %v5396_v27 }
0x17b1   : > { %v5399_v46 = vrot.slane %v5398_v52, 4 }
0x17b3   : > { %v5400_v48 = vadd.f32 %v5399_v46, %v5398_v52 }
0x17b5   : > { %v5401_v18 = vrot.slane %v5400_v48, 2 }
0x17b7   : > { %v5402_v17 = vadd.f32 %v5401_v18, %v5400_v48 }
0x17b9   : > { %v5403_v45 = vrot.slane %v5402_v17, 1 }
0x17bb   : > { %v5404_v0 = vadd.f32 %v5403_v45, %v5402_v17 }
0x17bd   : > { %v5405_v57 = vmul.f32 0.025641026, %v5404_v0 }
0x17bf   : > { %v5406_v56 = vadd.f32 1e-05, %v5405_v57 }
0x17c1   : > { %6919 = vrsqrt.f32 %v5406_v56 }
0x17ce   : > { %v6920_v8 = vpop.eup %6919 }
0x17cf   : > { %v5408_v36 = vmul.f32 %v6920_v8, %v9114_v58  ;;  %v5409_v1 = vmul.f32 %v6920_v8, %v9111_v12  ;;  %v5410_v16 = vmul.f32 %v6920_v8, %v9118_v23  ;;  %v5411_v44 = vmul.f32 %v6920_v8, %v9116_v15 }
0x17d0   : > { %v5412_v31 = vmul.f32 %v6920_v8, %v5340_v7  ;;  %v5413_v33 = vmul.f32 %v6920_v8, %v9124_v37 }
0x17d1   : > { %5414 = vst.msk [vmem:[%s589_s25 - $0x2] sm:$0xfc] %vm887_vm7, %v5408_v36 }
0x17d2   : > { %5415 = vst.msk [vmem:[%s589_s25 + $0x6] sm:$0xff] %vm682_vm4, %v5409_v1  ;;  %5416 = vst.msk [vmem:[%s589_s25 + $0xe] sm:$0xff] %vm682_vm4, %v5410_v16 }
0x17d3   : > { %5417 = vst.msk [vmem:[%s589_s25 + $0x16] sm:$0xff] %vm682_vm4, %v5411_v44  ;;  %5418 = vst.msk [vmem:[%s589_s25 + $0x1e] sm:$0xff] %vm682_vm4, %v5412_v31 }
0x17d4   : > { %5419 = vst.msk [vmem:[%s589_s25 + $0x26] sm:$0x1] %vm903_vm9, %v5413_v33 }
0x17d5 PF: > { %s28_s27 = sadd.s32 1, %s6928_s27  }
0x17d6   : > { %p25_p4 = scmp.ge.s32.totalorder %s28_s27, 4  }
0x17d8   :  { %27 = sbr.rel (!%p25_p4) target bundleno = 4 (0x4), region = 137 }

</bundles_post_ra>
